<compile_context>
chip_gen: v5e
topology: v5e:2x2
jax: 0.10.0
libtpu: 0.0.40
codegen_flags: <defaults>
</compile_context>

<pallas_src>
import jax
import jax.numpy as jnp
import numpy as np
from jax.experimental import pallas as pl
from jax.experimental.pallas import tpu as pltpu

BN_EPS = 1e-5
CK = 128  # channel tile = lane width


def _ceil_to(v, m):
    return ((v + m - 1) // m) * m


# ---------------------------------------------------------------------------
# Kernel 1: tiled per-channel sum / sum-of-squares for batch-norm statistics.
# Grid = (channel_blocks, batch); batch is the reduction axis ("arbitrary",
# resident (1, CK) output accumulators, pl.when init at batch step 0).
# ---------------------------------------------------------------------------
def _bn_stats_kernel(x_ref, sum_ref, ssq_ref):
    @pl.when(pl.program_id(1) == 0)
    def _init():
        sum_ref[...] = jnp.zeros_like(sum_ref)
        ssq_ref[...] = jnp.zeros_like(ssq_ref)

    h, w, ck = x_ref.shape[1], x_ref.shape[2], x_ref.shape[3]
    x = x_ref[0].reshape(h * w, ck)  # (H*W, CK) f32
    sum_ref[...] += jnp.sum(x, axis=0, keepdims=True)
    ssq_ref[...] += jnp.sum(x * x, axis=0, keepdims=True)


def _bn_stats(feat, cin_p):
    n, h, w, _ = feat.shape
    return pl.pallas_call(
        _bn_stats_kernel,
        out_shape=(jax.ShapeDtypeStruct((1, cin_p), jnp.float32),
                   jax.ShapeDtypeStruct((1, cin_p), jnp.float32)),
        grid_spec=pltpu.PrefetchScalarGridSpec(
            num_scalar_prefetch=0,
            grid=(cin_p // CK, n),
            in_specs=[pl.BlockSpec((1, h, w, CK), lambda c, b: (b, 0, 0, c))],
            out_specs=[pl.BlockSpec((1, CK), lambda c, b: (0, c)),
                       pl.BlockSpec((1, CK), lambda c, b: (0, c))],
        ),
        compiler_params=pltpu.CompilerParams(
            dimension_semantics=("parallel", "arbitrary")),
    )(feat)


# ---------------------------------------------------------------------------
# Kernel 2: fused BN(scale/shift) + ReLU + 3x3 conv (padding=1).
# Grid = (batch, Cin_pad/128). Per step: normalize+ReLU one (H, W, 128) channel
# slab in VMEM, scatter it into a halo'd scratch, then run 9 shifted-tap bf16
# matmuls accumulating into an f32 VMEM accumulator. Bias + store on last slab.
# ---------------------------------------------------------------------------
def _bn_relu_conv_kernel(x_ref, scale_ref, shift_ref, w_ref, b_ref, o_ref,
                         acc_ref, pad_ref):
    k = pl.program_id(1)
    h, w_dim, ck = x_ref.shape[1], x_ref.shape[2], x_ref.shape[3]
    coutp = o_ref.shape[3]

    @pl.when(k == 0)
    def _init():
        acc_ref[...] = jnp.zeros_like(acc_ref)
        pad_ref[...] = jnp.zeros_like(pad_ref)  # zero halo border (stays zero)

    # BatchNorm (precomputed batch-stat scale/shift) + ReLU, fused in VMEM, f32.
    x = x_ref[0]                                               # (H, W, CK)
    act = jnp.maximum(x * scale_ref[...] + shift_ref[...], 0.0)
    pad_ref[1:h + 1, 1:w_dim + 1, :] = act                     # interior of halo buf

    # 3x3 conv as 9 shifted-tap matmuls: bf16 MXU inputs, f32 accumulation.
    for t in range(9):
        dh, dw = t // 3, t % 3
        tap = pad_ref[dh:dh + h, dw:dw + w_dim, :].reshape(h * w_dim, ck)
        acc_ref[...] += jnp.dot(tap.astype(jnp.bfloat16), w_ref[t],
                                preferred_element_type=jnp.float32)

    # Finalize on the last Cin slab: add bias, write the lane-dense output slab.
    @pl.when(k == pl.num_programs(1) - 1)
    def _finalize():
        out = acc_ref[...] + b_ref[...]
        o_ref[0] = out.reshape(h, w_dim, coutp).astype(o_ref.dtype)


def _bn_relu_conv(feat, scale, shift, w_p, bias_p, cin_p, cout_p, out_block):
    # TODO(synk): tile H (with halo rows) for large feature maps; currently one
    # full H x W image per grid step, which is fine for small/medium spatial sizes.
    n, h, w, _ = feat.shape
    return pl.pallas_call(
        _bn_relu_conv_kernel,
        out_shape=jax.ShapeDtypeStruct(feat.shape, feat.dtype),
        grid_spec=pltpu.PrefetchScalarGridSpec(
            num_scalar_prefetch=0,
            grid=(n, cin_p // CK),
            in_specs=[
                pl.BlockSpec((1, h, w, CK), lambda b, k: (b, 0, 0, k)),
                pl.BlockSpec((1, CK), lambda b, k: (0, k)),
                pl.BlockSpec((1, CK), lambda b, k: (0, k)),
                pl.BlockSpec((9, CK, cout_p), lambda b, k: (0, k, 0)),
                pl.BlockSpec((1, cout_p), lambda b, k: (0, 0)),
            ],
            out_specs=pl.BlockSpec((1, h, w, cout_p),
                                   lambda b, k: (b, 0, 0, out_block)),
            scratch_shapes=[
                pltpu.VMEM((h * w, cout_p), jnp.float32),     # f32 accumulator
                pltpu.VMEM((h + 2, w + 2, CK), jnp.float32),  # halo'd activation
            ],
        ),
        # Write the new channel slab in place into the dense feature buffer.
        input_output_aliases={0: 0},
        compiler_params=pltpu.CompilerParams(
            dimension_semantics=("parallel", "arbitrary")),
    )(feat, scale, shift, w_p, bias_p)


# ---------------------------------------------------------------------------
# DenseBlock: params + channel-padded param layout + forward
# ---------------------------------------------------------------------------
def init_dense_block(key, num_convs, input_channels, num_channels):
    params = []
    c = input_channels
    for _ in range(num_convs):
        key, kw, kb = jax.random.split(key, 3)
        w = jax.random.normal(kw, (3, 3, c, num_channels), jnp.float32) * 0.1
        b = jax.random.normal(kb, (num_channels,), jnp.float32) * 0.1
        gamma = jnp.ones((c,), jnp.float32)   # BatchNorm2d default init
        beta = jnp.zeros((c,), jnp.float32)
        params.append((gamma, beta, w, b))
        c += num_channels
    return params


def _pad_layer_params(params, c0, nc, c0_p, cout_p):
    """Scatter real per-layer params into the 128-padded channel layout.

    Padded channel layout: [input slab 0..c0_p) holds the block input, then one
    cout_p-wide slab per conv output. Padded positions get zero weights/gamma,
    so they contribute exactly zero everywhere.
    """
    padded = []
    for l, (gamma, beta, w, b) in enumerate(params):
        cin = c0 + l * nc
        cin_p = c0_p + l * cout_p
        w9 = w.reshape(9, cin, nc)                      # (kh*3+kw, cin, nc)
        w_p = jnp.zeros((9, cin_p, cout_p), jnp.float32)
        g_p = jnp.zeros((cin_p,), jnp.float32)
        bt_p = jnp.zeros((cin_p,), jnp.float32)
        # slab 0: the block input channels
        w_p = w_p.at[:, :c0, :nc].set(w9[:, :c0, :])
        g_p = g_p.at[:c0].set(gamma[:c0])
        bt_p = bt_p.at[:c0].set(beta[:c0])
        # slabs 1..l: previous conv outputs
        for j in range(l):
            rs = c0 + j * nc
            ps = c0_p + j * cout_p
            w_p = w_p.at[:, ps:ps + nc, :nc].set(w9[:, rs:rs + nc, :])
            g_p = g_p.at[ps:ps + nc].set(gamma[rs:rs + nc])
            bt_p = bt_p.at[ps:ps + nc].set(beta[rs:rs + nc])
        bias_p = jnp.zeros((1, cout_p), jnp.float32).at[0, :nc].set(b)
        padded.append((g_p.reshape(1, cin_p), bt_p.reshape(1, cin_p),
                       w_p.astype(jnp.bfloat16), bias_p))
    return padded


def dense_block_forward(params, x_nchw):
    num_convs = len(params)
    nc = params[0][3].shape[0]          # conv output channels (growth rate)
    c0 = params[0][0].shape[0]          # block input channels

    x = jnp.transpose(x_nchw, (0, 2, 3, 1)).astype(jnp.float32)   # NCHW -> NHWC
    n, h, w, _ = x.shape
    m = n * h * w

    cout_p = _ceil_to(nc, CK)
    c0_p = _ceil_to(c0, cout_p)          # keep every slab cout_p-aligned
    ctot_p = c0_p + num_convs * cout_p

    # Preallocated channel-padded dense feature buffer; every layer appends its
    # output slab in place (padded channels stay exactly zero).
    feat = jnp.zeros((n, h, w, ctot_p), jnp.float32)
    feat = feat.at[:, :, :, :c0].set(x)

    padded = _pad_layer_params(params, c0, nc, c0_p, cout_p)
    for l, (g_p, bt_p, w_p, bias_p) in enumerate(padded):
        cin_p = c0_p + l * cout_p
        # (a) tiled batch-stat reduction (sum / sumsq) over the active channels
        s, ss = _bn_stats(feat, cin_p)
        mean = s * (1.0 / m)
        var = jnp.maximum(ss * (1.0 / m) - mean * mean, 0.0)   # biased batch var
        inv = jax.lax.rsqrt(var + BN_EPS)
        scale = g_p * inv                    # gamma / sqrt(var + eps), (1, cin_p)
        shift = bt_p - mean * scale
        # (b) fused normalize + ReLU + 3x3 conv, written into its slab in place
        feat = _bn_relu_conv(feat, scale, shift, w_p, bias_p,
                             cin_p, cout_p, cin_p // cout_p)

    # Gather the real (unpadded) channels back out and return NCHW.
    pieces = [feat[:, :, :, :c0]]
    for l in range(num_convs):
        st = c0_p + l * cout_p
        pieces.append(feat[:, :, :, st:st + nc])
    y = jnp.concatenate(pieces, axis=-1)
    return jnp.transpose(y, (0, 3, 1, 2))


# ---------------------------------------------------------------------------
# Pure-JAX reference (NCHW, mirrors the PyTorch forward) for a sanity check
# ---------------------------------------------------------------------------
def reference_forward(params, x_nchw):
    x = x_nchw
    for gamma, beta, w, b in params:
        mean = jnp.mean(x, axis=(0, 2, 3), keepdims=True)
        var = jnp.mean((x - mean) ** 2, axis=(0, 2, 3), keepdims=True)
        a = (x - mean) / jnp.sqrt(var + BN_EPS)
        a = a * gamma.reshape(1, -1, 1, 1) + beta.reshape(1, -1, 1, 1)
        a = jnp.maximum(a, 0.0)
        w_oihw = jnp.transpose(w, (3, 2, 0, 1))  # (Cout, Cin, KH, KW)
        y = jax.lax.conv_general_dilated(
            a, w_oihw, window_strides=(1, 1), padding=((1, 1), (1, 1)),
            dimension_numbers=("NCHW", "OIHW", "NCHW"))
        y = y + b.reshape(1, -1, 1, 1)
        x = jnp.concatenate([x, y], axis=1)
    return x


if __name__ == "__main__":
    num_convs, input_channels, num_channels = 2, 4, 4
    N, H, W = 2, 16, 16

    key = jax.random.PRNGKey(0)
    k_x, k_p = jax.random.split(key)
    x = jax.random.normal(k_x, (N, input_channels, H, W), jnp.float32)
    params = init_dense_block(k_p, num_convs, input_channels, num_channels)

    fwd = jax.jit(dense_block_forward)
    out = jax.block_until_ready(fwd(params, x))

    expected_channels = input_channels + num_convs * num_channels
    assert out.shape == (N, expected_channels, H, W), out.shape

    ref = reference_forward(params, x)
    # bf16 MXU inputs (f32 accumulation) vs an all-f32 reference -> relaxed tol.
    np.testing.assert_allclose(np.asarray(out), np.asarray(ref), rtol=2e-2, atol=2e-2)

    print("KERNEL_OK")
</pallas_src>

<mosaic_0001>
module attributes {stable_mosaic.version = 11 : i64} {
  func.func @_bn_stats_kernel(%arg0: i32, %arg1: i32, %arg2: memref<1x16x16x128xf32, #tpu.memory_space<vmem>>, %arg3: memref<1x128xf32, #tpu.memory_space<vmem>>, %arg4: memref<1x128xf32, #tpu.memory_space<vmem>>) attributes {dimension_semantics = [#tpu.dimension_semantics<parallel>, #tpu.dimension_semantics<arbitrary>], iteration_bounds = array<i64: 1, 2>, scalar_prefetch = 0 : i64, scratch_operands = 0 : i64, tpu.core_type = #tpu.core_type<tc>, window_params = [{transform_indices = @transform_0, window_bounds = array<i64: 1, 16, 16, 128>}, {transform_indices = @transform_1, window_bounds = array<i64: 1, 128>}, {transform_indices = @transform_2, window_bounds = array<i64: 1, 128>}]} {
    %c0_i32 = arith.constant 0 : i32
    %0 = arith.cmpi eq, %arg1, %c0_i32 : i32
    %1 = arith.extui %0 : i1 to i32
    %c0_i32_0 = arith.constant 0 : i32
    %2 = arith.cmpi ne, %1, %c0_i32_0 : i32
    scf.if %2 {
      %cst_13 = arith.constant 0.000000e+00 : f32
      %17 = vector.broadcast %cst_13 : f32 to vector<1x128xf32>
      %c0_14 = arith.constant 0 : index
      %c0_15 = arith.constant 0 : index
      %18 = vector.load %arg3[%c0_14, %c0_15] : memref<1x128xf32, #tpu.memory_space<vmem>>, vector<1x128xf32>
      tpu.vector_store %arg3[%c0_14, %c0_15], %17 {strides = array<i32>} : memref<1x128xf32, #tpu.memory_space<vmem>>, vector<1x128xf32>,
      %cst_16 = arith.constant 0.000000e+00 : f32
      %19 = vector.broadcast %cst_16 : f32 to vector<1x128xf32>
      %c0_17 = arith.constant 0 : index
      %c0_18 = arith.constant 0 : index
      %20 = vector.load %arg4[%c0_17, %c0_18] : memref<1x128xf32, #tpu.memory_space<vmem>>, vector<1x128xf32>
      tpu.vector_store %arg4[%c0_17, %c0_18], %19 {strides = array<i32>} : memref<1x128xf32, #tpu.memory_space<vmem>>, vector<1x128xf32>,
    } else {
    }
    %c0 = arith.constant 0 : index
    %c0_1 = arith.constant 0 : index
    %c0_2 = arith.constant 0 : index
    %c0_3 = arith.constant 0 : index
    %3 = vector.load %arg2[%c0, %c0_1, %c0_2, %c0_3] : memref<1x16x16x128xf32, #tpu.memory_space<vmem>>, vector<1x16x16x128xf32>
    %4 = vector.shape_cast %3 : vector<1x16x16x128xf32> to vector<16x16x128xf32>
    %5 = vector.shape_cast %4 : vector<16x16x128xf32> to vector<256x128xf32>
    %c0_4 = arith.constant 0 : index
    %c0_5 = arith.constant 0 : index
    %6 = vector.load %arg3[%c0_4, %c0_5] : memref<1x128xf32, #tpu.memory_space<vmem>>, vector<1x128xf32>
    %cst = arith.constant dense<0.000000e+00> : vector<128xf32>
    %7 = vector.multi_reduction <add>, %5, %cst [0] : vector<256x128xf32> to vector<128xf32>
    %8 = vector.shape_cast %7 : vector<128xf32> to vector<1x128xf32>
    %9 = arith.addf %6, %8 : vector<1x128xf32>
    %c0_6 = arith.constant 0 : index
    %c0_7 = arith.constant 0 : index
    %10 = vector.load %arg3[%c0_6, %c0_7] : memref<1x128xf32, #tpu.memory_space<vmem>>, vector<1x128xf32>
    tpu.vector_store %arg3[%c0_6, %c0_7], %9 {strides = array<i32>} : memref<1x128xf32, #tpu.memory_space<vmem>>, vector<1x128xf32>,
    %c0_8 = arith.constant 0 : index
    %c0_9 = arith.constant 0 : index
    %11 = vector.load %arg4[%c0_8, %c0_9] : memref<1x128xf32, #tpu.memory_space<vmem>>, vector<1x128xf32>
    %12 = arith.mulf %5, %5 : vector<256x128xf32>
    %cst_10 = arith.constant dense<0.000000e+00> : vector<128xf32>
    %13 = vector.multi_reduction <add>, %12, %cst_10 [0] : vector<256x128xf32> to vector<128xf32>
    %14 = vector.shape_cast %13 : vector<128xf32> to vector<1x128xf32>
    %15 = arith.addf %11, %14 : vector<1x128xf32>
    %c0_11 = arith.constant 0 : index
    %c0_12 = arith.constant 0 : index
    %16 = vector.load %arg4[%c0_11, %c0_12] : memref<1x128xf32, #tpu.memory_space<vmem>>, vector<1x128xf32>
    tpu.vector_store %arg4[%c0_11, %c0_12], %15 {strides = array<i32>} : memref<1x128xf32, #tpu.memory_space<vmem>>, vector<1x128xf32>,
    return
  }
  func.func @transform_0(%arg0: i32, %arg1: i32) -> (i32, i32, i32, i32) {
    %c0_i32 = arith.constant 0 : i32
    %c0_i32_0 = arith.constant 0 : i32
    %c0_i32_1 = arith.constant 0 : i32
    return %arg1, %c0_i32, %c0_i32_0, %arg0 : i32, i32, i32, i32
  }
  func.func @transform_1(%arg0: i32, %arg1: i32) -> (i32, i32) {
    %c0_i32 = arith.constant 0 : i32
    %c0_i32_0 = arith.constant 0 : i32
    return %c0_i32, %arg0 : i32, i32
  }
  func.func @transform_2(%arg0: i32, %arg1: i32) -> (i32, i32) {
    %c0_i32 = arith.constant 0 : i32
    %c0_i32_0 = arith.constant 0 : i32
    return %c0_i32, %arg0 : i32, i32
  }
}

module attributes {stable_mosaic.version = 11 : i64} {
  func.func @_bn_relu_conv_kernel(%arg0: i32, %arg1: i32, %arg2: memref<1x16x16x128xf32, #tpu.memory_space<vmem>>, %arg3: memref<1x128xf32, #tpu.memory_space<vmem>>, %arg4: memref<1x128xf32, #tpu.memory_space<vmem>>, %arg5: memref<9x128x128xbf16, #tpu.memory_space<vmem>>, %arg6: memref<1x128xf32, #tpu.memory_space<vmem>>, %arg7: memref<1x16x16x128xf32, #tpu.memory_space<vmem>>, %arg8: memref<256x128xf32, #tpu.memory_space<vmem>>, %arg9: memref<18x18x128xf32, #tpu.memory_space<vmem>>) attributes {dimension_semantics = [#tpu.dimension_semantics<parallel>, #tpu.dimension_semantics<arbitrary>], iteration_bounds = array<i64: 2, 1>, scalar_prefetch = 0 : i64, scratch_operands = 2 : i64, tpu.core_type = #tpu.core_type<tc>, window_params = [{transform_indices = @transform_0, window_bounds = array<i64: 1, 16, 16, 128>}, {transform_indices = @transform_1, window_bounds = array<i64: 1, 128>}, {transform_indices = @transform_2, window_bounds = array<i64: 1, 128>}, {transform_indices = @transform_3, window_bounds = array<i64: 9, 128, 128>}, {pipeline_mode = #tpu.pipeline_mode<synchronous>, transform_indices = @transform_4, window_bounds = array<i64: 1, 128>}, {transform_indices = @transform_5, window_bounds = array<i64: 1, 16, 16, 128>}]} {
    %c0_i32 = arith.constant 0 : i32
    %0 = arith.cmpi eq, %arg1, %c0_i32 : i32
    %1 = arith.extui %0 : i1 to i32
    %c0_i32_0 = arith.constant 0 : i32
    %2 = arith.cmpi ne, %1, %c0_i32_0 : i32
    scf.if %2 {
      %cst_104 = arith.constant 0.000000e+00 : f32
      %100 = vector.broadcast %cst_104 : f32 to vector<256x128xf32>
      %c0_105 = arith.constant 0 : index
      %c0_106 = arith.constant 0 : index
      %101 = vector.load %arg8[%c0_105, %c0_106] : memref<256x128xf32, #tpu.memory_space<vmem>>, vector<256x128xf32>
      tpu.vector_store %arg8[%c0_105, %c0_106], %100 {strides = array<i32>} : memref<256x128xf32, #tpu.memory_space<vmem>>, vector<256x128xf32>,
      %cst_107 = arith.constant 0.000000e+00 : f32
      %102 = vector.broadcast %cst_107 : f32 to vector<18x18x128xf32>
      %c0_108 = arith.constant 0 : index
      %c0_109 = arith.constant 0 : index
      %c0_110 = arith.constant 0 : index
      %103 = vector.load %arg9[%c0_108, %c0_109, %c0_110] : memref<18x18x128xf32, #tpu.memory_space<vmem>>, vector<18x18x128xf32>
      tpu.vector_store %arg9[%c0_108, %c0_109, %c0_110], %102 {strides = array<i32>} : memref<18x18x128xf32, #tpu.memory_space<vmem>>, vector<18x18x128xf32>,
    } else {
    }
    %c0 = arith.constant 0 : index
    %c0_1 = arith.constant 0 : index
    %c0_2 = arith.constant 0 : index
    %c0_3 = arith.constant 0 : index
    %3 = vector.load %arg2[%c0, %c0_1, %c0_2, %c0_3] : memref<1x16x16x128xf32, #tpu.memory_space<vmem>>, vector<1x16x16x128xf32>
    %4 = vector.shape_cast %3 : vector<1x16x16x128xf32> to vector<16x16x128xf32>
    %c0_4 = arith.constant 0 : index
    %c0_5 = arith.constant 0 : index
    %5 = vector.load %arg3[%c0_4, %c0_5] : memref<1x128xf32, #tpu.memory_space<vmem>>, vector<1x128xf32>
    %6 = vector.shape_cast %5 : vector<1x128xf32> to vector<1x1x128xf32>
    %7 = vector.broadcast %6 : vector<1x1x128xf32> to vector<16x16x128xf32>
    %8 = arith.mulf %4, %7 : vector<16x16x128xf32>
    %c0_6 = arith.constant 0 : index
    %c0_7 = arith.constant 0 : index
    %9 = vector.load %arg4[%c0_6, %c0_7] : memref<1x128xf32, #tpu.memory_space<vmem>>, vector<1x128xf32>
    %10 = vector.shape_cast %9 : vector<1x128xf32> to vector<1x1x128xf32>
    %11 = vector.broadcast %10 : vector<1x1x128xf32> to vector<16x16x128xf32>
    %12 = arith.addf %8, %11 : vector<16x16x128xf32>
    %cst = arith.constant 0.000000e+00 : f32
    %13 = vector.broadcast %cst : f32 to vector<16x16x128xf32>
    %14 = arith.maximumf %12, %13 : vector<16x16x128xf32>
    %c1 = arith.constant 1 : index
    %c1_8 = arith.constant 1 : index
    %c0_9 = arith.constant 0 : index
    %15 = vector.load %arg9[%c1, %c1_8, %c0_9] : memref<18x18x128xf32, #tpu.memory_space<vmem>>, vector<16x16x128xf32>
    tpu.vector_store %arg9[%c1, %c1_8, %c0_9], %14 {strides = array<i32>} : memref<18x18x128xf32, #tpu.memory_space<vmem>>, vector<16x16x128xf32>,
    %c0_10 = arith.constant 0 : index
    %c0_11 = arith.constant 0 : index
    %c0_12 = arith.constant 0 : index
    %16 = vector.load %arg9[%c0_10, %c0_11, %c0_12] : memref<18x18x128xf32, #tpu.memory_space<vmem>>, vector<16x16x128xf32>
    %17 = vector.shape_cast %16 : vector<16x16x128xf32> to vector<256x128xf32>
    %c0_13 = arith.constant 0 : index
    %c0_14 = arith.constant 0 : index
    %18 = vector.load %arg8[%c0_13, %c0_14] : memref<256x128xf32, #tpu.memory_space<vmem>>, vector<256x128xf32>
    %19 = arith.truncf %17 : vector<256x128xf32> to vector<256x128xbf16>
    %c0_15 = arith.constant 0 : index
    %c0_16 = arith.constant 0 : index
    %c0_17 = arith.constant 0 : index
    %20 = vector.load %arg5[%c0_15, %c0_16, %c0_17] : memref<9x128x128xbf16, #tpu.memory_space<vmem>>, vector<1x128x128xbf16>
    %21 = vector.shape_cast %20 : vector<1x128x128xbf16> to vector<128x128xbf16>
    %cst_18 = arith.constant dense<0.000000e+00> : vector<256x128xf32>
    %22 = tpu.matmul %19, %21, %cst_18 {dimension_numbers = #tpu.dot_dimension_numbers<[1], [0], [0], [1], [0, 0, 1, 1], [], []>} : vector<256x128xbf16>, vector<128x128xbf16>, vector<256x128xf32> -> vector<256x128xf32>
    %23 = arith.addf %18, %22 : vector<256x128xf32>
    %c0_19 = arith.constant 0 : index
    %c0_20 = arith.constant 0 : index
    %24 = vector.load %arg8[%c0_19, %c0_20] : memref<256x128xf32, #tpu.memory_space<vmem>>, vector<256x128xf32>
    tpu.vector_store %arg8[%c0_19, %c0_20], %23 {strides = array<i32>} : memref<256x128xf32, #tpu.memory_space<vmem>>, vector<256x128xf32>,
    %c0_21 = arith.constant 0 : index
    %c1_22 = arith.constant 1 : index
    %c0_23 = arith.constant 0 : index
    %25 = vector.load %arg9[%c0_21, %c1_22, %c0_23] : memref<18x18x128xf32, #tpu.memory_space<vmem>>, vector<16x16x128xf32>
    %26 = vector.shape_cast %25 : vector<16x16x128xf32> to vector<256x128xf32>
    %c0_24 = arith.constant 0 : index
    %c0_25 = arith.constant 0 : index
    %27 = vector.load %arg8[%c0_24, %c0_25] : memref<256x128xf32, #tpu.memory_space<vmem>>, vector<256x128xf32>
    %28 = arith.truncf %26 : vector<256x128xf32> to vector<256x128xbf16>
    %c1_26 = arith.constant 1 : index
    %c0_27 = arith.constant 0 : index
    %c0_28 = arith.constant 0 : index
    %29 = vector.load %arg5[%c1_26, %c0_27, %c0_28] : memref<9x128x128xbf16, #tpu.memory_space<vmem>>, vector<1x128x128xbf16>
    %30 = vector.shape_cast %29 : vector<1x128x128xbf16> to vector<128x128xbf16>
    %cst_29 = arith.constant dense<0.000000e+00> : vector<256x128xf32>
    %31 = tpu.matmul %28, %30, %cst_29 {dimension_numbers = #tpu.dot_dimension_numbers<[1], [0], [0], [1], [0, 0, 1, 1], [], []>} : vector<256x128xbf16>, vector<128x128xbf16>, vector<256x128xf32> -> vector<256x128xf32>
    %32 = arith.addf %27, %31 : vector<256x128xf32>
    %c0_30 = arith.constant 0 : index
    %c0_31 = arith.constant 0 : index
    %33 = vector.load %arg8[%c0_30, %c0_31] : memref<256x128xf32, #tpu.memory_space<vmem>>, vector<256x128xf32>
    tpu.vector_store %arg8[%c0_30, %c0_31], %32 {strides = array<i32>} : memref<256x128xf32, #tpu.memory_space<vmem>>, vector<256x128xf32>,
    %c0_32 = arith.constant 0 : index
    %c2 = arith.constant 2 : index
    %c0_33 = arith.constant 0 : index
    %34 = vector.load %arg9[%c0_32, %c2, %c0_33] : memref<18x18x128xf32, #tpu.memory_space<vmem>>, vector<16x16x128xf32>
    %35 = vector.shape_cast %34 : vector<16x16x128xf32> to vector<256x128xf32>
    %c0_34 = arith.constant 0 : index
    %c0_35 = arith.constant 0 : index
    %36 = vector.load %arg8[%c0_34, %c0_35] : memref<256x128xf32, #tpu.memory_space<vmem>>, vector<256x128xf32>
    %37 = arith.truncf %35 : vector<256x128xf32> to vector<256x128xbf16>
    %c2_36 = arith.constant 2 : index
    %c0_37 = arith.constant 0 : index
    %c0_38 = arith.constant 0 : index
    %38 = vector.load %arg5[%c2_36, %c0_37, %c0_38] : memref<9x128x128xbf16, #tpu.memory_space<vmem>>, vector<1x128x128xbf16>
    %39 = vector.shape_cast %38 : vector<1x128x128xbf16> to vector<128x128xbf16>
    %cst_39 = arith.constant dense<0.000000e+00> : vector<256x128xf32>
    %40 = tpu.matmul %37, %39, %cst_39 {dimension_numbers = #tpu.dot_dimension_numbers<[1], [0], [0], [1], [0, 0, 1, 1], [], []>} : vector<256x128xbf16>, vector<128x128xbf16>, vector<256x128xf32> -> vector<256x128xf32>
    %41 = arith.addf %36, %40 : vector<256x128xf32>
    %c0_40 = arith.constant 0 : index
    %c0_41 = arith.constant 0 : index
    %42 = vector.load %arg8[%c0_40, %c0_41] : memref<256x128xf32, #tpu.memory_space<vmem>>, vector<256x128xf32>
    tpu.vector_store %arg8[%c0_40, %c0_41], %41 {strides = array<i32>} : memref<256x128xf32, #tpu.memory_space<vmem>>, vector<256x128xf32>,
    %c1_42 = arith.constant 1 : index
    %c0_43 = arith.constant 0 : index
    %c0_44 = arith.constant 0 : index
    %43 = vector.load %arg9[%c1_42, %c0_43, %c0_44] : memref<18x18x128xf32, #tpu.memory_space<vmem>>, vector<16x16x128xf32>
    %44 = vector.shape_cast %43 : vector<16x16x128xf32> to vector<256x128xf32>
    %c0_45 = arith.constant 0 : index
    %c0_46 = arith.constant 0 : index
    %45 = vector.load %arg8[%c0_45, %c0_46] : memref<256x128xf32, #tpu.memory_space<vmem>>, vector<256x128xf32>
    %46 = arith.truncf %44 : vector<256x128xf32> to vector<256x128xbf16>
    %c3 = arith.constant 3 : index
    %c0_47 = arith.constant 0 : index
    %c0_48 = arith.constant 0 : index
    %47 = vector.load %arg5[%c3, %c0_47, %c0_48] : memref<9x128x128xbf16, #tpu.memory_space<vmem>>, vector<1x128x128xbf16>
    %48 = vector.shape_cast %47 : vector<1x128x128xbf16> to vector<128x128xbf16>
    %cst_49 = arith.constant dense<0.000000e+00> : vector<256x128xf32>
    %49 = tpu.matmul %46, %48, %cst_49 {dimension_numbers = #tpu.dot_dimension_numbers<[1], [0], [0], [1], [0, 0, 1, 1], [], []>} : vector<256x128xbf16>, vector<128x128xbf16>, vector<256x128xf32> -> vector<256x128xf32>
    %50 = arith.addf %45, %49 : vector<256x128xf32>
    %c0_50 = arith.constant 0 : index
    %c0_51 = arith.constant 0 : index
    %51 = vector.load %arg8[%c0_50, %c0_51] : memref<256x128xf32, #tpu.memory_space<vmem>>, vector<256x128xf32>
    tpu.vector_store %arg8[%c0_50, %c0_51], %50 {strides = array<i32>} : memref<256x128xf32, #tpu.memory_space<vmem>>, vector<256x128xf32>,
    %c1_52 = arith.constant 1 : index
    %c1_53 = arith.constant 1 : index
    %c0_54 = arith.constant 0 : index
    %52 = vector.load %arg9[%c1_52, %c1_53, %c0_54] : memref<18x18x128xf32, #tpu.memory_space<vmem>>, vector<16x16x128xf32>
    %53 = vector.shape_cast %52 : vector<16x16x128xf32> to vector<256x128xf32>
    %c0_55 = arith.constant 0 : index
    %c0_56 = arith.constant 0 : index
    %54 = vector.load %arg8[%c0_55, %c0_56] : memref<256x128xf32, #tpu.memory_space<vmem>>, vector<256x128xf32>
    %55 = arith.truncf %53 : vector<256x128xf32> to vector<256x128xbf16>
    %c4 = arith.constant 4 : index
    %c0_57 = arith.constant 0 : index
    %c0_58 = arith.constant 0 : index
    %56 = vector.load %arg5[%c4, %c0_57, %c0_58] : memref<9x128x128xbf16, #tpu.memory_space<vmem>>, vector<1x128x128xbf16>
    %57 = vector.shape_cast %56 : vector<1x128x128xbf16> to vector<128x128xbf16>
    %cst_59 = arith.constant dense<0.000000e+00> : vector<256x128xf32>
    %58 = tpu.matmul %55, %57, %cst_59 {dimension_numbers = #tpu.dot_dimension_numbers<[1], [0], [0], [1], [0, 0, 1, 1], [], []>} : vector<256x128xbf16>, vector<128x128xbf16>, vector<256x128xf32> -> vector<256x128xf32>
    %59 = arith.addf %54, %58 : vector<256x128xf32>
    %c0_60 = arith.constant 0 : index
    %c0_61 = arith.constant 0 : index
    %60 = vector.load %arg8[%c0_60, %c0_61] : memref<256x128xf32, #tpu.memory_space<vmem>>, vector<256x128xf32>
    tpu.vector_store %arg8[%c0_60, %c0_61], %59 {strides = array<i32>} : memref<256x128xf32, #tpu.memory_space<vmem>>, vector<256x128xf32>,
    %c1_62 = arith.constant 1 : index
    %c2_63 = arith.constant 2 : index
    %c0_64 = arith.constant 0 : index
    %61 = vector.load %arg9[%c1_62, %c2_63, %c0_64] : memref<18x18x128xf32, #tpu.memory_space<vmem>>, vector<16x16x128xf32>
    %62 = vector.shape_cast %61 : vector<16x16x128xf32> to vector<256x128xf32>
    %c0_65 = arith.constant 0 : index
    %c0_66 = arith.constant 0 : index
    %63 = vector.load %arg8[%c0_65, %c0_66] : memref<256x128xf32, #tpu.memory_space<vmem>>, vector<256x128xf32>
    %64 = arith.truncf %62 : vector<256x128xf32> to vector<256x128xbf16>
    %c5 = arith.constant 5 : index
    %c0_67 = arith.constant 0 : index
    %c0_68 = arith.constant 0 : index
    %65 = vector.load %arg5[%c5, %c0_67, %c0_68] : memref<9x128x128xbf16, #tpu.memory_space<vmem>>, vector<1x128x128xbf16>
    %66 = vector.shape_cast %65 : vector<1x128x128xbf16> to vector<128x128xbf16>
    %cst_69 = arith.constant dense<0.000000e+00> : vector<256x128xf32>
    %67 = tpu.matmul %64, %66, %cst_69 {dimension_numbers = #tpu.dot_dimension_numbers<[1], [0], [0], [1], [0, 0, 1, 1], [], []>} : vector<256x128xbf16>, vector<128x128xbf16>, vector<256x128xf32> -> vector<256x128xf32>
    %68 = arith.addf %63, %67 : vector<256x128xf32>
    %c0_70 = arith.constant 0 : index
    %c0_71 = arith.constant 0 : index
    %69 = vector.load %arg8[%c0_70, %c0_71] : memref<256x128xf32, #tpu.memory_space<vmem>>, vector<256x128xf32>
    tpu.vector_store %arg8[%c0_70, %c0_71], %68 {strides = array<i32>} : memref<256x128xf32, #tpu.memory_space<vmem>>, vector<256x128xf32>,
    %c2_72 = arith.constant 2 : index
    %c0_73 = arith.constant 0 : index
    %c0_74 = arith.constant 0 : index
    %70 = vector.load %arg9[%c2_72, %c0_73, %c0_74] : memref<18x18x128xf32, #tpu.memory_space<vmem>>, vector<16x16x128xf32>
    %71 = vector.shape_cast %70 : vector<16x16x128xf32> to vector<256x128xf32>
    %c0_75 = arith.constant 0 : index
    %c0_76 = arith.constant 0 : index
    %72 = vector.load %arg8[%c0_75, %c0_76] : memref<256x128xf32, #tpu.memory_space<vmem>>, vector<256x128xf32>
    %73 = arith.truncf %71 : vector<256x128xf32> to vector<256x128xbf16>
    %c6 = arith.constant 6 : index
    %c0_77 = arith.constant 0 : index
    %c0_78 = arith.constant 0 : index
    %74 = vector.load %arg5[%c6, %c0_77, %c0_78] : memref<9x128x128xbf16, #tpu.memory_space<vmem>>, vector<1x128x128xbf16>
    %75 = vector.shape_cast %74 : vector<1x128x128xbf16> to vector<128x128xbf16>
    %cst_79 = arith.constant dense<0.000000e+00> : vector<256x128xf32>
    %76 = tpu.matmul %73, %75, %cst_79 {dimension_numbers = #tpu.dot_dimension_numbers<[1], [0], [0], [1], [0, 0, 1, 1], [], []>} : vector<256x128xbf16>, vector<128x128xbf16>, vector<256x128xf32> -> vector<256x128xf32>
    %77 = arith.addf %72, %76 : vector<256x128xf32>
    %c0_80 = arith.constant 0 : index
    %c0_81 = arith.constant 0 : index
    %78 = vector.load %arg8[%c0_80, %c0_81] : memref<256x128xf32, #tpu.memory_space<vmem>>, vector<256x128xf32>
    tpu.vector_store %arg8[%c0_80, %c0_81], %77 {strides = array<i32>} : memref<256x128xf32, #tpu.memory_space<vmem>>, vector<256x128xf32>,
    %c2_82 = arith.constant 2 : index
    %c1_83 = arith.constant 1 : index
    %c0_84 = arith.constant 0 : index
    %79 = vector.load %arg9[%c2_82, %c1_83, %c0_84] : memref<18x18x128xf32, #tpu.memory_space<vmem>>, vector<16x16x128xf32>
    %80 = vector.shape_cast %79 : vector<16x16x128xf32> to vector<256x128xf32>
    %c0_85 = arith.constant 0 : index
    %c0_86 = arith.constant 0 : index
    %81 = vector.load %arg8[%c0_85, %c0_86] : memref<256x128xf32, #tpu.memory_space<vmem>>, vector<256x128xf32>
    %82 = arith.truncf %80 : vector<256x128xf32> to vector<256x128xbf16>
    %c7 = arith.constant 7 : index
    %c0_87 = arith.constant 0 : index
    %c0_88 = arith.constant 0 : index
    %83 = vector.load %arg5[%c7, %c0_87, %c0_88] : memref<9x128x128xbf16, #tpu.memory_space<vmem>>, vector<1x128x128xbf16>
    %84 = vector.shape_cast %83 : vector<1x128x128xbf16> to vector<128x128xbf16>
    %cst_89 = arith.constant dense<0.000000e+00> : vector<256x128xf32>
    %85 = tpu.matmul %82, %84, %cst_89 {dimension_numbers = #tpu.dot_dimension_numbers<[1], [0], [0], [1], [0, 0, 1, 1], [], []>} : vector<256x128xbf16>, vector<128x128xbf16>, vector<256x128xf32> -> vector<256x128xf32>
    %86 = arith.addf %81, %85 : vector<256x128xf32>
    %c0_90 = arith.constant 0 : index
    %c0_91 = arith.constant 0 : index
    %87 = vector.load %arg8[%c0_90, %c0_91] : memref<256x128xf32, #tpu.memory_space<vmem>>, vector<256x128xf32>
    tpu.vector_store %arg8[%c0_90, %c0_91], %86 {strides = array<i32>} : memref<256x128xf32, #tpu.memory_space<vmem>>, vector<256x128xf32>,
    %c2_92 = arith.constant 2 : index
    %c2_93 = arith.constant 2 : index
    %c0_94 = arith.constant 0 : index
    %88 = vector.load %arg9[%c2_92, %c2_93, %c0_94] : memref<18x18x128xf32, #tpu.memory_space<vmem>>, vector<16x16x128xf32>
    %89 = vector.shape_cast %88 : vector<16x16x128xf32> to vector<256x128xf32>
    %c0_95 = arith.constant 0 : index
    %c0_96 = arith.constant 0 : index
    %90 = vector.load %arg8[%c0_95, %c0_96] : memref<256x128xf32, #tpu.memory_space<vmem>>, vector<256x128xf32>
    %91 = arith.truncf %89 : vector<256x128xf32> to vector<256x128xbf16>
    %c8 = arith.constant 8 : index
    %c0_97 = arith.constant 0 : index
    %c0_98 = arith.constant 0 : index
    %92 = vector.load %arg5[%c8, %c0_97, %c0_98] : memref<9x128x128xbf16, #tpu.memory_space<vmem>>, vector<1x128x128xbf16>
    %93 = vector.shape_cast %92 : vector<1x128x128xbf16> to vector<128x128xbf16>
    %cst_99 = arith.constant dense<0.000000e+00> : vector<256x128xf32>
    %94 = tpu.matmul %91, %93, %cst_99 {dimension_numbers = #tpu.dot_dimension_numbers<[1], [0], [0], [1], [0, 0, 1, 1], [], []>} : vector<256x128xbf16>, vector<128x128xbf16>, vector<256x128xf32> -> vector<256x128xf32>
    %95 = arith.addf %90, %94 : vector<256x128xf32>
    %c0_100 = arith.constant 0 : index
    %c0_101 = arith.constant 0 : index
    %96 = vector.load %arg8[%c0_100, %c0_101] : memref<256x128xf32, #tpu.memory_space<vmem>>, vector<256x128xf32>
    tpu.vector_store %arg8[%c0_100, %c0_101], %95 {strides = array<i32>} : memref<256x128xf32, #tpu.memory_space<vmem>>, vector<256x128xf32>,
    %c0_i32_102 = arith.constant 0 : i32
    %97 = arith.cmpi eq, %arg1, %c0_i32_102 : i32
    %98 = arith.extui %97 : i1 to i32
    %c0_i32_103 = arith.constant 0 : i32
    %99 = arith.cmpi ne, %98, %c0_i32_103 : i32
    scf.if %99 {
      %c0_104 = arith.constant 0 : index
      %c0_105 = arith.constant 0 : index
      %100 = vector.load %arg8[%c0_104, %c0_105] : memref<256x128xf32, #tpu.memory_space<vmem>>, vector<256x128xf32>
      %c0_106 = arith.constant 0 : index
      %c0_107 = arith.constant 0 : index
      %101 = vector.load %arg6[%c0_106, %c0_107] : memref<1x128xf32, #tpu.memory_space<vmem>>, vector<1x128xf32>
      %102 = vector.broadcast %101 : vector<1x128xf32> to vector<256x128xf32>
      %103 = arith.addf %100, %102 : vector<256x128xf32>
      %104 = vector.shape_cast %103 : vector<256x128xf32> to vector<16x16x128xf32>
      %c0_108 = arith.constant 0 : index
      %c0_109 = arith.constant 0 : index
      %c0_110 = arith.constant 0 : index
      %c0_111 = arith.constant 0 : index
      %105 = vector.load %arg7[%c0_108, %c0_109, %c0_110, %c0_111] : memref<1x16x16x128xf32, #tpu.memory_space<vmem>>, vector<1x16x16x128xf32>
      %106 = vector.shape_cast %105 : vector<1x16x16x128xf32> to vector<16x16x128xf32>
      %107 = vector.shape_cast %104 : vector<16x16x128xf32> to vector<1x16x16x128xf32>
      tpu.vector_store %arg7[%c0_108, %c0_109, %c0_110, %c0_111], %107 {strides = array<i32>} : memref<1x16x16x128xf32, #tpu.memory_space<vmem>>, vector<1x16x16x128xf32>,
    } else {
    }
    return
  }
  func.func @transform_0(%arg0: i32, %arg1: i32) -> (i32, i32, i32, i32) {
    %c0_i32 = arith.constant 0 : i32
    %c0_i32_0 = arith.constant 0 : i32
    %c0_i32_1 = arith.constant 0 : i32
    return %arg0, %c0_i32, %c0_i32_0, %arg1 : i32, i32, i32, i32
  }
  func.func @transform_1(%arg0: i32, %arg1: i32) -> (i32, i32) {
    %c0_i32 = arith.constant 0 : i32
    %c0_i32_0 = arith.constant 0 : i32
    return %c0_i32, %arg1 : i32, i32
  }
  func.func @transform_2(%arg0: i32, %arg1: i32) -> (i32, i32) {
    %c0_i32 = arith.constant 0 : i32
    %c0_i32_0 = arith.constant 0 : i32
    return %c0_i32, %arg1 : i32, i32
  }
  func.func @transform_3(%arg0: i32, %arg1: i32) -> (i32, i32, i32) {
    %c0_i32 = arith.constant 0 : i32
    %c0_i32_0 = arith.constant 0 : i32
    %c0_i32_1 = arith.constant 0 : i32
    return %c0_i32, %arg1, %c0_i32_0 : i32, i32, i32
  }
  func.func @transform_4(%arg0: i32, %arg1: i32) -> (i32, i32) {
    %c0_i32 = arith.constant 0 : i32
    %c0_i32_0 = arith.constant 0 : i32
    %c0_i32_1 = arith.constant 0 : i32
    return %c0_i32, %c0_i32_0 : i32, i32
  }
  func.func @transform_5(%arg0: i32, %arg1: i32) -> (i32, i32, i32, i32) {
    %c0_i32 = arith.constant 0 : i32
    %c0_i32_0 = arith.constant 0 : i32
    %c1_i32 = arith.constant 1 : i32
    %c0_i32_1 = arith.constant 0 : i32
    return %arg0, %c0_i32, %c0_i32_0, %c1_i32 : i32, i32, i32, i32
  }
}

module attributes {stable_mosaic.version = 11 : i64} {
  func.func @_bn_stats_kernel(%arg0: i32, %arg1: i32, %arg2: memref<1x16x16x128xf32, #tpu.memory_space<vmem>>, %arg3: memref<1x128xf32, #tpu.memory_space<vmem>>, %arg4: memref<1x128xf32, #tpu.memory_space<vmem>>) attributes {dimension_semantics = [#tpu.dimension_semantics<parallel>, #tpu.dimension_semantics<arbitrary>], iteration_bounds = array<i64: 2, 2>, scalar_prefetch = 0 : i64, scratch_operands = 0 : i64, tpu.core_type = #tpu.core_type<tc>, window_params = [{transform_indices = @transform_0, window_bounds = array<i64: 1, 16, 16, 128>}, {transform_indices = @transform_1, window_bounds = array<i64: 1, 128>}, {transform_indices = @transform_2, window_bounds = array<i64: 1, 128>}]} {
    %c0_i32 = arith.constant 0 : i32
    %0 = arith.cmpi eq, %arg1, %c0_i32 : i32
    %1 = arith.extui %0 : i1 to i32
    %c0_i32_0 = arith.constant 0 : i32
    %2 = arith.cmpi ne, %1, %c0_i32_0 : i32
    scf.if %2 {
      %cst_13 = arith.constant 0.000000e+00 : f32
      %17 = vector.broadcast %cst_13 : f32 to vector<1x128xf32>
      %c0_14 = arith.constant 0 : index
      %c0_15 = arith.constant 0 : index
      %18 = vector.load %arg3[%c0_14, %c0_15] : memref<1x128xf32, #tpu.memory_space<vmem>>, vector<1x128xf32>
      tpu.vector_store %arg3[%c0_14, %c0_15], %17 {strides = array<i32>} : memref<1x128xf32, #tpu.memory_space<vmem>>, vector<1x128xf32>,
      %cst_16 = arith.constant 0.000000e+00 : f32
      %19 = vector.broadcast %cst_16 : f32 to vector<1x128xf32>
      %c0_17 = arith.constant 0 : index
      %c0_18 = arith.constant 0 : index
      %20 = vector.load %arg4[%c0_17, %c0_18] : memref<1x128xf32, #tpu.memory_space<vmem>>, vector<1x128xf32>
      tpu.vector_store %arg4[%c0_17, %c0_18], %19 {strides = array<i32>} : memref<1x128xf32, #tpu.memory_space<vmem>>, vector<1x128xf32>,
    } else {
    }
    %c0 = arith.constant 0 : index
    %c0_1 = arith.constant 0 : index
    %c0_2 = arith.constant 0 : index
    %c0_3 = arith.constant 0 : index
    %3 = vector.load %arg2[%c0, %c0_1, %c0_2, %c0_3] : memref<1x16x16x128xf32, #tpu.memory_space<vmem>>, vector<1x16x16x128xf32>
    %4 = vector.shape_cast %3 : vector<1x16x16x128xf32> to vector<16x16x128xf32>
    %5 = vector.shape_cast %4 : vector<16x16x128xf32> to vector<256x128xf32>
    %c0_4 = arith.constant 0 : index
    %c0_5 = arith.constant 0 : index
    %6 = vector.load %arg3[%c0_4, %c0_5] : memref<1x128xf32, #tpu.memory_space<vmem>>, vector<1x128xf32>
    %cst = arith.constant dense<0.000000e+00> : vector<128xf32>
    %7 = vector.multi_reduction <add>, %5, %cst [0] : vector<256x128xf32> to vector<128xf32>
    %8 = vector.shape_cast %7 : vector<128xf32> to vector<1x128xf32>
    %9 = arith.addf %6, %8 : vector<1x128xf32>
    %c0_6 = arith.constant 0 : index
    %c0_7 = arith.constant 0 : index
    %10 = vector.load %arg3[%c0_6, %c0_7] : memref<1x128xf32, #tpu.memory_space<vmem>>, vector<1x128xf32>
    tpu.vector_store %arg3[%c0_6, %c0_7], %9 {strides = array<i32>} : memref<1x128xf32, #tpu.memory_space<vmem>>, vector<1x128xf32>,
    %c0_8 = arith.constant 0 : index
    %c0_9 = arith.constant 0 : index
    %11 = vector.load %arg4[%c0_8, %c0_9] : memref<1x128xf32, #tpu.memory_space<vmem>>, vector<1x128xf32>
    %12 = arith.mulf %5, %5 : vector<256x128xf32>
    %cst_10 = arith.constant dense<0.000000e+00> : vector<128xf32>
    %13 = vector.multi_reduction <add>, %12, %cst_10 [0] : vector<256x128xf32> to vector<128xf32>
    %14 = vector.shape_cast %13 : vector<128xf32> to vector<1x128xf32>
    %15 = arith.addf %11, %14 : vector<1x128xf32>
    %c0_11 = arith.constant 0 : index
    %c0_12 = arith.constant 0 : index
    %16 = vector.load %arg4[%c0_11, %c0_12] : memref<1x128xf32, #tpu.memory_space<vmem>>, vector<1x128xf32>
    tpu.vector_store %arg4[%c0_11, %c0_12], %15 {strides = array<i32>} : memref<1x128xf32, #tpu.memory_space<vmem>>, vector<1x128xf32>,
    return
  }
  func.func @transform_0(%arg0: i32, %arg1: i32) -> (i32, i32, i32, i32) {
    %c0_i32 = arith.constant 0 : i32
    %c0_i32_0 = arith.constant 0 : i32
    %c0_i32_1 = arith.constant 0 : i32
    return %arg1, %c0_i32, %c0_i32_0, %arg0 : i32, i32, i32, i32
  }
  func.func @transform_1(%arg0: i32, %arg1: i32) -> (i32, i32) {
    %c0_i32 = arith.constant 0 : i32
    %c0_i32_0 = arith.constant 0 : i32
    return %c0_i32, %arg0 : i32, i32
  }
  func.func @transform_2(%arg0: i32, %arg1: i32) -> (i32, i32) {
    %c0_i32 = arith.constant 0 : i32
    %c0_i32_0 = arith.constant 0 : i32
    return %c0_i32, %arg0 : i32, i32
  }
}

module attributes {stable_mosaic.version = 11 : i64} {
  func.func @_bn_relu_conv_kernel(%arg0: i32, %arg1: i32, %arg2: memref<1x16x16x128xf32, #tpu.memory_space<vmem>>, %arg3: memref<1x128xf32, #tpu.memory_space<vmem>>, %arg4: memref<1x128xf32, #tpu.memory_space<vmem>>, %arg5: memref<9x128x128xbf16, #tpu.memory_space<vmem>>, %arg6: memref<1x128xf32, #tpu.memory_space<vmem>>, %arg7: memref<1x16x16x128xf32, #tpu.memory_space<vmem>>, %arg8: memref<256x128xf32, #tpu.memory_space<vmem>>, %arg9: memref<18x18x128xf32, #tpu.memory_space<vmem>>) attributes {dimension_semantics = [#tpu.dimension_semantics<parallel>, #tpu.dimension_semantics<arbitrary>], iteration_bounds = array<i64: 2, 2>, scalar_prefetch = 0 : i64, scratch_operands = 2 : i64, tpu.core_type = #tpu.core_type<tc>, window_params = [{transform_indices = @transform_0, window_bounds = array<i64: 1, 16, 16, 128>}, {transform_indices = @transform_1, window_bounds = array<i64: 1, 128>}, {transform_indices = @transform_2, window_bounds = array<i64: 1, 128>}, {transform_indices = @transform_3, window_bounds = array<i64: 9, 128, 128>}, {pipeline_mode = #tpu.pipeline_mode<synchronous>, transform_indices = @transform_4, window_bounds = array<i64: 1, 128>}, {transform_indices = @transform_5, window_bounds = array<i64: 1, 16, 16, 128>}]} {
    %c0_i32 = arith.constant 0 : i32
    %0 = arith.cmpi eq, %arg1, %c0_i32 : i32
    %1 = arith.extui %0 : i1 to i32
    %c0_i32_0 = arith.constant 0 : i32
    %2 = arith.cmpi ne, %1, %c0_i32_0 : i32
    scf.if %2 {
      %cst_103 = arith.constant 0.000000e+00 : f32
      %100 = vector.broadcast %cst_103 : f32 to vector<256x128xf32>
      %c0_104 = arith.constant 0 : index
      %c0_105 = arith.constant 0 : index
      %101 = vector.load %arg8[%c0_104, %c0_105] : memref<256x128xf32, #tpu.memory_space<vmem>>, vector<256x128xf32>
      tpu.vector_store %arg8[%c0_104, %c0_105], %100 {strides = array<i32>} : memref<256x128xf32, #tpu.memory_space<vmem>>, vector<256x128xf32>,
      %cst_106 = arith.constant 0.000000e+00 : f32
      %102 = vector.broadcast %cst_106 : f32 to vector<18x18x128xf32>
      %c0_107 = arith.constant 0 : index
      %c0_108 = arith.constant 0 : index
      %c0_109 = arith.constant 0 : index
      %103 = vector.load %arg9[%c0_107, %c0_108, %c0_109] : memref<18x18x128xf32, #tpu.memory_space<vmem>>, vector<18x18x128xf32>
      tpu.vector_store %arg9[%c0_107, %c0_108, %c0_109], %102 {strides = array<i32>} : memref<18x18x128xf32, #tpu.memory_space<vmem>>, vector<18x18x128xf32>,
    } else {
    }
    %c0 = arith.constant 0 : index
    %c0_1 = arith.constant 0 : index
    %c0_2 = arith.constant 0 : index
    %c0_3 = arith.constant 0 : index
    %3 = vector.load %arg2[%c0, %c0_1, %c0_2, %c0_3] : memref<1x16x16x128xf32, #tpu.memory_space<vmem>>, vector<1x16x16x128xf32>
    %4 = vector.shape_cast %3 : vector<1x16x16x128xf32> to vector<16x16x128xf32>
    %c0_4 = arith.constant 0 : index
    %c0_5 = arith.constant 0 : index
    %5 = vector.load %arg3[%c0_4, %c0_5] : memref<1x128xf32, #tpu.memory_space<vmem>>, vector<1x128xf32>
    %6 = vector.shape_cast %5 : vector<1x128xf32> to vector<1x1x128xf32>
    %7 = vector.broadcast %6 : vector<1x1x128xf32> to vector<16x16x128xf32>
    %8 = arith.mulf %4, %7 : vector<16x16x128xf32>
    %c0_6 = arith.constant 0 : index
    %c0_7 = arith.constant 0 : index
    %9 = vector.load %arg4[%c0_6, %c0_7] : memref<1x128xf32, #tpu.memory_space<vmem>>, vector<1x128xf32>
    %10 = vector.shape_cast %9 : vector<1x128xf32> to vector<1x1x128xf32>
    %11 = vector.broadcast %10 : vector<1x1x128xf32> to vector<16x16x128xf32>
    %12 = arith.addf %8, %11 : vector<16x16x128xf32>
    %cst = arith.constant 0.000000e+00 : f32
    %13 = vector.broadcast %cst : f32 to vector<16x16x128xf32>
    %14 = arith.maximumf %12, %13 : vector<16x16x128xf32>
    %c1 = arith.constant 1 : index
    %c1_8 = arith.constant 1 : index
    %c0_9 = arith.constant 0 : index
    %15 = vector.load %arg9[%c1, %c1_8, %c0_9] : memref<18x18x128xf32, #tpu.memory_space<vmem>>, vector<16x16x128xf32>
    tpu.vector_store %arg9[%c1, %c1_8, %c0_9], %14 {strides = array<i32>} : memref<18x18x128xf32, #tpu.memory_space<vmem>>, vector<16x16x128xf32>,
    %c0_10 = arith.constant 0 : index
    %c0_11 = arith.constant 0 : index
    %c0_12 = arith.constant 0 : index
    %16 = vector.load %arg9[%c0_10, %c0_11, %c0_12] : memref<18x18x128xf32, #tpu.memory_space<vmem>>, vector<16x16x128xf32>
    %17 = vector.shape_cast %16 : vector<16x16x128xf32> to vector<256x128xf32>
    %c0_13 = arith.constant 0 : index
    %c0_14 = arith.constant 0 : index
    %18 = vector.load %arg8[%c0_13, %c0_14] : memref<256x128xf32, #tpu.memory_space<vmem>>, vector<256x128xf32>
    %19 = arith.truncf %17 : vector<256x128xf32> to vector<256x128xbf16>
    %c0_15 = arith.constant 0 : index
    %c0_16 = arith.constant 0 : index
    %c0_17 = arith.constant 0 : index
    %20 = vector.load %arg5[%c0_15, %c0_16, %c0_17] : memref<9x128x128xbf16, #tpu.memory_space<vmem>>, vector<1x128x128xbf16>
    %21 = vector.shape_cast %20 : vector<1x128x128xbf16> to vector<128x128xbf16>
    %cst_18 = arith.constant dense<0.000000e+00> : vector<256x128xf32>
    %22 = tpu.matmul %19, %21, %cst_18 {dimension_numbers = #tpu.dot_dimension_numbers<[1], [0], [0], [1], [0, 0, 1, 1], [], []>} : vector<256x128xbf16>, vector<128x128xbf16>, vector<256x128xf32> -> vector<256x128xf32>
    %23 = arith.addf %18, %22 : vector<256x128xf32>
    %c0_19 = arith.constant 0 : index
    %c0_20 = arith.constant 0 : index
    %24 = vector.load %arg8[%c0_19, %c0_20] : memref<256x128xf32, #tpu.memory_space<vmem>>, vector<256x128xf32>
    tpu.vector_store %arg8[%c0_19, %c0_20], %23 {strides = array<i32>} : memref<256x128xf32, #tpu.memory_space<vmem>>, vector<256x128xf32>,
    %c0_21 = arith.constant 0 : index
    %c1_22 = arith.constant 1 : index
    %c0_23 = arith.constant 0 : index
    %25 = vector.load %arg9[%c0_21, %c1_22, %c0_23] : memref<18x18x128xf32, #tpu.memory_space<vmem>>, vector<16x16x128xf32>
    %26 = vector.shape_cast %25 : vector<16x16x128xf32> to vector<256x128xf32>
    %c0_24 = arith.constant 0 : index
    %c0_25 = arith.constant 0 : index
    %27 = vector.load %arg8[%c0_24, %c0_25] : memref<256x128xf32, #tpu.memory_space<vmem>>, vector<256x128xf32>
    %28 = arith.truncf %26 : vector<256x128xf32> to vector<256x128xbf16>
    %c1_26 = arith.constant 1 : index
    %c0_27 = arith.constant 0 : index
    %c0_28 = arith.constant 0 : index
    %29 = vector.load %arg5[%c1_26, %c0_27, %c0_28] : memref<9x128x128xbf16, #tpu.memory_space<vmem>>, vector<1x128x128xbf16>
    %30 = vector.shape_cast %29 : vector<1x128x128xbf16> to vector<128x128xbf16>
    %cst_29 = arith.constant dense<0.000000e+00> : vector<256x128xf32>
    %31 = tpu.matmul %28, %30, %cst_29 {dimension_numbers = #tpu.dot_dimension_numbers<[1], [0], [0], [1], [0, 0, 1, 1], [], []>} : vector<256x128xbf16>, vector<128x128xbf16>, vector<256x128xf32> -> vector<256x128xf32>
    %32 = arith.addf %27, %31 : vector<256x128xf32>
    %c0_30 = arith.constant 0 : index
    %c0_31 = arith.constant 0 : index
    %33 = vector.load %arg8[%c0_30, %c0_31] : memref<256x128xf32, #tpu.memory_space<vmem>>, vector<256x128xf32>
    tpu.vector_store %arg8[%c0_30, %c0_31], %32 {strides = array<i32>} : memref<256x128xf32, #tpu.memory_space<vmem>>, vector<256x128xf32>,
    %c0_32 = arith.constant 0 : index
    %c2 = arith.constant 2 : index
    %c0_33 = arith.constant 0 : index
    %34 = vector.load %arg9[%c0_32, %c2, %c0_33] : memref<18x18x128xf32, #tpu.memory_space<vmem>>, vector<16x16x128xf32>
    %35 = vector.shape_cast %34 : vector<16x16x128xf32> to vector<256x128xf32>
    %c0_34 = arith.constant 0 : index
    %c0_35 = arith.constant 0 : index
    %36 = vector.load %arg8[%c0_34, %c0_35] : memref<256x128xf32, #tpu.memory_space<vmem>>, vector<256x128xf32>
    %37 = arith.truncf %35 : vector<256x128xf32> to vector<256x128xbf16>
    %c2_36 = arith.constant 2 : index
    %c0_37 = arith.constant 0 : index
    %c0_38 = arith.constant 0 : index
    %38 = vector.load %arg5[%c2_36, %c0_37, %c0_38] : memref<9x128x128xbf16, #tpu.memory_space<vmem>>, vector<1x128x128xbf16>
    %39 = vector.shape_cast %38 : vector<1x128x128xbf16> to vector<128x128xbf16>
    %cst_39 = arith.constant dense<0.000000e+00> : vector<256x128xf32>
    %40 = tpu.matmul %37, %39, %cst_39 {dimension_numbers = #tpu.dot_dimension_numbers<[1], [0], [0], [1], [0, 0, 1, 1], [], []>} : vector<256x128xbf16>, vector<128x128xbf16>, vector<256x128xf32> -> vector<256x128xf32>
    %41 = arith.addf %36, %40 : vector<256x128xf32>
    %c0_40 = arith.constant 0 : index
    %c0_41 = arith.constant 0 : index
    %42 = vector.load %arg8[%c0_40, %c0_41] : memref<256x128xf32, #tpu.memory_space<vmem>>, vector<256x128xf32>
    tpu.vector_store %arg8[%c0_40, %c0_41], %41 {strides = array<i32>} : memref<256x128xf32, #tpu.memory_space<vmem>>, vector<256x128xf32>,
    %c1_42 = arith.constant 1 : index
    %c0_43 = arith.constant 0 : index
    %c0_44 = arith.constant 0 : index
    %43 = vector.load %arg9[%c1_42, %c0_43, %c0_44] : memref<18x18x128xf32, #tpu.memory_space<vmem>>, vector<16x16x128xf32>
    %44 = vector.shape_cast %43 : vector<16x16x128xf32> to vector<256x128xf32>
    %c0_45 = arith.constant 0 : index
    %c0_46 = arith.constant 0 : index
    %45 = vector.load %arg8[%c0_45, %c0_46] : memref<256x128xf32, #tpu.memory_space<vmem>>, vector<256x128xf32>
    %46 = arith.truncf %44 : vector<256x128xf32> to vector<256x128xbf16>
    %c3 = arith.constant 3 : index
    %c0_47 = arith.constant 0 : index
    %c0_48 = arith.constant 0 : index
    %47 = vector.load %arg5[%c3, %c0_47, %c0_48] : memref<9x128x128xbf16, #tpu.memory_space<vmem>>, vector<1x128x128xbf16>
    %48 = vector.shape_cast %47 : vector<1x128x128xbf16> to vector<128x128xbf16>
    %cst_49 = arith.constant dense<0.000000e+00> : vector<256x128xf32>
    %49 = tpu.matmul %46, %48, %cst_49 {dimension_numbers = #tpu.dot_dimension_numbers<[1], [0], [0], [1], [0, 0, 1, 1], [], []>} : vector<256x128xbf16>, vector<128x128xbf16>, vector<256x128xf32> -> vector<256x128xf32>
    %50 = arith.addf %45, %49 : vector<256x128xf32>
    %c0_50 = arith.constant 0 : index
    %c0_51 = arith.constant 0 : index
    %51 = vector.load %arg8[%c0_50, %c0_51] : memref<256x128xf32, #tpu.memory_space<vmem>>, vector<256x128xf32>
    tpu.vector_store %arg8[%c0_50, %c0_51], %50 {strides = array<i32>} : memref<256x128xf32, #tpu.memory_space<vmem>>, vector<256x128xf32>,
    %c1_52 = arith.constant 1 : index
    %c1_53 = arith.constant 1 : index
    %c0_54 = arith.constant 0 : index
    %52 = vector.load %arg9[%c1_52, %c1_53, %c0_54] : memref<18x18x128xf32, #tpu.memory_space<vmem>>, vector<16x16x128xf32>
    %53 = vector.shape_cast %52 : vector<16x16x128xf32> to vector<256x128xf32>
    %c0_55 = arith.constant 0 : index
    %c0_56 = arith.constant 0 : index
    %54 = vector.load %arg8[%c0_55, %c0_56] : memref<256x128xf32, #tpu.memory_space<vmem>>, vector<256x128xf32>
    %55 = arith.truncf %53 : vector<256x128xf32> to vector<256x128xbf16>
    %c4 = arith.constant 4 : index
    %c0_57 = arith.constant 0 : index
    %c0_58 = arith.constant 0 : index
    %56 = vector.load %arg5[%c4, %c0_57, %c0_58] : memref<9x128x128xbf16, #tpu.memory_space<vmem>>, vector<1x128x128xbf16>
    %57 = vector.shape_cast %56 : vector<1x128x128xbf16> to vector<128x128xbf16>
    %cst_59 = arith.constant dense<0.000000e+00> : vector<256x128xf32>
    %58 = tpu.matmul %55, %57, %cst_59 {dimension_numbers = #tpu.dot_dimension_numbers<[1], [0], [0], [1], [0, 0, 1, 1], [], []>} : vector<256x128xbf16>, vector<128x128xbf16>, vector<256x128xf32> -> vector<256x128xf32>
    %59 = arith.addf %54, %58 : vector<256x128xf32>
    %c0_60 = arith.constant 0 : index
    %c0_61 = arith.constant 0 : index
    %60 = vector.load %arg8[%c0_60, %c0_61] : memref<256x128xf32, #tpu.memory_space<vmem>>, vector<256x128xf32>
    tpu.vector_store %arg8[%c0_60, %c0_61], %59 {strides = array<i32>} : memref<256x128xf32, #tpu.memory_space<vmem>>, vector<256x128xf32>,
    %c1_62 = arith.constant 1 : index
    %c2_63 = arith.constant 2 : index
    %c0_64 = arith.constant 0 : index
    %61 = vector.load %arg9[%c1_62, %c2_63, %c0_64] : memref<18x18x128xf32, #tpu.memory_space<vmem>>, vector<16x16x128xf32>
    %62 = vector.shape_cast %61 : vector<16x16x128xf32> to vector<256x128xf32>
    %c0_65 = arith.constant 0 : index
    %c0_66 = arith.constant 0 : index
    %63 = vector.load %arg8[%c0_65, %c0_66] : memref<256x128xf32, #tpu.memory_space<vmem>>, vector<256x128xf32>
    %64 = arith.truncf %62 : vector<256x128xf32> to vector<256x128xbf16>
    %c5 = arith.constant 5 : index
    %c0_67 = arith.constant 0 : index
    %c0_68 = arith.constant 0 : index
    %65 = vector.load %arg5[%c5, %c0_67, %c0_68] : memref<9x128x128xbf16, #tpu.memory_space<vmem>>, vector<1x128x128xbf16>
    %66 = vector.shape_cast %65 : vector<1x128x128xbf16> to vector<128x128xbf16>
    %cst_69 = arith.constant dense<0.000000e+00> : vector<256x128xf32>
    %67 = tpu.matmul %64, %66, %cst_69 {dimension_numbers = #tpu.dot_dimension_numbers<[1], [0], [0], [1], [0, 0, 1, 1], [], []>} : vector<256x128xbf16>, vector<128x128xbf16>, vector<256x128xf32> -> vector<256x128xf32>
    %68 = arith.addf %63, %67 : vector<256x128xf32>
    %c0_70 = arith.constant 0 : index
    %c0_71 = arith.constant 0 : index
    %69 = vector.load %arg8[%c0_70, %c0_71] : memref<256x128xf32, #tpu.memory_space<vmem>>, vector<256x128xf32>
    tpu.vector_store %arg8[%c0_70, %c0_71], %68 {strides = array<i32>} : memref<256x128xf32, #tpu.memory_space<vmem>>, vector<256x128xf32>,
    %c2_72 = arith.constant 2 : index
    %c0_73 = arith.constant 0 : index
    %c0_74 = arith.constant 0 : index
    %70 = vector.load %arg9[%c2_72, %c0_73, %c0_74] : memref<18x18x128xf32, #tpu.memory_space<vmem>>, vector<16x16x128xf32>
    %71 = vector.shape_cast %70 : vector<16x16x128xf32> to vector<256x128xf32>
    %c0_75 = arith.constant 0 : index
    %c0_76 = arith.constant 0 : index
    %72 = vector.load %arg8[%c0_75, %c0_76] : memref<256x128xf32, #tpu.memory_space<vmem>>, vector<256x128xf32>
    %73 = arith.truncf %71 : vector<256x128xf32> to vector<256x128xbf16>
    %c6 = arith.constant 6 : index
    %c0_77 = arith.constant 0 : index
    %c0_78 = arith.constant 0 : index
    %74 = vector.load %arg5[%c6, %c0_77, %c0_78] : memref<9x128x128xbf16, #tpu.memory_space<vmem>>, vector<1x128x128xbf16>
    %75 = vector.shape_cast %74 : vector<1x128x128xbf16> to vector<128x128xbf16>
    %cst_79 = arith.constant dense<0.000000e+00> : vector<256x128xf32>
    %76 = tpu.matmul %73, %75, %cst_79 {dimension_numbers = #tpu.dot_dimension_numbers<[1], [0], [0], [1], [0, 0, 1, 1], [], []>} : vector<256x128xbf16>, vector<128x128xbf16>, vector<256x128xf32> -> vector<256x128xf32>
    %77 = arith.addf %72, %76 : vector<256x128xf32>
    %c0_80 = arith.constant 0 : index
    %c0_81 = arith.constant 0 : index
    %78 = vector.load %arg8[%c0_80, %c0_81] : memref<256x128xf32, #tpu.memory_space<vmem>>, vector<256x128xf32>
    tpu.vector_store %arg8[%c0_80, %c0_81], %77 {strides = array<i32>} : memref<256x128xf32, #tpu.memory_space<vmem>>, vector<256x128xf32>,
    %c2_82 = arith.constant 2 : index
    %c1_83 = arith.constant 1 : index
    %c0_84 = arith.constant 0 : index
    %79 = vector.load %arg9[%c2_82, %c1_83, %c0_84] : memref<18x18x128xf32, #tpu.memory_space<vmem>>, vector<16x16x128xf32>
    %80 = vector.shape_cast %79 : vector<16x16x128xf32> to vector<256x128xf32>
    %c0_85 = arith.constant 0 : index
    %c0_86 = arith.constant 0 : index
    %81 = vector.load %arg8[%c0_85, %c0_86] : memref<256x128xf32, #tpu.memory_space<vmem>>, vector<256x128xf32>
    %82 = arith.truncf %80 : vector<256x128xf32> to vector<256x128xbf16>
    %c7 = arith.constant 7 : index
    %c0_87 = arith.constant 0 : index
    %c0_88 = arith.constant 0 : index
    %83 = vector.load %arg5[%c7, %c0_87, %c0_88] : memref<9x128x128xbf16, #tpu.memory_space<vmem>>, vector<1x128x128xbf16>
    %84 = vector.shape_cast %83 : vector<1x128x128xbf16> to vector<128x128xbf16>
    %cst_89 = arith.constant dense<0.000000e+00> : vector<256x128xf32>
    %85 = tpu.matmul %82, %84, %cst_89 {dimension_numbers = #tpu.dot_dimension_numbers<[1], [0], [0], [1], [0, 0, 1, 1], [], []>} : vector<256x128xbf16>, vector<128x128xbf16>, vector<256x128xf32> -> vector<256x128xf32>
    %86 = arith.addf %81, %85 : vector<256x128xf32>
    %c0_90 = arith.constant 0 : index
    %c0_91 = arith.constant 0 : index
    %87 = vector.load %arg8[%c0_90, %c0_91] : memref<256x128xf32, #tpu.memory_space<vmem>>, vector<256x128xf32>
    tpu.vector_store %arg8[%c0_90, %c0_91], %86 {strides = array<i32>} : memref<256x128xf32, #tpu.memory_space<vmem>>, vector<256x128xf32>,
    %c2_92 = arith.constant 2 : index
    %c2_93 = arith.constant 2 : index
    %c0_94 = arith.constant 0 : index
    %88 = vector.load %arg9[%c2_92, %c2_93, %c0_94] : memref<18x18x128xf32, #tpu.memory_space<vmem>>, vector<16x16x128xf32>
    %89 = vector.shape_cast %88 : vector<16x16x128xf32> to vector<256x128xf32>
    %c0_95 = arith.constant 0 : index
    %c0_96 = arith.constant 0 : index
    %90 = vector.load %arg8[%c0_95, %c0_96] : memref<256x128xf32, #tpu.memory_space<vmem>>, vector<256x128xf32>
    %91 = arith.truncf %89 : vector<256x128xf32> to vector<256x128xbf16>
    %c8 = arith.constant 8 : index
    %c0_97 = arith.constant 0 : index
    %c0_98 = arith.constant 0 : index
    %92 = vector.load %arg5[%c8, %c0_97, %c0_98] : memref<9x128x128xbf16, #tpu.memory_space<vmem>>, vector<1x128x128xbf16>
    %93 = vector.shape_cast %92 : vector<1x128x128xbf16> to vector<128x128xbf16>
    %cst_99 = arith.constant dense<0.000000e+00> : vector<256x128xf32>
    %94 = tpu.matmul %91, %93, %cst_99 {dimension_numbers = #tpu.dot_dimension_numbers<[1], [0], [0], [1], [0, 0, 1, 1], [], []>} : vector<256x128xbf16>, vector<128x128xbf16>, vector<256x128xf32> -> vector<256x128xf32>
    %95 = arith.addf %90, %94 : vector<256x128xf32>
    %c0_100 = arith.constant 0 : index
    %c0_101 = arith.constant 0 : index
    %96 = vector.load %arg8[%c0_100, %c0_101] : memref<256x128xf32, #tpu.memory_space<vmem>>, vector<256x128xf32>
    tpu.vector_store %arg8[%c0_100, %c0_101], %95 {strides = array<i32>} : memref<256x128xf32, #tpu.memory_space<vmem>>, vector<256x128xf32>,
    %c1_i32 = arith.constant 1 : i32
    %97 = arith.cmpi eq, %arg1, %c1_i32 : i32
    %98 = arith.extui %97 : i1 to i32
    %c0_i32_102 = arith.constant 0 : i32
    %99 = arith.cmpi ne, %98, %c0_i32_102 : i32
    scf.if %99 {
      %c0_103 = arith.constant 0 : index
      %c0_104 = arith.constant 0 : index
      %100 = vector.load %arg8[%c0_103, %c0_104] : memref<256x128xf32, #tpu.memory_space<vmem>>, vector<256x128xf32>
      %c0_105 = arith.constant 0 : index
      %c0_106 = arith.constant 0 : index
      %101 = vector.load %arg6[%c0_105, %c0_106] : memref<1x128xf32, #tpu.memory_space<vmem>>, vector<1x128xf32>
      %102 = vector.broadcast %101 : vector<1x128xf32> to vector<256x128xf32>
      %103 = arith.addf %100, %102 : vector<256x128xf32>
      %104 = vector.shape_cast %103 : vector<256x128xf32> to vector<16x16x128xf32>
      %c0_107 = arith.constant 0 : index
      %c0_108 = arith.constant 0 : index
      %c0_109 = arith.constant 0 : index
      %c0_110 = arith.constant 0 : index
      %105 = vector.load %arg7[%c0_107, %c0_108, %c0_109, %c0_110] : memref<1x16x16x128xf32, #tpu.memory_space<vmem>>, vector<1x16x16x128xf32>
      %106 = vector.shape_cast %105 : vector<1x16x16x128xf32> to vector<16x16x128xf32>
      %107 = vector.shape_cast %104 : vector<16x16x128xf32> to vector<1x16x16x128xf32>
      tpu.vector_store %arg7[%c0_107, %c0_108, %c0_109, %c0_110], %107 {strides = array<i32>} : memref<1x16x16x128xf32, #tpu.memory_space<vmem>>, vector<1x16x16x128xf32>,
    } else {
    }
    return
  }
  func.func @transform_0(%arg0: i32, %arg1: i32) -> (i32, i32, i32, i32) {
    %c0_i32 = arith.constant 0 : i32
    %c0_i32_0 = arith.constant 0 : i32
    %c0_i32_1 = arith.constant 0 : i32
    return %arg0, %c0_i32, %c0_i32_0, %arg1 : i32, i32, i32, i32
  }
  func.func @transform_1(%arg0: i32, %arg1: i32) -> (i32, i32) {
    %c0_i32 = arith.constant 0 : i32
    %c0_i32_0 = arith.constant 0 : i32
    return %c0_i32, %arg1 : i32, i32
  }
  func.func @transform_2(%arg0: i32, %arg1: i32) -> (i32, i32) {
    %c0_i32 = arith.constant 0 : i32
    %c0_i32_0 = arith.constant 0 : i32
    return %c0_i32, %arg1 : i32, i32
  }
  func.func @transform_3(%arg0: i32, %arg1: i32) -> (i32, i32, i32) {
    %c0_i32 = arith.constant 0 : i32
    %c0_i32_0 = arith.constant 0 : i32
    %c0_i32_1 = arith.constant 0 : i32
    return %c0_i32, %arg1, %c0_i32_0 : i32, i32, i32
  }
  func.func @transform_4(%arg0: i32, %arg1: i32) -> (i32, i32) {
    %c0_i32 = arith.constant 0 : i32
    %c0_i32_0 = arith.constant 0 : i32
    %c0_i32_1 = arith.constant 0 : i32
    return %c0_i32, %c0_i32_0 : i32, i32
  }
  func.func @transform_5(%arg0: i32, %arg1: i32) -> (i32, i32, i32, i32) {
    %c0_i32 = arith.constant 0 : i32
    %c0_i32_0 = arith.constant 0 : i32
    %c2_i32 = arith.constant 2 : i32
    %c0_i32_1 = arith.constant 0 : i32
    return %arg0, %c0_i32, %c0_i32_0, %c2_i32 : i32, i32, i32, i32
  }
}

</mosaic_0001>

<bundles_post_ra>
// kernel: dense_block_forward.4
= control target key start
LH: loop header
LB: loop body
LE: loop exit
PB: predicated region body
PF: predicated region fallthrough
CT: control target
= control target key end

     0   :  { %s667_s9 = smov 0   ;;  %s669_s10 = smov 0   ;;  %s849_s0 = inlined_call_operand.vmem [shape: f32[2,16,16,384], index: 0, kind: input, shape index: {}]   ;;  %s850_s1 = inlined_call_operand.vmem [shape: f32[1,128], index: 1, kind: output, shape index: {0}]   ;;  %s851_s2 = inlined_call_operand.vmem [shape: f32[1,128], index: 2, kind: output, shape index: {1}]  }
   0x1   :  { %s671_s11 = smov 0   ;;  %s673_s12 = smov 0  }
   0x2   :  { %s675_s13 = smov 0  }
   0x3 LB: > { %s22_s14 = sadd.s32 1, %s645_s12  ;;  %p41_p1 = scmp.ne.s32.totalorder %s637_s10, %s633_s9  ;;  %s649_s13 = sphi %s675_s13, %s13_s13   ;;  %s645_s12 = sphi %s673_s12, %s855_s12   ;;  %s641_s11 = sphi %s671_s11, %s854_s11   ;;  %s637_s10 = sphi %s669_s10, %s853_s10   ;;  %s633_s9 = sphi %s667_s9, %s852_s9  }
   0x4   : > { %p23_p0 = scmp.ge.s32.totalorder %s22_s14, 2  ;;  %p42_p2 = scmp.eq.s32.totalorder %s649_s13, 0 }
   0x5   : > { %s34_s16 = sadd.s32 1, %s637_s10  ;;  %p559_p5 = scmp.ge.s32.totalorder %s649_s13, 2 }
   0x6   : > { %s857_s14 = smov (%p23_p0, %s22_s14), 0  ;;  %p43_p3 = por %p42_p2, %p41_p1 }
   0x7   : > { %s29_s15 = ssub.s32 %s645_s12, %s857_s14  ;;  %119 = sbr.rel (%p559_p5) target bundleno = 49 (0x31), region = 16 }
   0x8   : > { %p32_p4 = scmp.eq.s32.totalorder %s29_s15, 0 }
   0xa   : > { %s702_s17 = scalar_select %p32_p4, %s637_s10, %s34_s16  }
   0xc   : > { %122 = sbr.rel (!%p43_p3) target bundleno = 49 (0x31), region = 20  ;;  %s124_s18 = sand.u32 (%p43_p3), 1, %s637_s10  }
   0xd   : > { %s569_s19 = smul.u32 (%p43_p3), 768, %s645_s12  ;;  %s560_s20 = sshll.u32 (%p43_p3), %s124_s18, 8 }
   0xe   : > { %s715_s24 = scalar_lea.vmem (%p43_p3), [#allocation2], %s560_s20 }
   0xf   : > { %s710_s23 = scalar_lea.vmem (%p43_p3), %s849_s0, %s569_s19 }
  0x10   : > { %v221_v0 = vld [vmem:[%s710_s23] sm:$0xff] (%p43_p3)  ;;  %v223_v1 = vld [vmem:[%s710_s23 + $0x18] sm:$0xff] (%p43_p3)  ;;  %v225_v2 = vld [vmem:[%s710_s23 + $0x30] sm:$0xff] (%p43_p3) }
  0x11   : > { %222 = vst [vmem:[%s715_s24] sm:$0xff] %v221_v0  ;;  %v227_v3 = vld [vmem:[%s710_s23 + $0x48] sm:$0xff]  ;;  %v229_v4 = vld [vmem:[%s710_s23 + $0x60] sm:$0xff]  ;;  %v231_v5 = vld [vmem:[%s710_s23 + $0x78] sm:$0xff] }
  0x12   : > { %224 = vst [vmem:[%s715_s24 + $0x8] sm:$0xff] %v223_v1  ;;  %v233_v6 = vld [vmem:[%s710_s23 + $0x90] sm:$0xff]  ;;  %v235_v7 = vld [vmem:[%s710_s23 + $0xa8] sm:$0xff]  ;;  %v237_v8 = vld [vmem:[%s710_s23 + $0xc0] sm:$0xff] }
  0x13   : > { %226 = vst [vmem:[%s715_s24 + $0x10] sm:$0xff] %v225_v2  ;;  %v239_v9 = vld [vmem:[%s710_s23 + $0xd8] sm:$0xff]  ;;  %v241_v10 = vld [vmem:[%s710_s23 + $0xf0] sm:$0xff]  ;;  %v243_v11 = vld [vmem:[%s710_s23 + $0x108] sm:$0xff] }
  0x14   : > { %228 = vst [vmem:[%s715_s24 + $0x18] sm:$0xff] %v227_v3  ;;  %v245_v12 = vld [vmem:[%s710_s23 + $0x120] sm:$0xff]  ;;  %v247_v13 = vld [vmem:[%s710_s23 + $0x138] sm:$0xff]  ;;  %v249_v14 = vld [vmem:[%s710_s23 + $0x150] sm:$0xff] }
  0x15   : > { %230 = vst [vmem:[%s715_s24 + $0x20] sm:$0xff] %v229_v4  ;;  %v251_v15 = vld [vmem:[%s710_s23 + $0x168] sm:$0xff]  ;;  %v253_v16 = vld [vmem:[%s710_s23 + $0x180] sm:$0xff]  ;;  %v255_v17 = vld [vmem:[%s710_s23 + $0x198] sm:$0xff] }
  0x16   : > { %232 = vst [vmem:[%s715_s24 + $0x28] sm:$0xff] %v231_v5  ;;  %v257_v18 = vld [vmem:[%s710_s23 + $0x1b0] sm:$0xff]  ;;  %v259_v19 = vld [vmem:[%s710_s23 + $0x1c8] sm:$0xff]  ;;  %v261_v20 = vld [vmem:[%s710_s23 + $0x1e0] sm:$0xff] }
  0x17   : > { %234 = vst [vmem:[%s715_s24 + $0x30] sm:$0xff] %v233_v6  ;;  %v263_v21 = vld [vmem:[%s710_s23 + $0x1f8] sm:$0xff]  ;;  %v265_v22 = vld [vmem:[%s710_s23 + $0x210] sm:$0xff]  ;;  %v267_v23 = vld [vmem:[%s710_s23 + $0x228] sm:$0xff] }
  0x18   : > { %236 = vst [vmem:[%s715_s24 + $0x38] sm:$0xff] %v235_v7  ;;  %v269_v24 = vld [vmem:[%s710_s23 + $0x240] sm:$0xff]  ;;  %v271_v25 = vld [vmem:[%s710_s23 + $0x258] sm:$0xff]  ;;  %v273_v26 = vld [vmem:[%s710_s23 + $0x270] sm:$0xff] }
  0x19   : > { %238 = vst [vmem:[%s715_s24 + $0x40] sm:$0xff] %v237_v8  ;;  %v275_v27 = vld [vmem:[%s710_s23 + $0x288] sm:$0xff]  ;;  %v277_v28 = vld [vmem:[%s710_s23 + $0x2a0] sm:$0xff]  ;;  %v279_v29 = vld [vmem:[%s710_s23 + $0x2b8] sm:$0xff] }
  0x1a   : > { %240 = vst [vmem:[%s715_s24 + $0x48] sm:$0xff] %v239_v9  ;;  %v281_v30 = vld [vmem:[%s710_s23 + $0x2d0] sm:$0xff]  ;;  %v283_v31 = vld [vmem:[%s710_s23 + $0x2e8] sm:$0xff] }
  0x1b   : > { %242 = vst [vmem:[%s715_s24 + $0x50] sm:$0xff] %v241_v10 }
  0x1c   : > { %244 = vst [vmem:[%s715_s24 + $0x58] sm:$0xff] %v243_v11 }
  0x1d   : > { %246 = vst [vmem:[%s715_s24 + $0x60] sm:$0xff] %v245_v12 }
  0x1e   : > { %248 = vst [vmem:[%s715_s24 + $0x68] sm:$0xff] %v247_v13 }
  0x1f   : > { %250 = vst [vmem:[%s715_s24 + $0x70] sm:$0xff] %v249_v14 }
  0x20   : > { %252 = vst [vmem:[%s715_s24 + $0x78] sm:$0xff] %v251_v15 }
  0x21   : > { %254 = vst [vmem:[%s715_s24 + $0x80] sm:$0xff] %v253_v16 }
  0x22   : > { %256 = vst [vmem:[%s715_s24 + $0x88] sm:$0xff] %v255_v17 }
  0x23   : > { %258 = vst [vmem:[%s715_s24 + $0x90] sm:$0xff] %v257_v18 }
  0x24   : > { %260 = vst [vmem:[%s715_s24 + $0x98] sm:$0xff] %v259_v19 }
  0x25   : > { %262 = vst [vmem:[%s715_s24 + $0xa0] sm:$0xff] %v261_v20 }
  0x26   : > { %264 = vst [vmem:[%s715_s24 + $0xa8] sm:$0xff] %v263_v21 }
  0x27   : > { %266 = vst [vmem:[%s715_s24 + $0xb0] sm:$0xff] %v265_v22 }
  0x28   : > { %268 = vst [vmem:[%s715_s24 + $0xb8] sm:$0xff] %v267_v23 }
  0x29   : > { %270 = vst [vmem:[%s715_s24 + $0xc0] sm:$0xff] %v269_v24 }
  0x2a   : > { %272 = vst [vmem:[%s715_s24 + $0xc8] sm:$0xff] %v271_v25 }
  0x2b   : > { %274 = vst [vmem:[%s715_s24 + $0xd0] sm:$0xff] %v273_v26 }
  0x2c   : > { %276 = vst [vmem:[%s715_s24 + $0xd8] sm:$0xff] %v275_v27 }
  0x2d   : > { %278 = vst [vmem:[%s715_s24 + $0xe0] sm:$0xff] %v277_v28 }
  0x2e   : > { %280 = vst [vmem:[%s715_s24 + $0xe8] sm:$0xff] %v279_v29 }
  0x2f   : > { %282 = vst [vmem:[%s715_s24 + $0xf0] sm:$0xff] %v281_v30 }
  0x30   : > { %284 = vst [vmem:[%s715_s24 + $0xf8] sm:$0xff] %v283_v31 }
  0x31 PF: > { %p562_p6 = scmp.ge.s32.totalorder %s649_s13, 1  ;;  %p289_p7 = scmp.lt.s32.totalorder %s649_s13, 3 }
  0x33   : > { %p290_p8 = pnand %p562_p6, %p289_p7 }
  0x34   : > { %s296_s25 = sand.u32 (!%p290_p8), 1, %s633_s9   ;;  %p564_p9 = scmp.ne.s32.totalorder (!%p290_p8), %s641_s11, 0 }
  0x35   : > { %293 = sbr.rel (%p290_p8) target bundleno = 146 (0x92), region = 58  ;;  %s563_s26 = sshll.u32 (!%p290_p8), %s296_s25, 8 }
  0x36   : > { %s781_s27 = scalar_lea.vmem (!%p290_p8), [#allocation2], %s563_s26 }
  0x3a   : > { %327 = sbr.rel (%p564_p9) target bundleno = 66 (0x42), region = 66 }
  0x3f   : > { %v651_v32 = vmov 0.0  }
  0x40   : > { %328 = vst [vmem:[%s850_s1] sm:$0x1] %v651_v32 }
  0x41   : > { %329 = vst [vmem:[%s851_s2] sm:$0x1] %v651_v32 }
  0x42 PF: > { %v330_v33 = vld [vmem:[%s781_s27] sm:$0xff]  ;;  %v331_v34 = vld [vmem:[%s781_s27 + $0x8] sm:$0xff]  ;;  %v332_v35 = vld [vmem:[%s781_s27 + $0x10] sm:$0xff] }
  0x43   : > { %v333_v36 = vld [vmem:[%s781_s27 + $0x18] sm:$0xff]  ;;  %v363_v37 = vadd.f32 %v331_v34, %v330_v33  ;;  %v403_v38 = vmul.f32 %v330_v33, %v330_v33  ;;  %v404_v39 = vmul.f32 %v331_v34, %v331_v34  ;;  %v405_v40 = vmul.f32 %v332_v35, %v332_v35  ;;  %v334_v41 = vld [vmem:[%s781_s27 + $0x20] sm:$0xff]  ;;  %v335_v45 = vld [vmem:[%s781_s27 + $0x28] sm:$0xff] }
  0x44   : > { %v406_v43 = vmul.f32 %v333_v36, %v333_v36  ;;  %v407_v47 = vmul.f32 %v334_v41, %v334_v41  ;;  %v336_v49 = vld [vmem:[%s781_s27 + $0x30] sm:$0xff]  ;;  %v408_v51 = vmul.f32 %v335_v45, %v335_v45  ;;  %v337_v53 = vld [vmem:[%s781_s27 + $0x38] sm:$0xff]  ;;  %v338_v57 = vld [vmem:[%s781_s27 + $0x40] sm:$0xff] }
  0x45   : > { %v364_v42 = vadd.f32 %v363_v37, %v332_v35  ;;  %v435_v44 = vadd.f32 %v404_v39, %v403_v38  ;;  %v409_v55 = vmul.f32 %v336_v49, %v336_v49  ;;  %v410_v59 = vmul.f32 %v337_v53, %v337_v53  ;;  %v339_v61 = vld [vmem:[%s781_s27 + $0x48] sm:$0xff]  ;;  %v340_v1 = vld [vmem:[%s781_s27 + $0x50] sm:$0xff]  ;;  %v341_v5 = vld [vmem:[%s781_s27 + $0x58] sm:$0xff] }
  0x46   : > { %v411_v63 = vmul.f32 %v338_v57, %v338_v57  ;;  %v412_v3 = vmul.f32 %v339_v61, %v339_v61  ;;  %v413_v7 = vmul.f32 %v340_v1, %v340_v1  ;;  %v342_v9 = vld [vmem:[%s781_s27 + $0x60] sm:$0xff]  ;;  %v414_v11 = vmul.f32 %v341_v5, %v341_v5  ;;  %v343_v13 = vld [vmem:[%s781_s27 + $0x68] sm:$0xff]  ;;  %v344_v17 = vld [vmem:[%s781_s27 + $0x70] sm:$0xff] }
  0x47   : > { %v365_v46 = vadd.f32 %v364_v42, %v333_v36  ;;  %v436_v48 = vadd.f32 %v435_v44, %v405_v40  ;;  %v415_v15 = vmul.f32 %v342_v9, %v342_v9  ;;  %v416_v19 = vmul.f32 %v343_v13, %v343_v13  ;;  %v345_v21 = vld [vmem:[%s781_s27 + $0x78] sm:$0xff]  ;;  %v346_v25 = vld [vmem:[%s781_s27 + $0x80] sm:$0xff]  ;;  %v347_v29 = vld [vmem:[%s781_s27 + $0x88] sm:$0xff] }
  0x48   : > { %v417_v23 = vmul.f32 %v344_v17, %v344_v17  ;;  %v418_v27 = vmul.f32 %v345_v21, %v345_v21  ;;  %v419_v31 = vmul.f32 %v346_v25, %v346_v25  ;;  %v348_v33 = vld [vmem:[%s781_s27 + $0x90] sm:$0xff]  ;;  %v420_v35 = vmul.f32 %v347_v29, %v347_v29  ;;  %v349_v37 = vld [vmem:[%s781_s27 + $0x98] sm:$0xff] }
  0x49   : > { %v366_v50 = vadd.f32 %v365_v46, %v334_v41  ;;  %v437_v52 = vadd.f32 %v436_v48, %v406_v43  ;;  %v421_v39 = vmul.f32 %v348_v33, %v348_v33  ;;  %v350_v41 = vld [vmem:[%s781_s27 + $0xa0] sm:$0xff]  ;;  %v422_v43 = vmul.f32 %v349_v37, %v349_v37 }
  0x4b   : > { %v367_v54 = vadd.f32 %v366_v50, %v335_v45  ;;  %v438_v56 = vadd.f32 %v437_v52, %v407_v47  ;;  %v351_v45 = vld [vmem:[%s781_s27 + $0xa8] sm:$0xff]  ;;  %v423_v47 = vmul.f32 %v350_v41, %v350_v41 }
  0x4d   : > { %v368_v58 = vadd.f32 %v367_v54, %v336_v49  ;;  %v439_v60 = vadd.f32 %v438_v56, %v408_v51  ;;  %v352_v49 = vld [vmem:[%s781_s27 + $0xb0] sm:$0xff]  ;;  %v424_v51 = vmul.f32 %v351_v45, %v351_v45 }
  0x4f   : > { %v369_v62 = vadd.f32 %v368_v58, %v337_v53  ;;  %v440_v0 = vadd.f32 %v439_v60, %v409_v55  ;;  %v353_v53 = vld [vmem:[%s781_s27 + $0xb8] sm:$0xff]  ;;  %v425_v55 = vmul.f32 %v352_v49, %v352_v49 }
  0x51   : > { %v370_v2 = vadd.f32 %v369_v62, %v338_v57  ;;  %v441_v4 = vadd.f32 %v440_v0, %v410_v59  ;;  %v354_v57 = vld [vmem:[%s781_s27 + $0xc0] sm:$0xff]  ;;  %v426_v59 = vmul.f32 %v353_v53, %v353_v53 }
  0x53   : > { %v371_v6 = vadd.f32 %v370_v2, %v339_v61  ;;  %v442_v8 = vadd.f32 %v441_v4, %v411_v63  ;;  %v355_v61 = vld [vmem:[%s781_s27 + $0xc8] sm:$0xff]  ;;  %v427_v63 = vmul.f32 %v354_v57, %v354_v57 }
  0x55   : > { %v372_v10 = vadd.f32 %v371_v6, %v340_v1  ;;  %v443_v12 = vadd.f32 %v442_v8, %v412_v3  ;;  %v356_v1 = vld [vmem:[%s781_s27 + $0xd0] sm:$0xff]  ;;  %v428_v3 = vmul.f32 %v355_v61, %v355_v61 }
  0x57   : > { %v373_v14 = vadd.f32 %v372_v10, %v341_v5  ;;  %v444_v16 = vadd.f32 %v443_v12, %v413_v7  ;;  %v357_v5 = vld [vmem:[%s781_s27 + $0xd8] sm:$0xff]  ;;  %v429_v7 = vmul.f32 %v356_v1, %v356_v1 }
  0x59   : > { %v374_v18 = vadd.f32 %v373_v14, %v342_v9  ;;  %v445_v20 = vadd.f32 %v444_v16, %v414_v11  ;;  %v358_v9 = vld [vmem:[%s781_s27 + $0xe0] sm:$0xff]  ;;  %v430_v11 = vmul.f32 %v357_v5, %v357_v5 }
  0x5b   : > { %v375_v22 = vadd.f32 %v374_v18, %v343_v13  ;;  %v446_v24 = vadd.f32 %v445_v20, %v415_v15  ;;  %v359_v13 = vld [vmem:[%s781_s27 + $0xe8] sm:$0xff]  ;;  %v431_v15 = vmul.f32 %v358_v9, %v358_v9 }
  0x5d   : > { %v376_v26 = vadd.f32 %v375_v22, %v344_v17  ;;  %v447_v28 = vadd.f32 %v446_v24, %v416_v19  ;;  %v360_v17 = vld [vmem:[%s781_s27 + $0xf0] sm:$0xff]  ;;  %v432_v19 = vmul.f32 %v359_v13, %v359_v13 }
  0x5f   : > { %v377_v30 = vadd.f32 %v376_v26, %v345_v21  ;;  %v448_v32 = vadd.f32 %v447_v28, %v417_v23  ;;  %v361_v21 = vld [vmem:[%s781_s27 + $0xf8] sm:$0xff]  ;;  %v433_v23 = vmul.f32 %v360_v17, %v360_v17 }
  0x60   : > { %v434_v26 = vmul.f32 %v361_v21, %v361_v21 }
  0x61   : > { %v378_v34 = vadd.f32 %v377_v30, %v346_v25  ;;  %v449_v36 = vadd.f32 %v448_v32, %v418_v27 }
  0x63   : > { %v379_v38 = vadd.f32 %v378_v34, %v347_v29  ;;  %v450_v40 = vadd.f32 %v449_v36, %v419_v31 }
  0x65   : > { %v380_v42 = vadd.f32 %v379_v38, %v348_v33  ;;  %v451_v44 = vadd.f32 %v450_v40, %v420_v35 }
  0x67   : > { %v381_v46 = vadd.f32 %v380_v42, %v349_v37  ;;  %v452_v48 = vadd.f32 %v451_v44, %v421_v39  ;;  %v362_v39 = vld [vmem:[%s850_s1] sm:$0x1] }
  0x68   : > { %v402_v44 = vld [vmem:[%s851_s2] sm:$0x1] }
  0x69   : > { %v382_v50 = vadd.f32 %v381_v46, %v350_v41  ;;  %v453_v52 = vadd.f32 %v452_v48, %v422_v43 }
  0x6b   : > { %v383_v54 = vadd.f32 %v382_v50, %v351_v45  ;;  %v454_v56 = vadd.f32 %v453_v52, %v423_v47 }
  0x6d   : > { %v384_v58 = vadd.f32 %v383_v54, %v352_v49  ;;  %v455_v60 = vadd.f32 %v454_v56, %v424_v51 }
  0x6f   : > { %v385_v62 = vadd.f32 %v384_v58, %v353_v53  ;;  %v456_v0 = vadd.f32 %v455_v60, %v425_v55 }
  0x71   : > { %v386_v2 = vadd.f32 %v385_v62, %v354_v57  ;;  %v457_v4 = vadd.f32 %v456_v0, %v426_v59 }
  0x73   : > { %v387_v6 = vadd.f32 %v386_v2, %v355_v61  ;;  %v458_v8 = vadd.f32 %v457_v4, %v427_v63 }
  0x75   : > { %v388_v10 = vadd.f32 %v387_v6, %v356_v1  ;;  %v459_v12 = vadd.f32 %v458_v8, %v428_v3 }
  0x77   : > { %v389_v14 = vadd.f32 %v388_v10, %v357_v5  ;;  %v460_v16 = vadd.f32 %v459_v12, %v429_v7 }
  0x79   : > { %v390_v18 = vadd.f32 %v389_v14, %v358_v9  ;;  %v461_v20 = vadd.f32 %v460_v16, %v430_v11 }
  0x7b   : > { %v391_v22 = vadd.f32 %v390_v18, %v359_v13  ;;  %v462_v24 = vadd.f32 %v461_v20, %v431_v15 }
  0x7d   : > { %v392_v25 = vadd.f32 %v391_v22, %v360_v17  ;;  %v463_v27 = vadd.f32 %v462_v24, %v432_v19 }
  0x7f   : > { %v393_v28 = vadd.f32 %v392_v25, %v361_v21  ;;  %v464_v29 = vadd.f32 %v463_v27, %v433_v23 }
  0x81   : > { %v394_v30 = vrot.slane %v393_v28, 4  ;;  %v465_v31 = vadd.f32 %v464_v29, %v434_v26 }
  0x83   : > { %v395_v32 = vadd.f32 %v394_v30, %v393_v28  ;;  %v466_v33 = vrot.slane %v465_v31, 4 }
  0x85   : > { %v396_v34 = vrot.slane %v395_v32, 2  ;;  %v467_v35 = vadd.f32 %v466_v33, %v465_v31 }
  0x87   : > { %v397_v36 = vadd.f32 %v396_v34, %v395_v32  ;;  %v468_v37 = vrot.slane %v467_v35, 2 }
  0x89   : > { %v398_v38 = vrot.slane %v397_v36, 1  ;;  %v469_v40 = vadd.f32 %v468_v37, %v467_v35 }
  0x8b   : > { %v399_v41 = vadd.f32 %v398_v38, %v397_v36  ;;  %v470_v42 = vrot.slane %v469_v40, 1 }
  0x8d   : > { %v400_v43 = vadd.f32 %v399_v41, %v362_v39  ;;  %v471_v45 = vadd.f32 %v470_v42, %v469_v40 }
  0x8f   : > { %401 = vst [vmem:[%s850_s1] sm:$0x1] %v400_v43  ;;  %v472_v46 = vadd.f32 %v471_v45, %v402_v44 }
  0x91   : > { %473 = vst [vmem:[%s851_s2] sm:$0x1] %v472_v46 }
  0x92 PF: > { %s13_s13 = sadd.s32 1, %s649_s13   ;;  %s852_s9 = smov %s637_s10 }
  0x93   : > { %p10_p10 = scmp.ge.s32.totalorder %s13_s13, 4   ;;  %s853_s10 = smov %s702_s17 }
  0x94   : > { %s854_s11 = smov %s645_s12  ;;  %s855_s12 = smov %s857_s14 }
  0x95   :  { %12 = sbr.rel (!%p10_p10) target bundleno = 3 (0x3), region = 113 }

// kernel: dense_block_forward.6
= control target key start
LH: loop header
LB: loop body
LE: loop exit
PB: predicated region body
PF: predicated region fallthrough
CT: control target
= control target key end

     0   :  { %s706_s9 = smov 0   ;;  %s708_s10 = smov 0   ;;  %s911_s0 = inlined_call_operand.vmem [shape: f32[2,16,16,384], index: 0, kind: input, shape index: {}]   ;;  %s912_s1 = inlined_call_operand.vmem [shape: f32[1,256], index: 1, kind: output, shape index: {0}]   ;;  %s913_s2 = inlined_call_operand.vmem [shape: f32[1,256], index: 2, kind: output, shape index: {1}]  }
   0x1   :  { %s710_s11 = smov 0   ;;  %s712_s12 = smov 0  }
   0x2   :  { %s714_s13 = smov 0   ;;  %s716_s14 = smov 0  }
   0x3   :  { %s718_s15 = smov 0  }
   0x4 LB: > { %s22_s16 = sadd.s32 1, %s680_s13  ;;  %s25_s17 = sadd.s32 1, %s684_s14  ;;  %s688_s15 = sphi %s718_s15, %s13_s15   ;;  %s684_s14 = sphi %s716_s14, %s919_s14   ;;  %s680_s13 = sphi %s714_s13, %s918_s13   ;;  %s676_s12 = sphi %s712_s12, %s917_s12   ;;  %s672_s11 = sphi %s710_s11, %s916_s11   ;;  %s668_s10 = sphi %s708_s10, %s915_s10   ;;  %s664_s9 = sphi %s706_s9, %s914_s9  }
   0x5   : > { %p23_p0 = scmp.ge.s32.totalorder %s22_s16, 2  ;;  %p41_p1 = scmp.ne.s32.totalorder %s668_s10, %s664_s9 }
   0x6   : > { %p42_p2 = scmp.eq.s32.totalorder %s688_s15, 0  ;;  %s34_s21 = sadd.s32 1, %s668_s10 }
   0x7   : > { %s921_s16 = smov (%p23_p0, %s22_s16), 0  ;;  %s923_s17 = smov (!%p23_p0, %s25_s17), %s684_s14 }
   0x8   : > { %p43_p3 = por %p42_p2, %p41_p1  ;;  %p27_p4 = scmp.ge.s32.totalorder %s923_s17, 2 }
   0x9   : > { %s29_s18 = ssub.s32 %s680_s13, %s921_s16  ;;  %p568_p6 = scmp.ge.s32.totalorder %s688_s15, 4 }
   0xa   : > { %s925_s17 = smov (%p27_p4, %s923_s17), 0 }
   0xb   : > { %s30_s19 = ssub.s32 %s684_s14, %s925_s17  ;;  %119 = sbr.rel (%p568_p6) target bundleno = 55 (0x37), region = 16 }
   0xc   : > { %s31_s20 = sor.u32 %s30_s19, %s29_s18 }
   0xd   : > { %p32_p5 = scmp.eq.s32.totalorder %s31_s20, 0 }
   0xf   : > { %s757_s22 = scalar_select %p32_p5, %s668_s10, %s34_s21  }
  0x10   : > { %122 = sbr.rel (!%p43_p3) target bundleno = 55 (0x37), region = 20  ;;  %s124_s23 = sand.u32 (%p43_p3), 1, %s668_s10  }
  0x11   : > { %s576_s24 = smul.u32 (%p43_p3), 96, %s680_s13  ;;  %s569_s25 = sshll.u32 (%p43_p3), %s124_s23, 8 }
  0x12   : > { %s771_s3 = scalar_lea.vmem (%p43_p3), [#allocation2], %s569_s25 }
  0x13   : > { %s128_s26 = sadd.s32 (%p43_p3), %s684_s14, %s576_s24 }
  0x14   : > { %s570_s27 = sshll.u32 (%p43_p3), %s128_s26, 3 }
  0x15   : > { %s766_s30 = scalar_lea.vmem %s911_s0, %s570_s27 }
  0x16   : > { %v221_v0 = vld [vmem:[%s766_s30] sm:$0xff]  ;;  %v223_v1 = vld [vmem:[%s766_s30 + $0x18] sm:$0xff]  ;;  %v225_v2 = vld [vmem:[%s766_s30 + $0x30] sm:$0xff] }
  0x17   : > { %222 = vst [vmem:[%s771_s3] sm:$0xff] %v221_v0  ;;  %v227_v3 = vld [vmem:[%s766_s30 + $0x48] sm:$0xff]  ;;  %v229_v4 = vld [vmem:[%s766_s30 + $0x60] sm:$0xff]  ;;  %v231_v5 = vld [vmem:[%s766_s30 + $0x78] sm:$0xff] }
  0x18   : > { %224 = vst [vmem:[%s771_s3 + $0x8] sm:$0xff] %v223_v1  ;;  %v233_v6 = vld [vmem:[%s766_s30 + $0x90] sm:$0xff]  ;;  %v235_v7 = vld [vmem:[%s766_s30 + $0xa8] sm:$0xff]  ;;  %v237_v8 = vld [vmem:[%s766_s30 + $0xc0] sm:$0xff] }
  0x19   : > { %226 = vst [vmem:[%s771_s3 + $0x10] sm:$0xff] %v225_v2  ;;  %v239_v9 = vld [vmem:[%s766_s30 + $0xd8] sm:$0xff]  ;;  %v241_v10 = vld [vmem:[%s766_s30 + $0xf0] sm:$0xff]  ;;  %v243_v11 = vld [vmem:[%s766_s30 + $0x108] sm:$0xff] }
  0x1a   : > { %228 = vst [vmem:[%s771_s3 + $0x18] sm:$0xff] %v227_v3  ;;  %v245_v12 = vld [vmem:[%s766_s30 + $0x120] sm:$0xff]  ;;  %v247_v13 = vld [vmem:[%s766_s30 + $0x138] sm:$0xff]  ;;  %v249_v14 = vld [vmem:[%s766_s30 + $0x150] sm:$0xff] }
  0x1b   : > { %230 = vst [vmem:[%s771_s3 + $0x20] sm:$0xff] %v229_v4  ;;  %v251_v15 = vld [vmem:[%s766_s30 + $0x168] sm:$0xff]  ;;  %v253_v16 = vld [vmem:[%s766_s30 + $0x180] sm:$0xff]  ;;  %v255_v17 = vld [vmem:[%s766_s30 + $0x198] sm:$0xff] }
  0x1c   : > { %232 = vst [vmem:[%s771_s3 + $0x28] sm:$0xff] %v231_v5  ;;  %v257_v18 = vld [vmem:[%s766_s30 + $0x1b0] sm:$0xff]  ;;  %v259_v19 = vld [vmem:[%s766_s30 + $0x1c8] sm:$0xff]  ;;  %v261_v20 = vld [vmem:[%s766_s30 + $0x1e0] sm:$0xff] }
  0x1d   : > { %234 = vst [vmem:[%s771_s3 + $0x30] sm:$0xff] %v233_v6  ;;  %v263_v21 = vld [vmem:[%s766_s30 + $0x1f8] sm:$0xff]  ;;  %v265_v22 = vld [vmem:[%s766_s30 + $0x210] sm:$0xff]  ;;  %v267_v23 = vld [vmem:[%s766_s30 + $0x228] sm:$0xff] }
  0x1e   : > { %236 = vst [vmem:[%s771_s3 + $0x38] sm:$0xff] %v235_v7  ;;  %v269_v24 = vld [vmem:[%s766_s30 + $0x240] sm:$0xff]  ;;  %v271_v25 = vld [vmem:[%s766_s30 + $0x258] sm:$0xff]  ;;  %v273_v26 = vld [vmem:[%s766_s30 + $0x270] sm:$0xff] }
  0x1f   : > { %238 = vst [vmem:[%s771_s3 + $0x40] sm:$0xff] %v237_v8  ;;  %v275_v27 = vld [vmem:[%s766_s30 + $0x288] sm:$0xff]  ;;  %v277_v28 = vld [vmem:[%s766_s30 + $0x2a0] sm:$0xff]  ;;  %v279_v29 = vld [vmem:[%s766_s30 + $0x2b8] sm:$0xff] }
  0x20   : > { %240 = vst [vmem:[%s771_s3 + $0x48] sm:$0xff] %v239_v9  ;;  %v281_v30 = vld [vmem:[%s766_s30 + $0x2d0] sm:$0xff]  ;;  %v283_v31 = vld [vmem:[%s766_s30 + $0x2e8] sm:$0xff] }
  0x21   : > { %242 = vst [vmem:[%s771_s3 + $0x50] sm:$0xff] %v241_v10 }
  0x22   : > { %244 = vst [vmem:[%s771_s3 + $0x58] sm:$0xff] %v243_v11 }
  0x23   : > { %246 = vst [vmem:[%s771_s3 + $0x60] sm:$0xff] %v245_v12 }
  0x24   : > { %248 = vst [vmem:[%s771_s3 + $0x68] sm:$0xff] %v247_v13 }
  0x25   : > { %250 = vst [vmem:[%s771_s3 + $0x70] sm:$0xff] %v249_v14 }
  0x26   : > { %252 = vst [vmem:[%s771_s3 + $0x78] sm:$0xff] %v251_v15 }
  0x27   : > { %254 = vst [vmem:[%s771_s3 + $0x80] sm:$0xff] %v253_v16 }
  0x28   : > { %256 = vst [vmem:[%s771_s3 + $0x88] sm:$0xff] %v255_v17 }
  0x29   : > { %258 = vst [vmem:[%s771_s3 + $0x90] sm:$0xff] %v257_v18 }
  0x2a   : > { %260 = vst [vmem:[%s771_s3 + $0x98] sm:$0xff] %v259_v19 }
  0x2b   : > { %262 = vst [vmem:[%s771_s3 + $0xa0] sm:$0xff] %v261_v20 }
  0x2c   : > { %264 = vst [vmem:[%s771_s3 + $0xa8] sm:$0xff] %v263_v21 }
  0x2d   : > { %266 = vst [vmem:[%s771_s3 + $0xb0] sm:$0xff] %v265_v22 }
  0x2e   : > { %268 = vst [vmem:[%s771_s3 + $0xb8] sm:$0xff] %v267_v23 }
  0x2f   : > { %270 = vst [vmem:[%s771_s3 + $0xc0] sm:$0xff] %v269_v24 }
  0x30   : > { %272 = vst [vmem:[%s771_s3 + $0xc8] sm:$0xff] %v271_v25 }
  0x31   : > { %274 = vst [vmem:[%s771_s3 + $0xd0] sm:$0xff] %v273_v26 }
  0x32   : > { %276 = vst [vmem:[%s771_s3 + $0xd8] sm:$0xff] %v275_v27 }
  0x33   : > { %278 = vst [vmem:[%s771_s3 + $0xe0] sm:$0xff] %v277_v28 }
  0x34   : > { %280 = vst [vmem:[%s771_s3 + $0xe8] sm:$0xff] %v279_v29 }
  0x35   : > { %282 = vst [vmem:[%s771_s3 + $0xf0] sm:$0xff] %v281_v30 }
  0x36   : > { %284 = vst [vmem:[%s771_s3 + $0xf8] sm:$0xff] %v283_v31 }
  0x37 PF: > { %p571_p7 = scmp.ge.s32.totalorder %s688_s15, 1  ;;  %p289_p8 = scmp.lt.s32.totalorder %s688_s15, 5 }
  0x39   : > { %p290_p9 = pnand %p571_p7, %p289_p8 }
  0x3a   : > { %s296_s4 = sand.u32 (!%p290_p9), 1, %s664_s9   ;;  %p318_p10 = scmp.lt.s32.totalorder (!%p290_p9), %s676_s12, 1 }
  0x3b   : > { %293 = sbr.rel (%p290_p9) target bundleno = 152 (0x98), region = 58  ;;  %s572_s5 = sshll.u32 (!%p290_p9), %s296_s4, 8 }
  0x3c   : > { %s849_s21 = scalar_lea.vmem (!%p290_p9), [#allocation2], %s572_s5  ;;  %p573_p11 = scmp.ne.s32.totalorder (!%p290_p9), %s672_s11, 0 }
  0x40   : > { %s927_s12 = smov (!%p318_p10, %s676_s12), 1  ;;  %327 = sbr.rel (%p573_p11) target bundleno = 72 (0x48), region = 66 }
  0x41   : > { %s842_s8 = scalar_lea.vmem %s912_s1, %s927_s12  ;;  %s847_s20 = scalar_lea.vmem %s913_s2, %s927_s12 }
  0x45   : > { %v690_v32 = vmov 0.0  }
  0x46   : > { %328 = vst [vmem:[%s842_s8] sm:$0x1] %v690_v32 }
  0x47   : > { %329 = vst [vmem:[%s847_s20] sm:$0x1] %v690_v32 }
  0x48 PF: > { %v330_v33 = vld [vmem:[%s849_s21] sm:$0xff]  ;;  %v331_v34 = vld [vmem:[%s849_s21 + $0x8] sm:$0xff]  ;;  %v332_v35 = vld [vmem:[%s849_s21 + $0x10] sm:$0xff] }
  0x49   : > { %v333_v36 = vld [vmem:[%s849_s21 + $0x18] sm:$0xff]  ;;  %v363_v37 = vadd.f32 %v331_v34, %v330_v33  ;;  %v403_v38 = vmul.f32 %v330_v33, %v330_v33  ;;  %v404_v39 = vmul.f32 %v331_v34, %v331_v34  ;;  %v405_v40 = vmul.f32 %v332_v35, %v332_v35  ;;  %v334_v41 = vld [vmem:[%s849_s21 + $0x20] sm:$0xff]  ;;  %v335_v45 = vld [vmem:[%s849_s21 + $0x28] sm:$0xff] }
  0x4a   : > { %v406_v43 = vmul.f32 %v333_v36, %v333_v36  ;;  %v407_v47 = vmul.f32 %v334_v41, %v334_v41  ;;  %v336_v49 = vld [vmem:[%s849_s21 + $0x30] sm:$0xff]  ;;  %v408_v51 = vmul.f32 %v335_v45, %v335_v45  ;;  %v337_v53 = vld [vmem:[%s849_s21 + $0x38] sm:$0xff]  ;;  %v338_v57 = vld [vmem:[%s849_s21 + $0x40] sm:$0xff] }
  0x4b   : > { %v364_v42 = vadd.f32 %v363_v37, %v332_v35  ;;  %v435_v44 = vadd.f32 %v404_v39, %v403_v38  ;;  %v409_v55 = vmul.f32 %v336_v49, %v336_v49  ;;  %v410_v59 = vmul.f32 %v337_v53, %v337_v53  ;;  %v339_v61 = vld [vmem:[%s849_s21 + $0x48] sm:$0xff]  ;;  %v340_v1 = vld [vmem:[%s849_s21 + $0x50] sm:$0xff]  ;;  %v341_v5 = vld [vmem:[%s849_s21 + $0x58] sm:$0xff] }
  0x4c   : > { %v411_v63 = vmul.f32 %v338_v57, %v338_v57  ;;  %v412_v3 = vmul.f32 %v339_v61, %v339_v61  ;;  %v413_v7 = vmul.f32 %v340_v1, %v340_v1  ;;  %v342_v9 = vld [vmem:[%s849_s21 + $0x60] sm:$0xff]  ;;  %v414_v11 = vmul.f32 %v341_v5, %v341_v5  ;;  %v343_v13 = vld [vmem:[%s849_s21 + $0x68] sm:$0xff]  ;;  %v344_v17 = vld [vmem:[%s849_s21 + $0x70] sm:$0xff] }
  0x4d   : > { %v365_v46 = vadd.f32 %v364_v42, %v333_v36  ;;  %v436_v48 = vadd.f32 %v435_v44, %v405_v40  ;;  %v415_v15 = vmul.f32 %v342_v9, %v342_v9  ;;  %v416_v19 = vmul.f32 %v343_v13, %v343_v13  ;;  %v345_v21 = vld [vmem:[%s849_s21 + $0x78] sm:$0xff]  ;;  %v346_v25 = vld [vmem:[%s849_s21 + $0x80] sm:$0xff]  ;;  %v347_v29 = vld [vmem:[%s849_s21 + $0x88] sm:$0xff] }
  0x4e   : > { %v417_v23 = vmul.f32 %v344_v17, %v344_v17  ;;  %v418_v27 = vmul.f32 %v345_v21, %v345_v21  ;;  %v419_v31 = vmul.f32 %v346_v25, %v346_v25  ;;  %v348_v33 = vld [vmem:[%s849_s21 + $0x90] sm:$0xff]  ;;  %v420_v35 = vmul.f32 %v347_v29, %v347_v29  ;;  %v349_v37 = vld [vmem:[%s849_s21 + $0x98] sm:$0xff] }
  0x4f   : > { %v366_v50 = vadd.f32 %v365_v46, %v334_v41  ;;  %v437_v52 = vadd.f32 %v436_v48, %v406_v43  ;;  %v421_v39 = vmul.f32 %v348_v33, %v348_v33  ;;  %v350_v41 = vld [vmem:[%s849_s21 + $0xa0] sm:$0xff]  ;;  %v422_v43 = vmul.f32 %v349_v37, %v349_v37 }
  0x51   : > { %v367_v54 = vadd.f32 %v366_v50, %v335_v45  ;;  %v438_v56 = vadd.f32 %v437_v52, %v407_v47  ;;  %v351_v45 = vld [vmem:[%s849_s21 + $0xa8] sm:$0xff]  ;;  %v423_v47 = vmul.f32 %v350_v41, %v350_v41 }
  0x53   : > { %v368_v58 = vadd.f32 %v367_v54, %v336_v49  ;;  %v439_v60 = vadd.f32 %v438_v56, %v408_v51  ;;  %v352_v49 = vld [vmem:[%s849_s21 + $0xb0] sm:$0xff]  ;;  %v424_v51 = vmul.f32 %v351_v45, %v351_v45 }
  0x55   : > { %v369_v62 = vadd.f32 %v368_v58, %v337_v53  ;;  %v440_v0 = vadd.f32 %v439_v60, %v409_v55  ;;  %v353_v53 = vld [vmem:[%s849_s21 + $0xb8] sm:$0xff]  ;;  %v425_v55 = vmul.f32 %v352_v49, %v352_v49 }
  0x57   : > { %v370_v2 = vadd.f32 %v369_v62, %v338_v57  ;;  %v441_v4 = vadd.f32 %v440_v0, %v410_v59  ;;  %v354_v57 = vld [vmem:[%s849_s21 + $0xc0] sm:$0xff]  ;;  %v426_v59 = vmul.f32 %v353_v53, %v353_v53 }
  0x59   : > { %v371_v6 = vadd.f32 %v370_v2, %v339_v61  ;;  %v442_v8 = vadd.f32 %v441_v4, %v411_v63  ;;  %v355_v61 = vld [vmem:[%s849_s21 + $0xc8] sm:$0xff]  ;;  %v427_v63 = vmul.f32 %v354_v57, %v354_v57 }
  0x5b   : > { %v372_v10 = vadd.f32 %v371_v6, %v340_v1  ;;  %v443_v12 = vadd.f32 %v442_v8, %v412_v3  ;;  %v356_v1 = vld [vmem:[%s849_s21 + $0xd0] sm:$0xff]  ;;  %v428_v3 = vmul.f32 %v355_v61, %v355_v61 }
  0x5d   : > { %v373_v14 = vadd.f32 %v372_v10, %v341_v5  ;;  %v444_v16 = vadd.f32 %v443_v12, %v413_v7  ;;  %v357_v5 = vld [vmem:[%s849_s21 + $0xd8] sm:$0xff]  ;;  %v429_v7 = vmul.f32 %v356_v1, %v356_v1 }
  0x5f   : > { %v374_v18 = vadd.f32 %v373_v14, %v342_v9  ;;  %v445_v20 = vadd.f32 %v444_v16, %v414_v11  ;;  %v358_v9 = vld [vmem:[%s849_s21 + $0xe0] sm:$0xff]  ;;  %v430_v11 = vmul.f32 %v357_v5, %v357_v5 }
  0x61   : > { %v375_v22 = vadd.f32 %v374_v18, %v343_v13  ;;  %v446_v24 = vadd.f32 %v445_v20, %v415_v15  ;;  %v359_v13 = vld [vmem:[%s849_s21 + $0xe8] sm:$0xff]  ;;  %v431_v15 = vmul.f32 %v358_v9, %v358_v9 }
  0x63   : > { %v376_v26 = vadd.f32 %v375_v22, %v344_v17  ;;  %v447_v28 = vadd.f32 %v446_v24, %v416_v19  ;;  %v360_v17 = vld [vmem:[%s849_s21 + $0xf0] sm:$0xff]  ;;  %v432_v19 = vmul.f32 %v359_v13, %v359_v13 }
  0x65   : > { %v377_v30 = vadd.f32 %v376_v26, %v345_v21  ;;  %v448_v32 = vadd.f32 %v447_v28, %v417_v23  ;;  %v361_v21 = vld [vmem:[%s849_s21 + $0xf8] sm:$0xff]  ;;  %v433_v23 = vmul.f32 %v360_v17, %v360_v17 }
  0x66   : > { %v434_v26 = vmul.f32 %v361_v21, %v361_v21 }
  0x67   : > { %v378_v34 = vadd.f32 %v377_v30, %v346_v25  ;;  %v449_v36 = vadd.f32 %v448_v32, %v418_v27 }
  0x69   : > { %v379_v38 = vadd.f32 %v378_v34, %v347_v29  ;;  %v450_v40 = vadd.f32 %v449_v36, %v419_v31 }
  0x6b   : > { %v380_v42 = vadd.f32 %v379_v38, %v348_v33  ;;  %v451_v44 = vadd.f32 %v450_v40, %v420_v35 }
  0x6d   : > { %v381_v46 = vadd.f32 %v380_v42, %v349_v37  ;;  %v452_v48 = vadd.f32 %v451_v44, %v421_v39  ;;  %v362_v39 = vld [vmem:[%s842_s8] sm:$0x1] }
  0x6e   : > { %v402_v44 = vld [vmem:[%s847_s20] sm:$0x1] }
  0x6f   : > { %v382_v50 = vadd.f32 %v381_v46, %v350_v41  ;;  %v453_v52 = vadd.f32 %v452_v48, %v422_v43 }
  0x71   : > { %v383_v54 = vadd.f32 %v382_v50, %v351_v45  ;;  %v454_v56 = vadd.f32 %v453_v52, %v423_v47 }
  0x73   : > { %v384_v58 = vadd.f32 %v383_v54, %v352_v49  ;;  %v455_v60 = vadd.f32 %v454_v56, %v424_v51 }
  0x75   : > { %v385_v62 = vadd.f32 %v384_v58, %v353_v53  ;;  %v456_v0 = vadd.f32 %v455_v60, %v425_v55 }
  0x77   : > { %v386_v2 = vadd.f32 %v385_v62, %v354_v57  ;;  %v457_v4 = vadd.f32 %v456_v0, %v426_v59 }
  0x79   : > { %v387_v6 = vadd.f32 %v386_v2, %v355_v61  ;;  %v458_v8 = vadd.f32 %v457_v4, %v427_v63 }
  0x7b   : > { %v388_v10 = vadd.f32 %v387_v6, %v356_v1  ;;  %v459_v12 = vadd.f32 %v458_v8, %v428_v3 }
  0x7d   : > { %v389_v14 = vadd.f32 %v388_v10, %v357_v5  ;;  %v460_v16 = vadd.f32 %v459_v12, %v429_v7 }
  0x7f   : > { %v390_v18 = vadd.f32 %v389_v14, %v358_v9  ;;  %v461_v20 = vadd.f32 %v460_v16, %v430_v11 }
  0x81   : > { %v391_v22 = vadd.f32 %v390_v18, %v359_v13  ;;  %v462_v24 = vadd.f32 %v461_v20, %v431_v15 }
  0x83   : > { %v392_v25 = vadd.f32 %v391_v22, %v360_v17  ;;  %v463_v27 = vadd.f32 %v462_v24, %v432_v19 }
  0x85   : > { %v393_v28 = vadd.f32 %v392_v25, %v361_v21  ;;  %v464_v29 = vadd.f32 %v463_v27, %v433_v23 }
  0x87   : > { %v394_v30 = vrot.slane %v393_v28, 4  ;;  %v465_v31 = vadd.f32 %v464_v29, %v434_v26 }
  0x89   : > { %v395_v32 = vadd.f32 %v394_v30, %v393_v28  ;;  %v466_v33 = vrot.slane %v465_v31, 4 }
  0x8b   : > { %v396_v34 = vrot.slane %v395_v32, 2  ;;  %v467_v35 = vadd.f32 %v466_v33, %v465_v31 }
  0x8d   : > { %v397_v36 = vadd.f32 %v396_v34, %v395_v32  ;;  %v468_v37 = vrot.slane %v467_v35, 2 }
  0x8f   : > { %v398_v38 = vrot.slane %v397_v36, 1  ;;  %v469_v40 = vadd.f32 %v468_v37, %v467_v35 }
  0x91   : > { %v399_v41 = vadd.f32 %v398_v38, %v397_v36  ;;  %v470_v42 = vrot.slane %v469_v40, 1 }
  0x93   : > { %v400_v43 = vadd.f32 %v399_v41, %v362_v39  ;;  %v471_v45 = vadd.f32 %v470_v42, %v469_v40 }
  0x95   : > { %401 = vst [vmem:[%s842_s8] sm:$0x1] %v400_v43  ;;  %v472_v46 = vadd.f32 %v471_v45, %v402_v44 }
  0x97   : > { %473 = vst [vmem:[%s847_s20] sm:$0x1] %v472_v46 }
  0x98 PF: > { %s13_s15 = sadd.s32 1, %s688_s15   ;;  %s914_s9 = smov %s668_s10 }
  0x99   : > { %p10_p12 = scmp.ge.s32.totalorder %s13_s15, 6   ;;  %s915_s10 = smov %s757_s22 }
  0x9a   : > { %s916_s11 = smov %s680_s13  ;;  %s917_s12 = smov %s684_s14 }
  0x9b   : > { %s918_s13 = smov %s921_s16  ;;  %s919_s14 = smov %s925_s17 }
  0x9c   :  { %12 = sbr.rel (!%p10_p12) target bundleno = 4 (0x4), region = 113 }

// kernel: dense_block_forward.5
= control target key start
LH: loop header
LB: loop body
LE: loop exit
PB: predicated region body
PF: predicated region fallthrough
CT: control target
= control target key end

     0   :  { %s4444_s18 = smov 0   ;;  %s4446_s19 = smov 0   ;;  %s5583_s0 = inlined_call_operand.vmem [shape: f32[2,16,16,384], index: 0, kind: input, shape index: {}, may-alias: {0,5}]   ;;  %s5584_s1 = inlined_call_operand.vmem [shape: f32[1,128], index: 1, kind: input, shape index: {}]   ;;  %s5585_s2 = inlined_call_operand.vmem [shape: f32[1,128], index: 2, kind: input, shape index: {}]   ;;  %s5586_s3 = inlined_call_operand.vmem [shape: bf16[9,128,128], index: 3, kind: input, shape index: {}]   ;;  %s5587_s4 = inlined_call_operand.vmem [shape: f32[1,128], index: 4, kind: input, shape index: {}]   ;;  %s5588_s5 = inlined_call_operand.vmem [shape: f32[2,16,16,384], index: 5, kind: output, shape index: {}, may-alias: {0,5}]  }
   0x1   :  { %s4448_s20 = smov 0   ;;  %s4450_s21 = smov 0  }
   0x2   :  { %s4452_s22 = smov 0  }
   0x3 LB: > { %s27_s23 = sadd.s32 1, %s4406_s21  ;;  %s3764_s24 = sadd.s32 4294967295, %s4410_s22   ;;  %s4410_s22 = sphi %s4452_s22, %s15_s22   ;;  %s4406_s21 = sphi %s4450_s21, %s5628_s21   ;;  %s4402_s20 = sphi %s4448_s20, %s5627_s20   ;;  %s4398_s19 = sphi %s4446_s19, %s5626_s19   ;;  %s4394_s18 = sphi %s4444_s18, %s5625_s18  }
   0x4   : > { %p29_p0 = scmp.ge.s32.totalorder %s27_s23, 2  ;;  %p43_p1 = scmp.ne.s32.totalorder %s4398_s19, %s4394_s18 }
   0x5   : > { %p44_p2 = scmp.eq.s32.totalorder %s4410_s22, 0  ;;  %p172_p4 = scmp.eq.s32.totalorder %s3764_s24, 1 }
   0x6   : > { %s5630_s23 = smov (%p29_p0, %s27_s23), 0  ;;  %s36_s26 = sadd.s32 1, %s4398_s19 }
   0x7   : > { %p45_p3 = por %p44_p2, %p43_p1  ;;  %s31_s25 = ssub.s32 %s4406_s21, %s5630_s23 }
   0x8   : > { %p34_p5 = scmp.eq.s32.totalorder %s31_s25, 0  ;;  %p4479_p6 = por %p172_p4, %p43_p1 }
   0x9   : > { %p3770_p7 = scmp.ge.s32.totalorder %s4410_s22, 2 }
   0xa   : > { %s4484_s28 = scalar_select %p34_p5, %s4398_s19, %s36_s26  }
   0xb   : > { %218 = sbr.rel (%p3770_p7) target bundleno = 53 (0x35), region = 32 }
  0x10   : > { %221 = sbr.rel (!%p45_p3) target bundleno = 53 (0x35), region = 36  ;;  %s223_s29 = sand.u32 (%p45_p3), 1, %s4398_s19  }
  0x11   : > { %s4324_s30 = smul.u32 (%p45_p3), 768, %s4406_s21  ;;  %s3771_s6 = sshll.u32 (%p45_p3), %s223_s29, 8 }
  0x12   : > { %s4497_s10 = scalar_lea.vmem (%p45_p3), [#allocation4], %s3771_s6 }
  0x13   : > { %s4492_s9 = scalar_lea.vmem (%p45_p3), %s5583_s0, %s4324_s30 }
  0x14   : > { %v320_v0 = vld [vmem:[%s4492_s9] sm:$0xff] (%p45_p3)  ;;  %v322_v1 = vld [vmem:[%s4492_s9 + $0x18] sm:$0xff] (%p45_p3)  ;;  %v324_v2 = vld [vmem:[%s4492_s9 + $0x30] sm:$0xff] (%p45_p3) }
  0x15   : > { %321 = vst [vmem:[%s4497_s10] sm:$0xff] %v320_v0  ;;  %v326_v3 = vld [vmem:[%s4492_s9 + $0x48] sm:$0xff]  ;;  %v328_v4 = vld [vmem:[%s4492_s9 + $0x60] sm:$0xff]  ;;  %v330_v5 = vld [vmem:[%s4492_s9 + $0x78] sm:$0xff] }
  0x16   : > { %323 = vst [vmem:[%s4497_s10 + $0x8] sm:$0xff] %v322_v1  ;;  %v332_v6 = vld [vmem:[%s4492_s9 + $0x90] sm:$0xff]  ;;  %v334_v7 = vld [vmem:[%s4492_s9 + $0xa8] sm:$0xff]  ;;  %v336_v8 = vld [vmem:[%s4492_s9 + $0xc0] sm:$0xff] }
  0x17   : > { %325 = vst [vmem:[%s4497_s10 + $0x10] sm:$0xff] %v324_v2  ;;  %v338_v9 = vld [vmem:[%s4492_s9 + $0xd8] sm:$0xff]  ;;  %v340_v10 = vld [vmem:[%s4492_s9 + $0xf0] sm:$0xff]  ;;  %v342_v11 = vld [vmem:[%s4492_s9 + $0x108] sm:$0xff] }
  0x18   : > { %327 = vst [vmem:[%s4497_s10 + $0x18] sm:$0xff] %v326_v3  ;;  %v344_v12 = vld [vmem:[%s4492_s9 + $0x120] sm:$0xff]  ;;  %v346_v13 = vld [vmem:[%s4492_s9 + $0x138] sm:$0xff]  ;;  %v348_v14 = vld [vmem:[%s4492_s9 + $0x150] sm:$0xff] }
  0x19   : > { %329 = vst [vmem:[%s4497_s10 + $0x20] sm:$0xff] %v328_v4  ;;  %v350_v15 = vld [vmem:[%s4492_s9 + $0x168] sm:$0xff]  ;;  %v352_v16 = vld [vmem:[%s4492_s9 + $0x180] sm:$0xff]  ;;  %v354_v17 = vld [vmem:[%s4492_s9 + $0x198] sm:$0xff] }
  0x1a   : > { %331 = vst [vmem:[%s4497_s10 + $0x28] sm:$0xff] %v330_v5  ;;  %v356_v18 = vld [vmem:[%s4492_s9 + $0x1b0] sm:$0xff]  ;;  %v358_v19 = vld [vmem:[%s4492_s9 + $0x1c8] sm:$0xff]  ;;  %v360_v20 = vld [vmem:[%s4492_s9 + $0x1e0] sm:$0xff] }
  0x1b   : > { %333 = vst [vmem:[%s4497_s10 + $0x30] sm:$0xff] %v332_v6  ;;  %v362_v21 = vld [vmem:[%s4492_s9 + $0x1f8] sm:$0xff]  ;;  %v364_v22 = vld [vmem:[%s4492_s9 + $0x210] sm:$0xff]  ;;  %v366_v23 = vld [vmem:[%s4492_s9 + $0x228] sm:$0xff] }
  0x1c   : > { %335 = vst [vmem:[%s4497_s10 + $0x38] sm:$0xff] %v334_v7  ;;  %v368_v24 = vld [vmem:[%s4492_s9 + $0x240] sm:$0xff]  ;;  %v370_v25 = vld [vmem:[%s4492_s9 + $0x258] sm:$0xff]  ;;  %v372_v26 = vld [vmem:[%s4492_s9 + $0x270] sm:$0xff] }
  0x1d   : > { %337 = vst [vmem:[%s4497_s10 + $0x40] sm:$0xff] %v336_v8  ;;  %v374_v27 = vld [vmem:[%s4492_s9 + $0x288] sm:$0xff]  ;;  %v376_v28 = vld [vmem:[%s4492_s9 + $0x2a0] sm:$0xff]  ;;  %v378_v29 = vld [vmem:[%s4492_s9 + $0x2b8] sm:$0xff] }
  0x1e   : > { %339 = vst [vmem:[%s4497_s10 + $0x48] sm:$0xff] %v338_v9  ;;  %v380_v30 = vld [vmem:[%s4492_s9 + $0x2d0] sm:$0xff]  ;;  %v382_v31 = vld [vmem:[%s4492_s9 + $0x2e8] sm:$0xff] }
  0x1f   : > { %341 = vst [vmem:[%s4497_s10 + $0x50] sm:$0xff] %v340_v10 }
  0x20   : > { %343 = vst [vmem:[%s4497_s10 + $0x58] sm:$0xff] %v342_v11 }
  0x21   : > { %345 = vst [vmem:[%s4497_s10 + $0x60] sm:$0xff] %v344_v12 }
  0x22   : > { %347 = vst [vmem:[%s4497_s10 + $0x68] sm:$0xff] %v346_v13 }
  0x23   : > { %349 = vst [vmem:[%s4497_s10 + $0x70] sm:$0xff] %v348_v14 }
  0x24   : > { %351 = vst [vmem:[%s4497_s10 + $0x78] sm:$0xff] %v350_v15 }
  0x25   : > { %353 = vst [vmem:[%s4497_s10 + $0x80] sm:$0xff] %v352_v16 }
  0x26   : > { %355 = vst [vmem:[%s4497_s10 + $0x88] sm:$0xff] %v354_v17 }
  0x27   : > { %357 = vst [vmem:[%s4497_s10 + $0x90] sm:$0xff] %v356_v18 }
  0x28   : > { %359 = vst [vmem:[%s4497_s10 + $0x98] sm:$0xff] %v358_v19 }
  0x29   : > { %361 = vst [vmem:[%s4497_s10 + $0xa0] sm:$0xff] %v360_v20 }
  0x2a   : > { %363 = vst [vmem:[%s4497_s10 + $0xa8] sm:$0xff] %v362_v21 }
  0x2b   : > { %365 = vst [vmem:[%s4497_s10 + $0xb0] sm:$0xff] %v364_v22 }
  0x2c   : > { %367 = vst [vmem:[%s4497_s10 + $0xb8] sm:$0xff] %v366_v23 }
  0x2d   : > { %369 = vst [vmem:[%s4497_s10 + $0xc0] sm:$0xff] %v368_v24 }
  0x2e   : > { %371 = vst [vmem:[%s4497_s10 + $0xc8] sm:$0xff] %v370_v25 }
  0x2f   : > { %373 = vst [vmem:[%s4497_s10 + $0xd0] sm:$0xff] %v372_v26 }
  0x30   : > { %375 = vst [vmem:[%s4497_s10 + $0xd8] sm:$0xff] %v374_v27 }
  0x31   : > { %377 = vst [vmem:[%s4497_s10 + $0xe0] sm:$0xff] %v376_v28 }
  0x32   : > { %379 = vst [vmem:[%s4497_s10 + $0xe8] sm:$0xff] %v378_v29 }
  0x33   : > { %381 = vst [vmem:[%s4497_s10 + $0xf0] sm:$0xff] %v380_v30 }
  0x34   : > { %383 = vst [vmem:[%s4497_s10 + $0xf8] sm:$0xff] %v382_v31 }
  0x35 PF: > { %p3773_p8 = scmp.ge.s32.totalorder %s4410_s22, 1  ;;  %p388_p9 = scmp.lt.s32.totalorder %s4410_s22, 3 }
  0x37   : > { %p389_p10 = pnand %p3773_p8, %p388_p9 }
  0x39   : > { %392 = sbr.rel (%p389_p10) target bundleno = 847 (0x34f), region = 74 }
  0x3e   : > { %v4235_v32 = vld [vmem:[%s5586_s3 + $0x38] sm:$0xff]  ;;  %s395_s13 = sand.u32 1, %s4394_s18   ;;  %v4412_v33 = vmov 0.0   ;;  %v4234_v34 = vld [vmem:[%s5586_s3 + $0x30] sm:$0xff]  ;;  %v4582_v37 = vld [vmem:[%s5584_s1] ss:$0 sm:$0xff] }
  0x3f   : > { %s4566_s14 = sshll.u32 %s395_s13, 8  ;;  %492 = vst [vmem:[#allocation3 + $0x60] sm:$0xff] %v4412_v33  ;;  %4300 = vmatpush.bf16.msra.mxu1 %v4235_v32  ;;  %4301 = vmatpush.bf16.msra.mxu2 %v4235_v32  ;;  %v4587_v38 = vld [vmem:[%s5585_s2] ss:$0 sm:$0xff]  ;;  %v4233_v41 = vld [vmem:[%s5586_s3 + $0x28] sm:$0xff]  ;;  %v4231_v47 = vld [vmem:[%s5586_s3 + $0x18] sm:$0xff] }
  0x40   : > { %493 = vst [vmem:[#allocation3 + $0x68] sm:$0xff] %v4412_v33  ;;  %4302 = vmatpush.bf16.msra.mxu3 %v4235_v32  ;;  %847 = vmatpush.bf16.msra.mxu0 %v4235_v32  ;;  %s4575_s17 = scalar_lea.vmem [#allocation4], %s4566_s14  ;;  %v4232_v46 = vld [vmem:[%s5586_s3 + $0x20] sm:$0xff]  ;;  %v4230_v48 = vld [vmem:[%s5586_s3 + $0x10] sm:$0xff]  ;;  %v4229_v49 = vld [vmem:[%s5586_s3 + $0x8] sm:$0xff]  ;;  %v4413_v58 = vmov 0.0|0.0  }
  0x41   : > { %494 = vst [vmem:[#allocation3 + $0x70] sm:$0x3] %v4412_v33  ;;  %v540_v35 = vld [vmem:[%s4575_s17 + $0x30] sm:$0xff]  ;;  %v541_v36 = vld [vmem:[%s4575_s17 + $0x38] sm:$0xff]  ;;  %v4251_v54 = vld [vmem:[%s5586_s3 + $0xb8] sm:$0xff]  ;;  %s5386_s30 = scalar_lea.vmem [#allocation5], %s4566_s14 }
  0x42   : > { %480 = vst [vmem:[#allocation3] sm:$0xff] %v4412_v33  ;;  %v576_v39 = vmul.f32 %v4582_v37, %v540_v35  ;;  %v577_v40 = vmul.f32 %v4582_v37, %v541_v36  ;;  %v4228_v50 = vld [vmem:[%s5586_s3] sm:$0xff]  ;;  %v4259_v55 = vld [vmem:[%s5586_s3 + $0xf8] sm:$0xff]  ;;  %v4250_v59 = vld [vmem:[%s5586_s3 + $0xb0] sm:$0xff]  ;;  %s4193_s14 = smul.u32 (%p4479_p6), 768, %s4402_s20 }
  0x43   : > { %481 = vst [vmem:[#allocation3 + $0x8] sm:$0xff] %v4412_v33  ;;  %4303 = vmatpush.bf16.msra.mxu1 %v4234_v34  ;;  %4304 = vmatpush.bf16.msra.mxu2 %v4234_v34  ;;  %v4243_v56 = vld [vmem:[%s5586_s3 + $0x78] sm:$0xff]  ;;  %v4258_v60 = vld [vmem:[%s5586_s3 + $0xf0] sm:$0xff]  ;;  %v548_v62 = vld [vmem:[%s4575_s17 + $0x70] sm:$0xff] }
  0x44   : > { %482 = vst [vmem:[#allocation3 + $0x10] sm:$0x3] %v4412_v33  ;;  %4305 = vmatpush.bf16.msra.mxu3 %v4234_v34  ;;  %848 = vmatpush.bf16.msra.mxu0 %v4234_v34  ;;  %v4598_v42 = vadd.f32 %v4587_v38, %v576_v39  ;;  %v4601_v43 = vadd.f32 %v4587_v38, %v577_v40  ;;  %v4267_v57 = vld [vmem:[%s5586_s3 + $0x138] sm:$0xff]  ;;  %v4242_v61 = vld [vmem:[%s5586_s3 + $0x70] sm:$0xff]  ;;  %v549_v63 = vld [vmem:[%s4575_s17 + $0x78] sm:$0xff]  ;;  %s5504_s8 = scalar_lea.vmem (%p4479_p6), %s5588_s5, %s4193_s14 }
  0x45   : > { %483 = vst [vmem:[#allocation3 + $0x18] sm:$0xff] %v4412_v33  ;;  %v556_v0 = vld [vmem:[%s4575_s17 + $0xb0] sm:$0xff]  ;;  %v584_v1 = vmul.f32 %v4582_v37, %v548_v62  ;;  %v557_v2 = vld [vmem:[%s4575_s17 + $0xb8] sm:$0xff]  ;;  %v585_v3 = vmul.f32 %v4582_v37, %v549_v63  ;;  %v542_v4 = vld [vmem:[%s4575_s17 + $0x40] sm:$0xff] }
  0x46   : > { %484 = vst [vmem:[#allocation3 + $0x20] sm:$0xff] %v4412_v33  ;;  %v644_v44 = vmax.f32 %v4598_v42, 0.0  ;;  %v645_v45 = vmax.f32 %v4601_v43, 0.0  ;;  %v592_v5 = vmul.f32 %v4582_v37, %v556_v0  ;;  %v543_v6 = vld [vmem:[%s4575_s17 + $0x48] sm:$0xff]  ;;  %v593_v7 = vmul.f32 %v4582_v37, %v557_v2  ;;  %v550_v8 = vld [vmem:[%s4575_s17 + $0x80] sm:$0xff]  ;;  %v544_v25 = vld [vmem:[%s4575_s17 + $0x50] sm:$0xff] }
  0x47   : > { %485 = vst [vmem:[#allocation3 + $0x28] sm:$0x3] %v4412_v33  ;;  %4306 = vmatpush.bf16.msra.mxu1 %v4233_v41  ;;  %4307 = vmatpush.bf16.msra.mxu2 %v4233_v41  ;;  %v620_v9 = vadd.f32 %v4587_v38, %v584_v1  ;;  %v578_v10 = vmul.f32 %v4582_v37, %v542_v4  ;;  %v551_v11 = vld [vmem:[%s4575_s17 + $0x88] sm:$0xff]  ;;  %v558_v14 = vld [vmem:[%s4575_s17 + $0xc0] sm:$0xff]  ;;  %v4249_v29 = vld [vmem:[%s5586_s3 + $0xa8] sm:$0xff] }
  0x48   : > { %486 = vst [vmem:[#allocation3 + $0x30] sm:$0xff] %v4412_v33  ;;  %4308 = vmatpush.bf16.msra.mxu3 %v4233_v41  ;;  %849 = vmatpush.bf16.msra.mxu0 %v4233_v41  ;;  %v621_v12 = vadd.f32 %v4587_v38, %v585_v3  ;;  %v579_v13 = vmul.f32 %v4582_v37, %v543_v6  ;;  %v559_v17 = vld [vmem:[%s4575_s17 + $0xc8] sm:$0xff]  ;;  %v534_v20 = vld [vmem:[%s4575_s17] sm:$0xff]  ;;  %v4257_v30 = vld [vmem:[%s5586_s3 + $0xe8] sm:$0xff] }
  0x49   : > { %677 = vst [vmem:[#allocation3 + $0x61] sm:$0xff] %v644_v44  ;;  %v628_v15 = vadd.f32 %v4587_v38, %v592_v5  ;;  %v586_v16 = vmul.f32 %v4582_v37, %v550_v8  ;;  %v629_v18 = vadd.f32 %v4587_v38, %v593_v7  ;;  %v587_v19 = vmul.f32 %v4582_v37, %v551_v11  ;;  %v535_v24 = vld [vmem:[%s4575_s17 + $0x8] sm:$0xff]  ;;  %v4266_v31 = vld [vmem:[%s5586_s3 + $0x130] sm:$0xff]  ;;  %v4241_v36 = vld [vmem:[%s5586_s3 + $0x68] sm:$0xff] }
  0x4a   : > { %678 = vst [vmem:[#allocation3 + $0x69] sm:$0xff] %v645_v45  ;;  %v652_v21 = vmax.f32 %v620_v9, 0.0  ;;  %v4717_v22 = vadd.f32 %v4587_v38, %v578_v10  ;;  %v594_v23 = vmul.f32 %v4582_v37, %v558_v14  ;;  %v653_v26 = vmax.f32 %v621_v12, 0.0  ;;  %v545_v39 = vld [vmem:[%s4575_s17 + $0x58] sm:$0xff]  ;;  %v536_v3 = vld [vmem:[%s4575_s17 + $0x10] sm:$0xff] }
  0x4b   : > { %487 = vst [vmem:[#allocation3 + $0x38] sm:$0xff] %v4412_v33  ;;  %4309 = vmatpush.bf16.msra.mxu1 %v4232_v46  ;;  %4310 = vmatpush.bf16.msra.mxu2 %v4232_v46  ;;  %v4724_v27 = vadd.f32 %v4587_v38, %v579_v13  ;;  %v595_v28 = vmul.f32 %v4582_v37, %v559_v17  ;;  %v660_v32 = vmax.f32 %v628_v15, 0.0  ;;  %v661_v40 = vmax.f32 %v629_v18, 0.0  ;;  %v561_v63 = vld [vmem:[%s4575_s17 + $0xd8] sm:$0xff] }
  0x4c   : > { %488 = vst [vmem:[#allocation3 + $0x40] sm:$0x3] %v4412_v33  ;;  %4311 = vmatpush.bf16.msra.mxu3 %v4232_v46  ;;  %850 = vmatpush.bf16.msra.mxu0 %v4232_v46  ;;  %v4738_v34 = vadd.f32 %v4587_v38, %v586_v16  ;;  %v570_v35 = vmul.f32 %v4582_v37, %v534_v20  ;;  %v537_v7 = vld [vmem:[%s4575_s17 + $0x18] sm:$0xff] }
  0x4d   : > { %489 = vst [vmem:[#allocation3 + $0x48] sm:$0xff] %v4412_v33  ;;  %v4747_v41 = vadd.f32 %v4587_v38, %v587_v19  ;;  %v571_v46 = vmul.f32 %v4582_v37, %v535_v24  ;;  %v597_v10 = vmul.f32 %v4582_v37, %v561_v63  ;;  %v572_v13 = vmul.f32 %v4582_v37, %v536_v3  ;;  %v4263_v3 = vld [vmem:[%s5586_s3 + $0x118] sm:$0xff] }
  0x4e   : > { %490 = vst [vmem:[#allocation3 + $0x50] sm:$0xff] %v4412_v33  ;;  %v573_v17 = vmul.f32 %v4582_v37, %v537_v7 }
  0x4f   : > { %491 = vst [vmem:[#allocation3 + $0x58] sm:$0x3] %v4412_v33  ;;  %4312 = vmatpush.bf16.msra.mxu1 %v4231_v47  ;;  %4313 = vmatpush.bf16.msra.mxu2 %v4231_v47  ;;  %v655_v0 = vmax.f32 %v4747_v41, 0.0  ;;  %v4779_v1 = vadd.f32 %v4587_v38, %v571_v46  ;;  %v547_v46 = vld [vmem:[%s4575_s17 + $0x68] sm:$0xff] }
  0x50   : > { %495 = vst [vmem:[#allocation3 + $0x78] sm:$0xff] %v4412_v33  ;;  %4314 = vmatpush.bf16.msra.mxu3 %v4231_v47  ;;  %851 = vmatpush.bf16.msra.mxu0 %v4231_v47  ;;  %v711_v51 = vld [vmem:[#allocation3 + $0x60] sm:$0xff] }
  0x51   : > { %496 = vst [vmem:[#allocation3 + $0x80] sm:$0xff] %v4412_v33  ;;  %v712_v52 = vld [vmem:[#allocation3 + $0x68] sm:$0xff]  ;;  %v4248_v47 = vld [vmem:[%s5586_s3 + $0xa0] sm:$0xff]  ;;  %v639_v15 = vmax.f32 %v4779_v1, 0.0  ;;  %v4274_v1 = vld [vmem:[%s5586_s3 + $0x170] sm:$0xff] }
  0x52   : > { %497 = vst [vmem:[#allocation3 + $0x88] sm:$0x3] %v4412_v33  ;;  %v4644_v53 = vpack.c.bf16 %v712_v52, %v711_v51  ;;  %v4265_v51 = vld [vmem:[%s5586_s3 + $0x128] sm:$0xff]  ;;  %v4240_v52 = vld [vmem:[%s5586_s3 + $0x60] sm:$0xff] }
  0x53   : > { %498 = vst [vmem:[#allocation3 + $0x90] sm:$0xff] %v4412_v33  ;;  %4315 = vmatpush.bf16.msra.mxu1 %v4230_v48  ;;  %4316 = vmatpush.bf16.msra.mxu2 %v4230_v48 }
  0x54   : > { %499 = vst [vmem:[#allocation3 + $0x98] sm:$0xff] %v4412_v33  ;;  %4317 = vmatpush.bf16.msra.mxu3 %v4230_v48  ;;  %852 = vmatpush.bf16.msra.mxu0 %v4230_v48  ;;  %v4256_v48 = vld [vmem:[%s5586_s3 + $0xe0] sm:$0xff] }
  0x55   : > { %500 = vst [vmem:[#allocation3 + $0xa0] sm:$0x3] %v4412_v33 }
  0x56   : > { %501 = vst [vmem:[#allocation3 + $0xa8] sm:$0xff] %v4412_v33 }
  0x57   : > { %502 = vst [vmem:[#allocation3 + $0xb0] sm:$0xff] %v4412_v33  ;;  %4318 = vmatpush.bf16.msra.mxu1 %v4229_v49  ;;  %4319 = vmatpush.bf16.msra.mxu2 %v4229_v49 }
  0x58   : > { %503 = vst [vmem:[#allocation3 + $0xb8] sm:$0x3] %v4412_v33  ;;  %4320 = vmatpush.bf16.msra.mxu3 %v4229_v49  ;;  %853 = vmatpush.bf16.msra.mxu0 %v4229_v49  ;;  %v552_v49 = vld [vmem:[%s4575_s17 + $0x90] sm:$0xff] }
  0x59   : > { %504 = vst [vmem:[#allocation3 + $0xc0] sm:$0xff] %v4412_v33  ;;  %v588_v62 = vmul.f32 %v4582_v37, %v552_v49  ;;  %v4247_v49 = vld [vmem:[%s5586_s3 + $0x98] sm:$0xff] }
  0x5a   : > { %505 = vst [vmem:[#allocation3 + $0xc8] sm:$0xff] %v4412_v33 }
  0x5b   : > { %506 = vst [vmem:[#allocation3 + $0xd0] sm:$0x3] %v4412_v33  ;;  %4321 = vmatpush.bf16.msra.mxu1 %v4228_v50  ;;  %4322 = vmatpush.bf16.msra.mxu2 %v4228_v50  ;;  %v4800_v12 = vadd.f32 %v4587_v38, %v588_v62 }
  0x5c   : > { %507 = vst [vmem:[#allocation3 + $0xd8] sm:$0xff] %v4412_v33  ;;  %4323 = vmatpush.bf16.msra.mxu3 %v4228_v50  ;;  %854 = vmatpush.bf16.msra.mxu0 %v4228_v50  ;;  %v630_v50 = vadd.f32 %v4587_v38, %v594_v23 }
  0x5d   : > { %508 = vst [vmem:[#allocation3 + $0xe0] sm:$0xff] %v4412_v33 }
  0x5e   : > { %509 = vst [vmem:[#allocation3 + $0xe8] sm:$0x3] %v4412_v33  ;;  %875 = vmatmul.bf16.vlgmr.msra.gmra.mxu1 %v4644_v53  ;;  %v662_v4 = vmax.f32 %v630_v50, 0.0  ;;  %v4255_v50 = vld [vmem:[%s5586_s3 + $0xd8] sm:$0xff] }
  0x5f   : > { %510 = vst [vmem:[#allocation3 + $0xf0] sm:$0xff] %v4412_v33  ;;  %1443 = vmatpush.bf16.msrb.mxu2 %v4251_v54  ;;  %855 = vmatmul.bf16.vlgmr.msra.gmra.mxu0 %v4413_v58  ;;  %v580_v54 = vmul.f32 %v4582_v37, %v544_v25  ;;  %v581_v58 = vmul.f32 %v4582_v37, %v545_v39 }
  0x60   : > { %511 = vst [vmem:[#allocation3 + $0xf8] sm:$0xff] %v4412_v33  ;;  %1741 = vmatpush.bf16.msrb.mxu3 %v4259_v55  ;;  %1145 = vmatpush.bf16.msrb.mxu1 %v4243_v56  ;;  %v553_v55 = vld [vmem:[%s4575_s17 + $0x98] sm:$0xff]  ;;  %v647_v56 = vmax.f32 %v4724_v27, 0.0  ;;  %v633_v25 = vadd.f32 %v4587_v38, %v597_v10  ;;  %v554_v10 = vld [vmem:[%s4575_s17 + $0xa0] sm:$0xff]  ;;  %v4288_v27 = vld [vmem:[%s5586_s3 + $0x1e0] sm:$0xff] }
  0x61   : > { %512 = vst [vmem:[#allocation3 + $0x100] sm:$0x3] %v4412_v33  ;;  %2039 = vmatpush.bf16.msrb.mxu0 %v4267_v57  ;;  %v631_v57 = vadd.f32 %v4587_v38, %v595_v28  ;;  %v589_v2 = vmul.f32 %v4582_v37, %v553_v55  ;;  %v4786_v5 = vadd.f32 %v4587_v38, %v580_v54  ;;  %v656_v28 = vmax.f32 %v4800_v12, 0.0  ;;  %v4264_v55 = vld [vmem:[%s5586_s3 + $0x120] sm:$0xff] }
  0x62   : > { %513 = vst [vmem:[#allocation3 + $0x108] sm:$0xff] %v4412_v33  ;;  %v4793_v9 = vadd.f32 %v4587_v38, %v581_v58 }
  0x63   : > { %514 = vst [vmem:[#allocation3 + $0x110] sm:$0xff] %v4412_v33  ;;  %1444 = vmatpush.bf16.msrb.mxu2 %v4250_v59  ;;  %v560_v59 = vld [vmem:[%s4575_s17 + $0xd0] sm:$0xff]  ;;  %v663_v8 = vmax.f32 %v631_v57, 0.0  ;;  %v4807_v16 = vadd.f32 %v4587_v38, %v589_v2  ;;  %v648_v19 = vmax.f32 %v4786_v5, 0.0  ;;  %v4239_v57 = vld [vmem:[%s5586_s3 + $0x58] sm:$0xff]  ;;  %v4254_v2 = vld [vmem:[%s5586_s3 + $0xd0] sm:$0xff] }
  0x64   : > { %515 = vst [vmem:[#allocation3 + $0x118] sm:$0x3] %v4412_v33  ;;  %1742 = vmatpush.bf16.msrb.mxu3 %v4258_v60  ;;  %1146 = vmatpush.bf16.msrb.mxu1 %v4242_v61  ;;  %v654_v60 = vmax.f32 %v4738_v34, 0.0  ;;  %v4773_v61 = vadd.f32 %v4587_v38, %v570_v35  ;;  %v596_v6 = vmul.f32 %v4582_v37, %v560_v59  ;;  %v649_v24 = vmax.f32 %v4793_v9, 0.0  ;;  %v4246_v59 = vld [vmem:[%s5586_s3 + $0x90] sm:$0xff] }
  0x65   : > { %516 = vst [vmem:[#allocation3 + $0x120] sm:$0xff] %v4412_v33  ;;  %2040 = vmatpush.bf16.msrb.mxu0 %v4266_v31  ;;  %v4824_v35 = vadd.f32 %v4587_v38, %v573_v17  ;;  %v590_v17 = vmul.f32 %v4582_v37, %v554_v10 }
  0x66   : > { %517 = vst [vmem:[#allocation3 + $0x128] sm:$0xff] %v4412_v33  ;;  %v638_v11 = vmax.f32 %v4773_v61, 0.0  ;;  %v632_v20 = vadd.f32 %v4587_v38, %v596_v6  ;;  %v4290_v61 = vld [vmem:[%s5586_s3 + $0x1f0] sm:$0xff] }
  0x67   : > { %518 = vst [vmem:[#allocation3 + $0x130] sm:$0x3] %v4412_v33  ;;  %1445 = vmatpush.bf16.msrb.mxu2 %v4249_v29  ;;  %v4818_v29 = vadd.f32 %v4587_v38, %v572_v13  ;;  %v641_v58 = vmax.f32 %v4824_v35, 0.0  ;;  %v555_v13 = vld [vmem:[%s4575_s17 + $0xa8] sm:$0xff] }
  0x68   : > { %519 = vst [vmem:[#allocation3 + $0x138] sm:$0xff] %v4412_v33  ;;  %1743 = vmatpush.bf16.msrb.mxu3 %v4257_v30  ;;  %1147 = vmatpush.bf16.msrb.mxu1 %v4241_v36  ;;  %v664_v39 = vmax.f32 %v632_v20, 0.0  ;;  %v562_v20 = vld [vmem:[%s4575_s17 + $0xe0] sm:$0xff] }
  0x69   : > { %520 = vst [vmem:[#allocation3 + $0x140] sm:$0xff] %v4412_v33  ;;  %2041 = vmatpush.bf16.msrb.mxu0 %v4265_v51  ;;  %v640_v54 = vmax.f32 %v4818_v29, 0.0  ;;  %v4282_v29 = vld [vmem:[%s5586_s3 + $0x1b0] sm:$0xff] }
  0x6a   : > { %521 = vst [vmem:[#allocation3 + $0x148] sm:$0x3] %v4412_v33 }
  0x6b   : > { %522 = vst [vmem:[#allocation3 + $0x150] sm:$0xff] %v4412_v33  ;;  %1446 = vmatpush.bf16.msrb.mxu2 %v4248_v47 }
  0x6c   : > { %523 = vst [vmem:[#allocation3 + $0x158] sm:$0xff] %v4412_v33  ;;  %1744 = vmatpush.bf16.msrb.mxu3 %v4256_v48  ;;  %1148 = vmatpush.bf16.msrb.mxu1 %v4240_v52  ;;  %v665_v48 = vmax.f32 %v633_v25, 0.0  ;;  %v583_v52 = vmul.f32 %v4582_v37, %v547_v46  ;;  %v598_v25 = vmul.f32 %v4582_v37, %v562_v20 }
  0x6d   : > { %524 = vst [vmem:[#allocation3 + $0x160] sm:$0x3] %v4412_v33  ;;  %2042 = vmatpush.bf16.msrb.mxu0 %v4264_v55 }
  0x6e   : > { %525 = vst [vmem:[#allocation3 + $0x168] sm:$0xff] %v4412_v33  ;;  %v4862_v63 = vadd.f32 %v4587_v38, %v583_v52 }
  0x6f   : > { %526 = vst [vmem:[#allocation3 + $0x170] sm:$0xff] %v4412_v33  ;;  %1447 = vmatpush.bf16.msrb.mxu2 %v4247_v49  ;;  %v634_v49 = vadd.f32 %v4587_v38, %v598_v25  ;;  %v4262_v25 = vld [vmem:[%s5586_s3 + $0x110] sm:$0xff] }
  0x70   : > { %527 = vst [vmem:[#allocation3 + $0x178] sm:$0x3] %v4412_v33  ;;  %1745 = vmatpush.bf16.msrb.mxu3 %v4255_v50  ;;  %1149 = vmatpush.bf16.msrb.mxu1 %v4239_v57 }
  0x71   : > { %528 = vst [vmem:[#allocation3 + $0x180] sm:$0xff] %v4412_v33  ;;  %2043 = vmatpush.bf16.msrb.mxu0 %v4263_v3 }
  0x72   : > { %529 = vst [vmem:[#allocation3 + $0x188] sm:$0xff] %v4412_v33 }
  0x73   : > { %530 = vst [vmem:[#allocation3 + $0x190] sm:$0x3] %v4412_v33  ;;  %1448 = vmatpush.bf16.msrb.mxu2 %v4246_v59 }
  0x74   : > { %531 = vst [vmem:[#allocation3 + $0x198] sm:$0xff] %v4412_v33  ;;  %1746 = vmatpush.bf16.msrb.mxu3 %v4254_v2 }
  0x75   : > { %532 = vst [vmem:[#allocation3 + $0x1a0] sm:$0xff] %v4412_v33  ;;  %2044 = vmatpush.bf16.msrb.mxu0 %v4262_v25  ;;  %v4283_v25 = vld [vmem:[%s5586_s3 + $0x1b8] sm:$0xff] }
  0x76   : > { %533 = vst [vmem:[#allocation3 + $0x1a8] sm:$0x3] %v4412_v33  ;;  %v646_v33 = vmax.f32 %v4717_v22, 0.0  ;;  %v4280_v22 = vld [vmem:[%s5586_s3 + $0x1a0] sm:$0xff] }
  0x77   : > { %685 = vst [vmem:[#allocation3 + $0xc1] sm:$0xff] %v652_v21 }
  0x78   : > { %686 = vst [vmem:[#allocation3 + $0xc9] sm:$0xff] %v653_v26  ;;  %v1962_v42 = vpack.c.bf16 %v647_v56, %v646_v33 }
  0x79   : > { %693 = vst [vmem:[#allocation3 + $0x121] sm:$0xff] %v660_v32  ;;  %v657_v32 = vmax.f32 %v4807_v16, 0.0 }
  0x7a   : > { %694 = vst [vmem:[#allocation3 + $0x129] sm:$0xff] %v661_v40  ;;  %v546_v40 = vld [vmem:[%s4575_s17 + $0x60] sm:$0xff] }
  0x7b   : > { %679 = vst [vmem:[#allocation3 + $0x79] sm:$0xff] %v646_v33  ;;  %v582_v51 = vmul.f32 %v4582_v37, %v546_v40  ;;  %v4894_v40 = vadd.f32 %v4587_v38, %v590_v17 }
  0x7c   : > { %680 = vst [vmem:[#allocation3 + $0x81] sm:$0xff] %v647_v56 }
  0x7d   : > { %687 = vst [vmem:[#allocation3 + $0xd9] sm:$0xff] %v654_v60  ;;  %v4859_v62 = vadd.f32 %v4587_v38, %v582_v51  ;;  %v658_v55 = vmax.f32 %v4894_v40, 0.0 }
  0x7e   : > { %v719_v14 = vld [vmem:[#allocation3 + $0xc0] sm:$0xff]  ;;  %688 = vst [vmem:[#allocation3 + $0xe1] sm:$0xff] %v655_v0 }
  0x7f   : > { %v720_v18 = vld [vmem:[#allocation3 + $0xc8] sm:$0xff]  ;;  %695 = vst [vmem:[#allocation3 + $0x139] sm:$0xff] %v662_v4  ;;  %v4238_v4 = vld [vmem:[%s5586_s3 + $0x50] sm:$0xff]  ;;  %v650_v7 = vmax.f32 %v4859_v62, 0.0 }
  0x80   : > { %v775_v21 = vpack.c.bf16 %v720_v18, %v719_v14  ;;  %v727_v23 = vld [vmem:[#allocation3 + $0x120] sm:$0xff]  ;;  %696 = vst [vmem:[#allocation3 + $0x141] sm:$0xff] %v663_v8  ;;  %v651_v8 = vmax.f32 %v4862_v63, 0.0  ;;  %v591_v18 = vmul.f32 %v4582_v37, %v555_v13  ;;  %1150 = vmatpush.bf16.msrb.mxu1 %v4238_v4  ;;  %v666_v4 = vmax.f32 %v634_v49, 0.0  ;;  %v4279_v63 = vld [vmem:[%s5586_s3 + $0x198] sm:$0xff] }
  0x81   : > { %v728_v26 = vld [vmem:[#allocation3 + $0x128] sm:$0xff]  ;;  %671 = vst [vmem:[#allocation3 + $0x19] sm:$0xff] %v638_v11 }
  0x82   : > { %895 = vmatmul.bf16.vlgmr.msra.gmra.mxu2 %v775_v21  ;;  %v779_v30 = vpack.c.bf16 %v728_v26, %v727_v23  ;;  %v713_v31 = vld [vmem:[#allocation3 + $0x78] sm:$0xff]  ;;  %672 = vst [vmem:[#allocation3 + $0x21] sm:$0xff] %v639_v15  ;;  %v4897_v46 = vadd.f32 %v4587_v38, %v591_v18 }
  0x83   : > { %v714_v36 = vld [vmem:[#allocation3 + $0x80] sm:$0xff]  ;;  %681 = vst [vmem:[#allocation3 + $0x91] sm:$0xff] %v648_v19  ;;  %v563_v21 = vld [vmem:[%s4575_s17 + $0xe8] sm:$0xff] }
  0x84   : > { %915 = vmatmul.bf16.vlgmr.msra.gmra.mxu3 %v779_v30  ;;  %v4830_v47 = vpack.c.bf16 %v714_v36, %v713_v31  ;;  %682 = vst [vmem:[#allocation3 + $0x99] sm:$0xff] %v649_v24  ;;  %v599_v26 = vmul.f32 %v4582_v37, %v563_v21  ;;  %v538_v30 = vld [vmem:[%s4575_s17 + $0x20] sm:$0xff]  ;;  %v539_v31 = vld [vmem:[%s4575_s17 + $0x28] sm:$0xff]  ;;  %v5589_v57 = vmax.f32 %v4897_v46, 0.0  ;;  %v4253_v21 = vld [vmem:[%s5586_s3 + $0xc8] sm:$0xff] }
  0x85   : > { %689 = vst [vmem:[#allocation3 + $0xf1] sm:$0xff] %v656_v28  ;;  %v721_v36 = vld [vmem:[#allocation3 + $0xd8] sm:$0xff]  ;;  %v575_v59 = vmul.f32 %v4582_v37, %v539_v31  ;;  %v4237_v31 = vld [vmem:[%s5586_s3 + $0x48] sm:$0xff]  ;;  %1747 = vmatpush.bf16.msrb.mxu3 %v4253_v21 }
  0x86   : > { %880 = vmatmul.bf16.gmra.mxu1 %v4830_v47  ;;  %690 = vst [vmem:[#allocation3 + $0xf9] sm:$0xff] %v657_v32  ;;  %v635_v50 = vadd.f32 %v4587_v38, %v599_v26  ;;  %v729_v51 = vld [vmem:[#allocation3 + $0x138] sm:$0xff] }
  0x87   : > { %697 = vst [vmem:[#allocation3 + $0x151] sm:$0xff] %v664_v39  ;;  %v722_v39 = vld [vmem:[#allocation3 + $0xe0] sm:$0xff]  ;;  %1151 = vmatpush.bf16.msrb.mxu1 %v4237_v31 }
  0x88   : > { %v705_v6 = vld [vmem:[#allocation3 + $0x18] sm:$0xff]  ;;  %698 = vst [vmem:[#allocation3 + $0x159] sm:$0xff] %v665_v48  ;;  %v574_v48 = vmul.f32 %v4582_v37, %v538_v30  ;;  %v730_v52 = vld [vmem:[#allocation3 + $0x140] sm:$0xff]  ;;  %v4911_v3 = vpack.c.bf16 %v722_v39, %v721_v36 }
  0x89   : > { %v706_v14 = vld [vmem:[#allocation3 + $0x20] sm:$0xff]  ;;  %673 = vst [vmem:[#allocation3 + $0x31] sm:$0xff] %v640_v54  ;;  %v780_v18 = vpack.c.bf16 %v730_v52, %v729_v51 }
  0x8a   : > { %v4883_v23 = vpack.c.bf16 %v706_v14, %v705_v6  ;;  %674 = vst [vmem:[#allocation3 + $0x39] sm:$0xff] %v641_v58  ;;  %v4909_v2 = vadd.f32 %v4587_v38, %v574_v48  ;;  %v667_v6 = vmax.f32 %v635_v50, 0.0  ;;  %v715_v10 = vld [vmem:[#allocation3 + $0x90] sm:$0xff]  ;;  %v4916_v14 = vadd.f32 %v4587_v38, %v575_v59  ;;  %v4245_v38 = vld [vmem:[%s5586_s3 + $0x88] sm:$0xff]  ;;  %v4244_v36 = vld [vmem:[%s5586_s3 + $0x80] sm:$0xff] }
  0x8b   : > { %683 = vst [vmem:[#allocation3 + $0xa9] sm:$0xff] %v650_v7  ;;  %v716_v13 = vld [vmem:[#allocation3 + $0x98] sm:$0xff]  ;;  %1449 = vmatpush.bf16.msrb.mxu2 %v4245_v38  ;;  %v4252_v39 = vld [vmem:[%s5586_s3 + $0xc0] sm:$0xff]  ;;  %v4261_v48 = vld [vmem:[%s5586_s3 + $0x108] sm:$0xff] }
  0x8c   : > { %860 = vmatmul.bf16.gmra.mxu0 %v4883_v23  ;;  %684 = vst [vmem:[#allocation3 + $0xb1] sm:$0xff] %v651_v8  ;;  %v642_v17 = vmax.f32 %v4909_v2, 0.0  ;;  %v643_v37 = vmax.f32 %v4916_v14, 0.0  ;;  %v4923_v20 = vpack.c.bf16 %v716_v13, %v715_v10  ;;  %v4236_v50 = vld [vmem:[%s5586_s3 + $0x40] sm:$0xff]  ;;  %v723_v51 = vld [vmem:[#allocation3 + $0xf0] sm:$0xff]  ;;  %1748 = vmatpush.bf16.msrb.mxu3 %v4252_v39  ;;  %v4299_v39 = vld [vmem:[%s5586_s3 + $0x238] sm:$0xff] }
  0x8d   : > { %691 = vst [vmem:[#allocation3 + $0x109] sm:$0xff] %v658_v55  ;;  %v724_v52 = vld [vmem:[#allocation3 + $0xf8] sm:$0xff]  ;;  %2045 = vmatpush.bf16.msrb.mxu0 %v4261_v48  ;;  %v4260_v59 = vld [vmem:[%s5586_s3 + $0x100] sm:$0xff]  ;;  %1152 = vmatpush.bf16.msrb.mxu1 %v4236_v50 }
  0x8e   : > { %692 = vst [vmem:[#allocation3 + $0x111] sm:$0xff] %v5589_v57  ;;  %v4960_v10 = vpack.c.bf16 %v724_v52, %v723_v51  ;;  %v1960_v35 = vpack.c.bf16 %v643_v37, %v642_v17 }
  0x8f   : > { %699 = vst [vmem:[#allocation3 + $0x169] sm:$0xff] %v666_v4  ;;  %1450 = vmatpush.bf16.msrb.mxu2 %v4244_v36  ;;  %v731_v4 = vld [vmem:[#allocation3 + $0x150] sm:$0xff] }
  0x90   : > { %700 = vst [vmem:[#allocation3 + $0x171] sm:$0xff] %v667_v6  ;;  %v707_v26 = vld [vmem:[#allocation3 + $0x30] sm:$0xff]  ;;  %v732_v6 = vld [vmem:[#allocation3 + $0x158] sm:$0xff] }
  0x91   : > { %675 = vst [vmem:[#allocation3 + $0x49] sm:$0xff] %v642_v17  ;;  %v708_v30 = vld [vmem:[#allocation3 + $0x38] sm:$0xff]  ;;  %2046 = vmatpush.bf16.msrb.mxu0 %v4260_v59  ;;  %v781_v38 = vpack.c.bf16 %v732_v6, %v731_v4  ;;  %v1000_v6 = vld [vmem:[#allocation3 + $0x1] sm:$0xff] }
  0x92   : > { %900 = vmatmul.bf16.gmra.mxu2 %v4911_v3  ;;  %676 = vst [vmem:[#allocation3 + $0x51] sm:$0xff] %v643_v37  ;;  %v4951_v49 = vpack.c.bf16 %v708_v30, %v707_v26  ;;  %v717_v13 = vld [vmem:[#allocation3 + $0xa8] sm:$0xff]  ;;  %v4291_v26 = vld [vmem:[%s5586_s3 + $0x1f8] sm:$0xff] }
  0x93   : > { %v4275_v30 = vld [vmem:[%s5586_s3 + $0x178] sm:$0xff]  ;;  %2636 = vmatpush.bf16.msra.mxu2 %v4283_v25  ;;  %2934 = vmatpush.bf16.msra.mxu3 %v4291_v26  ;;  %v1959_v25 = vpack.c.bf16 %v641_v58, %v640_v54  ;;  %v1958_v26 = vpack.c.bf16 %v639_v15, %v638_v11  ;;  %v4298_v11 = vld [vmem:[%s5586_s3 + $0x230] sm:$0xff]  ;;  %v1301_v54 = vld [vmem:[#allocation3 + $0x22] sm:$0xff] }
  0x94   : > { %920 = vmatmul.bf16.gmra.mxu3 %v780_v18  ;;  %v718_v18 = vld [vmem:[#allocation3 + $0xb0] sm:$0xff]  ;;  %2337 = vmatpush.bf16.msra.mxu1 %v4275_v30  ;;  %v725_v50 = vld [vmem:[#allocation3 + $0x108] sm:$0xff]  ;;  %v1300_v15 = vld [vmem:[#allocation3 + $0x1a] sm:$0xff] }
  0x95   : > { %v4963_v21 = vpack.c.bf16 %v718_v18, %v717_v13  ;;  %3232 = vmatpush.bf16.msra.mxu0 %v4299_v39  ;;  %v726_v51 = vld [vmem:[#allocation3 + $0x110] sm:$0xff]  ;;  %v1298_v30 = vld [vmem:[#allocation3 + $0x2] sm:$0xff]  ;;  %v5006_v58 = vpack.c.bf16 %v1301_v54, %v1300_v15  ;;  %v1303_v2 = vld [vmem:[#allocation3 + $0x3a] sm:$0xff] }
  0x96   : > { %885 = vmatmul.bf16.gmra.mxu1 %v4923_v20  ;;  %v733_v52 = vld [vmem:[#allocation3 + $0x168] sm:$0xff]  ;;  %v4978_v4 = vpack.c.bf16 %v726_v51, %v725_v50  ;;  %v1310_v15 = vld [vmem:[#allocation3 + $0x92] sm:$0xff]  ;;  %v1311_v54 = vld [vmem:[#allocation3 + $0x9a] sm:$0xff] }
  0x97   : > { %v734_v59 = vld [vmem:[#allocation3 + $0x170] sm:$0xff]  ;;  %2637 = vmatpush.bf16.msra.mxu2 %v4282_v29  ;;  %2935 = vmatpush.bf16.msra.mxu3 %v4290_v61  ;;  %v4281_v17 = vld [vmem:[%s5586_s3 + $0x1a8] sm:$0xff] }
  0x98   : > { %v709_v31 = vld [vmem:[#allocation3 + $0x48] sm:$0xff]  ;;  %v782_v18 = vpack.c.bf16 %v734_v59, %v733_v52  ;;  %2338 = vmatpush.bf16.msra.mxu1 %v4274_v1 }
  0x99   : > { %v710_v36 = vld [vmem:[#allocation3 + $0x50] sm:$0xff]  ;;  %3233 = vmatpush.bf16.msra.mxu0 %v4298_v11  ;;  %v4289_v37 = vld [vmem:[%s5586_s3 + $0x1e8] sm:$0xff] }
  0x9a   : > { %v770_v48 = vpack.c.bf16 %v710_v36, %v709_v31  ;;  %v1001_v13 = vld [vmem:[#allocation3 + $0x9] sm:$0xff]  ;;  %v1305_v51 = vld [vmem:[#allocation3 + $0x52] sm:$0xff] }
  0x9b   : > { %v1299_v31 = vld [vmem:[#allocation3 + $0xa] sm:$0xff]  ;;  %2638 = vmatpush.bf16.msra.mxu2 %v4281_v17  ;;  %2936 = vmatpush.bf16.msra.mxu3 %v4289_v37 }
  0x9c   : > { %865 = vmatmul.bf16.gmra.mxu0 %v4951_v49  ;;  %v1362_v36 = vpack.c.bf16 %v1299_v31, %v1298_v30  ;;  %v4297_v39 = vld [vmem:[%s5586_s3 + $0x228] sm:$0xff]  ;;  %v1308_v30 = vld [vmem:[#allocation3 + $0x7a] sm:$0xff] }
  0x9d   : > { %3234 = vmatpush.bf16.msra.mxu0 %v4297_v39  ;;  %v1304_v50 = vld [vmem:[#allocation3 + $0x4a] sm:$0xff]  ;;  %v1309_v31 = vld [vmem:[#allocation3 + $0x82] sm:$0xff] }
  0x9e   : > { %v5029_v52 = vpack.c.bf16 %v1305_v51, %v1304_v50  ;;  %v1909_v39 = vld [vmem:[#allocation3 + $0xc9] sm:$0xff]  ;;  %v4295_v51 = vld [vmem:[%s5586_s3 + $0x218] sm:$0xff] }
  0x9f   : > { %2639 = vmatpush.bf16.msra.mxu2 %v4280_v22  ;;  %2937 = vmatpush.bf16.msra.mxu3 %v4288_v27 }
  0xa2   : > { %905 = vmatmul.bf16.gmra.mxu2 %v4960_v10 }
  0xa3   : > { %2640 = vmatpush.bf16.msra.mxu2 %v4279_v63 }
  0xa4   : > { %925 = vmatmul.bf16.gmra.mxu3 %v781_v38  ;;  %v1064_v38 = vpack.c.bf16 %v1001_v13, %v1000_v6 }
  0xa6   : > { %890 = vmatmul.bf16.gmra.mxu1 %v4963_v21 }
  0xac   : > { %870 = vmatmul.bf16.gmra.mxu0 %v770_v48 }
  0xb2   : > { %910 = vmatmul.bf16.gmra.mxu2 %v4978_v4 }
  0xb4   : > { %930 = vmatmul.bf16.gmra.mxu3 %v782_v18 }
  0xb6   : > { %1153 = vmatmul.bf16.vlgmr.msrb.gmra.mxu1 %v1064_v38  ;;  %v4272_v38 = vld [vmem:[%s5586_s3 + $0x160] sm:$0xff] }
  0xbc   : > { %2047 = vmatmul.bf16.vlgmr.msrb.gmra.mxu0 %v1958_v26 }
  0xc2   : > { %1451 = vmatmul.bf16.vlgmr.msrb.gmra.mxu2 %v1362_v36 }
  0xc4   : > { %1749 = vmatmul.bf16.vlgmr.msrb.gmra.mxu3 %v4883_v23  ;;  %v1302_v23 = vld [vmem:[#allocation3 + $0x32] sm:$0xff] }
  0xc5   : > { %v5010_v14 = vpack.c.bf16 %v1303_v2, %v1302_v23 }
  0xc6   : > { %1158 = vmatmul.bf16.gmra.mxu1 %v1958_v26 }
  0xcc   : > { %2052 = vmatmul.bf16.gmra.mxu0 %v1959_v25 }
  0xd2   : > { %1456 = vmatmul.bf16.gmra.mxu2 %v5006_v58 }
  0xd4   : > { %1754 = vmatmul.bf16.gmra.mxu3 %v4951_v49  ;;  %v4273_v49 = vld [vmem:[%s5586_s3 + $0x168] sm:$0xff] }
  0xd5   : > { %2339 = vmatpush.bf16.msra.mxu1 %v4273_v49  ;;  %v1908_v49 = vld [vmem:[#allocation3 + $0xc1] sm:$0xff] }
  0xd6   : > { %1163 = vmatmul.bf16.gmra.mxu1 %v1959_v25  ;;  %v1963_v25 = vpack.c.bf16 %v649_v24, %v648_v19  ;;  %v1964_v24 = vpack.c.bf16 %v651_v8, %v650_v7  ;;  %v4287_v7 = vld [vmem:[%s5586_s3 + $0x1d8] sm:$0xff]  ;;  %v1965_v50 = vpack.c.bf16 %v1909_v39, %v1908_v49  ;;  %v1314_v39 = vld [vmem:[#allocation3 + $0xc2] sm:$0xff] }
  0xd7   : > { %2938 = vmatpush.bf16.msra.mxu3 %v4287_v7  ;;  %v1966_v7 = vpack.c.bf16 %v655_v0, %v654_v60 }
  0xd9   : > { %2340 = vmatpush.bf16.msra.mxu1 %v4272_v38  ;;  %v1610_v38 = vld [vmem:[#allocation3 + $0xc0] sm:$0xff] }
  0xdb   : > { %v5031_v59 = vpop.f32.mrf.mxu1 }
  0xdc   : > { %2057 = vmatmul.bf16.gmra.mxu0 %v1960_v35  ;;  %v5035_v6 = vpop.f32.mrf.mxu0 }
  0xe2   : > { %1461 = vmatmul.bf16.gmra.mxu2 %v5010_v14 }
  0xe3   : > { %v5041_v43 = vpop.f32.mrf.mxu1 }
  0xe4   : > { %1759 = vmatmul.bf16.gmra.mxu3 %v770_v48  ;;  %v1961_v48 = vpack.c.bf16 %v645_v45, %v644_v44  ;;  %v1306_v44 = vld [vmem:[#allocation3 + $0x62] sm:$0xff]  ;;  %v1307_v45 = vld [vmem:[#allocation3 + $0x6a] sm:$0xff]  ;;  %v5045_v18 = vpop.f32.mrf.mxu0 }
  0xe5   : > { %v5043_v13 = vpack.c.bf16 %v1307_v45, %v1306_v44  ;;  %v1312_v44 = vld [vmem:[#allocation3 + $0xaa] sm:$0xff]  ;;  %v1313_v45 = vld [vmem:[#allocation3 + $0xb2] sm:$0xff] }
  0xe6   : > { %1168 = vmatmul.bf16.gmra.mxu1 %v1960_v35  ;;  %v5077_v35 = vpack.c.bf16 %v1309_v31, %v1308_v30 }
  0xec   : > { %2062 = vmatmul.bf16.gmra.mxu0 %v1961_v48 }
  0xf2   : > { %1466 = vmatmul.bf16.gmra.mxu2 %v5029_v52 }
  0xf4   : > { %1764 = vmatmul.bf16.gmra.mxu3 %v4644_v53 }
  0xf6   : > { %1173 = vmatmul.bf16.gmra.mxu1 %v1961_v48 }
  0xfc   : > { %2067 = vmatmul.bf16.gmra.mxu0 %v1962_v42 }
 0x102   : > { %1471 = vmatmul.bf16.gmra.mxu2 %v5043_v13 }
 0x103   : > { %v5048_v53 = vpop.f32.mrf.mxu1 }
 0x104   : > { %1769 = vmatmul.bf16.gmra.mxu3 %v4830_v47  ;;  %v4296_v47 = vld [vmem:[%s5586_s3 + $0x220] sm:$0xff] }
 0x105   : > { %v5057_v33 = vpop.f32.mrf.mxu2  ;;  %3235 = vmatpush.bf16.msra.mxu0 %v4296_v47  ;;  %v1611_v47 = vld [vmem:[#allocation3 + $0xc8] sm:$0xff] }
 0x106   : > { %1178 = vmatmul.bf16.gmra.mxu1 %v1962_v42  ;;  %v1667_v31 = vpack.c.bf16 %v1611_v47, %v1610_v38 }
 0x107   : > { %v5059_v56 = vpop.f32.mrf.mxu3 }
 0x109   : > { %v5071_v26 = vpop.f32.mrf.mxu0  ;;  %3236 = vmatpush.bf16.msra.mxu0 %v4295_v51 }
 0x10b   : > { %v5073_v36 = vpop.f32.mrf.mxu1 }
 0x10c   : > { %2072 = vmatmul.bf16.gmra.mxu0 %v1963_v25 }
 0x10d   : > { %v5075_v29 = vpop.f32.mrf.mxu2 }
 0x10f   : > { %v5079_v61 = vpop.f32.mrf.mxu3 }
 0x111   : > { %v5081_v1 = vpop.f32.mrf.mxu0 }
 0x112   : > { %1476 = vmatmul.bf16.gmra.mxu2 %v5077_v35 }
 0x113   : > { %v5084_v5 = vpop.f32.mrf.mxu1 }
 0x114   : > { %1774 = vmatmul.bf16.gmra.mxu3 %v4923_v20  ;;  %v5101_v20 = vpack.c.bf16 %v1311_v54, %v1310_v15 }
 0x115   : > { %v5087_v9 = vpop.f32.mrf.mxu2 }
 0x116   : > { %1183 = vmatmul.bf16.gmra.mxu1 %v1963_v25  ;;  %v5133_v25 = vpack.c.bf16 %v1313_v45, %v1312_v44 }
 0x117   : > { %v5089_v19 = vpop.f32.mrf.mxu3 }
 0x119   : > { %v5095_v11 = vpop.f32.mrf.mxu0 }
 0x11b   : > { %v5097_v23 = vpop.f32.mrf.mxu1 }
 0x11c   : > { %2077 = vmatmul.bf16.gmra.mxu0 %v1964_v24 }
 0x11d   : > { %v5099_v2 = vpop.f32.mrf.mxu2 }
 0x11f   : > { %v5103_v17 = vpop.f32.mrf.mxu3 }
 0x121   : > { %v5105_v37 = vpop.f32.mrf.mxu0 }
 0x122   : > { %1481 = vmatmul.bf16.gmra.mxu2 %v5101_v20 }
 0x123   : > { %v5108_v62 = vpop.f32.mrf.mxu1 }
 0x124   : > { %1779 = vmatmul.bf16.gmra.mxu3 %v4963_v21  ;;  %v4271_v21 = vld [vmem:[%s5586_s3 + $0x158] sm:$0xff] }
 0x125   : > { %v5117_v8 = vpop.f32.mrf.mxu2  ;;  %2341 = vmatpush.bf16.msra.mxu1 %v4271_v21  ;;  %v1315_v21 = vld [vmem:[#allocation3 + $0xca] sm:$0xff] }
 0x126   : > { %1188 = vmatmul.bf16.gmra.mxu1 %v1964_v24  ;;  %v5151_v38 = vpack.c.bf16 %v1315_v21, %v1314_v39 }
 0x127   : > { %v5119_v48 = vpop.f32.mrf.mxu3 }
 0x129   : > { %v5127_v42 = vpop.f32.mrf.mxu0 }
 0x12b   : > { %v5129_v22 = vpop.f32.mrf.mxu1 }
 0x12c   : > { %2082 = vmatmul.bf16.gmra.mxu0 %v1965_v50 }
 0x12d   : > { %v5131_v27 = vpop.f32.mrf.mxu2 }
 0x12f   : > { %v5135_v30 = vpop.f32.mrf.mxu3 }
 0x131   : > { %v5137_v24 = vpop.f32.mrf.mxu0 }
 0x132   : > { %1486 = vmatmul.bf16.gmra.mxu2 %v5133_v25 }
 0x133   : > { %v1154_v15 = vpop.f32.mrf.mxu1 }
 0x134   : > { %1784 = vmatmul.bf16.gmra.mxu3 %v1667_v31  ;;  %v1019_v31 = vld [vmem:[#allocation3 + $0xe1] sm:$0xff]  ;;  %v1234_v60 = vadd.f32 %v1154_v15, %v5035_v6  ;;  %v4294_v15 = vld [vmem:[%s5586_s3 + $0x210] sm:$0xff] }
 0x135   : > { %v5140_v54 = vpop.f32.mrf.mxu2  ;;  %3237 = vmatpush.bf16.msra.mxu0 %v4294_v15 }
 0x136   : > { %1193 = vmatmul.bf16.gmra.mxu1 %v1965_v50  ;;  %v1018_v50 = vld [vmem:[#allocation3 + $0xd9] sm:$0xff] }
 0x137   : > { %v5142_v63 = vpop.f32.mrf.mxu3  ;;  %v5156_v34 = vpack.c.bf16 %v1019_v31, %v1018_v50 }
 0x139   : > { %v2048_v49 = vpop.f32.mrf.mxu0 }
 0x13b   : > { %v1156_v51 = vpop.f32.mrf.mxu1 }
 0x13c   : > { %2087 = vmatmul.bf16.gmra.mxu0 %v1966_v7  ;;  %v1235_v44 = vadd.f32 %v1156_v51, %v5045_v18  ;;  %v4278_v18 = vld [vmem:[%s5586_s3 + $0x190] sm:$0xff] }
 0x13d   : > { %v5149_v45 = vpop.f32.mrf.mxu2  ;;  %v4286_v7 = vld [vmem:[%s5586_s3 + $0x1d0] sm:$0xff]  ;;  %2641 = vmatpush.bf16.msra.mxu2 %v4278_v18 }
 0x13e   : > { %2939 = vmatpush.bf16.msra.mxu3 %v4286_v7 }
 0x13f   : > { %v5153_v47 = vpop.f32.mrf.mxu3 }
 0x141   : > { %v2050_v57 = vpop.f32.mrf.mxu0 }
 0x142   : > { %1491 = vmatmul.bf16.gmra.mxu2 %v5151_v38 }
 0x143   : > { %v1159_v41 = vpop.f32.mrf.mxu1 }
 0x144   : > { %1789 = vmatmul.bf16.gmra.mxu3 %v4911_v3  ;;  %v1236_v0 = vadd.f32 %v1159_v41, %v5071_v26  ;;  %v1967_v3 = vpack.c.bf16 %v657_v32, %v656_v28  ;;  %v4270_v26 = vld [vmem:[%s5586_s3 + $0x150] sm:$0xff]  ;;  %v1316_v41 = vld [vmem:[#allocation3 + $0xda] sm:$0xff] }
 0x145   : > { %v1452_v39 = vpop.f32.mrf.mxu2  ;;  %2342 = vmatpush.bf16.msra.mxu1 %v4270_v26 }
 0x146   : > { %v1532_v21 = vadd.f32 %v1452_v39, %v1234_v60  ;;  %1198 = vmatmul.bf16.gmra.mxu1 %v5156_v34  ;;  %v1317_v60 = vld [vmem:[#allocation3 + $0xe2] sm:$0xff] }
 0x147   : > { %v1750_v51 = vpop.f32.mrf.mxu3  ;;  %v5181_v32 = vpack.c.bf16 %v1317_v60, %v1316_v41 }
 0x148   : > { %v1830_v6 = vadd.f32 %v1750_v51, %v1532_v21 }
 0x149   : > { %v2053_v50 = vpop.f32.mrf.mxu0 }
 0x14a   : > { %v5178_v31 = vadd.f32 %v2048_v49, %v1830_v6 }
 0x14b   : > { %v1161_v18 = vpop.f32.mrf.mxu1 }
 0x14c   : > { %2092 = vmatmul.bf16.gmra.mxu0 %v1967_v3  ;;  %v1237_v12 = vadd.f32 %v1161_v18, %v5081_v1 }
 0x14d   : > { %v1454_v16 = vpop.f32.mrf.mxu2 }
 0x14e   : > { %v1533_v28 = vadd.f32 %v1454_v16, %v1235_v44  ;;  %v5596_v44 = vmax.f32 %v4897_v46, 0.0 }
 0x14f   : > { %v1752_v7 = vpop.f32.mrf.mxu3 }
 0x150   : > { %v1831_v39 = vadd.f32 %v1752_v7, %v1533_v28  ;;  %v1968_v41 = vpack.c.bf16 %v5596_v44, %v658_v55  ;;  %v1319_v28 = vld [vmem:[#allocation3 + $0xfa] sm:$0xff] }
 0x151   : > { %v2055_v21 = vpop.f32.mrf.mxu0 }
 0x152   : > { %1496 = vmatmul.bf16.gmra.mxu2 %v5181_v32  ;;  %v5184_v51 = vadd.f32 %v2050_v57, %v1831_v39  ;;  %v1318_v57 = vld [vmem:[#allocation3 + $0xf2] sm:$0xff] }
 0x153   : > { %v1164_v26 = vpop.f32.mrf.mxu1 }
 0x154   : > { %1794 = vmatmul.bf16.gmra.mxu3 %v4960_v10  ;;  %v1238_v49 = vadd.f32 %v1164_v26, %v5095_v11 }
 0x155   : > { %v1457_v6 = vpop.f32.mrf.mxu2 }
 0x156   : > { %v1534_v15 = vadd.f32 %v1457_v6, %v1236_v0  ;;  %1203 = vmatmul.bf16.gmra.mxu1 %v1967_v3  ;;  %v5195_v0 = vpack.c.bf16 %v1319_v28, %v1318_v57  ;;  %v4293_v57 = vld [vmem:[%s5586_s3 + $0x208] sm:$0xff] }
 0x157   : > { %v1755_v1 = vpop.f32.mrf.mxu3  ;;  %3238 = vmatpush.bf16.msra.mxu0 %v4293_v57 }
 0x158   : > { %v1832_v18 = vadd.f32 %v1755_v1, %v1534_v15  ;;  %v1916_v15 = vld [vmem:[#allocation3 + $0x121] sm:$0xff]  ;;  %v1917_v1 = vld [vmem:[#allocation3 + $0x129] sm:$0xff] }
 0x159   : > { %v2058_v60 = vpop.f32.mrf.mxu0 }
 0x15a   : > { %v5192_v16 = vadd.f32 %v2053_v50, %v1832_v18  ;;  %v4285_v50 = vld [vmem:[%s5586_s3 + $0x1c8] sm:$0xff] }
 0x15b   : > { %v1166_v7 = vpop.f32.mrf.mxu1  ;;  %2940 = vmatpush.bf16.msra.mxu3 %v4285_v50 }
 0x15c   : > { %2097 = vmatmul.bf16.gmra.mxu0 %v1968_v41  ;;  %v1239_v10 = vadd.f32 %v1166_v7, %v5105_v37  ;;  %v4277_v37 = vld [vmem:[%s5586_s3 + $0x188] sm:$0xff] }
 0x15d   : > { %v1459_v11 = vpop.f32.mrf.mxu2  ;;  %2642 = vmatpush.bf16.msra.mxu2 %v4277_v37 }
 0x15e   : > { %v1535_v39 = vadd.f32 %v1459_v11, %v1237_v12 }
 0x15f   : > { %v1757_v3 = vpop.f32.mrf.mxu3 }
 0x160   : > { %v1833_v26 = vadd.f32 %v1757_v3, %v1535_v39 }
 0x161   : > { %v2060_v6 = vpop.f32.mrf.mxu0 }
 0x162   : > { %1501 = vmatmul.bf16.gmra.mxu2 %v5195_v0  ;;  %v5198_v40 = vadd.f32 %v2055_v21, %v1833_v26  ;;  %v1618_v26 = vld [vmem:[#allocation3 + $0x120] sm:$0xff] }
 0x163   : > { %v1169_v46 = vpop.f32.mrf.mxu1 }
 0x164   : > { %1799 = vmatmul.bf16.gmra.mxu3 %v4978_v4  ;;  %v1240_v55 = vadd.f32 %v1169_v46, %v5127_v42  ;;  %v5208_v4 = vpack.c.bf16 %v1917_v1, %v1916_v15  ;;  %v4269_v42 = vld [vmem:[%s5586_s3 + $0x148] sm:$0xff] }
 0x165   : > { %v1462_v12 = vpop.f32.mrf.mxu2  ;;  %2343 = vmatpush.bf16.msra.mxu1 %v4269_v42  ;;  %v1619_v46 = vld [vmem:[#allocation3 + $0x128] sm:$0xff] }
 0x166   : > { %v1536_v18 = vadd.f32 %v1462_v12, %v1238_v49  ;;  %1208 = vmatmul.bf16.gmra.mxu1 %v1968_v41  ;;  %5597 = vst [vmem:[#allocation6_spill] sm:$0xff] %v5208_v4  ;;  %v1320_v49 = vld [vmem:[#allocation3 + $0x10a] sm:$0xff]  ;;  %v1321_v41 = vld [vmem:[#allocation3 + $0x112] sm:$0xff]  ;;  %v5222_v1 = vpack.c.bf16 %v1619_v46, %v1618_v26  ;;  %v1919_v42 = vld [vmem:[#allocation3 + $0x141] sm:$0xff] }
 0x167   : > { %v1760_v21 = vpop.f32.mrf.mxu3  ;;  %v5220_v50 = vpack.c.bf16 %v1321_v41, %v1320_v49  ;;  %v1322_v26 = vld [vmem:[#allocation3 + $0x122] sm:$0xff] }
 0x168   : > { %v1834_v44 = vadd.f32 %v1760_v21, %v1536_v18  ;;  %5599 = vst [vmem:[#allocation8_spill] sm:$0xff] %v5222_v1 }
 0x169   : > { %v2063_v28 = vpop.f32.mrf.mxu0 }
 0x16a   : > { %v5216_v7 = vadd.f32 %v2058_v60, %v1834_v44 }
 0x16b   : > { %v1171_v11 = vpop.f32.mrf.mxu1 }
 0x16c   : > { %5598 = vst [vmem:[#allocation7_spill] sm:$0xff] %v5216_v7  ;;  %2102 = vmatmul.bf16.gmra.mxu0 %v5208_v4  ;;  %v1241_v39 = vadd.f32 %v1171_v11, %v5137_v24  ;;  %v1918_v24 = vld [vmem:[#allocation3 + $0x139] sm:$0xff]  ;;  %v1922_v7 = vld [vmem:[#allocation3 + $0x169] sm:$0xff] }
 0x16d   : > { %v1464_v3 = vpop.f32.mrf.mxu2  ;;  %v5229_v41 = vpack.c.bf16 %v1919_v42, %v1918_v24 }
 0x16e   : > { %v1537_v37 = vadd.f32 %v1464_v3, %v1239_v10 }
 0x16f   : > { %v1762_v12 = vpop.f32.mrf.mxu3  ;;  %5601 = vst [vmem:[#allocation10_spill] sm:$0xff] %v5229_v41 }
 0x170   : > { %v1835_v15 = vadd.f32 %v1762_v12, %v1537_v37  ;;  %v1620_v12 = vld [vmem:[#allocation3 + $0x138] sm:$0xff] }
 0x171   : > { %v2065_v18 = vpop.f32.mrf.mxu0 }
 0x172   : > { %1506 = vmatmul.bf16.gmra.mxu2 %v5220_v50  ;;  %v5225_v60 = vadd.f32 %v2060_v6, %v1835_v15  ;;  %v1323_v6 = vld [vmem:[#allocation3 + $0x12a] sm:$0xff]  ;;  %v1621_v15 = vld [vmem:[#allocation3 + $0x140] sm:$0xff] }
 0x173   : > { %v1174_v21 = vpop.f32.mrf.mxu1  ;;  %v1672_v24 = vpack.c.bf16 %v1621_v15, %v1620_v12  ;;  %v1921_v12 = vld [vmem:[#allocation3 + $0x159] sm:$0xff] }
 0x174   : > { %5600 = vst [vmem:[#allocation9_spill] sm:$0xff] %v5225_v60  ;;  %1804 = vmatmul.bf16.gmra.mxu3 %v5222_v1  ;;  %v1923_v1 = vld [vmem:[#allocation3 + $0x171] sm:$0xff] }
 0x175   : > { %v1467_v44 = vpop.f32.mrf.mxu2 }
 0x176   : > { %v1538_v57 = vadd.f32 %v1467_v44, %v1240_v55  ;;  %1213 = vmatmul.bf16.gmra.mxu1 %v5208_v4  ;;  %v5234_v44 = vpack.c.bf16 %v1323_v6, %v1322_v26  ;;  %v4276_v4 = vld [vmem:[%s5586_s3 + $0x180] sm:$0xff] }
 0x177   : > { %v1765_v10 = vpop.f32.mrf.mxu3  ;;  %v4369_v26 = vld [vmem:[%s5584_s1] ss:$0 sm:$0xff]  ;;  %2643 = vmatpush.bf16.msra.mxu2 %v4276_v4 }
 0x178   : > { %v1836_v49 = vadd.f32 %v1765_v10, %v1538_v57  ;;  %v4292_v4 = vld [vmem:[%s5586_s3 + $0x200] sm:$0xff] }
 0x179   : > { %v2068_v11 = vpop.f32.mrf.mxu0  ;;  %3239 = vmatpush.bf16.msra.mxu0 %v4292_v4 }
 0x17a   : > { %v5231_v3 = vadd.f32 %v2063_v28, %v1836_v49  ;;  %v564_v49 = vld [vmem:[%s4575_s17 + $0xf0] sm:$0xff] }
 0x17b   : > { %v1176_v46 = vpop.f32.mrf.mxu1 }
 0x17c   : > { %5602 = vst [vmem:[#allocation11_spill] sm:$0xff] %v5231_v3  ;;  %2107 = vmatmul.bf16.gmra.mxu0 %v5229_v41  ;;  %v1242_v3 = vadd.f32 %v1174_v21, %v5031_v59  ;;  %v4370_v21 = vld [vmem:[%s5585_s2] ss:$0 sm:$0xff] }
 0x17d   : > { %v1469_v37 = vpop.f32.mrf.mxu2 }
 0x17e   : > { %v1539_v55 = vadd.f32 %v1469_v37, %v1241_v39  ;;  %v4284_v39 = vld [vmem:[%s5586_s3 + $0x1c0] sm:$0xff]  ;;  %v1920_v37 = vld [vmem:[#allocation3 + $0x151] sm:$0xff] }
 0x17f   : > { %v1767_v60 = vpop.f32.mrf.mxu3  ;;  %2941 = vmatpush.bf16.msra.mxu3 %v4284_v39 }
 0x180   : > { %v1837_v57 = vadd.f32 %v1767_v60, %v1539_v55  ;;  %v565_v60 = vld [vmem:[%s4575_s17 + $0xf8] sm:$0xff] }
 0x181   : > { %v2070_v42 = vpop.f32.mrf.mxu0  ;;  %v601_v15 = vmul.f32 %v4369_v26, %v565_v60 }
 0x182   : > { %1511 = vmatmul.bf16.gmra.mxu2 %v5234_v44  ;;  %v5237_v28 = vadd.f32 %v2065_v18, %v1837_v57  ;;  %v600_v18 = vmul.f32 %v4369_v26, %v564_v49  ;;  %v5259_v49 = vpack.c.bf16 %v1921_v12, %v1920_v37  ;;  %v1325_v37 = vld [vmem:[#allocation3 + $0x142] sm:$0xff] }
 0x183   : > { %v1179_v10 = vpop.f32.mrf.mxu1 }
 0x184   : > { %5603 = vst [vmem:[#allocation12_spill] sm:$0xff] %v5237_v28  ;;  %1809 = vmatmul.bf16.gmra.mxu3 %v1672_v24  ;;  %v5255_v55 = vadd.f32 %v4370_v21, %v600_v18  ;;  %v5257_v24 = vadd.f32 %v4370_v21, %v601_v15  ;;  %v1243_v15 = vadd.f32 %v1176_v46, %v5041_v43  ;;  %v1622_v21 = vld [vmem:[#allocation3 + $0x150] sm:$0xff] }
 0x185   : > { %v1472_v6 = vpop.f32.mrf.mxu2  ;;  %5604 = vst [vmem:[#allocation13_spill] sm:$0xff] %v5259_v49  ;;  %v1244_v43 = vadd.f32 %v1179_v10, %v5048_v53 }
 0x186   : > { %v1540_v59 = vadd.f32 %v1472_v6, %v1242_v3  ;;  %1218 = vmatmul.bf16.gmra.mxu1 %v5229_v41  ;;  %v4268_v3 = vld [vmem:[%s5586_s3 + $0x140] sm:$0xff]  ;;  %v668_v60 = vmax.f32 %v5255_v55, 0.0  ;;  %v669_v18 = vmax.f32 %v5257_v24, 0.0 }
 0x187   : > { %v1770_v57 = vpop.f32.mrf.mxu3  ;;  %2344 = vmatpush.bf16.msra.mxu1 %v4268_v3  ;;  %v1324_v6 = vld [vmem:[#allocation3 + $0x13a] sm:$0xff] }
 0x188   : > { %v1838_v28 = vadd.f32 %v1770_v57, %v1540_v59  ;;  %701 = vst [vmem:[#allocation3 + $0x181] sm:$0xff] %v668_v60  ;;  %v1623_v57 = vld [vmem:[#allocation3 + $0x158] sm:$0xff]  ;;  %v5273_v41 = vpack.c.bf16 %v1325_v37, %v1324_v6 }
 0x189   : > { %v2073_v26 = vpop.f32.mrf.mxu0  ;;  %702 = vst [vmem:[#allocation3 + $0x189] sm:$0xff] %v669_v18  ;;  %v5275_v4 = vpack.c.bf16 %v1623_v57, %v1622_v21 }
 0x18a   : > { %v5269_v39 = vadd.f32 %v2068_v11, %v1838_v28 }
 0x18b   : > { %v1181_v12 = vpop.f32.mrf.mxu1 }
 0x18c   : > { %5605 = vst [vmem:[#allocation14_spill] sm:$0xff] %v5269_v39  ;;  %2112 = vmatmul.bf16.gmra.mxu0 %v5259_v49  ;;  %v1245_v53 = vadd.f32 %v1181_v12, %v5073_v36 }
 0x18d   : > { %v1474_v59 = vpop.f32.mrf.mxu2 }
 0x18e   : > { %v1541_v55 = vadd.f32 %v1474_v59, %v1243_v15  ;;  %v5283_v59 = vpack.c.bf16 %v1923_v1, %v1922_v7 }
 0x18f   : > { %v1772_v24 = vpop.f32.mrf.mxu3 }
 0x190   : > { %v1839_v3 = vadd.f32 %v1772_v24, %v1541_v55  ;;  %v1327_v55 = vld [vmem:[#allocation3 + $0x15a] sm:$0xff] }
 0x191   : > { %v2075_v11 = vpop.f32.mrf.mxu0 }
 0x192   : > { %1516 = vmatmul.bf16.gmra.mxu2 %v5273_v41  ;;  %v5278_v28 = vadd.f32 %v2070_v42, %v1839_v3  ;;  %v1326_v42 = vld [vmem:[#allocation3 + $0x152] sm:$0xff]  ;;  %v1624_v3 = vld [vmem:[#allocation3 + $0x168] sm:$0xff] }
 0x193   : > { %v1184_v39 = vpop.f32.mrf.mxu1 }
 0x194   : > { %5606 = vst [vmem:[#allocation15_spill] sm:$0xff] %v5278_v28  ;;  %1814 = vmatmul.bf16.gmra.mxu3 %v5275_v4  ;;  %v1625_v28 = vld [vmem:[#allocation3 + $0x170] sm:$0xff] }
 0x195   : > { %v1477_v46 = vpop.f32.mrf.mxu2  ;;  %v1674_v7 = vpack.c.bf16 %v1625_v28, %v1624_v3  ;;  %v1328_v28 = vld [vmem:[#allocation3 + $0x16a] sm:$0xff] }
 0x196   : > { %v1542_v15 = vadd.f32 %v1477_v46, %v1244_v43  ;;  %1223 = vmatmul.bf16.gmra.mxu1 %v5259_v49  ;;  %v5289_v46 = vpack.c.bf16 %v1327_v55, %v1326_v42  ;;  %v5296_v42 = vpack.c.bf16 %v669_v18, %v668_v60 }
 0x197   : > { %v1775_v6 = vpop.f32.mrf.mxu3 }
 0x198   : > { %v1840_v37 = vadd.f32 %v1775_v6, %v1542_v15  ;;  %5608 = vst [vmem:[#allocation17_spill] sm:$0xff] %v5296_v42 }
 0x199   : > { %v2078_v21 = vpop.f32.mrf.mxu0 }
 0x19a   : > { %v5285_v57 = vadd.f32 %v2073_v26, %v1840_v37  ;;  %v1246_v37 = vadd.f32 %v1184_v39, %v5084_v5  ;;  %v1626_v39 = vld [vmem:[#allocation3 + $0x180] sm:$0xff] }
 0x19b   : > { %v1186_v24 = vpop.f32.mrf.mxu1 }
 0x19c   : > { %5607 = vst [vmem:[#allocation16_spill] sm:$0xff] %v5285_v57  ;;  %2117 = vmatmul.bf16.gmra.mxu0 %v5283_v59 }
 0x19d   : > { %v1479_v10 = vpop.f32.mrf.mxu2 }
 0x19e   : > { %v1543_v43 = vadd.f32 %v1479_v10, %v1245_v53  ;;  %v1329_v10 = vld [vmem:[#allocation3 + $0x172] sm:$0xff] }
 0x19f   : > { %v1777_v49 = vpop.f32.mrf.mxu3 }
 0x1a0   : > { %v1841_v15 = vadd.f32 %v1777_v49, %v1543_v43  ;;  %v1627_v43 = vld [vmem:[#allocation3 + $0x188] sm:$0xff] }
 0x1a1   : > { %v2080_v1 = vpop.f32.mrf.mxu0  ;;  %v5304_v60 = vpack.c.bf16 %v1627_v43, %v1626_v39  ;;  %v2492_v39 = vld [vmem:[#allocation3 + $0x38] sm:$0xff] }
 0x1a2   : > { %1521 = vmatmul.bf16.gmra.mxu2 %v5289_v46  ;;  %v5292_v26 = vadd.f32 %v2075_v11, %v1841_v15  ;;  %v1247_v11 = vadd.f32 %v1186_v24, %v5097_v23 }
 0x1a3   : > { %v1189_v6 = vpop.f32.mrf.mxu1 }
 0x1a4   : > { %1819 = vmatmul.bf16.gmra.mxu3 %v1674_v7  ;;  %v5302_v7 = vpack.c.bf16 %v1329_v10, %v1328_v28  ;;  %v1248_v23 = vadd.f32 %v1189_v6, %v5108_v62  ;;  %v2789_v62 = vld [vmem:[#allocation3 + $0x31] sm:$0xff]  ;;  %v2790_v6 = vld [vmem:[#allocation3 + $0x39] sm:$0xff] }
 0x1a5   : > { %v1482_v36 = vpop.f32.mrf.mxu2 }
 0x1a6   : > { %v1544_v12 = vadd.f32 %v1482_v36, %v1246_v37  ;;  %1228 = vmatmul.bf16.gmra.mxu1 %v5283_v59 }
 0x1a7   : > { %v1780_v57 = vpop.f32.mrf.mxu3 }
 0x1a8   : > { %v1842_v53 = vadd.f32 %v1780_v57, %v1544_v12 }
 0x1a9   : > { %v2083_v55 = vpop.f32.mrf.mxu0 }
 0x1aa   : > { %v5298_v49 = vadd.f32 %v2078_v21, %v1842_v53 }
 0x1ab   : > { %v1191_v3 = vpop.f32.mrf.mxu1 }
 0x1ac   : > { %2122 = vmatmul.bf16.gmra.mxu0 %v5296_v42 }
 0x1ad   : > { %v1484_v5 = vpop.f32.mrf.mxu2 }
 0x1ae   : > { %v1545_v15 = vadd.f32 %v1484_v5, %v1247_v11  ;;  %v2491_v5 = vld [vmem:[#allocation3 + $0x30] sm:$0xff] }
 0x1af   : > { %v1782_v37 = vpop.f32.mrf.mxu3 }
 0x1b0   : > { %v1843_v57 = vadd.f32 %v1782_v37, %v1545_v15 }
 0x1b1   : > { %v2085_v18 = vpop.f32.mrf.mxu0 }
 0x1b2   : > { %1526 = vmatmul.bf16.gmra.mxu2 %v5302_v7  ;;  %v5307_v21 = vadd.f32 %v2080_v1, %v1843_v57  ;;  %v1249_v1 = vadd.f32 %v1191_v3, %v5129_v22  ;;  %v2555_v57 = vpack.c.bf16 %v2492_v39, %v2491_v5 }
 0x1b3   : > { %v1194_v36 = vpop.f32.mrf.mxu1 }
 0x1b4   : > { %5609 = vst [vmem:[#allocation18_spill] sm:$0xff] %v5307_v21  ;;  %1824 = vmatmul.bf16.gmra.mxu3 %v5304_v60  ;;  %v1250_v22 = vadd.f32 %v1194_v36, %v5057_v33 }
 0x1b5   : > { %v1487_v24 = vpop.f32.mrf.mxu2 }
 0x1b6   : > { %v1546_v12 = vadd.f32 %v1487_v24, %v1248_v23  ;;  %2345 = vmatmul.bf16.vlgmr.msra.gmra.mxu1 %v5006_v58  ;;  %v2194_v24 = vld [vmem:[#allocation3 + $0x32] sm:$0xff]  ;;  %v2195_v58 = vld [vmem:[#allocation3 + $0x3a] sm:$0xff] }
 0x1b7   : > { %v1785_v53 = vpop.f32.mrf.mxu3 }
 0x1b8   : > { %v1844_v28 = vadd.f32 %v1785_v53, %v1546_v12  ;;  %v2853_v12 = vpack.c.bf16 %v2790_v6, %v2789_v62 }
 0x1b9   : > { %v2088_v10 = vpop.f32.mrf.mxu0 }
 0x1ba   : > { %v5312_v11 = vadd.f32 %v2083_v55, %v1844_v28  ;;  %v2257_v55 = vpack.c.bf16 %v2195_v58, %v2194_v24  ;;  %v2196_v24 = vld [vmem:[#allocation3 + $0x4a] sm:$0xff]  ;;  %v2197_v58 = vld [vmem:[#allocation3 + $0x52] sm:$0xff] }
 0x1bb   : > { %v1196_v43 = vpop.f32.mrf.mxu1 }
 0x1bc   : > { %5610 = vst [vmem:[#allocation19_spill] sm:$0xff] %v5312_v11  ;;  %3240 = vmatmul.bf16.vlgmr.msra.gmra.mxu0 %v5010_v14  ;;  %v1251_v6 = vadd.f32 %v1196_v43, %v5075_v29 }
 0x1bd   : > { %v1489_v15 = vpop.f32.mrf.mxu2 }
 0x1be   : > { %v1547_v37 = vadd.f32 %v1489_v15, %v1249_v1  ;;  %v2493_v15 = vld [vmem:[#allocation3 + $0x48] sm:$0xff] }
 0x1bf   : > { %v1787_v23 = vpop.f32.mrf.mxu3 }
 0x1c0   : > { %v1845_v21 = vadd.f32 %v1787_v23, %v1547_v37  ;;  %v2494_v37 = vld [vmem:[#allocation3 + $0x50] sm:$0xff] }
 0x1c1   : > { %v2090_v53 = vpop.f32.mrf.mxu0  ;;  %v2556_v36 = vpack.c.bf16 %v2494_v37, %v2493_v15 }
 0x1c2   : > { %2644 = vmatmul.bf16.vlgmr.msra.gmra.mxu2 %v2555_v57  ;;  %v5316_v28 = vadd.f32 %v2085_v18, %v1845_v21  ;;  %v2791_v21 = vld [vmem:[#allocation3 + $0x49] sm:$0xff]  ;;  %v2792_v57 = vld [vmem:[#allocation3 + $0x51] sm:$0xff] }
 0x1c3   : > { %v1199_v11 = vpop.f32.mrf.mxu1 }
 0x1c4   : > { %2942 = vmatmul.bf16.vlgmr.msra.gmra.mxu3 %v2853_v12  ;;  %v1252_v29 = vadd.f32 %v1199_v11, %v5087_v9 }
 0x1c5   : > { %v1492_v14 = vpop.f32.mrf.mxu2 }
 0x1c6   : > { %v1548_v3 = vadd.f32 %v1492_v14, %v1250_v22  ;;  %2350 = vmatmul.bf16.gmra.mxu1 %v2257_v55 }
 0x1c7   : > { %v1790_v42 = vpop.f32.mrf.mxu3 }
 0x1c8   : > { %v1846_v1 = vadd.f32 %v1790_v42, %v1548_v3  ;;  %v2854_v42 = vpack.c.bf16 %v2792_v57, %v2791_v21 }
 0x1c9   : > { %v2093_v5 = vpop.f32.mrf.mxu0 }
 0x1ca   : > { %v5319_v39 = vadd.f32 %v2088_v10, %v1846_v1  ;;  %v2258_v10 = vpack.c.bf16 %v2197_v58, %v2196_v24  ;;  %v2198_v24 = vld [vmem:[#allocation3 + $0x62] sm:$0xff]  ;;  %v2199_v58 = vld [vmem:[#allocation3 + $0x6a] sm:$0xff] }
 0x1cb   : > { %v1201_v62 = vpop.f32.mrf.mxu1 }
 0x1cc   : > { %3245 = vmatmul.bf16.gmra.mxu0 %v5029_v52  ;;  %v1253_v57 = vadd.f32 %v1201_v62, %v5099_v2 }
 0x1cd   : > { %v1494_v18 = vpop.f32.mrf.mxu2 }
 0x1ce   : > { %v1549_v33 = vadd.f32 %v1494_v18, %v1251_v6  ;;  %v2495_v6 = vld [vmem:[#allocation3 + $0x60] sm:$0xff]  ;;  %v2496_v18 = vld [vmem:[#allocation3 + $0x68] sm:$0xff] }
 0x1cf   : > { %v1792_v23 = vpop.f32.mrf.mxu3  ;;  %v2557_v11 = vpack.c.bf16 %v2496_v18, %v2495_v6  ;;  %v2497_v18 = vld [vmem:[#allocation3 + $0x78] sm:$0xff] }
 0x1d0   : > { %v1847_v12 = vadd.f32 %v1792_v23, %v1549_v33  ;;  %v2793_v33 = vld [vmem:[#allocation3 + $0x61] sm:$0xff] }
 0x1d1   : > { %v2095_v55 = vpop.f32.mrf.mxu0 }
 0x1d2   : > { %2649 = vmatmul.bf16.gmra.mxu2 %v2556_v36  ;;  %v5323_v22 = vadd.f32 %v2090_v53, %v1847_v12  ;;  %v2794_v36 = vld [vmem:[#allocation3 + $0x69] sm:$0xff] }
 0x1d3   : > { %v1204_v14 = vpop.f32.mrf.mxu1 }
 0x1d4   : > { %2947 = vmatmul.bf16.gmra.mxu3 %v2854_v42  ;;  %v2855_v42 = vpack.c.bf16 %v2794_v36, %v2793_v33  ;;  %v1254_v2 = vadd.f32 %v1204_v14, %v5117_v8  ;;  %v2795_v36 = vld [vmem:[#allocation3 + $0x79] sm:$0xff] }
 0x1d5   : > { %v1497_v52 = vpop.f32.mrf.mxu2 }
 0x1d6   : > { %v1550_v43 = vadd.f32 %v1497_v52, %v1252_v29  ;;  %2355 = vmatmul.bf16.gmra.mxu1 %v2258_v10 }
 0x1d7   : > { %v1795_v3 = vpop.f32.mrf.mxu3 }
 0x1d8   : > { %v1848_v1 = vadd.f32 %v1795_v3, %v1550_v43 }
 0x1d9   : > { %v2098_v15 = vpop.f32.mrf.mxu0 }
 0x1da   : > { %v5326_v37 = vadd.f32 %v2093_v5, %v1848_v1  ;;  %v2259_v5 = vpack.c.bf16 %v2199_v58, %v2198_v24  ;;  %v2201_v24 = vld [vmem:[#allocation3 + $0x82] sm:$0xff] }
 0x1db   : > { %v1206_v21 = vpop.f32.mrf.mxu1 }
 0x1dc   : > { %3250 = vmatmul.bf16.gmra.mxu0 %v5043_v13  ;;  %v1255_v33 = vadd.f32 %v1206_v21, %v5131_v27 }
 0x1dd   : > { %v1499_v53 = vpop.f32.mrf.mxu2 }
 0x1de   : > { %v1551_v9 = vadd.f32 %v1499_v53, %v1253_v57  ;;  %v2498_v57 = vld [vmem:[#allocation3 + $0x80] sm:$0xff] }
 0x1df   : > { %v1797_v23 = vpop.f32.mrf.mxu3  ;;  %v2558_v14 = vpack.c.bf16 %v2498_v57, %v2497_v18  ;;  %v2499_v18 = vld [vmem:[#allocation3 + $0x90] sm:$0xff]  ;;  %v2500_v57 = vld [vmem:[#allocation3 + $0x98] sm:$0xff] }
 0x1e0   : > { %v1849_v12 = vadd.f32 %v1797_v23, %v1551_v9  ;;  %v2796_v9 = vld [vmem:[#allocation3 + $0x81] sm:$0xff] }
 0x1e1   : > { %v2100_v10 = vpop.f32.mrf.mxu0  ;;  %v2200_v23 = vld [vmem:[#allocation3 + $0x7a] sm:$0xff] }
 0x1e2   : > { %2654 = vmatmul.bf16.gmra.mxu2 %v2557_v11  ;;  %v5330_v29 = vadd.f32 %v2095_v55, %v1849_v12  ;;  %v2856_v12 = vpack.c.bf16 %v2796_v9, %v2795_v36  ;;  %v2797_v36 = vld [vmem:[#allocation3 + $0x91] sm:$0xff]  ;;  %v2798_v9 = vld [vmem:[#allocation3 + $0x99] sm:$0xff] }
 0x1e3   : > { %v1209_v52 = vpop.f32.mrf.mxu1 }
 0x1e4   : > { %2952 = vmatmul.bf16.gmra.mxu3 %v2855_v42  ;;  %v1256_v27 = vadd.f32 %v1209_v52, %v5140_v54  ;;  %v2559_v52 = vpack.c.bf16 %v2500_v57, %v2499_v18  ;;  %v2502_v18 = vld [vmem:[#allocation3 + $0xb0] sm:$0xff] }
 0x1e5   : > { %v1502_v13 = vpop.f32.mrf.mxu2 }
 0x1e6   : > { %v1552_v62 = vadd.f32 %v1502_v13, %v1254_v2  ;;  %2360 = vmatmul.bf16.gmra.mxu1 %v2259_v5 }
 0x1e7   : > { %v1800_v43 = vpop.f32.mrf.mxu3 }
 0x1e8   : > { %v1850_v3 = vadd.f32 %v1800_v43, %v1552_v62 }
 0x1e9   : > { %v2103_v1 = vpop.f32.mrf.mxu0 }
 0x1ea   : > { %v5333_v6 = vadd.f32 %v2098_v15, %v1850_v3  ;;  %v2260_v15 = vpack.c.bf16 %v2201_v24, %v2200_v23  ;;  %v2857_v24 = vpack.c.bf16 %v2798_v9, %v2797_v36  ;;  %v2800_v36 = vld [vmem:[#allocation3 + $0xb1] sm:$0xff] }
 0x1eb   : > { %v1211_v53 = vpop.f32.mrf.mxu1 }
 0x1ec   : > { %3255 = vmatmul.bf16.gmra.mxu0 %v5077_v35 }
 0x1ed   : > { %v1504_v55 = vpop.f32.mrf.mxu2 }
 0x1ee   : > { %v1553_v8 = vadd.f32 %v1504_v55, %v1255_v33  ;;  %v1257_v55 = vadd.f32 %v1211_v53, %v5149_v45 }
 0x1ef   : > { %v1802_v11 = vpop.f32.mrf.mxu3 }
 0x1f0   : > { %v1851_v58 = vadd.f32 %v1802_v11, %v1553_v8  ;;  %v2203_v11 = vld [vmem:[#allocation3 + $0x9a] sm:$0xff] }
 0x1f1   : > { %v2105_v42 = vpop.f32.mrf.mxu0 }
 0x1f2   : > { %2659 = vmatmul.bf16.gmra.mxu2 %v2558_v14  ;;  %v5337_v5 = vadd.f32 %v2100_v10, %v1851_v58  ;;  %v2202_v14 = vld [vmem:[#allocation3 + $0x92] sm:$0xff] }
 0x1f3   : > { %v1214_v2 = vpop.f32.mrf.mxu1 }
 0x1f4   : > { %2957 = vmatmul.bf16.gmra.mxu3 %v2856_v12  ;;  %v1258_v45 = vadd.f32 %v1214_v2, %v5059_v56 }
 0x1f5   : > { %v1507_v35 = vpop.f32.mrf.mxu2 }
 0x1f6   : > { %v1554_v21 = vadd.f32 %v1507_v35, %v1256_v27  ;;  %2365 = vmatmul.bf16.gmra.mxu1 %v2260_v15 }
 0x1f7   : > { %v1805_v13 = vpop.f32.mrf.mxu3 }
 0x1f8   : > { %v1852_v62 = vadd.f32 %v1805_v13, %v1554_v21 }
 0x1f9   : > { %v2108_v43 = vpop.f32.mrf.mxu0 }
 0x1fa   : > { %v5340_v3 = vadd.f32 %v2103_v1, %v1852_v62  ;;  %v2261_v1 = vpack.c.bf16 %v2203_v11, %v2202_v14  ;;  %v2501_v62 = vld [vmem:[#allocation3 + $0xa8] sm:$0xff] }
 0x1fb   : > { %v1216_v33 = vpop.f32.mrf.mxu1  ;;  %v2560_v2 = vpack.c.bf16 %v2502_v18, %v2501_v62 }
 0x1fc   : > { %3260 = vmatmul.bf16.gmra.mxu0 %v5101_v20 }
 0x1fd   : > { %v1509_v10 = vpop.f32.mrf.mxu2 }
 0x1fe   : > { %v1555_v54 = vadd.f32 %v1509_v10, %v1257_v55  ;;  %v1259_v55 = vadd.f32 %v1216_v33, %v5079_v61  ;;  %v2799_v10 = vld [vmem:[#allocation3 + $0xa9] sm:$0xff] }
 0x1ff   : > { %v1807_v8 = vpop.f32.mrf.mxu3  ;;  %v2858_v14 = vpack.c.bf16 %v2800_v36, %v2799_v10  ;;  %v2206_v36 = vld [vmem:[#allocation3 + $0xc2] sm:$0xff] }
 0x200   : > { %v1853_v23 = vadd.f32 %v1807_v8, %v1555_v54  ;;  %v2204_v54 = vld [vmem:[#allocation3 + $0xaa] sm:$0xff] }
 0x201   : > { %v2110_v58 = vpop.f32.mrf.mxu0 }
 0x202   : > { %2664 = vmatmul.bf16.gmra.mxu2 %v2559_v52  ;;  %v5344_v12 = vadd.f32 %v2105_v42, %v1853_v23  ;;  %v2205_v52 = vld [vmem:[#allocation3 + $0xb2] sm:$0xff] }
 0x203   : > { %v1219_v15 = vpop.f32.mrf.mxu1 }
 0x204   : > { %2962 = vmatmul.bf16.gmra.mxu3 %v2857_v24  ;;  %v1260_v61 = vadd.f32 %v1219_v15, %v5089_v19 }
 0x205   : > { %v1512_v20 = vpop.f32.mrf.mxu2 }
 0x206   : > { %v1556_v53 = vadd.f32 %v1512_v20, %v1258_v45  ;;  %2370 = vmatmul.bf16.gmra.mxu1 %v2261_v1 }
 0x207   : > { %v1810_v27 = vpop.f32.mrf.mxu3 }
 0x208   : > { %v1854_v35 = vadd.f32 %v1810_v27, %v1556_v53  ;;  %v2503_v27 = vld [vmem:[#allocation3 + $0xc0] sm:$0xff] }
 0x209   : > { %v2113_v21 = vpop.f32.mrf.mxu0 }
 0x20a   : > { %v5347_v13 = vadd.f32 %v2108_v43, %v1854_v35  ;;  %v2262_v43 = vpack.c.bf16 %v2205_v52, %v2204_v54  ;;  %v2504_v35 = vld [vmem:[#allocation3 + $0xc8] sm:$0xff] }
 0x20b   : > { %v1221_v57 = vpop.f32.mrf.mxu1  ;;  %v2561_v15 = vpack.c.bf16 %v2504_v35, %v2503_v27 }
 0x20c   : > { %3265 = vmatmul.bf16.gmra.mxu0 %v5133_v25  ;;  %v1261_v18 = vadd.f32 %v1221_v57, %v5103_v17 }
 0x20d   : > { %v1514_v42 = vpop.f32.mrf.mxu2 }
 0x20e   : > { %v1557_v56 = vadd.f32 %v1514_v42, %v1259_v55  ;;  %v2801_v55 = vld [vmem:[#allocation3 + $0xc1] sm:$0xff]  ;;  %v2802_v42 = vld [vmem:[#allocation3 + $0xc9] sm:$0xff] }
 0x20f   : > { %v1812_v9 = vpop.f32.mrf.mxu3 }
 0x210   : > { %v1855_v8 = vadd.f32 %v1812_v9, %v1557_v56  ;;  %v2207_v56 = vld [vmem:[#allocation3 + $0xca] sm:$0xff]  ;;  %v2859_v9 = vpack.c.bf16 %v2802_v42, %v2801_v55 }
 0x211   : > { %v2115_v11 = vpop.f32.mrf.mxu0 }
 0x212   : > { %2669 = vmatmul.bf16.gmra.mxu2 %v2560_v2  ;;  %v5351_v23 = vadd.f32 %v2110_v58, %v1855_v8 }
 0x213   : > { %v1224_v24 = vpop.f32.mrf.mxu1 }
 0x214   : > { %2967 = vmatmul.bf16.gmra.mxu3 %v2858_v14  ;;  %v1262_v17 = vadd.f32 %v1224_v24, %v5119_v48 }
 0x215   : > { %v1517_v25 = vpop.f32.mrf.mxu2 }
 0x216   : > { %v1558_v33 = vadd.f32 %v1517_v25, %v1260_v61  ;;  %2375 = vmatmul.bf16.gmra.mxu1 %v2262_v43 }
 0x217   : > { %v1815_v1 = vpop.f32.mrf.mxu3 }
 0x218   : > { %v1856_v45 = vadd.f32 %v1815_v1, %v1558_v33  ;;  %v2505_v33 = vld [vmem:[#allocation3 + $0xd8] sm:$0xff]  ;;  %v2506_v1 = vld [vmem:[#allocation3 + $0xe0] sm:$0xff] }
 0x219   : > { %v2118_v20 = vpop.f32.mrf.mxu0 }
 0x21a   : > { %v5354_v53 = vadd.f32 %v2113_v21, %v1856_v45  ;;  %v2263_v21 = vpack.c.bf16 %v2207_v56, %v2206_v36  ;;  %v2507_v56 = vld [vmem:[#allocation3 + $0xf0] sm:$0xff] }
 0x21b   : > { %v1226_v62 = vpop.f32.mrf.mxu1 }
 0x21c   : > { %3270 = vmatmul.bf16.gmra.mxu0 %v5151_v38  ;;  %v1263_v27 = vadd.f32 %v1226_v62, %v5135_v30 }
 0x21d   : > { %v1519_v58 = vpop.f32.mrf.mxu2 }
 0x21e   : > { %v1559_v19 = vadd.f32 %v1519_v58, %v1261_v18  ;;  %v2562_v18 = vpack.c.bf16 %v2506_v1, %v2505_v33 }
 0x21f   : > { %v1817_v10 = vpop.f32.mrf.mxu3 }
 0x220   : > { %v1857_v2 = vadd.f32 %v1817_v10, %v1559_v19 }
 0x221   : > { %v2120_v54 = vpop.f32.mrf.mxu0 }
 0x222   : > { %2674 = vmatmul.bf16.gmra.mxu2 %v2561_v15  ;;  %v5358_v52 = vadd.f32 %v2115_v11, %v1857_v2  ;;  %v2508_v2 = vld [vmem:[#allocation3 + $0xf8] sm:$0xff] }
 0x223   : > { %v1229_v8 = vpop.f32.mrf.mxu1 }
 0x224   : > { %2972 = vmatmul.bf16.gmra.mxu3 %v2859_v9 }
 0x225   : > { %v1522_v38 = vpop.f32.mrf.mxu2 }
 0x226   : > { %v1560_v57 = vadd.f32 %v1522_v38, %v1262_v17  ;;  %2380 = vmatmul.bf16.gmra.mxu1 %v2263_v21  ;;  %v2563_v17 = vpack.c.bf16 %v2508_v2, %v2507_v56 }
 0x227   : > { %v1820_v14 = vpop.f32.mrf.mxu3 }
 0x228   : > { %v1858_v43 = vadd.f32 %v1820_v14, %v1560_v57  ;;  %v2210_v57 = vld [vmem:[#allocation3 + $0xf2] sm:$0xff] }
 0x229   : > { %v2123_v61 = vpop.f32.mrf.mxu0 }
 0x22a   : > { %v5361_v25 = vadd.f32 %v2118_v20, %v1858_v43  ;;  %v1264_v20 = vadd.f32 %v1229_v8, %v5142_v63  ;;  %v2805_v63 = vld [vmem:[#allocation3 + $0xf1] sm:$0xff]  ;;  %v2806_v8 = vld [vmem:[#allocation3 + $0xf9] sm:$0xff] }
 0x22b   : > { %v1231_v45 = vpop.f32.mrf.mxu1  ;;  %v2861_v43 = vpack.c.bf16 %v2806_v8, %v2805_v63 }
 0x22c   : > { %3275 = vmatmul.bf16.gmra.mxu0 %v5181_v32 }
 0x22d   : > { %v1524_v11 = vpop.f32.mrf.mxu2 }
 0x22e   : > { %v1561_v35 = vadd.f32 %v1524_v11, %v1263_v27 }
 0x22f   : > { %v1822_v48 = vpop.f32.mrf.mxu3 }
 0x230   : > { %v1859_v24 = vadd.f32 %v1822_v48, %v1561_v35 }
 0x231   : > { %v2125_v58 = vpop.f32.mrf.mxu0 }
 0x232   : > { %2679 = vmatmul.bf16.gmra.mxu2 %v2562_v18  ;;  %v5365_v55 = vadd.f32 %v2120_v54, %v1859_v24  ;;  %v1265_v54 = vadd.f32 %v1231_v45, %v5153_v47  ;;  %v5380_v18 = vld [vmem:[%s5587_s4] ss:$0 sm:$0xff] }
 0x233   : > { %v2346_v42 = vpop.f32.mrf.mxu1 }
 0x234   : > { %2977 = vmatmul.bf16.gmra.mxu3 %v5156_v34  ;;  %v2426_v47 = vadd.f32 %v2346_v42, %v5178_v31 }
 0x235   : > { %v1527_v19 = vpop.f32.mrf.mxu2 }
 0x236   : > { %v1562_v15 = vadd.f32 %v1527_v19, %v1264_v20  ;;  %2385 = vmatmul.bf16.gmra.mxu1 %v5181_v32  ;;  %v2211_v32 = vld [vmem:[#allocation3 + $0xfa] sm:$0xff]  ;;  %v2509_v20 = vld [vmem:[#allocation3 + $0x108] sm:$0xff] }
 0x237   : > { %v1825_v30 = vpop.f32.mrf.mxu3 }
 0x238   : > { %v1860_v62 = vadd.f32 %v1825_v30, %v1562_v15  ;;  %v2807_v30 = vld [vmem:[#allocation3 + $0x109] sm:$0xff] }
 0x239   : > { %v3241_v10 = vpop.f32.mrf.mxu0 }
 0x23a   : > { %v5370_v36 = vadd.f32 %v2123_v61, %v1860_v62  ;;  %v2265_v61 = vpack.c.bf16 %v2211_v32, %v2210_v57  ;;  %v2808_v62 = vld [vmem:[#allocation3 + $0x111] sm:$0xff] }
 0x23b   : > { %v2348_v9 = vpop.f32.mrf.mxu1 }
 0x23c   : > { %3280 = vmatmul.bf16.gmra.mxu0 %v5195_v0  ;;  %v2427_v31 = vadd.f32 %v2348_v9, %v5184_v51 }
 0x23d   : > { %v1529_v21 = vpop.f32.mrf.mxu2 }
 0x23e   : > { %v1563_v34 = vadd.f32 %v1529_v21, %v1265_v54  ;;  %v2862_v21 = vpack.c.bf16 %v2808_v62, %v2807_v30 }
 0x23f   : > { %v1827_v38 = vpop.f32.mrf.mxu3 }
 0x240   : > { %v1861_v14 = vadd.f32 %v1827_v38, %v1563_v34 }
 0x241   : > { %v3243_v33 = vpop.f32.mrf.mxu0 }
 0x242   : > { %2684 = vmatmul.bf16.gmra.mxu2 %v2563_v17  ;;  %v5374_v1 = vadd.f32 %v2125_v58, %v1861_v14  ;;  %v2510_v58 = vld [vmem:[#allocation3 + $0x110] sm:$0xff] }
 0x243   : > { %v2351_v27 = vpop.f32.mrf.mxu1  ;;  %v2564_v2 = vpack.c.bf16 %v2510_v58, %v2509_v20  ;;  %v5611_v20 = vld [vmem:[#allocation8_spill] sm:$0xff] }
 0x244   : > { %2982 = vmatmul.bf16.gmra.mxu3 %v2861_v43  ;;  %v2428_v9 = vadd.f32 %v2351_v27, %v5192_v16 }
 0x245   : > { %v2645_v0 = vpop.f32.mrf.mxu2 }
 0x246   : > { %v2725_v45 = vadd.f32 %v2645_v0, %v2426_v47  ;;  %2390 = vmatmul.bf16.gmra.mxu1 %v2265_v61 }
 0x247   : > { %v2943_v11 = vpop.f32.mrf.mxu3 }
 0x248   : > { %v3023_v35 = vadd.f32 %v2943_v11, %v2725_v45  ;;  %v2214_v45 = vld [vmem:[#allocation3 + $0x122] sm:$0xff]  ;;  %v2215_v11 = vld [vmem:[#allocation3 + $0x12a] sm:$0xff] }
 0x249   : > { %v3246_v48 = vpop.f32.mrf.mxu0 }
 0x24a   : > { %v3321_v24 = vadd.f32 %v3241_v10, %v3023_v35 }
 0x24b   : > { %v2353_v19 = vpop.f32.mrf.mxu1 }
 0x24c   : > { %v3424_v15 = vadd.f32 %v5380_v18, %v3321_v24  ;;  %3285 = vmatmul.bf16.gmra.mxu0 %v5220_v50  ;;  %v2429_v47 = vadd.f32 %v2353_v19, %v5198_v40  ;;  %v5613_v19 = vld [vmem:[#allocation6_spill] sm:$0xff] }
 0x24d   : > { %v2647_v42 = vpop.f32.mrf.mxu2 }
 0x24e   : > { %3456 = vst [vmem:[%s5386_s30] sm:$0xff] %v3424_v15  ;;  %v2726_v56 = vadd.f32 %v2647_v42, %v2427_v31  ;;  %v5612_v31 = vld [vmem:[#allocation7_spill] sm:$0xff] }
 0x24f   : > { %v2945_v10 = vpop.f32.mrf.mxu3 }
 0x250   : > { %v3024_v54 = vadd.f32 %v2945_v10, %v2726_v56  ;;  %v2513_v10 = vld [vmem:[#allocation3 + $0x138] sm:$0xff] }
 0x251   : > { %v3248_v63 = vpop.f32.mrf.mxu0 }
 0x252   : > { %v3322_v8 = vadd.f32 %v3243_v33, %v3024_v54  ;;  %2689 = vmatmul.bf16.gmra.mxu2 %v2564_v2  ;;  %v2514_v54 = vld [vmem:[#allocation3 + $0x140] sm:$0xff] }
 0x253   : > { %v2356_v34 = vpop.f32.mrf.mxu1 }
 0x254   : > { %v3425_v51 = vadd.f32 %v5380_v18, %v3322_v8  ;;  %2987 = vmatmul.bf16.gmra.mxu3 %v2862_v21  ;;  %v2430_v40 = vadd.f32 %v2356_v34, %v5612_v31  ;;  %v5614_v8 = vld [vmem:[#allocation9_spill] sm:$0xff] }
 0x255   : > { %v2650_v17 = vpop.f32.mrf.mxu2 }
 0x256   : > { %3457 = vst [vmem:[%s5386_s30 + $0x8] sm:$0xff] %v3425_v51  ;;  %v2727_v38 = vadd.f32 %v2650_v17, %v2428_v9  ;;  %2395 = vmatmul.bf16.gmra.mxu1 %v5220_v50  ;;  %v2566_v17 = vpack.c.bf16 %v2514_v54, %v2513_v10  ;;  %v5618_v10 = vld [vmem:[#allocation14_spill] sm:$0xff] }
 0x257   : > { %v2948_v57 = vpop.f32.mrf.mxu3 }
 0x258   : > { %v3025_v32 = vadd.f32 %v2948_v57, %v2727_v38 }
 0x259   : > { %v3251_v14 = vpop.f32.mrf.mxu0 }
 0x25a   : > { %v3323_v43 = vadd.f32 %v3246_v48, %v3025_v32  ;;  %v2267_v48 = vpack.c.bf16 %v2215_v11, %v2214_v45 }
 0x25b   : > { %v2358_v61 = vpop.f32.mrf.mxu1 }
 0x25c   : > { %v3426_v33 = vadd.f32 %v5380_v18, %v3323_v43  ;;  %3290 = vmatmul.bf16.gmra.mxu0 %v5234_v44  ;;  %v2431_v51 = vadd.f32 %v2358_v61, %v5614_v8 }
 0x25d   : > { %v2652_v0 = vpop.f32.mrf.mxu2 }
 0x25e   : > { %3458 = vst [vmem:[%s5386_s30 + $0x10] sm:$0xff] %v3426_v33  ;;  %v2728_v16 = vadd.f32 %v2652_v0, %v2429_v47  ;;  %v5615_v47 = vld [vmem:[#allocation11_spill] sm:$0xff] }
 0x25f   : > { %v2950_v27 = vpop.f32.mrf.mxu3 }
 0x260   : > { %v3026_v35 = vadd.f32 %v2950_v27, %v2728_v16  ;;  %v5616_v16 = vld [vmem:[#allocation10_spill] sm:$0xff] }
 0x261   : > { %v3253_v50 = vpop.f32.mrf.mxu0 }
 0x262   : > { %v3324_v24 = vadd.f32 %v3248_v63, %v3026_v35  ;;  %2694 = vmatmul.bf16.gmra.mxu2 %v5611_v20 }
 0x263   : > { %v2361_v58 = vpop.f32.mrf.mxu1 }
 0x264   : > { %v3427_v15 = vadd.f32 %v5380_v18, %v3324_v24  ;;  %2992 = vmatmul.bf16.gmra.mxu3 %v5613_v19  ;;  %v2432_v0 = vadd.f32 %v2361_v58, %v5615_v47  ;;  %v2218_v19 = vld [vmem:[#allocation3 + $0x152] sm:$0xff] }
 0x265   : > { %v2655_v44 = vpop.f32.mrf.mxu2 }
 0x266   : > { %3459 = vst [vmem:[%s5386_s30 + $0x18] sm:$0xff] %v3427_v15  ;;  %v2729_v42 = vadd.f32 %v2655_v44, %v2430_v40  ;;  %2400 = vmatmul.bf16.gmra.mxu1 %v2267_v48  ;;  %v5617_v48 = vld [vmem:[#allocation12_spill] sm:$0xff] }
 0x267   : > { %v2953_v30 = vpop.f32.mrf.mxu3  ;;  %v2219_v44 = vld [vmem:[#allocation3 + $0x15a] sm:$0xff] }
 0x268   : > { %v3027_v62 = vadd.f32 %v2953_v30, %v2729_v42 }
 0x269   : > { %v3256_v56 = vpop.f32.mrf.mxu0 }
 0x26a   : > { %v3325_v2 = vadd.f32 %v3251_v14, %v3027_v62  ;;  %v2269_v62 = vpack.c.bf16 %v2219_v44, %v2218_v19 }
 0x26b   : > { %v2363_v21 = vpop.f32.mrf.mxu1 }
 0x26c   : > { %v3428_v63 = vadd.f32 %v5380_v18, %v3325_v2  ;;  %3295 = vmatmul.bf16.gmra.mxu0 %v5273_v41  ;;  %v2433_v15 = vadd.f32 %v2363_v21, %v5617_v48  ;;  %v5619_v21 = vld [vmem:[#allocation13_spill] sm:$0xff] }
 0x26d   : > { %v2657_v34 = vpop.f32.mrf.mxu2  ;;  %v3116_v48 = vld [vmem:[#allocation3 + $0x18a] sm:$0xff] }
 0x26e   : > { %3460 = vst [vmem:[%s5386_s30 + $0x20] sm:$0xff] %v3428_v63  ;;  %v2730_v9 = vadd.f32 %v2657_v34, %v2431_v51 }
 0x26f   : > { %v2955_v38 = vpop.f32.mrf.mxu3 }
 0x270   : > { %v3028_v57 = vadd.f32 %v2955_v38, %v2730_v9  ;;  %v2518_v38 = vld [vmem:[#allocation3 + $0x170] sm:$0xff] }
 0x271   : > { %v3258_v32 = vpop.f32.mrf.mxu0 }
 0x272   : > { %v3326_v43 = vadd.f32 %v3253_v50, %v3028_v57  ;;  %2699 = vmatmul.bf16.gmra.mxu2 %v2566_v17  ;;  %v2517_v17 = vld [vmem:[#allocation3 + $0x168] sm:$0xff] }
 0x273   : > { %v2366_v14 = vpop.f32.mrf.mxu1  ;;  %v2568_v47 = vpack.c.bf16 %v2518_v38, %v2517_v17 }
 0x274   : > { %v3429_v33 = vadd.f32 %v5380_v18, %v3326_v43  ;;  %2997 = vmatmul.bf16.gmra.mxu3 %v5616_v16  ;;  %v2434_v54 = vadd.f32 %v2366_v14, %v5618_v10 }
 0x275   : > { %v2660_v61 = vpop.f32.mrf.mxu2 }
 0x276   : > { %3461 = vst [vmem:[%s5386_s30 + $0x28] sm:$0xff] %v3429_v33  ;;  %v2731_v27 = vadd.f32 %v2660_v61, %v2432_v0  ;;  %2405 = vmatmul.bf16.gmra.mxu1 %v5273_v41 }
 0x277   : > { %v2958_v45 = vpop.f32.mrf.mxu3 }
 0x278   : > { %v3029_v11 = vadd.f32 %v2958_v45, %v2731_v27 }
 0x279   : > { %v3261_v35 = vpop.f32.mrf.mxu0 }
 0x27a   : > { %v3327_v24 = vadd.f32 %v3256_v56, %v3029_v11 }
 0x27b   : > { %v2368_v20 = vpop.f32.mrf.mxu1 }
 0x27c   : > { %v3430_v50 = vadd.f32 %v5380_v18, %v3327_v24  ;;  %3300 = vmatmul.bf16.gmra.mxu0 %v5289_v46 }
 0x27d   : > { %v2662_v31 = vpop.f32.mrf.mxu2 }
 0x27e   : > { %3462 = vst [vmem:[%s5386_s30 + $0x30] sm:$0xff] %v3430_v50  ;;  %v2732_v58 = vadd.f32 %v2662_v31, %v2433_v15  ;;  %v3115_v50 = vld [vmem:[#allocation3 + $0x182] sm:$0xff] }
 0x27f   : > { %v2960_v40 = vpop.f32.mrf.mxu3 }
 0x280   : > { %v3030_v42 = vadd.f32 %v2960_v40, %v2732_v58  ;;  %v3165_v40 = vpack.c.bf16 %v3116_v48, %v3115_v50  ;;  %v5624_v48 = vld [vmem:[#allocation19_spill] sm:$0xff] }
 0x281   : > { %v3263_v41 = vpop.f32.mrf.mxu0 }
 0x282   : > { %v3328_v30 = vadd.f32 %v3258_v32, %v3030_v42  ;;  %2704 = vmatmul.bf16.gmra.mxu2 %v5275_v4  ;;  %v5620_v32 = vld [vmem:[#allocation15_spill] sm:$0xff] }
 0x283   : > { %v2371_v56 = vpop.f32.mrf.mxu1  ;;  %v2435_v43 = vadd.f32 %v2368_v20, %v5620_v32 }
 0x284   : > { %v3431_v2 = vadd.f32 %v5380_v18, %v3328_v30  ;;  %3002 = vmatmul.bf16.gmra.mxu3 %v5619_v21 }
 0x285   : > { %v2665_v46 = vpop.f32.mrf.mxu2 }
 0x286   : > { %3463 = vst [vmem:[%s5386_s30 + $0x38] sm:$0xff] %v3431_v2  ;;  %v2733_v63 = vadd.f32 %v2665_v46, %v2434_v54  ;;  %2410 = vmatmul.bf16.gmra.mxu1 %v2269_v62 }
 0x287   : > { %v2963_v8 = vpop.f32.mrf.mxu3 }
 0x288   : > { %v3031_v51 = vadd.f32 %v2963_v8, %v2733_v63  ;;  %v5622_v63 = vld [vmem:[#allocation17_spill] sm:$0xff] }
 0x289   : > { %v3266_v34 = vpop.f32.mrf.mxu0 }
 0x28a   : > { %v3329_v9 = vadd.f32 %v3261_v35, %v3031_v51  ;;  %v5621_v35 = vld [vmem:[#allocation16_spill] sm:$0xff] }
 0x28b   : > { %v2373_v4 = vpop.f32.mrf.mxu1  ;;  %v2436_v24 = vadd.f32 %v2371_v56, %v5621_v35  ;;  %v3118_v51 = vld [vmem:[#allocation3 + $0x1a2] sm:$0xff] }
 0x28c   : > { %v3432_v57 = vadd.f32 %v5380_v18, %v3329_v9  ;;  %3305 = vmatmul.bf16.gmra.mxu0 %v5302_v7  ;;  %v2437_v30 = vadd.f32 %v2373_v4, %v5292_v26  ;;  %v3117_v26 = vld [vmem:[#allocation3 + $0x19a] sm:$0xff] }
 0x28d   : > { %v2667_v14 = vpop.f32.mrf.mxu2  ;;  %v3166_v38 = vpack.c.bf16 %v3118_v51, %v3117_v26 }
 0x28e   : > { %3464 = vst [vmem:[%s5386_s30 + $0x40] sm:$0xff] %v3432_v57  ;;  %v2734_v33 = vadd.f32 %v2667_v14, %v2435_v43  ;;  %v5623_v43 = vld [vmem:[#allocation18_spill] sm:$0xff] }
 0x28f   : > { %v2965_v0 = vpop.f32.mrf.mxu3 }
 0x290   : > { %v3032_v16 = vadd.f32 %v2965_v0, %v2734_v33  ;;  %v2819_v33 = vld [vmem:[#allocation3 + $0x199] sm:$0xff] }
 0x291   : > { %v3268_v61 = vpop.f32.mrf.mxu0 }
 0x292   : > { %v3330_v27 = vadd.f32 %v3263_v41, %v3032_v16  ;;  %2709 = vmatmul.bf16.gmra.mxu2 %v2568_v47  ;;  %v2820_v47 = vld [vmem:[#allocation3 + $0x1a1] sm:$0xff] }
 0x293   : > { %v2376_v45 = vpop.f32.mrf.mxu1  ;;  %v4371_v16 = vld [vmem:[#allocation3] sm:$0xff] }
 0x294   : > { %v3433_v11 = vadd.f32 %v5380_v18, %v3330_v27  ;;  %3007 = vmatmul.bf16.gmra.mxu3 %v5283_v59  ;;  %v2438_v46 = vadd.f32 %v2376_v45, %v5298_v49 }
 0x295   : > { %v2670_v20 = vpop.f32.mrf.mxu2 }
 0x296   : > { %3465 = vst [vmem:[%s5386_s30 + $0x48] sm:$0xff] %v3433_v11  ;;  %v2735_v15 = vadd.f32 %v2670_v20, %v2436_v24  ;;  %2415 = vmatmul.bf16.gmra.mxu1 %v5302_v7  ;;  %v2868_v11 = vpack.c.bf16 %v2820_v47, %v2819_v33 }
 0x297   : > { %v2968_v31 = vpop.f32.mrf.mxu3 }
 0x298   : > { %v3033_v58 = vadd.f32 %v2968_v31, %v2735_v15 }
 0x299   : > { %v3271_v19 = vpop.f32.mrf.mxu0 }
 0x29a   : > { %v3331_v44 = vadd.f32 %v3266_v34, %v3033_v58 }
 0x29b   : > { %v2378_v42 = vpop.f32.mrf.mxu1 }
 0x29c   : > { %v3434_v41 = vadd.f32 %v5380_v18, %v3331_v44  ;;  %3310 = vmatmul.bf16.gmra.mxu0 %v3165_v40  ;;  %v2439_v14 = vadd.f32 %v2378_v42, %v5623_v43 }
 0x29d   : > { %v2672_v59 = vpop.f32.mrf.mxu2 }
 0x29e   : > { %3466 = vst [vmem:[%s5386_s30 + $0x50] sm:$0xff] %v3434_v41  ;;  %v2736_v62 = vadd.f32 %v2672_v59, %v2437_v30 }
 0x29f   : > { %v2970_v56 = vpop.f32.mrf.mxu3 }
 0x2a0   : > { %v3034_v2 = vadd.f32 %v2970_v56, %v2736_v62 }
 0x2a1   : > { %v3273_v10 = vpop.f32.mrf.mxu0 }
 0x2a2   : > { %v3332_v54 = vadd.f32 %v3268_v61, %v3034_v2  ;;  %2714 = vmatmul.bf16.gmra.mxu2 %v5304_v60  ;;  %v2570_v61 = vpack.c.bf16 %v4371_v16, %v4371_v16 }
 0x2a3   : > { %v2381_v7 = vpop.f32.mrf.mxu1 }
 0x2a4   : > { %v3435_v21 = vadd.f32 %v5380_v18, %v3332_v54  ;;  %3012 = vmatmul.bf16.gmra.mxu3 %v5622_v63  ;;  %v2440_v15 = vadd.f32 %v2381_v7, %v5624_v48 }
 0x2a5   : > { %v2675_v8 = vpop.f32.mrf.mxu2 }
 0x2a6   : > { %3467 = vst [vmem:[%s5386_s30 + $0x58] sm:$0xff] %v3435_v21  ;;  %v2737_v34 = vadd.f32 %v2675_v8, %v2438_v46  ;;  %2420 = vmatmul.bf16.gmra.mxu1 %v3165_v40 }
 0x2a7   : > { %v2973_v9 = vpop.f32.mrf.mxu3 }
 0x2a8   : > { %v3035_v17 = vadd.f32 %v2973_v9, %v2737_v34 }
 0x2a9   : > { %v3276_v4 = vpop.f32.mrf.mxu0 }
 0x2aa   : > { %v3333_v57 = vadd.f32 %v3271_v19, %v3035_v17 }
 0x2ab   : > { %v2383_v60 = vpop.f32.mrf.mxu1 }
 0x2ac   : > { %v3436_v32 = vadd.f32 %v5380_v18, %v3333_v57  ;;  %3315 = vmatmul.bf16.gmra.mxu0 %v3166_v38  ;;  %v2441_v59 = vadd.f32 %v2383_v60, %v5316_v28 }
 0x2ad   : > { %v2677_v49 = vpop.f32.mrf.mxu2 }
 0x2ae   : > { %3468 = vst [vmem:[%s5386_s30 + $0x60] sm:$0xff] %v3436_v32  ;;  %v2738_v0 = vadd.f32 %v2677_v49, %v2439_v14 }
 0x2af   : > { %v2975_v27 = vpop.f32.mrf.mxu3 }
 0x2b0   : > { %v3036_v45 = vadd.f32 %v2975_v27, %v2738_v0 }
 0x2b1   : > { %v3278_v35 = vpop.f32.mrf.mxu0 }
 0x2b2   : > { %v3334_v24 = vadd.f32 %v3273_v10, %v3036_v45  ;;  %2719 = vmatmul.bf16.gmra.mxu2 %v2570_v61 }
 0x2b3   : > { %v2386_v20 = vpop.f32.mrf.mxu1 }
 0x2b4   : > { %v3437_v50 = vadd.f32 %v5380_v18, %v3334_v24  ;;  %3017 = vmatmul.bf16.gmra.mxu3 %v2868_v11  ;;  %v2442_v63 = vadd.f32 %v2386_v20, %v5319_v39 }
 0x2b5   : > { %v2680_v31 = vpop.f32.mrf.mxu2 }
 0x2b6   : > { %3469 = vst [vmem:[%s5386_s30 + $0x68] sm:$0xff] %v3437_v50  ;;  %v2739_v58 = vadd.f32 %v2680_v31, %v2440_v15 }
 0x2b7   : > { %v2978_v40 = vpop.f32.mrf.mxu3 }
 0x2b8   : > { %v3037_v19 = vadd.f32 %v2978_v40, %v2739_v58 }
 0x2b9   : > { %v3281_v44 = vpop.f32.mrf.mxu0 }
 0x2ba   : > { %v3335_v42 = vadd.f32 %v3276_v4, %v3037_v19 }
 0x2bb   : > { %v2388_v41 = vpop.f32.mrf.mxu1 }
 0x2bc   : > { %v3438_v30 = vadd.f32 %v5380_v18, %v3335_v42  ;;  %v2443_v4 = vadd.f32 %v2388_v41, %v5323_v22 }
 0x2bd   : > { %v2682_v62 = vpop.f32.mrf.mxu2 }
 0x2be   : > { %3470 = vst [vmem:[%s5386_s30 + $0x70] sm:$0xff] %v3438_v30  ;;  %v2740_v56 = vadd.f32 %v2682_v62, %v2441_v59 }
 0x2bf   : > { %v2980_v2 = vpop.f32.mrf.mxu3 }
 0x2c0   : > { %v3038_v10 = vadd.f32 %v2980_v2, %v2740_v56 }
 0x2c1   : > { %v3283_v54 = vpop.f32.mrf.mxu0 }
 0x2c2   : > { %v3336_v7 = vadd.f32 %v3278_v35, %v3038_v10 }
 0x2c3   : > { %v2391_v21 = vpop.f32.mrf.mxu1 }
 0x2c4   : > { %v3439_v46 = vadd.f32 %v5380_v18, %v3336_v7  ;;  %v2444_v47 = vadd.f32 %v2391_v21, %v5326_v37 }
 0x2c5   : > { %v2685_v8 = vpop.f32.mrf.mxu2 }
 0x2c6   : > { %3471 = vst [vmem:[%s5386_s30 + $0x78] sm:$0xff] %v3439_v46  ;;  %v2741_v26 = vadd.f32 %v2685_v8, %v2442_v63 }
 0x2c7   : > { %v2983_v51 = vpop.f32.mrf.mxu3 }
 0x2c8   : > { %v3039_v34 = vadd.f32 %v2983_v51, %v2741_v26 }
 0x2c9   : > { %v3286_v9 = vpop.f32.mrf.mxu0 }
 0x2ca   : > { %v3337_v28 = vadd.f32 %v3281_v44, %v3039_v34 }
 0x2cb   : > { %v2393_v17 = vpop.f32.mrf.mxu1 }
 0x2cc   : > { %v3440_v38 = vadd.f32 %v5380_v18, %v3337_v28  ;;  %v2445_v24 = vadd.f32 %v2393_v17, %v5330_v29 }
 0x2cd   : > { %v2687_v57 = vpop.f32.mrf.mxu2 }
 0x2ce   : > { %3472 = vst [vmem:[%s5386_s30 + $0x80] sm:$0xff] %v3440_v38  ;;  %v2742_v60 = vadd.f32 %v2687_v57, %v2443_v4 }
 0x2cf   : > { %v2985_v32 = vpop.f32.mrf.mxu3 }
 0x2d0   : > { %v3040_v43 = vadd.f32 %v2985_v32, %v2742_v60 }
 0x2d1   : > { %v3288_v14 = vpop.f32.mrf.mxu0 }
 0x2d2   : > { %v3338_v39 = vadd.f32 %v3283_v54, %v3040_v43 }
 0x2d3   : > { %v2396_v49 = vpop.f32.mrf.mxu1 }
 0x2d4   : > { %v3441_v33 = vadd.f32 %v5380_v18, %v3338_v39  ;;  %v2446_v19 = vadd.f32 %v2396_v49, %v5333_v6 }
 0x2d5   : > { %v2690_v0 = vpop.f32.mrf.mxu2 }
 0x2d6   : > { %3473 = vst [vmem:[%s5386_s30 + $0x88] sm:$0xff] %v3441_v33  ;;  %v2743_v16 = vadd.f32 %v2690_v0, %v2444_v47 }
 0x2d7   : > { %v2988_v61 = vpop.f32.mrf.mxu3 }
 0x2d8   : > { %v3041_v27 = vadd.f32 %v2988_v61, %v2743_v16 }
 0x2d9   : > { %v3291_v45 = vpop.f32.mrf.mxu0 }
 0x2da   : > { %v3339_v22 = vadd.f32 %v3286_v9, %v3041_v27 }
 0x2db   : > { %v2398_v11 = vpop.f32.mrf.mxu1 }
 0x2dc   : > { %v3442_v35 = vadd.f32 %v5380_v18, %v3339_v22  ;;  %v2447_v2 = vadd.f32 %v2398_v11, %v5337_v5 }
 0x2dd   : > { %v2692_v20 = vpop.f32.mrf.mxu2 }
 0x2de   : > { %3474 = vst [vmem:[%s5386_s30 + $0x90] sm:$0xff] %v3442_v35  ;;  %v2744_v50 = vadd.f32 %v2692_v20, %v2445_v24 }
 0x2df   : > { %v2990_v48 = vpop.f32.mrf.mxu3 }
 0x2e0   : > { %v3042_v15 = vadd.f32 %v2990_v48, %v2744_v50 }
 0x2e1   : > { %v3293_v31 = vpop.f32.mrf.mxu0 }
 0x2e2   : > { %v3340_v37 = vadd.f32 %v3288_v14, %v3042_v15 }
 0x2e3   : > { %v2401_v58 = vpop.f32.mrf.mxu1 }
 0x2e4   : > { %v3443_v40 = vadd.f32 %v5380_v18, %v3340_v37  ;;  %v2448_v26 = vadd.f32 %v2401_v58, %v5340_v3 }
 0x2e5   : > { %v2695_v44 = vpop.f32.mrf.mxu2 }
 0x2e6   : > { %3475 = vst [vmem:[%s5386_s30 + $0x98] sm:$0xff] %v3443_v40  ;;  %v2745_v42 = vadd.f32 %v2695_v44, %v2446_v19 }
 0x2e7   : > { %v2993_v41 = vpop.f32.mrf.mxu3 }
 0x2e8   : > { %v3043_v30 = vadd.f32 %v2993_v41, %v2745_v42 }
 0x2e9   : > { %v3296_v59 = vpop.f32.mrf.mxu0 }
 0x2ea   : > { %v3341_v29 = vadd.f32 %v3291_v45, %v3043_v30 }
 0x2eb   : > { %v2403_v62 = vpop.f32.mrf.mxu1 }
 0x2ec   : > { %v3444_v56 = vadd.f32 %v5380_v18, %v3341_v29  ;;  %v2449_v4 = vadd.f32 %v2403_v62, %v5344_v12 }
 0x2ed   : > { %v2697_v10 = vpop.f32.mrf.mxu2 }
 0x2ee   : > { %3476 = vst [vmem:[%s5386_s30 + $0xa0] sm:$0xff] %v3444_v56  ;;  %v2746_v54 = vadd.f32 %v2697_v10, %v2447_v2 }
 0x2ef   : > { %v2995_v7 = vpop.f32.mrf.mxu3 }
 0x2f0   : > { %v3044_v21 = vadd.f32 %v2995_v7, %v2746_v54 }
 0x2f1   : > { %v3298_v46 = vpop.f32.mrf.mxu0 }
 0x2f2   : > { %v3342_v6 = vadd.f32 %v3293_v31, %v3044_v21 }
 0x2f3   : > { %v2406_v63 = vpop.f32.mrf.mxu1 }
 0x2f4   : > { %v3445_v8 = vadd.f32 %v5380_v18, %v3342_v6  ;;  %v2450_v49 = vadd.f32 %v2406_v63, %v5347_v13 }
 0x2f5   : > { %v2700_v51 = vpop.f32.mrf.mxu2 }
 0x2f6   : > { %3477 = vst [vmem:[%s5386_s30 + $0xa8] sm:$0xff] %v3445_v8  ;;  %v2747_v34 = vadd.f32 %v2700_v51, %v2448_v26 }
 0x2f7   : > { %v2998_v9 = vpop.f32.mrf.mxu3 }
 0x2f8   : > { %v3045_v28 = vadd.f32 %v2998_v9, %v2747_v34 }
 0x2f9   : > { %v3301_v17 = vpop.f32.mrf.mxu0 }
 0x2fa   : > { %v3343_v5 = vadd.f32 %v3296_v59, %v3045_v28 }
 0x2fb   : > { %v2408_v60 = vpop.f32.mrf.mxu1 }
 0x2fc   : > { %v3446_v38 = vadd.f32 %v5380_v18, %v3343_v5  ;;  %v2451_v22 = vadd.f32 %v2408_v60, %v5351_v23 }
 0x2fd   : > { %v2702_v57 = vpop.f32.mrf.mxu2 }
 0x2fe   : > { %3478 = vst [vmem:[%s5386_s30 + $0xb0] sm:$0xff] %v3446_v38  ;;  %v2748_v32 = vadd.f32 %v2702_v57, %v2449_v4 }
 0x2ff   : > { %v3000_v43 = vpop.f32.mrf.mxu3 }
 0x300   : > { %v3046_v14 = vadd.f32 %v3000_v43, %v2748_v32 }
 0x301   : > { %v3303_v47 = vpop.f32.mrf.mxu0 }
 0x302   : > { %v3344_v3 = vadd.f32 %v3298_v46, %v3046_v14 }
 0x303   : > { %v2411_v61 = vpop.f32.mrf.mxu1 }
 0x304   : > { %v3447_v39 = vadd.f32 %v5380_v18, %v3344_v3  ;;  %v2452_v31 = vadd.f32 %v2411_v61, %v5354_v53 }
 0x305   : > { %v2705_v33 = vpop.f32.mrf.mxu2 }
 0x306   : > { %3479 = vst [vmem:[%s5386_s30 + $0xb8] sm:$0xff] %v3447_v39  ;;  %v2749_v0 = vadd.f32 %v2705_v33, %v2450_v49 }
 0x307   : > { %v3003_v16 = vpop.f32.mrf.mxu3 }
 0x308   : > { %v3047_v12 = vadd.f32 %v3003_v16, %v2749_v0 }
 0x309   : > { %v3306_v20 = vpop.f32.mrf.mxu0 }
 0x30a   : > { %v3345_v27 = vadd.f32 %v3301_v17, %v3047_v12 }
 0x30b   : > { %v2413_v13 = vpop.f32.mrf.mxu1 }
 0x30c   : > { %v3448_v45 = vadd.f32 %v5380_v18, %v3345_v27  ;;  %v2453_v30 = vadd.f32 %v2413_v13, %v5358_v52  ;;  %v3591_v27 = vld [vmem:[%s5386_s30 + $0x8] sm:$0xff] (%p4479_p6)  ;;  %v3609_v13 = vld [vmem:[%s5386_s30 + $0x50] sm:$0xff] (%p4479_p6) }
 0x30d   : > { %v2707_v11 = vpop.f32.mrf.mxu2  ;;  %4195 = vst [vmem:[%s5504_s8 + $0x20] sm:$0xff] (%p4479_p6), %v3591_v27 }
 0x30e   : > { %3480 = vst [vmem:[%s5386_s30 + $0xc0] sm:$0xff] %v3448_v45  ;;  %v2750_v35 = vadd.f32 %v2707_v11, %v2451_v22  ;;  %v3595_v45 = vld [vmem:[%s5386_s30 + $0x18] sm:$0xff] (%p4479_p6)  ;;  %v3597_v22 = vld [vmem:[%s5386_s30 + $0x20] sm:$0xff] (%p4479_p6)  ;;  %v3599_v11 = vld [vmem:[%s5386_s30 + $0x28] sm:$0xff] (%p4479_p6) }
 0x30f   : > { %v3005_v24 = vpop.f32.mrf.mxu3  ;;  %4197 = vst [vmem:[%s5504_s8 + $0x50] sm:$0xff] (%p4479_p6), %v3595_v45 }
 0x310   : > { %v3048_v50 = vadd.f32 %v3005_v24, %v2750_v35  ;;  %v3601_v35 = vld [vmem:[%s5386_s30 + $0x30] sm:$0xff] (%p4479_p6)  ;;  %4198 = vst [vmem:[%s5504_s8 + $0x68] sm:$0xff] (%p4479_p6), %v3597_v22  ;;  %v3603_v24 = vld [vmem:[%s5386_s30 + $0x38] sm:$0xff] (%p4479_p6) }
 0x311   : > { %v3308_v44 = vpop.f32.mrf.mxu0  ;;  %4199 = vst [vmem:[%s5504_s8 + $0x80] sm:$0xff] (%p4479_p6), %v3599_v11 }
 0x312   : > { %v3346_v48 = vadd.f32 %v3303_v47, %v3048_v50  ;;  %4200 = vst [vmem:[%s5504_s8 + $0x98] sm:$0xff] (%p4479_p6), %v3601_v35  ;;  %v3607_v50 = vld [vmem:[%s5386_s30 + $0x48] sm:$0xff] (%p4479_p6) }
 0x313   : > { %v2416_v42 = vpop.f32.mrf.mxu1  ;;  %4201 = vst [vmem:[%s5504_s8 + $0xb0] sm:$0xff] (%p4479_p6), %v3603_v24 }
 0x314   : > { %v3449_v15 = vadd.f32 %v5380_v18, %v3346_v48  ;;  %v2454_v54 = vadd.f32 %v2416_v42, %v5361_v25  ;;  %v3611_v48 = vld [vmem:[%s5386_s30 + $0x58] sm:$0xff] (%p4479_p6)  ;;  %4203 = vst [vmem:[%s5504_s8 + $0xe0] sm:$0xff] (%p4479_p6), %v3607_v50  ;;  %v3629_v42 = vld [vmem:[%s5386_s30 + $0xa0] sm:$0xff] (%p4479_p6) }
 0x315   : > { %v2710_v37 = vpop.f32.mrf.mxu2  ;;  %4204 = vst [vmem:[%s5504_s8 + $0xf8] sm:$0xff] (%p4479_p6), %v3609_v13 }
 0x316   : > { %3481 = vst [vmem:[%s5386_s30 + $0xc8] sm:$0xff] %v3449_v15  ;;  %v2751_v58 = vadd.f32 %v2710_v37, %v2452_v31  ;;  %v3613_v15 = vld [vmem:[%s5386_s30 + $0x60] sm:$0xff] (%p4479_p6)  ;;  %v3615_v31 = vld [vmem:[%s5386_s30 + $0x68] sm:$0xff] (%p4479_p6)  ;;  %v3617_v37 = vld [vmem:[%s5386_s30 + $0x70] sm:$0xff] (%p4479_p6) }
 0x317   : > { %v3008_v40 = vpop.f32.mrf.mxu3  ;;  %4205 = vst [vmem:[%s5504_s8 + $0x110] sm:$0xff] (%p4479_p6), %v3611_v48 }
 0x318   : > { %v3049_v19 = vadd.f32 %v3008_v40, %v2751_v58  ;;  %4206 = vst [vmem:[%s5504_s8 + $0x128] sm:$0xff] (%p4479_p6), %v3613_v15  ;;  %v3619_v58 = vld [vmem:[%s5386_s30 + $0x78] sm:$0xff] (%p4479_p6)  ;;  %v3621_v40 = vld [vmem:[%s5386_s30 + $0x80] sm:$0xff] (%p4479_p6) }
 0x319   : > { %v3311_v2 = vpop.f32.mrf.mxu0  ;;  %4207 = vst [vmem:[%s5504_s8 + $0x140] sm:$0xff] (%p4479_p6), %v3615_v31 }
 0x31a   : > { %v3347_v23 = vadd.f32 %v3306_v20, %v3049_v19  ;;  %v3605_v20 = vld [vmem:[%s5386_s30 + $0x40] sm:$0xff] (%p4479_p6)  ;;  %4208 = vst [vmem:[%s5504_s8 + $0x158] sm:$0xff] (%p4479_p6), %v3617_v37  ;;  %v3623_v19 = vld [vmem:[%s5386_s30 + $0x88] sm:$0xff] (%p4479_p6) }
 0x31b   : > { %v2418_v21 = vpop.f32.mrf.mxu1  ;;  %4202 = vst [vmem:[%s5504_s8 + $0xc8] sm:$0xff] (%p4479_p6), %v3605_v20 }
 0x31c   : > { %v3450_v41 = vadd.f32 %v5380_v18, %v3347_v23  ;;  %v2455_v26 = vadd.f32 %v2418_v21, %v5365_v55  ;;  %4209 = vst [vmem:[%s5504_s8 + $0x170] sm:$0xff] (%p4479_p6), %v3619_v58  ;;  %v3627_v23 = vld [vmem:[%s5386_s30 + $0x98] sm:$0xff] (%p4479_p6) }
 0x31d   : > { %v2712_v59 = vpop.f32.mrf.mxu2  ;;  %4210 = vst [vmem:[%s5504_s8 + $0x188] sm:$0xff] (%p4479_p6), %v3621_v40 }
 0x31e   : > { %3482 = vst [vmem:[%s5386_s30 + $0xd0] sm:$0xff] %v3450_v41  ;;  %v2752_v29 = vadd.f32 %v2712_v59, %v2453_v30  ;;  %v3631_v41 = vld [vmem:[%s5386_s30 + $0xa8] sm:$0xff] (%p4479_p6)  ;;  %v3633_v30 = vld [vmem:[%s5386_s30 + $0xb0] sm:$0xff] (%p4479_p6)  ;;  %v3635_v59 = vld [vmem:[%s5386_s30 + $0xb8] sm:$0xff] (%p4479_p6) }
 0x31f   : > { %v3010_v62 = vpop.f32.mrf.mxu3  ;;  %4211 = vst [vmem:[%s5504_s8 + $0x1a0] sm:$0xff] (%p4479_p6), %v3623_v19 }
 0x320   : > { %v3050_v56 = vadd.f32 %v3010_v62, %v2752_v29  ;;  %4213 = vst [vmem:[%s5504_s8 + $0x1d0] sm:$0xff] (%p4479_p6), %v3627_v23  ;;  %v3637_v29 = vld [vmem:[%s5386_s30 + $0xc0] sm:$0xff] (%p4479_p6)  ;;  %v3639_v62 = vld [vmem:[%s5386_s30 + $0xc8] sm:$0xff] (%p4479_p6) }
 0x321   : > { %v3313_v51 = vpop.f32.mrf.mxu0  ;;  %4214 = vst [vmem:[%s5504_s8 + $0x1e8] sm:$0xff] (%p4479_p6), %v3629_v42 }
 0x322   : > { %v3348_v53 = vadd.f32 %v3308_v44, %v3050_v56  ;;  %v3625_v44 = vld [vmem:[%s5386_s30 + $0x90] sm:$0xff] (%p4479_p6)  ;;  %4215 = vst [vmem:[%s5504_s8 + $0x200] sm:$0xff] (%p4479_p6), %v3631_v41 }
 0x323   : > { %v2421_v5 = vpop.f32.mrf.mxu1  ;;  %4212 = vst [vmem:[%s5504_s8 + $0x1b8] sm:$0xff] (%p4479_p6), %v3625_v44 }
 0x324   : > { %v3451_v10 = vadd.f32 %v5380_v18, %v3348_v53  ;;  %v2456_v4 = vadd.f32 %v2421_v5, %v5370_v36  ;;  %4216 = vst [vmem:[%s5504_s8 + $0x218] sm:$0xff] (%p4479_p6), %v3633_v30 }
 0x325   : > { %v2715_v7 = vpop.f32.mrf.mxu2  ;;  %4217 = vst [vmem:[%s5504_s8 + $0x230] sm:$0xff] (%p4479_p6), %v3635_v59  ;;  %v3641_v56 = vld [vmem:[%s5386_s30 + $0xd0] sm:$0xff] (%p4479_p6) }
 0x326   : > { %3483 = vst [vmem:[%s5386_s30 + $0xd8] sm:$0xff] %v3451_v10  ;;  %v2753_v46 = vadd.f32 %v2715_v7, %v2454_v54 }
 0x327   : > { %v3013_v6 = vpop.f32.mrf.mxu3  ;;  %4218 = vst [vmem:[%s5504_s8 + $0x248] sm:$0xff] (%p4479_p6), %v3637_v29 }
 0x328   : > { %v3051_v63 = vadd.f32 %v3013_v6, %v2753_v46  ;;  %4219 = vst [vmem:[%s5504_s8 + $0x260] sm:$0xff] (%p4479_p6), %v3639_v62 }
 0x329   : > { %v3316_v32 = vpop.f32.mrf.mxu0  ;;  %4220 = vst [vmem:[%s5504_s8 + $0x278] sm:$0xff] (%p4479_p6), %v3641_v56 }
 0x32a   : > { %v3349_v52 = vadd.f32 %v3311_v2, %v3051_v63 }
 0x32b   : > { %v2423_v14 = vpop.f32.mrf.mxu1 }
 0x32c   : > { %v3452_v8 = vadd.f32 %v5380_v18, %v3349_v52  ;;  %v2457_v49 = vadd.f32 %v2423_v14, %v5374_v1  ;;  %v3589_v1 = vld [vmem:[%s5386_s30] sm:$0xff] (%p4479_p6) }
 0x32d   : > { %v2717_v34 = vpop.f32.mrf.mxu2  ;;  %4194 = vst [vmem:[%s5504_s8 + $0x8] sm:$0xff] (%p4479_p6), %v3589_v1  ;;  %v3643_v53 = vld [vmem:[%s5386_s30 + $0xd8] sm:$0xff] (%p4479_p6) }
 0x32e   : > { %3484 = vst [vmem:[%s5386_s30 + $0xe0] sm:$0xff] %v3452_v8  ;;  %v2754_v9 = vadd.f32 %v2717_v34, %v2455_v26 }
 0x32f   : > { %v3015_v28 = vpop.f32.mrf.mxu3  ;;  %4221 = vst [vmem:[%s5504_s8 + $0x290] sm:$0xff] (%p4479_p6), %v3643_v53 }
 0x330   : > { %v3052_v25 = vadd.f32 %v3015_v28, %v2754_v9 }
 0x331   : > { %v3318_v61 = vpop.f32.mrf.mxu0 }
 0x332   : > { %v3350_v17 = vadd.f32 %v3313_v51, %v3052_v25 }
 0x334   : > { %v3453_v38 = vadd.f32 %v5380_v18, %v3350_v17 }
 0x335   : > { %v2720_v57 = vpop.f32.mrf.mxu2  ;;  %v3645_v2 = vld [vmem:[%s5386_s30 + $0xe0] sm:$0xff] (%p4479_p6) }
 0x336   : > { %3485 = vst [vmem:[%s5386_s30 + $0xe8] sm:$0xff] %v3453_v38  ;;  %v2755_v60 = vadd.f32 %v2720_v57, %v2456_v4 }
 0x337   : > { %v3018_v43 = vpop.f32.mrf.mxu3  ;;  %4222 = vst [vmem:[%s5504_s8 + $0x2a8] sm:$0xff] (%p4479_p6), %v3645_v2 }
 0x338   : > { %v3053_v55 = vadd.f32 %v3018_v43, %v2755_v60 }
 0x33a   : > { %v3351_v3 = vadd.f32 %v3316_v32, %v3053_v55 }
 0x33c   : > { %v3454_v39 = vadd.f32 %v5380_v18, %v3351_v3 }
 0x33d   : > { %v2722_v33 = vpop.f32.mrf.mxu2  ;;  %v3647_v10 = vld [vmem:[%s5386_s30 + $0xe8] sm:$0xff] (%p4479_p6) }
 0x33e   : > { %3486 = vst [vmem:[%s5386_s30 + $0xf0] sm:$0xff] %v3454_v39  ;;  %v2756_v47 = vadd.f32 %v2722_v33, %v2457_v49 }
 0x33f   : > { %v3020_v0 = vpop.f32.mrf.mxu3  ;;  %4223 = vst [vmem:[%s5504_s8 + $0x2c0] sm:$0xff] (%p4479_p6), %v3647_v10 }
 0x340   : > { %v3054_v16 = vadd.f32 %v3020_v0, %v2756_v47 }
 0x342   : > { %v3352_v36 = vadd.f32 %v3318_v61, %v3054_v16  ;;  %3494 = sbr.rel (!%p4479_p6) target bundleno = 847 (0x34f), region = 90 }
 0x344   : > { %v3455_v12 = vadd.f32 %v5380_v18, %v3352_v36  ;;  %v3593_v18 = vld [vmem:[%s5386_s30 + $0x10] sm:$0xff] (%p4479_p6) }
 0x345   : > { %4196 = vst [vmem:[%s5504_s8 + $0x38] sm:$0xff] (%p4479_p6), %v3593_v18  ;;  %v3649_v54 = vld [vmem:[%s5386_s30 + $0xf0] sm:$0xff] (%p4479_p6) }
 0x346   : > { %3487 = vst [vmem:[%s5386_s30 + $0xf8] sm:$0xff] %v3455_v12 }
 0x347   : > { %4224 = vst [vmem:[%s5504_s8 + $0x2d8] sm:$0xff] %v3649_v54 }
 0x34d   : > { %v3651_v7 = vld [vmem:[%s5386_s30 + $0xf8] sm:$0xff] }
 0x34e   : > { %4225 = vst [vmem:[%s5504_s8 + $0x2f0] sm:$0xff] %v3651_v7 }
 0x34f PF: > { %s15_s22 = sadd.s32 1, %s4410_s22   ;;  %s5625_s18 = smov %s4398_s19 }
 0x350   : > { %p12_p11 = scmp.ge.s32.totalorder %s15_s22, 4   ;;  %s5626_s19 = smov %s4484_s28 }
 0x351   : > { %s5627_s20 = smov %s4406_s21  ;;  %s5628_s21 = smov %s5630_s23 }
 0x352   :  { %14 = sbr.rel (!%p12_p11) target bundleno = 3 (0x3), region = 178 }

// kernel: dense_block_forward.7
= control target key start
LH: loop header
LB: loop body
LE: loop exit
PB: predicated region body
PF: predicated region fallthrough
CT: control target
= control target key end

     0   :  { %s6125_s0 = inlined_call_operand.vmem [shape: f32[2,16,16,384], index: 0, kind: input, shape index: {}, may-alias: {0,5}]   ;;  %s6126_s1 = inlined_call_operand.vmem [shape: f32[1,256], index: 1, kind: input, shape index: {}]   ;;  %s6127_s2 = inlined_call_operand.vmem [shape: f32[1,256], index: 2, kind: input, shape index: {}]   ;;  %s6128_s3 = inlined_call_operand.vmem [shape: bf16[9,256,128], index: 3, kind: input, shape index: {}]   ;;  %s6129_s4 = inlined_call_operand.vmem [shape: f32[1,128], index: 4, kind: input, shape index: {}]   ;;  %s6130_s5 = inlined_call_operand.vmem [shape: f32[2,16,16,384], index: 5, kind: output, shape index: {}, may-alias: {0,5}]  }
   0x1   :  { %6135 = sst [smem:[#allocation11_spill]] %s6125_s0 }
   0x2   :  { %6136 = sst [smem:[#allocation12_spill]] %s6128_s3 }
   0x3   :  { %s5158_s18 = smov 0   ;;  %s5160_s19 = smov 0  }
   0x4   :  { %s5162_s20 = smov 0   ;;  %s5164_s21 = smov 0  }
   0x5   :  { %s5166_s22 = smov 0   ;;  %s5168_s23 = smov 0  }
   0x6   :  { %s5170_s24 = smov 0   ;;  %s5172_s25 = smov 0  }
   0x7   :  { %s5174_s26 = smov 0   ;;  %s5176_s27 = smov 0  }
   0x8   :  { %s5178_s28 = smov 0  }
   0x9 LB: > { %6137 = sst [smem:[#allocation7_spill]] %s5117_s26  ;;  %s4380_s29 = sadd.s32 4294967295, %s5125_s28   ;;  %s5125_s28 = sphi %s5178_s28, %s15_s28   ;;  %s5121_s27 = sphi %s5176_s27, %s6149_s27   ;;  %s5117_s26 = sphi %s5174_s26, %s6148_s26   ;;  %s5113_s25 = sphi %s5172_s25, %s6147_s25   ;;  %s5109_s24 = sphi %s5170_s24, %s6146_s24   ;;  %s5105_s23 = sphi %s5168_s23, %s6155_s23   ;;  %s5101_s22 = sphi %s5166_s22, %s6154_s22   ;;  %s5097_s21 = sphi %s5164_s21, %s6153_s21   ;;  %s5093_s20 = sphi %s5162_s20, %s6152_s20   ;;  %s5089_s19 = sphi %s5160_s19, %s6151_s19   ;;  %s5085_s18 = sphi %s5158_s18, %s6150_s18  }
   0xa   : > { %6138 = sst [smem:[#allocation8_spill]] %s5121_s27  ;;  %s24_s30 = sadd.s32 1, %s5117_s26 }
   0xb   : > { %p25_p0 = scmp.ge.s32.totalorder %s24_s30, 2  ;;  %s27_s6 = sadd.s32 1, %s5121_s27 }
   0xc   : > { %s36_s7 = sadd.s32 1, %s5105_s23  ;;  %p43_p1 = scmp.ne.s32.totalorder %s5105_s23, %s5101_s22 }
   0xd   : > { %s6157_s30 = smov (%p25_p0, %s24_s30), 0  ;;  %s6159_s6 = smov (!%p25_p0, %s27_s6), %s5121_s27 }
   0xe   : > { %6139 = sst [smem:[#allocation9_spill]] %s6157_s30  ;;  %s32_s8 = ssub.s32 %s5117_s26, %s6157_s30 }
   0xf   : > { %p44_p2 = scmp.eq.s32.totalorder %s5125_s28, 0  ;;  %p29_p3 = scmp.ge.s32.totalorder %s6159_s6, 2 }
  0x10   : > { %p112_p4 = scmp.eq.s32.totalorder %s32_s8, 0  ;;  %s114_s10 = sadd.s32 1, %s5097_s21 }
  0x11   : > { %p5225_p5 = por %p44_p2, %p43_p1  ;;  %s6161_s6 = smov (%p29_p3, %s6159_s6), 0 }
  0x12   : > { %6141 = sst [smem:[#allocation10_spill]] %s6161_s6  ;;  %s31_s12 = ssub.s32 %s5121_s27, %s6161_s6 }
  0x13   : > { %s5233_s11 = scalar_select %p112_p4, %s5097_s21, %s114_s10  }
  0x14   : > { %p121_p6 = scmp.ne.s32.totalorder %s5097_s21, %s5093_s20  ;;  %s33_s13 = sor.u32 %s32_s8, %s31_s12 }
  0x15   : > { %p159_p7 = scmp.eq.s32.totalorder %s31_s12, 0  ;;  %p34_p8 = scmp.eq.s32.totalorder %s33_s13, 0 }
  0x16   : > { %p5239_p9 = por %p121_p6, %p44_p2  ;;  %s161_s15 = sadd.s32 1, %s5089_s19 }
  0x17   : > { %p171_p10 = scmp.ne.s32.totalorder %s5089_s19, %s5085_s18  ;;  %p172_p11 = scmp.eq.s32.totalorder %s4380_s29, 3 }
  0x18   : > { %s5247_s16 = scalar_select %p34_p8, %s5105_s23, %s36_s7  }
  0x19   : > { %s5250_s17 = scalar_select %p159_p7, %s5089_s19, %s161_s15  }
  0x1a   : > { %p5252_p12 = por %p172_p11, %p171_p10  ;;  %p4383_p13 = scmp.ge.s32.totalorder %s5125_s28, 4 }
  0x1c   : > { %197 = sbr.rel (%p4383_p13) target bundleno = 157 (0x9d), region = 20 }
  0x21   : > { %200 = sbr.rel (!%p5225_p5) target bundleno = 75 (0x4b), region = 24  ;;  %s202_s8 = sand.u32 (%p5225_p5), 1, %s5105_s23  }
  0x22   : > { %s4942_s10 = smul.u32 (%p5225_p5), 96, %s5121_s27  ;;  %s4384_s7 = sshll.u32 (%p5225_p5), %s202_s8, 8 }
  0x23   : > { %s6144_s0 = sld [smem:[#allocation11_spill]] (%p5225_p5)  ;;  %s5270_s9 = scalar_lea.vmem (%p5225_p5), [#allocation4], %s4384_s7 }
  0x24   : > { %s206_s12 = sadd.s32 (%p5225_p5), %s5117_s26, %s4942_s10 }
  0x25   : > { %s4385_s13 = sshll.u32 (%p5225_p5), %s206_s12, 3 }
  0x29   : > { %s5265_s6 = scalar_lea.vmem %s6144_s0, %s4385_s13 }
  0x2a   : > { %v299_v0 = vld [vmem:[%s5265_s6] sm:$0xff]  ;;  %v301_v1 = vld [vmem:[%s5265_s6 + $0x18] sm:$0xff]  ;;  %v303_v2 = vld [vmem:[%s5265_s6 + $0x30] sm:$0xff] }
  0x2b   : > { %300 = vst [vmem:[%s5270_s9] sm:$0xff] %v299_v0  ;;  %v305_v3 = vld [vmem:[%s5265_s6 + $0x48] sm:$0xff]  ;;  %v307_v4 = vld [vmem:[%s5265_s6 + $0x60] sm:$0xff]  ;;  %v309_v5 = vld [vmem:[%s5265_s6 + $0x78] sm:$0xff] }
  0x2c   : > { %302 = vst [vmem:[%s5270_s9 + $0x8] sm:$0xff] %v301_v1  ;;  %v311_v6 = vld [vmem:[%s5265_s6 + $0x90] sm:$0xff]  ;;  %v313_v7 = vld [vmem:[%s5265_s6 + $0xa8] sm:$0xff]  ;;  %v315_v8 = vld [vmem:[%s5265_s6 + $0xc0] sm:$0xff] }
  0x2d   : > { %304 = vst [vmem:[%s5270_s9 + $0x10] sm:$0xff] %v303_v2  ;;  %v317_v9 = vld [vmem:[%s5265_s6 + $0xd8] sm:$0xff]  ;;  %v319_v10 = vld [vmem:[%s5265_s6 + $0xf0] sm:$0xff]  ;;  %v321_v11 = vld [vmem:[%s5265_s6 + $0x108] sm:$0xff] }
  0x2e   : > { %306 = vst [vmem:[%s5270_s9 + $0x18] sm:$0xff] %v305_v3  ;;  %v323_v12 = vld [vmem:[%s5265_s6 + $0x120] sm:$0xff]  ;;  %v325_v13 = vld [vmem:[%s5265_s6 + $0x138] sm:$0xff]  ;;  %v327_v14 = vld [vmem:[%s5265_s6 + $0x150] sm:$0xff] }
  0x2f   : > { %308 = vst [vmem:[%s5270_s9 + $0x20] sm:$0xff] %v307_v4  ;;  %v329_v15 = vld [vmem:[%s5265_s6 + $0x168] sm:$0xff]  ;;  %v331_v16 = vld [vmem:[%s5265_s6 + $0x180] sm:$0xff]  ;;  %v333_v17 = vld [vmem:[%s5265_s6 + $0x198] sm:$0xff] }
  0x30   : > { %310 = vst [vmem:[%s5270_s9 + $0x28] sm:$0xff] %v309_v5  ;;  %v335_v18 = vld [vmem:[%s5265_s6 + $0x1b0] sm:$0xff]  ;;  %v337_v19 = vld [vmem:[%s5265_s6 + $0x1c8] sm:$0xff]  ;;  %v339_v20 = vld [vmem:[%s5265_s6 + $0x1e0] sm:$0xff] }
  0x31   : > { %312 = vst [vmem:[%s5270_s9 + $0x30] sm:$0xff] %v311_v6  ;;  %v341_v21 = vld [vmem:[%s5265_s6 + $0x1f8] sm:$0xff]  ;;  %v343_v22 = vld [vmem:[%s5265_s6 + $0x210] sm:$0xff]  ;;  %v345_v23 = vld [vmem:[%s5265_s6 + $0x228] sm:$0xff] }
  0x32   : > { %314 = vst [vmem:[%s5270_s9 + $0x38] sm:$0xff] %v313_v7  ;;  %v347_v24 = vld [vmem:[%s5265_s6 + $0x240] sm:$0xff]  ;;  %v349_v25 = vld [vmem:[%s5265_s6 + $0x258] sm:$0xff]  ;;  %v351_v26 = vld [vmem:[%s5265_s6 + $0x270] sm:$0xff] }
  0x33   : > { %316 = vst [vmem:[%s5270_s9 + $0x40] sm:$0xff] %v315_v8  ;;  %v353_v27 = vld [vmem:[%s5265_s6 + $0x288] sm:$0xff]  ;;  %v355_v28 = vld [vmem:[%s5265_s6 + $0x2a0] sm:$0xff]  ;;  %v357_v29 = vld [vmem:[%s5265_s6 + $0x2b8] sm:$0xff] }
  0x34   : > { %318 = vst [vmem:[%s5270_s9 + $0x48] sm:$0xff] %v317_v9  ;;  %v359_v30 = vld [vmem:[%s5265_s6 + $0x2d0] sm:$0xff]  ;;  %v361_v31 = vld [vmem:[%s5265_s6 + $0x2e8] sm:$0xff] }
  0x35   : > { %320 = vst [vmem:[%s5270_s9 + $0x50] sm:$0xff] %v319_v10 }
  0x36   : > { %322 = vst [vmem:[%s5270_s9 + $0x58] sm:$0xff] %v321_v11 }
  0x37   : > { %324 = vst [vmem:[%s5270_s9 + $0x60] sm:$0xff] %v323_v12 }
  0x38   : > { %326 = vst [vmem:[%s5270_s9 + $0x68] sm:$0xff] %v325_v13 }
  0x39   : > { %328 = vst [vmem:[%s5270_s9 + $0x70] sm:$0xff] %v327_v14 }
  0x3a   : > { %330 = vst [vmem:[%s5270_s9 + $0x78] sm:$0xff] %v329_v15 }
  0x3b   : > { %332 = vst [vmem:[%s5270_s9 + $0x80] sm:$0xff] %v331_v16 }
  0x3c   : > { %334 = vst [vmem:[%s5270_s9 + $0x88] sm:$0xff] %v333_v17 }
  0x3d   : > { %336 = vst [vmem:[%s5270_s9 + $0x90] sm:$0xff] %v335_v18 }
  0x3e   : > { %338 = vst [vmem:[%s5270_s9 + $0x98] sm:$0xff] %v337_v19 }
  0x3f   : > { %340 = vst [vmem:[%s5270_s9 + $0xa0] sm:$0xff] %v339_v20 }
  0x40   : > { %342 = vst [vmem:[%s5270_s9 + $0xa8] sm:$0xff] %v341_v21 }
  0x41   : > { %344 = vst [vmem:[%s5270_s9 + $0xb0] sm:$0xff] %v343_v22 }
  0x42   : > { %346 = vst [vmem:[%s5270_s9 + $0xb8] sm:$0xff] %v345_v23 }
  0x43   : > { %348 = vst [vmem:[%s5270_s9 + $0xc0] sm:$0xff] %v347_v24 }
  0x44   : > { %350 = vst [vmem:[%s5270_s9 + $0xc8] sm:$0xff] %v349_v25 }
  0x45   : > { %352 = vst [vmem:[%s5270_s9 + $0xd0] sm:$0xff] %v351_v26 }
  0x46   : > { %354 = vst [vmem:[%s5270_s9 + $0xd8] sm:$0xff] %v353_v27 }
  0x47   : > { %356 = vst [vmem:[%s5270_s9 + $0xe0] sm:$0xff] %v355_v28 }
  0x48   : > { %358 = vst [vmem:[%s5270_s9 + $0xe8] sm:$0xff] %v357_v29 }
  0x49   : > { %360 = vst [vmem:[%s5270_s9 + $0xf0] sm:$0xff] %v359_v30 }
  0x4a   : > { %362 = vst [vmem:[%s5270_s9 + $0xf8] sm:$0xff] %v361_v31 }
  0x4b PF: > { %380 = sbr.rel (!%p5239_p9) target bundleno = 157 (0x9d), region = 70  ;;  %s382_s8 = sand.u32 (%p5239_p9), 1, %s5097_s21  }
  0x4c   : > { %s4845_s10 = sshll.u32 (%p5239_p9), %s5117_s26, 6  ;;  %s4943_s7 = smul.u32 (%p5239_p9), 576, %s382_s8 }
  0x4d   : > { %s6145_s3 = sld [smem:[#allocation12_spill]] (%p5239_p9) }
  0x4e   : > { %s5345_s6 = scalar_lea.vmem (%p5239_p9), [#allocation5], %s4943_s7 }
  0x53   : > { %s5340_s15 = scalar_lea.vmem %s6145_s3, %s4845_s10 }
  0x54   : > { %v404_v32 = vld [vmem:[%s5340_s15] sm:$0xff]   ;;  %v408_v33 = vld [vmem:[%s5340_s15 + $0x8] sm:$0xff]   ;;  %v412_v34 = vld [vmem:[%s5340_s15 + $0x10] sm:$0xff]  }
  0x55   : > { %405 = vst [vmem:[%s5345_s6] sm:$0xff] %v404_v32   ;;  %v416_v35 = vld [vmem:[%s5340_s15 + $0x18] sm:$0xff]   ;;  %v420_v36 = vld [vmem:[%s5340_s15 + $0x20] sm:$0xff]   ;;  %v424_v37 = vld [vmem:[%s5340_s15 + $0x28] sm:$0xff]  }
  0x56   : > { %409 = vst [vmem:[%s5345_s6 + $0x8] sm:$0xff] %v408_v33   ;;  %v428_v38 = vld [vmem:[%s5340_s15 + $0x30] sm:$0xff]   ;;  %v432_v39 = vld [vmem:[%s5340_s15 + $0x38] sm:$0xff]   ;;  %v436_v40 = vld [vmem:[%s5340_s15 + $0x80] sm:$0xff]  }
  0x57   : > { %413 = vst [vmem:[%s5345_s6 + $0x10] sm:$0xff] %v412_v34   ;;  %v440_v41 = vld [vmem:[%s5340_s15 + $0x88] sm:$0xff]   ;;  %v444_v42 = vld [vmem:[%s5340_s15 + $0x90] sm:$0xff]   ;;  %v448_v43 = vld [vmem:[%s5340_s15 + $0x98] sm:$0xff]  }
  0x58   : > { %417 = vst [vmem:[%s5345_s6 + $0x18] sm:$0xff] %v416_v35   ;;  %v452_v44 = vld [vmem:[%s5340_s15 + $0xa0] sm:$0xff]   ;;  %v456_v45 = vld [vmem:[%s5340_s15 + $0xa8] sm:$0xff]   ;;  %v460_v46 = vld [vmem:[%s5340_s15 + $0xb0] sm:$0xff]  }
  0x59   : > { %421 = vst [vmem:[%s5345_s6 + $0x20] sm:$0xff] %v420_v36   ;;  %v464_v47 = vld [vmem:[%s5340_s15 + $0xb8] sm:$0xff]   ;;  %v468_v48 = vld [vmem:[%s5340_s15 + $0x100] sm:$0xff]   ;;  %v472_v49 = vld [vmem:[%s5340_s15 + $0x108] sm:$0xff]  }
  0x5a   : > { %425 = vst [vmem:[%s5345_s6 + $0x28] sm:$0xff] %v424_v37   ;;  %v476_v50 = vld [vmem:[%s5340_s15 + $0x110] sm:$0xff]   ;;  %v480_v51 = vld [vmem:[%s5340_s15 + $0x118] sm:$0xff]   ;;  %v484_v52 = vld [vmem:[%s5340_s15 + $0x120] sm:$0xff]  }
  0x5b   : > { %429 = vst [vmem:[%s5345_s6 + $0x30] sm:$0xff] %v428_v38   ;;  %v488_v53 = vld [vmem:[%s5340_s15 + $0x128] sm:$0xff]   ;;  %v492_v54 = vld [vmem:[%s5340_s15 + $0x130] sm:$0xff]   ;;  %v496_v55 = vld [vmem:[%s5340_s15 + $0x138] sm:$0xff]  }
  0x5c   : > { %433 = vst [vmem:[%s5345_s6 + $0x38] sm:$0xff] %v432_v39   ;;  %v500_v56 = vld [vmem:[%s5340_s15 + $0x180] sm:$0xff]   ;;  %v504_v57 = vld [vmem:[%s5340_s15 + $0x188] sm:$0xff]   ;;  %v508_v58 = vld [vmem:[%s5340_s15 + $0x190] sm:$0xff]  }
  0x5d   : > { %437 = vst [vmem:[%s5345_s6 + $0x40] sm:$0xff] %v436_v40   ;;  %v512_v59 = vld [vmem:[%s5340_s15 + $0x198] sm:$0xff]   ;;  %v516_v60 = vld [vmem:[%s5340_s15 + $0x1a0] sm:$0xff]   ;;  %v520_v61 = vld [vmem:[%s5340_s15 + $0x1a8] sm:$0xff]  }
  0x5e   : > { %441 = vst [vmem:[%s5345_s6 + $0x48] sm:$0xff] %v440_v41   ;;  %v524_v62 = vld [vmem:[%s5340_s15 + $0x1b0] sm:$0xff]   ;;  %v528_v63 = vld [vmem:[%s5340_s15 + $0x1b8] sm:$0xff]   ;;  %v532_v0 = vld [vmem:[%s5340_s15 + $0x200] sm:$0xff]  }
  0x5f   : > { %445 = vst [vmem:[%s5345_s6 + $0x50] sm:$0xff] %v444_v42   ;;  %v536_v1 = vld [vmem:[%s5340_s15 + $0x208] sm:$0xff]   ;;  %v540_v2 = vld [vmem:[%s5340_s15 + $0x210] sm:$0xff]   ;;  %v544_v3 = vld [vmem:[%s5340_s15 + $0x218] sm:$0xff]  }
  0x60   : > { %449 = vst [vmem:[%s5345_s6 + $0x58] sm:$0xff] %v448_v43   ;;  %v548_v4 = vld [vmem:[%s5340_s15 + $0x220] sm:$0xff]   ;;  %v552_v5 = vld [vmem:[%s5340_s15 + $0x228] sm:$0xff]   ;;  %v556_v6 = vld [vmem:[%s5340_s15 + $0x230] sm:$0xff]  }
  0x61   : > { %453 = vst [vmem:[%s5345_s6 + $0x60] sm:$0xff] %v452_v44   ;;  %v560_v7 = vld [vmem:[%s5340_s15 + $0x238] sm:$0xff]   ;;  %v564_v8 = vld [vmem:[%s5340_s15 + $0x280] sm:$0xff]   ;;  %v568_v9 = vld [vmem:[%s5340_s15 + $0x288] sm:$0xff]  }
  0x62   : > { %457 = vst [vmem:[%s5345_s6 + $0x68] sm:$0xff] %v456_v45   ;;  %v572_v10 = vld [vmem:[%s5340_s15 + $0x290] sm:$0xff]   ;;  %v576_v11 = vld [vmem:[%s5340_s15 + $0x298] sm:$0xff]   ;;  %v580_v12 = vld [vmem:[%s5340_s15 + $0x2a0] sm:$0xff]  }
  0x63   : > { %461 = vst [vmem:[%s5345_s6 + $0x70] sm:$0xff] %v460_v46   ;;  %v584_v13 = vld [vmem:[%s5340_s15 + $0x2a8] sm:$0xff]   ;;  %v588_v14 = vld [vmem:[%s5340_s15 + $0x2b0] sm:$0xff]   ;;  %v592_v15 = vld [vmem:[%s5340_s15 + $0x2b8] sm:$0xff]  }
  0x64   : > { %465 = vst [vmem:[%s5345_s6 + $0x78] sm:$0xff] %v464_v47   ;;  %v596_v16 = vld [vmem:[%s5340_s15 + $0x300] sm:$0xff]   ;;  %v600_v17 = vld [vmem:[%s5340_s15 + $0x308] sm:$0xff]   ;;  %v604_v18 = vld [vmem:[%s5340_s15 + $0x310] sm:$0xff]  }
  0x65   : > { %469 = vst [vmem:[%s5345_s6 + $0x80] sm:$0xff] %v468_v48   ;;  %v608_v19 = vld [vmem:[%s5340_s15 + $0x318] sm:$0xff]   ;;  %v612_v20 = vld [vmem:[%s5340_s15 + $0x320] sm:$0xff]   ;;  %v616_v21 = vld [vmem:[%s5340_s15 + $0x328] sm:$0xff]  }
  0x66   : > { %473 = vst [vmem:[%s5345_s6 + $0x88] sm:$0xff] %v472_v49   ;;  %v620_v22 = vld [vmem:[%s5340_s15 + $0x330] sm:$0xff]   ;;  %v624_v23 = vld [vmem:[%s5340_s15 + $0x338] sm:$0xff]   ;;  %v628_v24 = vld [vmem:[%s5340_s15 + $0x380] sm:$0xff]  }
  0x67   : > { %477 = vst [vmem:[%s5345_s6 + $0x90] sm:$0xff] %v476_v50   ;;  %v632_v25 = vld [vmem:[%s5340_s15 + $0x388] sm:$0xff]   ;;  %v636_v26 = vld [vmem:[%s5340_s15 + $0x390] sm:$0xff]   ;;  %v640_v27 = vld [vmem:[%s5340_s15 + $0x398] sm:$0xff]  }
  0x68   : > { %481 = vst [vmem:[%s5345_s6 + $0x98] sm:$0xff] %v480_v51   ;;  %v644_v28 = vld [vmem:[%s5340_s15 + $0x3a0] sm:$0xff]   ;;  %v648_v29 = vld [vmem:[%s5340_s15 + $0x3a8] sm:$0xff]   ;;  %v652_v30 = vld [vmem:[%s5340_s15 + $0x3b0] sm:$0xff]  }
  0x69   : > { %485 = vst [vmem:[%s5345_s6 + $0xa0] sm:$0xff] %v484_v52   ;;  %v656_v31 = vld [vmem:[%s5340_s15 + $0x3b8] sm:$0xff]   ;;  %v660_v32 = vld [vmem:[%s5340_s15 + $0x400] sm:$0xff]   ;;  %v664_v33 = vld [vmem:[%s5340_s15 + $0x408] sm:$0xff]  }
  0x6a   : > { %489 = vst [vmem:[%s5345_s6 + $0xa8] sm:$0xff] %v488_v53   ;;  %v668_v34 = vld [vmem:[%s5340_s15 + $0x410] sm:$0xff]   ;;  %v672_v35 = vld [vmem:[%s5340_s15 + $0x418] sm:$0xff]   ;;  %v676_v36 = vld [vmem:[%s5340_s15 + $0x420] sm:$0xff]  }
  0x6b   : > { %493 = vst [vmem:[%s5345_s6 + $0xb0] sm:$0xff] %v492_v54   ;;  %v680_v37 = vld [vmem:[%s5340_s15 + $0x428] sm:$0xff]   ;;  %v684_v38 = vld [vmem:[%s5340_s15 + $0x430] sm:$0xff]   ;;  %v688_v39 = vld [vmem:[%s5340_s15 + $0x438] sm:$0xff]  }
  0x6c   : > { %497 = vst [vmem:[%s5345_s6 + $0xb8] sm:$0xff] %v496_v55  }
  0x6d   : > { %501 = vst [vmem:[%s5345_s6 + $0xc0] sm:$0xff] %v500_v56  }
  0x6e   : > { %505 = vst [vmem:[%s5345_s6 + $0xc8] sm:$0xff] %v504_v57  }
  0x6f   : > { %509 = vst [vmem:[%s5345_s6 + $0xd0] sm:$0xff] %v508_v58  }
  0x70   : > { %513 = vst [vmem:[%s5345_s6 + $0xd8] sm:$0xff] %v512_v59  }
  0x71   : > { %517 = vst [vmem:[%s5345_s6 + $0xe0] sm:$0xff] %v516_v60  }
  0x72   : > { %521 = vst [vmem:[%s5345_s6 + $0xe8] sm:$0xff] %v520_v61  }
  0x73   : > { %525 = vst [vmem:[%s5345_s6 + $0xf0] sm:$0xff] %v524_v62  }
  0x74   : > { %529 = vst [vmem:[%s5345_s6 + $0xf8] sm:$0xff] %v528_v63  }
  0x75   : > { %533 = vst [vmem:[%s5345_s6 + $0x100] sm:$0xff] %v532_v0  }
  0x76   : > { %537 = vst [vmem:[%s5345_s6 + $0x108] sm:$0xff] %v536_v1  }
  0x77   : > { %541 = vst [vmem:[%s5345_s6 + $0x110] sm:$0xff] %v540_v2  }
  0x78   : > { %545 = vst [vmem:[%s5345_s6 + $0x118] sm:$0xff] %v544_v3  }
  0x79   : > { %549 = vst [vmem:[%s5345_s6 + $0x120] sm:$0xff] %v548_v4  }
  0x7a   : > { %553 = vst [vmem:[%s5345_s6 + $0x128] sm:$0xff] %v552_v5  }
  0x7b   : > { %557 = vst [vmem:[%s5345_s6 + $0x130] sm:$0xff] %v556_v6  }
  0x7c   : > { %561 = vst [vmem:[%s5345_s6 + $0x138] sm:$0xff] %v560_v7  }
  0x7d   : > { %565 = vst [vmem:[%s5345_s6 + $0x140] sm:$0xff] %v564_v8  }
  0x7e   : > { %569 = vst [vmem:[%s5345_s6 + $0x148] sm:$0xff] %v568_v9  }
  0x7f   : > { %573 = vst [vmem:[%s5345_s6 + $0x150] sm:$0xff] %v572_v10  }
  0x80   : > { %577 = vst [vmem:[%s5345_s6 + $0x158] sm:$0xff] %v576_v11  }
  0x81   : > { %581 = vst [vmem:[%s5345_s6 + $0x160] sm:$0xff] %v580_v12  }
  0x82   : > { %585 = vst [vmem:[%s5345_s6 + $0x168] sm:$0xff] %v584_v13  }
  0x83   : > { %589 = vst [vmem:[%s5345_s6 + $0x170] sm:$0xff] %v588_v14  }
  0x84   : > { %593 = vst [vmem:[%s5345_s6 + $0x178] sm:$0xff] %v592_v15  }
  0x85   : > { %597 = vst [vmem:[%s5345_s6 + $0x180] sm:$0xff] %v596_v16  }
  0x86   : > { %601 = vst [vmem:[%s5345_s6 + $0x188] sm:$0xff] %v600_v17  }
  0x87   : > { %605 = vst [vmem:[%s5345_s6 + $0x190] sm:$0xff] %v604_v18  }
  0x88   : > { %609 = vst [vmem:[%s5345_s6 + $0x198] sm:$0xff] %v608_v19  }
  0x89   : > { %613 = vst [vmem:[%s5345_s6 + $0x1a0] sm:$0xff] %v612_v20  }
  0x8a   : > { %617 = vst [vmem:[%s5345_s6 + $0x1a8] sm:$0xff] %v616_v21  }
  0x8b   : > { %621 = vst [vmem:[%s5345_s6 + $0x1b0] sm:$0xff] %v620_v22  }
  0x8c   : > { %625 = vst [vmem:[%s5345_s6 + $0x1b8] sm:$0xff] %v624_v23  }
  0x8d   : > { %629 = vst [vmem:[%s5345_s6 + $0x1c0] sm:$0xff] %v628_v24  }
  0x8e   : > { %633 = vst [vmem:[%s5345_s6 + $0x1c8] sm:$0xff] %v632_v25  }
  0x8f   : > { %637 = vst [vmem:[%s5345_s6 + $0x1d0] sm:$0xff] %v636_v26  }
  0x90   : > { %641 = vst [vmem:[%s5345_s6 + $0x1d8] sm:$0xff] %v640_v27  }
  0x91   : > { %645 = vst [vmem:[%s5345_s6 + $0x1e0] sm:$0xff] %v644_v28  }
  0x92   : > { %649 = vst [vmem:[%s5345_s6 + $0x1e8] sm:$0xff] %v648_v29  }
  0x93   : > { %653 = vst [vmem:[%s5345_s6 + $0x1f0] sm:$0xff] %v652_v30  }
  0x94   : > { %657 = vst [vmem:[%s5345_s6 + $0x1f8] sm:$0xff] %v656_v31  }
  0x95   : > { %661 = vst [vmem:[%s5345_s6 + $0x200] sm:$0xff] %v660_v32  }
  0x96   : > { %665 = vst [vmem:[%s5345_s6 + $0x208] sm:$0xff] %v664_v33  }
  0x97   : > { %669 = vst [vmem:[%s5345_s6 + $0x210] sm:$0xff] %v668_v34  }
  0x98   : > { %673 = vst [vmem:[%s5345_s6 + $0x218] sm:$0xff] %v672_v35  }
  0x99   : > { %677 = vst [vmem:[%s5345_s6 + $0x220] sm:$0xff] %v676_v36  }
  0x9a   : > { %681 = vst [vmem:[%s5345_s6 + $0x228] sm:$0xff] %v680_v37  }
  0x9b   : > { %685 = vst [vmem:[%s5345_s6 + $0x230] sm:$0xff] %v684_v38  }
  0x9c   : > { %689 = vst [vmem:[%s5345_s6 + $0x238] sm:$0xff] %v688_v39  }
  0x9d PF: > { %p4388_p0 = scmp.ge.s32.totalorder %s5125_s28, 1  ;;  %p1002_p1 = scmp.lt.s32.totalorder %s5125_s28, 5 }
  0x9f   : > { %p1003_p2 = pnand %p4388_p0, %p1002_p1 }
  0xa0   : > { %s1009_s14 = sand.u32 (!%p1003_p2), 1, %s5101_s22   ;;  %s1016_s29 = sand.u32 (!%p1003_p2), 1, %s5093_s20  }
  0xa1   : > { %1006 = sbr.rel (%p1003_p2) target bundleno = 1070 (0x42e), region = 111  ;;  %s4389_s9 = sshll.u32 (!%p1003_p2), %s1009_s14, 8 }
  0xa2   : > { %s4944_s8 = smul.u32 (!%p1003_p2), 576, %s1016_s29  ;;  %s1049_s10 = sand.u32 (!%p1003_p2), 1, %s5085_s18  }
  0xa3   : > { %s4390_s7 = sshll.u32 (!%p1003_p2), %s1049_s10, 8  ;;  %p1052_p3 = scmp.lt.s32.totalorder (!%p1003_p2), %s5109_s24, 1 }
  0xa4   : > { %s5505_s26 = scalar_lea.vmem (!%p1003_p2), [#allocation4], %s4389_s9  ;;  %s5507_s22 = scalar_lea.vmem (!%p1003_p2), [#allocation5], %s4944_s8 }
  0xa5   : > { %s5509_s20 = scalar_lea.vmem (!%p1003_p2), [#allocation6], %s4390_s7  ;;  %p4391_p4 = scmp.ne.s32.totalorder (!%p1003_p2), %s5109_s24, 0 }
  0xa6   : > { %s1053_s12 = scalar_select %p1052_p3, %s5109_s24, 1 }
  0xa7   : > { %1062 = sbr.rel (%p4391_p4) target bundleno = 259 (0x103), region = 123 }
  0xa8   : > { %s5498_s6 = scalar_lea.vmem %s6126_s1, %s1053_s12  ;;  %s5503_s27 = scalar_lea.vmem %s6127_s2, %s1053_s12 }
  0xac   : > { %v5127_v40 = vmov 0.0  }
  0xad   : > { %1063 = vst [vmem:[#allocation2 + $0xb0] sm:$0xff] %v5127_v40 }
  0xae   : > { %1064 = vst [vmem:[#allocation2] sm:$0xff] %v5127_v40 }
  0xaf   : > { %1065 = vst [vmem:[#allocation2 + $0xd8] sm:$0xff] %v5127_v40 }
  0xb0   : > { %1066 = vst [vmem:[#allocation2 + $0x18] sm:$0xff] %v5127_v40 }
  0xb1   : > { %1067 = vst [vmem:[#allocation2 + $0x50] sm:$0xff] %v5127_v40 }
  0xb2   : > { %1068 = vst [vmem:[#allocation2 + $0x68] sm:$0xff] %v5127_v40 }
  0xb3   : > { %1069 = vst [vmem:[#allocation2 + $0x30] sm:$0xff] %v5127_v40 }
  0xb4   : > { %1070 = vst [vmem:[#allocation2 + $0x48] sm:$0xff] %v5127_v40 }
  0xb5   : > { %1071 = vst [vmem:[#allocation2 + $0x80] sm:$0xff] %v5127_v40 }
  0xb6   : > { %1072 = vst [vmem:[#allocation2 + $0x88] sm:$0xff] %v5127_v40 }
  0xb7   : > { %1073 = vst [vmem:[#allocation2 + $0xe8] sm:$0xff] %v5127_v40 }
  0xb8   : > { %1074 = vst [vmem:[#allocation2 + $0xb8] sm:$0xff] %v5127_v40 }
  0xb9   : > { %1075 = vst [vmem:[#allocation2 + $0x60] sm:$0xff] %v5127_v40 }
  0xba   : > { %1076 = vst [vmem:[#allocation2 + $0xf0] sm:$0xff] %v5127_v40 }
  0xbb   : > { %1077 = vst [vmem:[#allocation2 + $0x8] sm:$0xff] %v5127_v40 }
  0xbc   : > { %1078 = vst [vmem:[#allocation2 + $0x78] sm:$0xff] %v5127_v40 }
  0xbd   : > { %1079 = vst [vmem:[#allocation2 + $0x38] sm:$0xff] %v5127_v40 }
  0xbe   : > { %1080 = vst [vmem:[#allocation2 + $0x58] sm:$0xff] %v5127_v40 }
  0xbf   : > { %1081 = vst [vmem:[#allocation2 + $0x40] sm:$0xff] %v5127_v40 }
  0xc0   : > { %1082 = vst [vmem:[#allocation2 + $0xc8] sm:$0xff] %v5127_v40 }
  0xc1   : > { %1083 = vst [vmem:[#allocation2 + $0xe0] sm:$0xff] %v5127_v40 }
  0xc2   : > { %1084 = vst [vmem:[#allocation2 + $0x90] sm:$0xff] %v5127_v40 }
  0xc3   : > { %1085 = vst [vmem:[#allocation2 + $0x70] sm:$0xff] %v5127_v40 }
  0xc4   : > { %1086 = vst [vmem:[#allocation2 + $0xc0] sm:$0xff] %v5127_v40 }
  0xc5   : > { %1087 = vst [vmem:[#allocation2 + $0xa8] sm:$0xff] %v5127_v40 }
  0xc6   : > { %1088 = vst [vmem:[#allocation2 + $0xd0] sm:$0xff] %v5127_v40 }
  0xc7   : > { %1089 = vst [vmem:[#allocation2 + $0x10] sm:$0xff] %v5127_v40 }
  0xc8   : > { %1090 = vst [vmem:[#allocation2 + $0x28] sm:$0xff] %v5127_v40 }
  0xc9   : > { %1091 = vst [vmem:[#allocation2 + $0xa0] sm:$0xff] %v5127_v40 }
  0xca   : > { %1092 = vst [vmem:[#allocation2 + $0xf8] sm:$0xff] %v5127_v40 }
  0xcb   : > { %1093 = vst [vmem:[#allocation2 + $0x20] sm:$0xff] %v5127_v40 }
  0xcc   : > { %1094 = vst [vmem:[#allocation2 + $0x98] sm:$0xff] %v5127_v40 }
  0xcd   : > { %1095 = vst [vmem:[#allocation3] sm:$0xff] %v5127_v40 }
  0xce   : > { %1096 = vst [vmem:[#allocation3 + $0x8] sm:$0xff] %v5127_v40 }
  0xcf   : > { %1097 = vst [vmem:[#allocation3 + $0x10] sm:$0x3] %v5127_v40 }
  0xd0   : > { %1098 = vst [vmem:[#allocation3 + $0x18] sm:$0xff] %v5127_v40 }
  0xd1   : > { %1099 = vst [vmem:[#allocation3 + $0x20] sm:$0xff] %v5127_v40 }
  0xd2   : > { %1100 = vst [vmem:[#allocation3 + $0x28] sm:$0x3] %v5127_v40 }
  0xd3   : > { %1101 = vst [vmem:[#allocation3 + $0x30] sm:$0xff] %v5127_v40 }
  0xd4   : > { %1102 = vst [vmem:[#allocation3 + $0x38] sm:$0xff] %v5127_v40 }
  0xd5   : > { %1103 = vst [vmem:[#allocation3 + $0x40] sm:$0x3] %v5127_v40 }
  0xd6   : > { %1104 = vst [vmem:[#allocation3 + $0x48] sm:$0xff] %v5127_v40 }
  0xd7   : > { %1105 = vst [vmem:[#allocation3 + $0x50] sm:$0xff] %v5127_v40 }
  0xd8   : > { %1106 = vst [vmem:[#allocation3 + $0x58] sm:$0x3] %v5127_v40 }
  0xd9   : > { %1107 = vst [vmem:[#allocation3 + $0x60] sm:$0xff] %v5127_v40 }
  0xda   : > { %1108 = vst [vmem:[#allocation3 + $0x68] sm:$0xff] %v5127_v40 }
  0xdb   : > { %1109 = vst [vmem:[#allocation3 + $0x70] sm:$0x3] %v5127_v40 }
  0xdc   : > { %1110 = vst [vmem:[#allocation3 + $0x78] sm:$0xff] %v5127_v40 }
  0xdd   : > { %1111 = vst [vmem:[#allocation3 + $0x80] sm:$0xff] %v5127_v40 }
  0xde   : > { %1112 = vst [vmem:[#allocation3 + $0x88] sm:$0x3] %v5127_v40 }
  0xdf   : > { %1113 = vst [vmem:[#allocation3 + $0x90] sm:$0xff] %v5127_v40 }
  0xe0   : > { %1114 = vst [vmem:[#allocation3 + $0x98] sm:$0xff] %v5127_v40 }
  0xe1   : > { %1115 = vst [vmem:[#allocation3 + $0xa0] sm:$0x3] %v5127_v40 }
  0xe2   : > { %1116 = vst [vmem:[#allocation3 + $0xa8] sm:$0xff] %v5127_v40 }
  0xe3   : > { %1117 = vst [vmem:[#allocation3 + $0xb0] sm:$0xff] %v5127_v40 }
  0xe4   : > { %1118 = vst [vmem:[#allocation3 + $0xb8] sm:$0x3] %v5127_v40 }
  0xe5   : > { %1119 = vst [vmem:[#allocation3 + $0xc0] sm:$0xff] %v5127_v40 }
  0xe6   : > { %1120 = vst [vmem:[#allocation3 + $0xc8] sm:$0xff] %v5127_v40 }
  0xe7   : > { %1121 = vst [vmem:[#allocation3 + $0xd0] sm:$0x3] %v5127_v40 }
  0xe8   : > { %1122 = vst [vmem:[#allocation3 + $0xd8] sm:$0xff] %v5127_v40 }
  0xe9   : > { %1123 = vst [vmem:[#allocation3 + $0xe0] sm:$0xff] %v5127_v40 }
  0xea   : > { %1124 = vst [vmem:[#allocation3 + $0xe8] sm:$0x3] %v5127_v40 }
  0xeb   : > { %1125 = vst [vmem:[#allocation3 + $0xf0] sm:$0xff] %v5127_v40 }
  0xec   : > { %1126 = vst [vmem:[#allocation3 + $0xf8] sm:$0xff] %v5127_v40 }
  0xed   : > { %1127 = vst [vmem:[#allocation3 + $0x100] sm:$0x3] %v5127_v40 }
  0xee   : > { %1128 = vst [vmem:[#allocation3 + $0x108] sm:$0xff] %v5127_v40 }
  0xef   : > { %1129 = vst [vmem:[#allocation3 + $0x110] sm:$0xff] %v5127_v40 }
  0xf0   : > { %1130 = vst [vmem:[#allocation3 + $0x118] sm:$0x3] %v5127_v40 }
  0xf1   : > { %1131 = vst [vmem:[#allocation3 + $0x120] sm:$0xff] %v5127_v40 }
  0xf2   : > { %1132 = vst [vmem:[#allocation3 + $0x128] sm:$0xff] %v5127_v40 }
  0xf3   : > { %1133 = vst [vmem:[#allocation3 + $0x130] sm:$0x3] %v5127_v40 }
  0xf4   : > { %1134 = vst [vmem:[#allocation3 + $0x138] sm:$0xff] %v5127_v40 }
  0xf5   : > { %1135 = vst [vmem:[#allocation3 + $0x140] sm:$0xff] %v5127_v40 }
  0xf6   : > { %1136 = vst [vmem:[#allocation3 + $0x148] sm:$0x3] %v5127_v40 }
  0xf7   : > { %1137 = vst [vmem:[#allocation3 + $0x150] sm:$0xff] %v5127_v40 }
  0xf8   : > { %1138 = vst [vmem:[#allocation3 + $0x158] sm:$0xff] %v5127_v40 }
  0xf9   : > { %1139 = vst [vmem:[#allocation3 + $0x160] sm:$0x3] %v5127_v40 }
  0xfa   : > { %1140 = vst [vmem:[#allocation3 + $0x168] sm:$0xff] %v5127_v40 }
  0xfb   : > { %1141 = vst [vmem:[#allocation3 + $0x170] sm:$0xff] %v5127_v40 }
  0xfc   : > { %1142 = vst [vmem:[#allocation3 + $0x178] sm:$0x3] %v5127_v40 }
  0xfd   : > { %1143 = vst [vmem:[#allocation3 + $0x180] sm:$0xff] %v5127_v40 }
  0xfe   : > { %1144 = vst [vmem:[#allocation3 + $0x188] sm:$0xff] %v5127_v40 }
  0xff   : > { %1145 = vst [vmem:[#allocation3 + $0x190] sm:$0x3] %v5127_v40 }
 0x100   : > { %1146 = vst [vmem:[#allocation3 + $0x198] sm:$0xff] %v5127_v40 }
 0x101   : > { %1147 = vst [vmem:[#allocation3 + $0x1a0] sm:$0xff] %v5127_v40 }
 0x102   : > { %1148 = vst [vmem:[#allocation3 + $0x1a8] sm:$0x3] %v5127_v40 }
 0x103 PF: > { %v4853_v41 = vld [vmem:[%s5507_s22 + $0x38] sm:$0xff]  ;;  %v4852_v42 = vld [vmem:[%s5507_s22 + $0x30] sm:$0xff]  ;;  %v4851_v52 = vld [vmem:[%s5507_s22 + $0x28] sm:$0xff]  ;;  %p4808_p5 = scmp.ne.s32.totalorder %s5109_s24, 1 }
 0x104   : > { %4918 = vmatpush.bf16.msra.mxu1 %v4853_v41  ;;  %4919 = vmatpush.bf16.msra.mxu2 %v4853_v41  ;;  %v1155_v43 = vld [vmem:[%s5505_s26 + $0x30] sm:$0xff]  ;;  %v1156_v44 = vld [vmem:[%s5505_s26 + $0x38] sm:$0xff]  ;;  %v1157_v59 = vld [vmem:[%s5505_s26 + $0x40] sm:$0xff] }
 0x105   : > { %4920 = vmatpush.bf16.msra.mxu3 %v4853_v41  ;;  %1462 = vmatpush.bf16.msra.mxu0 %v4853_v41  ;;  %v5603_v45 = vld [vmem:[%s5498_s6] ss:$0 sm:$0xff]  ;;  %v1164_v50 = vld [vmem:[%s5505_s26 + $0x78] sm:$0xff]  ;;  %v1158_v63 = vld [vmem:[%s5505_s26 + $0x48] sm:$0xff] }
 0x106   : > { %v5606_v46 = vld [vmem:[%s5503_s27] ss:$0 sm:$0xff]  ;;  %v1191_v48 = vmul.f32 %v5603_v45, %v1155_v43  ;;  %v1192_v49 = vmul.f32 %v5603_v45, %v1156_v44  ;;  %v1200_v53 = vmul.f32 %v5603_v45, %v1164_v50  ;;  %v1172_v55 = vld [vmem:[%s5505_s26 + $0xb8] sm:$0xff]  ;;  %v1193_v0 = vmul.f32 %v5603_v45, %v1157_v59  ;;  %v1165_v1 = vld [vmem:[%s5505_s26 + $0x80] sm:$0xff] }
 0x107   : > { %v1163_v47 = vld [vmem:[%s5505_s26 + $0x70] sm:$0xff]  ;;  %v1208_v62 = vmul.f32 %v5603_v45, %v1172_v55  ;;  %v1166_v2 = vld [vmem:[%s5505_s26 + $0x88] sm:$0xff]  ;;  %v1194_v6 = vmul.f32 %v5603_v45, %v1158_v63  ;;  %v4850_v7 = vld [vmem:[%s5507_s22 + $0x20] sm:$0xff]  ;;  %v1201_v14 = vmul.f32 %v5603_v45, %v1165_v1 }
 0x108   : > { %v1199_v51 = vmul.f32 %v5603_v45, %v1163_v47  ;;  %4921 = vmatpush.bf16.msra.mxu1 %v4852_v42  ;;  %4922 = vmatpush.bf16.msra.mxu2 %v4852_v42  ;;  %v1171_v54 = vld [vmem:[%s5505_s26 + $0xb0] sm:$0xff]  ;;  %v5618_v56 = vadd.f32 %v5606_v46, %v1191_v48  ;;  %v5621_v57 = vadd.f32 %v5606_v46, %v1192_v49  ;;  %v1173_v12 = vld [vmem:[%s5505_s26 + $0xc0] sm:$0xff]  ;;  %v1174_v16 = vld [vmem:[%s5505_s26 + $0xc8] sm:$0xff] }
 0x109   : > { %4923 = vmatpush.bf16.msra.mxu3 %v4852_v42  ;;  %1463 = vmatpush.bf16.msra.mxu0 %v4852_v42  ;;  %v1236_v60 = vadd.f32 %v5606_v46, %v1200_v53  ;;  %v1207_v61 = vmul.f32 %v5603_v45, %v1171_v54  ;;  %v1244_v10 = vadd.f32 %v5606_v46, %v1208_v62  ;;  %v1149_v17 = vld [vmem:[%s5505_s26] sm:$0xff]  ;;  %v1150_v18 = vld [vmem:[%s5505_s26 + $0x8] sm:$0xff]  ;;  %v4849_v26 = vld [vmem:[%s5507_s22 + $0x18] sm:$0xff] }
 0x10a   : > { %v1235_v58 = vadd.f32 %v5606_v46, %v1199_v51  ;;  %v1259_v3 = vmax.f32 %v5618_v56, 0.0  ;;  %v1260_v4 = vmax.f32 %v5621_v57, 0.0  ;;  %v5639_v11 = vadd.f32 %v5606_v46, %v1193_v0  ;;  %v4848_v37 = vld [vmem:[%s5507_s22 + $0x10] sm:$0xff]  ;;  %v1160_v42 = vld [vmem:[%s5505_s26 + $0x58] sm:$0xff]  ;;  %v4847_v47 = vld [vmem:[%s5507_s22 + $0x8] sm:$0xff] }
 0x10b   : > { %v1268_v8 = vmax.f32 %v1236_v60, 0.0  ;;  %v1243_v9 = vadd.f32 %v5606_v46, %v1207_v61  ;;  %v5645_v13 = vadd.f32 %v5606_v46, %v1194_v6  ;;  %v1202_v15 = vmul.f32 %v5603_v45, %v1166_v2  ;;  %v1159_v40 = vld [vmem:[%s5505_s26 + $0x50] sm:$0xff]  ;;  %v1168_v49 = vld [vmem:[%s5505_s26 + $0x98] sm:$0xff]  ;;  %v4846_v63 = vld [vmem:[%s5507_s22] sm:$0xff] }
 0x10c   : > { %v1267_v5 = vmax.f32 %v1235_v58, 0.0  ;;  %4924 = vmatpush.bf16.msra.mxu1 %v4851_v52  ;;  %4925 = vmatpush.bf16.msra.mxu2 %v4851_v52  ;;  %1292 = vst [vmem:[#allocation3 + $0x61] sm:$0xff] %v1259_v3  ;;  %v1276_v20 = vmax.f32 %v1244_v10, 0.0  ;;  %v1261_v21 = vmax.f32 %v5639_v11, 0.0  ;;  %v1237_v23 = vadd.f32 %v5606_v46, %v1201_v14  ;;  %v1167_v44 = vld [vmem:[%s5505_s26 + $0x90] sm:$0xff]  ;;  %v1176_v54 = vld [vmem:[%s5505_s26 + $0xd8] sm:$0xff] }
 0x10d   : > { %4926 = vmatpush.bf16.msra.mxu3 %v4851_v52  ;;  %1464 = vmatpush.bf16.msra.mxu0 %v4851_v52  ;;  %1293 = vst [vmem:[#allocation3 + $0x69] sm:$0xff] %v1260_v4  ;;  %v1275_v19 = vmax.f32 %v1243_v9, 0.0  ;;  %v1262_v22 = vmax.f32 %v5645_v13, 0.0  ;;  %v1238_v24 = vadd.f32 %v5606_v46, %v1202_v15  ;;  %v1209_v25 = vmul.f32 %v5603_v45, %v1173_v12  ;;  %v1175_v51 = vld [vmem:[%s5505_s26 + $0xd0] sm:$0xff]  ;;  %v1152_v62 = vld [vmem:[%s5505_s26 + $0x18] sm:$0xff]  ;;  %v4890_v57 = vld [vmem:[%s5507_s22 + $0x160] sm:$0xff] }
 0x10e   : > { %1300 = vst [vmem:[#allocation3 + $0xc1] sm:$0xff] %v1267_v5  ;;  %v1210_v27 = vmul.f32 %v5603_v45, %v1174_v16  ;;  %v1185_v28 = vmul.f32 %v5603_v45, %v1149_v17  ;;  %v1186_v29 = vmul.f32 %v5603_v45, %v1150_v18  ;;  %v1269_v30 = vmax.f32 %v1237_v23, 0.0  ;;  %v1151_v58 = vld [vmem:[%s5505_s26 + $0x10] sm:$0xff]  ;;  %v4861_v15 = vld [vmem:[%s5507_s22 + $0x78] sm:$0xff]  ;;  %v4898_v13 = vld [vmem:[%s5507_s22 + $0x1a0] sm:$0xff] }
 0x10f   : > { %1301 = vst [vmem:[#allocation3 + $0xc9] sm:$0xff] %v1268_v8  ;;  %v1245_v31 = vadd.f32 %v5606_v46, %v1209_v25  ;;  %v1270_v32 = vmax.f32 %v1238_v24, 0.0  ;;  %v1195_v43 = vmul.f32 %v5603_v45, %v1159_v40  ;;  %v1196_v48 = vmul.f32 %v5603_v45, %v1160_v42  ;;  %v4869_v24 = vld [vmem:[%s5507_s22 + $0xb8] sm:$0xff]  ;;  %v4868_v40 = vld [vmem:[%s5507_s22 + $0xb0] sm:$0xff] }
 0x110   : > { %4927 = vmatpush.bf16.msra.mxu1 %v4850_v7  ;;  %4928 = vmatpush.bf16.msra.mxu2 %v4850_v7  ;;  %1308 = vst [vmem:[#allocation3 + $0x121] sm:$0xff] %v1275_v19  ;;  %v1246_v33 = vadd.f32 %v5606_v46, %v1210_v27  ;;  %v5666_v34 = vadd.f32 %v5606_v46, %v1185_v28  ;;  %v4877_v25 = vld [vmem:[%s5507_s22 + $0xf8] sm:$0xff]  ;;  %v4876_v42 = vld [vmem:[%s5507_s22 + $0xf0] sm:$0xff] }
 0x111   : > { %4929 = vmatpush.bf16.msra.mxu3 %v4850_v7  ;;  %1465 = vmatpush.bf16.msra.mxu0 %v4850_v7  ;;  %1309 = vst [vmem:[#allocation3 + $0x129] sm:$0xff] %v1276_v20  ;;  %v5669_v35 = vadd.f32 %v5606_v46, %v1186_v29  ;;  %v1277_v36 = vmax.f32 %v1245_v31, 0.0  ;;  %v1203_v50 = vmul.f32 %v5603_v45, %v1167_v44  ;;  %v4859_v44 = vld [vmem:[%s5507_s22 + $0x68] sm:$0xff] }
 0x112   : > { %1294 = vst [vmem:[#allocation3 + $0x79] sm:$0xff] %v1261_v21  ;;  %v1278_v38 = vmax.f32 %v1246_v33, 0.0  ;;  %v1253_v39 = vmax.f32 %v5666_v34, 0.0  ;;  %v5688_v52 = vadd.f32 %v5606_v46, %v1195_v43  ;;  %v1204_v53 = vmul.f32 %v5603_v45, %v1168_v49  ;;  %v1319_v33 = vld [vmem:[#allocation3 + $0x8] sm:$0xff]  ;;  %v4875_v49 = vld [vmem:[%s5507_s22 + $0xe8] sm:$0xff] }
 0x113   : > { %1295 = vst [vmem:[#allocation3 + $0x81] sm:$0xff] %v1262_v22  ;;  %v1254_v41 = vmax.f32 %v5669_v35, 0.0  ;;  %v1211_v55 = vmul.f32 %v5603_v45, %v1175_v51  ;;  %v5697_v59 = vadd.f32 %v5606_v46, %v1196_v48  ;;  %v1239_v60 = vadd.f32 %v5606_v46, %v1203_v50  ;;  %v1326_v0 = vld [vmem:[#allocation3 + $0x60] sm:$0xff]  ;;  %v4867_v48 = vld [vmem:[%s5507_s22 + $0xa8] sm:$0xff]  ;;  %v1161_v50 = vld [vmem:[%s5505_s26 + $0x60] sm:$0xff] }
 0x114   : > { %4930 = vmatpush.bf16.msra.mxu1 %v4849_v26  ;;  %4931 = vmatpush.bf16.msra.mxu2 %v4849_v26  ;;  %1302 = vst [vmem:[#allocation3 + $0xd9] sm:$0xff] %v1269_v30  ;;  %v1212_v61 = vmul.f32 %v5603_v45, %v1176_v54  ;;  %v1263_v1 = vmax.f32 %v5688_v52, 0.0  ;;  %v1240_v2 = vadd.f32 %v5606_v46, %v1204_v53  ;;  %v1327_v7 = vld [vmem:[#allocation3 + $0x68] sm:$0xff]  ;;  %v1162_v51 = vld [vmem:[%s5505_s26 + $0x68] sm:$0xff]  ;;  %v4858_v53 = vld [vmem:[%s5507_s22 + $0x60] sm:$0xff] }
 0x115   : > { %4932 = vmatpush.bf16.msra.mxu3 %v4849_v26  ;;  %1466 = vmatpush.bf16.msra.mxu0 %v4849_v26  ;;  %1303 = vst [vmem:[#allocation3 + $0xe1] sm:$0xff] %v1270_v32  ;;  %v1247_v5 = vadd.f32 %v5606_v46, %v1211_v55  ;;  %v1187_v6 = vmul.f32 %v5603_v45, %v1151_v58  ;;  %v1334_v8 = vld [vmem:[#allocation3 + $0xc0] sm:$0xff]  ;;  %v1264_v10 = vmax.f32 %v5697_v59, 0.0  ;;  %v1271_v12 = vmax.f32 %v1239_v60, 0.0  ;;  %v1169_v58 = vld [vmem:[%s5505_s26 + $0xa0] sm:$0xff]  ;;  %v1170_v60 = vld [vmem:[%s5505_s26 + $0xa8] sm:$0xff] }
 0x116   : > { %1310 = vst [vmem:[#allocation3 + $0x139] sm:$0xff] %v1277_v36  ;;  %v1335_v9 = vld [vmem:[#allocation3 + $0xc8] sm:$0xff]  ;;  %v1248_v14 = vadd.f32 %v5606_v46, %v1212_v61  ;;  %v1272_v18 = vmax.f32 %v1240_v2, 0.0  ;;  %v1188_v20 = vmul.f32 %v5603_v45, %v1152_v62  ;;  %v5722_v27 = vpack.c.bf16 %v1327_v7, %v1326_v0  ;;  %v1318_v32 = vld [vmem:[#allocation3] sm:$0xff]  ;;  %v4883_v61 = vld [vmem:[%s5507_s22 + $0x128] sm:$0xff] }
 0x117   : > { %1311 = vst [vmem:[#allocation3 + $0x141] sm:$0xff] %v1278_v38  ;;  %v1342_v16 = vld [vmem:[#allocation3 + $0x120] sm:$0xff]  ;;  %v1279_v19 = vmax.f32 %v1247_v5, 0.0  ;;  %v5716_v23 = vadd.f32 %v5606_v46, %v1187_v6  ;;  %v1390_v28 = vpack.c.bf16 %v1335_v9, %v1334_v8  ;;  %v1382_v43 = vpack.c.bf16 %v1319_v33, %v1318_v32  ;;  %v1177_v0 = vld [vmem:[%s5505_s26 + $0xe0] sm:$0xff]  ;;  %v1178_v2 = vld [vmem:[%s5505_s26 + $0xe8] sm:$0xff] }
 0x118   : > { %4933 = vmatpush.bf16.msra.mxu1 %v4848_v37  ;;  %4934 = vmatpush.bf16.msra.mxu2 %v4848_v37  ;;  %1286 = vst [vmem:[#allocation3 + $0x19] sm:$0xff] %v1253_v39  ;;  %v1343_v17 = vld [vmem:[#allocation3 + $0x128] sm:$0xff]  ;;  %v1280_v26 = vmax.f32 %v1248_v14, 0.0  ;;  %v5725_v29 = vadd.f32 %v5606_v46, %v1188_v20  ;;  %v4860_v36 = vld [vmem:[%s5507_s22 + $0x70] sm:$0xff]  ;;  %v1197_v54 = vmul.f32 %v5603_v45, %v1161_v50  ;;  %v4866_v5 = vld [vmem:[%s5507_s22 + $0xa0] sm:$0xff] }
 0x119   : > { %4935 = vmatpush.bf16.msra.mxu3 %v4848_v37  ;;  %1467 = vmatpush.bf16.msra.mxu0 %v4848_v37  ;;  %1287 = vst [vmem:[#allocation3 + $0x21] sm:$0xff] %v1254_v41  ;;  %v1255_v30 = vmax.f32 %v5716_v23, 0.0  ;;  %v1394_v31 = vpack.c.bf16 %v1343_v17, %v1342_v16  ;;  %v4885_v37 = vld [vmem:[%s5507_s22 + $0x138] sm:$0xff]  ;;  %v1198_v55 = vmul.f32 %v5603_v45, %v1162_v51  ;;  %v4874_v6 = vld [vmem:[%s5507_s22 + $0xe0] sm:$0xff] }
 0x11a   : > { %1296 = vst [vmem:[#allocation3 + $0x91] sm:$0xff] %v1263_v1  ;;  %v1256_v38 = vmax.f32 %v5725_v29, 0.0  ;;  %v1205_v62 = vmul.f32 %v5603_v45, %v1169_v58  ;;  %v5757_v7 = vadd.f32 %v5606_v46, %v1197_v54  ;;  %v1153_v9 = vld [vmem:[%s5505_s26 + $0x20] sm:$0xff]  ;;  %v1213_v16 = vmul.f32 %v5603_v45, %v1177_v0  ;;  %v4857_v33 = vld [vmem:[%s5507_s22 + $0x58] sm:$0xff] }
 0x11b   : > { %1297 = vst [vmem:[#allocation3 + $0x99] sm:$0xff] %v1264_v10  ;;  %v5760_v8 = vadd.f32 %v5606_v46, %v1198_v55  ;;  %v1214_v17 = vmul.f32 %v5603_v45, %v1178_v2  ;;  %v1336_v20 = vld [vmem:[#allocation3 + $0xd8] sm:$0xff]  ;;  %v4872_v2 = vld [vmem:[%s5507_s22 + $0xd0] sm:$0xff]  ;;  %v1684_v56 = vpack.c.bf16 %v1262_v22, %v1261_v21  ;;  %v1369_v52 = vld [vmem:[#allocation2 + $0xc8] sm:$0xff] }
 0x11c   : > { %4936 = vmatpush.bf16.msra.mxu1 %v4847_v47  ;;  %4937 = vmatpush.bf16.msra.mxu2 %v4847_v47  ;;  %1304 = vst [vmem:[#allocation3 + $0xf1] sm:$0xff] %v1271_v12  ;;  %v1328_v12 = vld [vmem:[#allocation3 + $0x78] sm:$0xff]  ;;  %v1241_v14 = vadd.f32 %v5606_v46, %v1205_v62  ;;  %v4864_v62 = vld [vmem:[%s5507_s22 + $0x90] sm:$0xff] }
 0x11d   : > { %4938 = vmatpush.bf16.msra.mxu3 %v4847_v47  ;;  %1468 = vmatpush.bf16.msra.mxu0 %v4847_v47  ;;  %1305 = vst [vmem:[#allocation3 + $0xf9] sm:$0xff] %v1272_v18  ;;  %v4884_v47 = vld [vmem:[%s5507_s22 + $0x130] sm:$0xff]  ;;  %v1154_v18 = vld [vmem:[%s5505_s26 + $0x28] sm:$0xff] }
 0x11e   : > { %1312 = vst [vmem:[#allocation3 + $0x151] sm:$0xff] %v1279_v19  ;;  %v1329_v19 = vld [vmem:[#allocation3 + $0x80] sm:$0xff]  ;;  %v1367_v21 = vld [vmem:[#allocation2 + $0x58] sm:$0xff] }
 0x11f   : > { %1313 = vst [vmem:[#allocation3 + $0x159] sm:$0xff] %v1280_v26  ;;  %v1266_v26 = vmax.f32 %v5760_v8, 0.0  ;;  %v1345_v32 = vld [vmem:[#allocation3 + $0x140] sm:$0xff]  ;;  %v1320_v55 = vld [vmem:[#allocation3 + $0x18] sm:$0xff]  ;;  %v1371_v8 = vld [vmem:[#allocation2 + $0x90] sm:$0xff] }
 0x120   : > { %4939 = vmatpush.bf16.msra.mxu1 %v4846_v63  ;;  %4940 = vmatpush.bf16.msra.mxu2 %v4846_v63  ;;  %1288 = vst [vmem:[#allocation3 + $0x31] sm:$0xff] %v1255_v30  ;;  %v1321_v58 = vld [vmem:[#allocation3 + $0x20] sm:$0xff] }
 0x121   : > { %4941 = vmatpush.bf16.msra.mxu3 %v4846_v63  ;;  %1469 = vmatpush.bf16.msra.mxu0 %v4846_v63  ;;  %1289 = vst [vmem:[#allocation3 + $0x39] sm:$0xff] %v1256_v38  ;;  %v1206_v63 = vmul.f32 %v5603_v45, %v1170_v60  ;;  %v1915_v29 = vld [vmem:[#allocation3 + $0x1a] sm:$0xff] }
 0x122   : > { %1299 = vst [vmem:[#allocation3 + $0xb1] sm:$0xff] %v1266_v26  ;;  %v1923_v22 = vld [vmem:[#allocation3 + $0x7a] sm:$0xff]  ;;  %v1925_v59 = vld [vmem:[#allocation3 + $0x92] sm:$0xff] }
 0x123   : > { %1490 = vmatmul.bf16.vlgmr.msra.gmra.mxu1 %v5722_v27  ;;  %1510 = vmatmul.bf16.vlgmr.msra.gmra.mxu2 %v1390_v28  ;;  %v1189_v28 = vmul.f32 %v5603_v45, %v1153_v9  ;;  %v4863_v9 = vld [vmem:[%s5507_s22 + $0x88] sm:$0xff] }
 0x124   : > { %1760 = vmatpush.bf16.msrb.mxu1 %v4861_v15  ;;  %2058 = vmatpush.bf16.msrb.mxu2 %v4869_v24  ;;  %v1242_v15 = vadd.f32 %v5606_v46, %v1206_v63  ;;  %v1337_v24 = vld [vmem:[#allocation3 + $0xe0] sm:$0xff]  ;;  %v4882_v63 = vld [vmem:[%s5507_s22 + $0x120] sm:$0xff] }
 0x125   : > { %2356 = vmatpush.bf16.msrb.mxu3 %v4877_v25  ;;  %2654 = vmatpush.bf16.msrb.mxu0 %v4885_v37  ;;  %v1265_v25 = vmax.f32 %v5757_v7, 0.0  ;;  %v1391_v50 = vpack.c.bf16 %v1337_v24, %v1336_v20  ;;  %v1339_v20 = vld [vmem:[#allocation3 + $0xf8] sm:$0xff]  ;;  %v1346_v24 = vld [vmem:[#allocation3 + $0x150] sm:$0xff] }
 0x126   : > { %1530 = vmatmul.bf16.vlgmr.msra.gmra.mxu3 %v1394_v31  ;;  %1470 = vmatmul.bf16.vlgmr.msra.gmra.mxu0 %v1382_v43  ;;  %v1344_v31 = vld [vmem:[#allocation3 + $0x138] sm:$0xff]  ;;  %v1274_v37 = vmax.f32 %v1242_v15, 0.0  ;;  %v4865_v43 = vld [vmem:[%s5507_s22 + $0x98] sm:$0xff]  ;;  %v4862_v15 = vld [vmem:[%s5507_s22 + $0x80] sm:$0xff] }
 0x127   : > { %1298 = vst [vmem:[#allocation3 + $0xa9] sm:$0xff] %v1265_v25  ;;  %v1395_v54 = vpack.c.bf16 %v1345_v32, %v1344_v31  ;;  %v4879_v31 = vld [vmem:[%s5507_s22 + $0x108] sm:$0xff] }
 0x128   : > { %1761 = vmatpush.bf16.msrb.mxu1 %v4860_v36  ;;  %2059 = vmatpush.bf16.msrb.mxu2 %v4868_v40  ;;  %v1273_v36 = vmax.f32 %v1241_v14, 0.0  ;;  %v1249_v40 = vadd.f32 %v5606_v46, %v1213_v16  ;;  %1307 = vst [vmem:[#allocation3 + $0x111] sm:$0xff] %v1274_v37  ;;  %v4854_v14 = vld [vmem:[%s5507_s22 + $0x40] sm:$0xff]  ;;  %v4880_v16 = vld [vmem:[%s5507_s22 + $0x110] sm:$0xff] }
 0x129   : > { %2357 = vmatpush.bf16.msrb.mxu3 %v4876_v42  ;;  %2655 = vmatpush.bf16.msrb.mxu0 %v4884_v47  ;;  %v1250_v42 = vadd.f32 %v5606_v46, %v1214_v17  ;;  %v1190_v47 = vmul.f32 %v5603_v45, %v1154_v18  ;;  %v1330_v17 = vld [vmem:[#allocation3 + $0x90] sm:$0xff]  ;;  %v1331_v18 = vld [vmem:[#allocation3 + $0x98] sm:$0xff] }
 0x12a   : > { %v1281_v51 = vmax.f32 %v1249_v40, 0.0  ;;  %1306 = vst [vmem:[#allocation3 + $0x109] sm:$0xff] %v1273_v36  ;;  %v5811_v32 = vpack.c.bf16 %v1331_v18, %v1330_v17  ;;  %v1322_v37 = vld [vmem:[#allocation3 + $0x30] sm:$0xff]  ;;  %v1323_v40 = vld [vmem:[#allocation3 + $0x38] sm:$0xff] }
 0x12b   : > { %v5787_v60 = vadd.f32 %v5606_v46, %v1190_v47  ;;  %v4893_v47 = vld [vmem:[%s5507_s22 + $0x178] sm:$0xff] }
 0x12c   : > { %1762 = vmatpush.bf16.msrb.mxu1 %v4859_v44  ;;  %2060 = vmatpush.bf16.msrb.mxu2 %v4867_v48  ;;  %v4873_v44 = vld [vmem:[%s5507_s22 + $0xd8] sm:$0xff]  ;;  %v5780_v48 = vadd.f32 %v5606_v46, %v1189_v28  ;;  %1314 = vst [vmem:[#allocation3 + $0x169] sm:$0xff] %v1281_v51  ;;  %v5795_v46 = vpack.c.bf16 %v1321_v58, %v1320_v55  ;;  %v1347_v28 = vld [vmem:[#allocation3 + $0x158] sm:$0xff] }
 0x12d   : > { %2358 = vmatpush.bf16.msrb.mxu3 %v4875_v49  ;;  %2656 = vmatpush.bf16.msrb.mxu0 %v4883_v61  ;;  %v5782_v49 = vpack.c.bf16 %v1329_v19, %v1328_v12  ;;  %v4856_v61 = vld [vmem:[%s5507_s22 + $0x50] sm:$0xff]  ;;  %v1258_v0 = vmax.f32 %v5787_v60, 0.0  ;;  %v4871_v12 = vld [vmem:[%s5507_s22 + $0xc8] sm:$0xff]  ;;  %v1338_v19 = vld [vmem:[#allocation3 + $0xf0] sm:$0xff]  ;;  %v1396_v36 = vpack.c.bf16 %v1347_v28, %v1346_v24 }
 0x12e   : > { %v1257_v45 = vmax.f32 %v5780_v48, 0.0  ;;  %v4909_v51 = vld [vmem:[%s5507_s22 + $0x1f8] sm:$0xff]  ;;  %v1333_v55 = vld [vmem:[#allocation3 + $0xb0] sm:$0xff]  ;;  %v4908_v24 = vld [vmem:[%s5507_s22 + $0x1f0] sm:$0xff] }
 0x12f   : > { %1291 = vst [vmem:[#allocation3 + $0x51] sm:$0xff] %v1258_v0  ;;  %v1918_v48 = vld [vmem:[#allocation3 + $0x3a] sm:$0xff] }
 0x130   : > { %1763 = vmatpush.bf16.msrb.mxu1 %v4858_v53  ;;  %2061 = vmatpush.bf16.msrb.mxu2 %v4866_v5  ;;  %v1282_v53 = vmax.f32 %v1250_v42, 0.0  ;;  %1290 = vst [vmem:[#allocation3 + $0x49] sm:$0xff] %v1257_v45  ;;  %v4855_v5 = vld [vmem:[%s5507_s22 + $0x48] sm:$0xff]  ;;  %v4870_v42 = vld [vmem:[%s5507_s22 + $0xc0] sm:$0xff]  ;;  %v1682_v23 = vpack.c.bf16 %v1258_v0, %v1257_v45  ;;  %v4916_v60 = vld [vmem:[%s5507_s22 + $0x230] sm:$0xff] }
 0x131   : > { %2359 = vmatpush.bf16.msrb.mxu3 %v4874_v6  ;;  %2657 = vmatpush.bf16.msrb.mxu0 %v4882_v63  ;;  %v4881_v6 = vld [vmem:[%s5507_s22 + $0x118] sm:$0xff]  ;;  %v4891_v45 = vld [vmem:[%s5507_s22 + $0x168] sm:$0xff] }
 0x132   : > { %1315 = vst [vmem:[#allocation3 + $0x171] sm:$0xff] %v1282_v53  ;;  %v1680_v53 = vpack.c.bf16 %v1254_v41, %v1253_v39  ;;  %v1340_v58 = vld [vmem:[#allocation3 + $0x108] sm:$0xff]  ;;  %v1681_v41 = vpack.c.bf16 %v1256_v38, %v1255_v30  ;;  %v4899_v0 = vld [vmem:[%s5507_s22 + $0x1a8] sm:$0xff] }
 0x133   : > { %1495 = vmatmul.bf16.gmra.mxu1 %v5782_v49  ;;  %1515 = vmatmul.bf16.gmra.mxu2 %v1391_v50  ;;  %v4901_v50 = vld [vmem:[%s5507_s22 + $0x1b8] sm:$0xff] }
 0x134   : > { %1764 = vmatpush.bf16.msrb.mxu1 %v4857_v33  ;;  %2062 = vmatpush.bf16.msrb.mxu2 %v4865_v43  ;;  %v1392_v33 = vpack.c.bf16 %v1339_v20, %v1338_v19  ;;  %v4878_v43 = vld [vmem:[%s5507_s22 + $0x100] sm:$0xff]  ;;  %v4917_v39 = vld [vmem:[%s5507_s22 + $0x238] sm:$0xff]  ;;  %v4892_v19 = vld [vmem:[%s5507_s22 + $0x170] sm:$0xff] }
 0x135   : > { %2360 = vmatpush.bf16.msrb.mxu3 %v4873_v44  ;;  %2658 = vmatpush.bf16.msrb.mxu0 %v4881_v6  ;;  %v1384_v44 = vpack.c.bf16 %v1323_v40, %v1322_v37  ;;  %v4900_v20 = vld [vmem:[%s5507_s22 + $0x1b0] sm:$0xff]  ;;  %v4907_v37 = vld [vmem:[%s5507_s22 + $0x1e8] sm:$0xff]  ;;  %v1683_v40 = vpack.c.bf16 %v1260_v4, %v1259_v3 }
 0x136   : > { %1535 = vmatmul.bf16.gmra.mxu3 %v1395_v54  ;;  %1475 = vmatmul.bf16.gmra.mxu0 %v5795_v46  ;;  %v1332_v54 = vld [vmem:[#allocation3 + $0xa8] sm:$0xff]  ;;  %v1366_v3 = vld [vmem:[#allocation2 + $0x38] sm:$0xff] }
 0x137   : > { %v1324_v34 = vld [vmem:[#allocation3 + $0x48] sm:$0xff] }
 0x138   : > { %1765 = vmatpush.bf16.msrb.mxu1 %v4856_v61  ;;  %2063 = vmatpush.bf16.msrb.mxu2 %v4864_v62  ;;  %v1341_v61 = vld [vmem:[#allocation3 + $0x110] sm:$0xff]  ;;  %v1348_v62 = vld [vmem:[#allocation3 + $0x168] sm:$0xff] }
 0x139   : > { %2361 = vmatpush.bf16.msrb.mxu3 %v4872_v2  ;;  %2659 = vmatpush.bf16.msrb.mxu0 %v4880_v16  ;;  %v1349_v63 = vld [vmem:[#allocation3 + $0x170] sm:$0xff]  ;;  %v5823_v2 = vpack.c.bf16 %v1333_v55, %v1332_v54  ;;  %v1916_v30 = vld [vmem:[#allocation3 + $0x22] sm:$0xff] }
 0x13a   : > { %v1397_v6 = vpack.c.bf16 %v1349_v63, %v1348_v62  ;;  %v1914_v16 = vld [vmem:[#allocation3 + $0xa] sm:$0xff]  ;;  %v1978_v38 = vpack.c.bf16 %v1916_v30, %v1915_v29 }
 0x13c   : > { %1766 = vmatpush.bf16.msrb.mxu1 %v4855_v5  ;;  %2064 = vmatpush.bf16.msrb.mxu2 %v4863_v9  ;;  %v1393_v5 = vpack.c.bf16 %v1341_v61, %v1340_v58  ;;  %v1325_v9 = vld [vmem:[#allocation3 + $0x50] sm:$0xff] }
 0x13d   : > { %2362 = vmatpush.bf16.msrb.mxu3 %v4871_v12  ;;  %2660 = vmatpush.bf16.msrb.mxu0 %v4879_v31  ;;  %v1385_v35 = vpack.c.bf16 %v1325_v9, %v1324_v34  ;;  %v1615_v12 = vld [vmem:[#allocation3 + $0x1] sm:$0xff]  ;;  %v1919_v31 = vld [vmem:[#allocation3 + $0x4a] sm:$0xff] }
 0x13e   : > { %v1375_v61 = vld [vmem:[#allocation2 + $0xd0] sm:$0xff] }
 0x140   : > { %1767 = vmatpush.bf16.msrb.mxu1 %v4854_v14  ;;  %2065 = vmatpush.bf16.msrb.mxu2 %v4862_v15  ;;  %v1616_v14 = vld [vmem:[#allocation3 + $0x9] sm:$0xff] }
 0x141   : > { %2363 = vmatpush.bf16.msrb.mxu3 %v4870_v42  ;;  %2661 = vmatpush.bf16.msrb.mxu0 %v4878_v43  ;;  %v1913_v15 = vld [vmem:[#allocation3 + $0x2] sm:$0xff]  ;;  %v1679_v17 = vpack.c.bf16 %v1616_v14, %v1615_v12  ;;  %v1922_v43 = vld [vmem:[#allocation3 + $0x6a] sm:$0xff] }
 0x142   : > { %v1977_v18 = vpack.c.bf16 %v1914_v16, %v1913_v15  ;;  %v1921_v42 = vld [vmem:[#allocation3 + $0x62] sm:$0xff]  ;;  %v1376_v14 = vld [vmem:[#allocation2 + $0x10] sm:$0xff] }
 0x143   : > { %1500 = vmatmul.bf16.gmra.mxu1 %v5811_v32  ;;  %1520 = vmatmul.bf16.gmra.mxu2 %v1392_v33  ;;  %v1920_v33 = vld [vmem:[#allocation3 + $0x52] sm:$0xff] }
 0x144   : > { %2952 = vmatpush.bf16.msra.mxu1 %v4893_v47  ;;  %3251 = vmatpush.bf16.msra.mxu2 %v4901_v50  ;;  %v4915_v50 = vld [vmem:[%s5507_s22 + $0x228] sm:$0xff] }
 0x145   : > { %3549 = vmatpush.bf16.msra.mxu3 %v4909_v51  ;;  %3847 = vmatpush.bf16.msra.mxu0 %v4917_v39  ;;  %v1685_v39 = vpack.c.bf16 %v1264_v10, %v1263_v1  ;;  %v1926_v1 = vld [vmem:[#allocation3 + $0x9a] sm:$0xff] }
 0x146   : > { %1540 = vmatmul.bf16.gmra.mxu3 %v1396_v36  ;;  %1480 = vmatmul.bf16.gmra.mxu0 %v1384_v44  ;;  %v1980_v36 = vpack.c.bf16 %v1920_v33, %v1919_v31 }
 0x148   : > { %2953 = vmatpush.bf16.msra.mxu1 %v4892_v19  ;;  %3252 = vmatpush.bf16.msra.mxu2 %v4900_v20 }
 0x149   : > { %3550 = vmatpush.bf16.msra.mxu3 %v4908_v24  ;;  %3848 = vmatpush.bf16.msra.mxu0 %v4916_v60  ;;  %v1370_v60 = vld [vmem:[#allocation2 + $0xe0] sm:$0xff] }
 0x14c   : > { %2954 = vmatpush.bf16.msra.mxu1 %v4891_v45  ;;  %3253 = vmatpush.bf16.msra.mxu2 %v4899_v0  ;;  %v1378_v0 = vld [vmem:[#allocation2 + $0xa0] sm:$0xff] }
 0x14d   : > { %3551 = vmatpush.bf16.msra.mxu3 %v4907_v37  ;;  %3849 = vmatpush.bf16.msra.mxu0 %v4915_v50  ;;  %v4897_v37 = vld [vmem:[%s5507_s22 + $0x198] sm:$0xff] }
 0x150   : > { %2955 = vmatpush.bf16.msra.mxu1 %v4890_v57  ;;  %3254 = vmatpush.bf16.msra.mxu2 %v4898_v13  ;;  %v4905_v13 = vld [vmem:[%s5507_s22 + $0x1d8] sm:$0xff] }
 0x153   : > { %1505 = vmatmul.bf16.gmra.mxu1 %v5823_v2  ;;  %1525 = vmatmul.bf16.gmra.mxu2 %v1393_v5 }
 0x154   : > { %3255 = vmatpush.bf16.msra.mxu2 %v4897_v37 }
 0x156   : > { %1545 = vmatmul.bf16.gmra.mxu3 %v1397_v6  ;;  %1485 = vmatmul.bf16.gmra.mxu0 %v1385_v35 }
 0x163   : > { %1768 = vmatmul.bf16.vlgmr.msrb.gmra.mxu1 %v1679_v17  ;;  %2066 = vmatmul.bf16.vlgmr.msrb.gmra.mxu2 %v1977_v18 }
 0x166   : > { %2364 = vmatmul.bf16.vlgmr.msrb.gmra.mxu3 %v5795_v46  ;;  %2662 = vmatmul.bf16.vlgmr.msrb.gmra.mxu0 %v1680_v53  ;;  %v1917_v46 = vld [vmem:[#allocation3 + $0x32] sm:$0xff] }
 0x167   : > { %v1979_v28 = vpack.c.bf16 %v1918_v48, %v1917_v46  ;;  %v4914_v46 = vld [vmem:[%s5507_s22 + $0x220] sm:$0xff]  ;;  %v1686_v48 = vpack.c.bf16 %v1266_v26, %v1265_v25 }
 0x168   : > { %3850 = vmatpush.bf16.msra.mxu0 %v4914_v46  ;;  %v1927_v25 = vld [vmem:[#allocation3 + $0xaa] sm:$0xff]  ;;  %v1928_v26 = vld [vmem:[#allocation3 + $0xb2] sm:$0xff] }
 0x169   : > { %v1984_v57 = vpack.c.bf16 %v1928_v26, %v1927_v25  ;;  %v4913_v46 = vld [vmem:[%s5507_s22 + $0x218] sm:$0xff] }
 0x16c   : > { %3851 = vmatpush.bf16.msra.mxu0 %v4913_v46 }
 0x173   : > { %1773 = vmatmul.bf16.gmra.mxu1 %v1680_v53  ;;  %2071 = vmatmul.bf16.gmra.mxu2 %v1978_v38 }
 0x176   : > { %2369 = vmatmul.bf16.gmra.mxu3 %v1384_v44  ;;  %2667 = vmatmul.bf16.gmra.mxu0 %v1681_v41  ;;  %v1981_v44 = vpack.c.bf16 %v1922_v43, %v1921_v42  ;;  %v1379_v42 = vld [vmem:[#allocation2 + $0xf8] sm:$0xff]  ;;  %v2225_v43 = vld [vmem:[#allocation3 + $0xc0] sm:$0xff] }
 0x183   : > { %1778 = vmatmul.bf16.gmra.mxu1 %v1681_v41  ;;  %2076 = vmatmul.bf16.gmra.mxu2 %v1979_v28  ;;  %v1368_v41 = vld [vmem:[#allocation2 + $0x40] sm:$0xff]  ;;  %v4889_v28 = vld [vmem:[%s5507_s22 + $0x158] sm:$0xff] }
 0x184   : > { %2956 = vmatpush.bf16.msra.mxu1 %v4889_v28 }
 0x186   : > { %2374 = vmatmul.bf16.gmra.mxu3 %v1385_v35  ;;  %2672 = vmatmul.bf16.gmra.mxu0 %v1682_v23  ;;  %v4906_v35 = vld [vmem:[%s5507_s22 + $0x1e0] sm:$0xff] }
 0x187   : > { %3552 = vmatpush.bf16.msra.mxu3 %v4906_v35  ;;  %v1373_v35 = vld [vmem:[#allocation2 + $0xc0] sm:$0xff] }
 0x18b   : > { %3553 = vmatpush.bf16.msra.mxu3 %v4905_v13  ;;  %v1352_v13 = vld [vmem:[#allocation2 + $0xd8] sm:$0xff] }
 0x193   : > { %1783 = vmatmul.bf16.gmra.mxu1 %v1682_v23  ;;  %2081 = vmatmul.bf16.gmra.mxu2 %v1980_v36  ;;  %v1983_v23 = vpack.c.bf16 %v1926_v1, %v1925_v59 }
 0x196   : > { %2379 = vmatmul.bf16.gmra.mxu3 %v5722_v27  ;;  %2677 = vmatmul.bf16.gmra.mxu0 %v1683_v40  ;;  %v1374_v27 = vld [vmem:[#allocation2 + $0xa8] sm:$0xff] }
 0x1a0   : > { %v5848_v47 = vpop.f32.mrf.mxu1 }
 0x1a3   : > { %1788 = vmatmul.bf16.gmra.mxu1 %v1683_v40  ;;  %2086 = vmatmul.bf16.gmra.mxu2 %v1981_v44  ;;  %v5857_v4 = vpop.f32.mrf.mxu0  ;;  %v2226_v44 = vld [vmem:[#allocation3 + $0xc8] sm:$0xff] }
 0x1a6   : > { %2384 = vmatmul.bf16.gmra.mxu3 %v5782_v49  ;;  %v1511_v51 = vpop.f32.mrf.mxu2  ;;  %2682 = vmatmul.bf16.gmra.mxu0 %v1684_v56  ;;  %v1924_v49 = vld [vmem:[#allocation3 + $0x82] sm:$0xff] }
 0x1a7   : > { %v1567_v53 = vadd.f32 %v1511_v51, %v1366_v3  ;;  %v1982_v5 = vpack.c.bf16 %v1924_v49, %v1923_v22  ;;  %v1372_v22 = vld [vmem:[#allocation2 + $0x70] sm:$0xff] }
 0x1a8   : > { %v5859_v55 = vpop.f32.mrf.mxu1 }
 0x1a9   : > { %v1531_v54 = vpop.f32.mrf.mxu3  ;;  %1599 = vst [vmem:[#allocation2 + $0x38] sm:$0xff] %v1567_v53  ;;  %v2282_v53 = vpack.c.bf16 %v2226_v44, %v2225_v43  ;;  %v1931_v43 = vld [vmem:[#allocation3 + $0xda] sm:$0xff]  ;;  %v1932_v44 = vld [vmem:[#allocation3 + $0xe2] sm:$0xff] }
 0x1aa   : > { %v1575_v11 = vadd.f32 %v1531_v54, %v1374_v27  ;;  %v1631_v54 = vld [vmem:[#allocation3 + $0xc1] sm:$0xff] }
 0x1ab   : > { %v5862_v58 = vpop.f32.mrf.mxu0 }
 0x1ac   : > { %1607 = vst [vmem:[#allocation2 + $0xa8] sm:$0xff] %v1575_v11  ;;  %v1632_v11 = vld [vmem:[#allocation3 + $0xc9] sm:$0xff] }
 0x1ae   : > { %v1513_v62 = vpop.f32.mrf.mxu2 }
 0x1af   : > { %v1568_v63 = vadd.f32 %v1513_v62, %v1367_v21  ;;  %v1687_v21 = vpack.c.bf16 %v1632_v11, %v1631_v54  ;;  %v1986_v54 = vpack.c.bf16 %v1932_v44, %v1931_v43 }
 0x1b0   : > { %v5864_v34 = vpop.f32.mrf.mxu1 }
 0x1b1   : > { %v1533_v6 = vpop.f32.mrf.mxu3  ;;  %1600 = vst [vmem:[#allocation2 + $0x58] sm:$0xff] %v1568_v63 }
 0x1b2   : > { %v1576_v9 = vadd.f32 %v1533_v6, %v1375_v61  ;;  %v1380_v61 = vld [vmem:[#allocation2 + $0x20] sm:$0xff] }
 0x1b3   : > { %1793 = vmatmul.bf16.gmra.mxu1 %v1684_v56  ;;  %2091 = vmatmul.bf16.gmra.mxu2 %v1982_v5  ;;  %v5872_v12 = vpop.f32.mrf.mxu0 }
 0x1b4   : > { %1608 = vst [vmem:[#allocation2 + $0xd0] sm:$0xff] %v1576_v9 }
 0x1b6   : > { %2389 = vmatmul.bf16.gmra.mxu3 %v5811_v32  ;;  %v1516_v15 = vpop.f32.mrf.mxu2  ;;  %2687 = vmatmul.bf16.gmra.mxu0 %v1685_v39  ;;  %v1377_v32 = vld [vmem:[#allocation2 + $0x28] sm:$0xff] }
 0x1b7   : > { %v1569_v16 = vadd.f32 %v1516_v15, %v1368_v41  ;;  %v1930_v41 = vld [vmem:[#allocation3 + $0xca] sm:$0xff]  ;;  %v1381_v15 = vld [vmem:[#allocation2 + $0x98] sm:$0xff] }
 0x1b8   : > { %v5874_v18 = vpop.f32.mrf.mxu1 }
 0x1b9   : > { %v1536_v17 = vpop.f32.mrf.mxu3  ;;  %1601 = vst [vmem:[#allocation2 + $0x40] sm:$0xff] %v1569_v16  ;;  %v2227_v16 = vld [vmem:[#allocation3 + $0xd8] sm:$0xff] }
 0x1ba   : > { %v1577_v19 = vadd.f32 %v1536_v17, %v1376_v14  ;;  %v2228_v17 = vld [vmem:[#allocation3 + $0xe0] sm:$0xff] }
 0x1bb   : > { %v5876_v10 = vpop.f32.mrf.mxu0 }
 0x1bc   : > { %1609 = vst [vmem:[#allocation2 + $0x10] sm:$0xff] %v1577_v19 }
 0x1be   : > { %v1518_v20 = vpop.f32.mrf.mxu2 }
 0x1bf   : > { %v1570_v24 = vadd.f32 %v1518_v20, %v1369_v52 }
 0x1c0   : > { %v5878_v30 = vpop.f32.mrf.mxu1 }
 0x1c1   : > { %v1538_v29 = vpop.f32.mrf.mxu3  ;;  %1602 = vst [vmem:[#allocation2 + $0xc8] sm:$0xff] %v1570_v24 }
 0x1c2   : > { %v1578_v38 = vadd.f32 %v1538_v29, %v1377_v32  ;;  %v1350_v32 = vld [vmem:[#allocation2 + $0xb0] sm:$0xff]  ;;  %v1633_v29 = vld [vmem:[#allocation3 + $0xd9] sm:$0xff] }
 0x1c3   : > { %1798 = vmatmul.bf16.gmra.mxu1 %v1685_v39  ;;  %2096 = vmatmul.bf16.gmra.mxu2 %v1983_v23  ;;  %v5887_v45 = vpop.f32.mrf.mxu0  ;;  %v1929_v39 = vld [vmem:[#allocation3 + $0xc2] sm:$0xff]  ;;  %v2283_v23 = vpack.c.bf16 %v2228_v17, %v2227_v16 }
 0x1c4   : > { %1610 = vst [vmem:[#allocation2 + $0x28] sm:$0xff] %v1578_v38  ;;  %v1985_v59 = vpack.c.bf16 %v1930_v41, %v1929_v39  ;;  %v1634_v38 = vld [vmem:[#allocation3 + $0xe1] sm:$0xff] }
 0x1c5   : > { %v1688_v28 = vpack.c.bf16 %v1634_v38, %v1633_v29  ;;  %v2231_v29 = vld [vmem:[#allocation3 + $0x108] sm:$0xff]  ;;  %v2232_v38 = vld [vmem:[#allocation3 + $0x110] sm:$0xff] }
 0x1c6   : > { %2394 = vmatmul.bf16.gmra.mxu3 %v5823_v2  ;;  %v1521_v31 = vpop.f32.mrf.mxu2  ;;  %2692 = vmatmul.bf16.gmra.mxu0 %v1686_v48 }
 0x1c7   : > { %v1571_v33 = vadd.f32 %v1521_v31, %v1370_v60  ;;  %v4888_v60 = vld [vmem:[%s5507_s22 + $0x150] sm:$0xff] }
 0x1c8   : > { %v5890_v40 = vpop.f32.mrf.mxu1  ;;  %2957 = vmatpush.bf16.msra.mxu1 %v4888_v60 }
 0x1c9   : > { %v1541_v36 = vpop.f32.mrf.mxu3  ;;  %1603 = vst [vmem:[#allocation2 + $0xe0] sm:$0xff] %v1571_v33 }
 0x1ca   : > { %v1579_v7 = vadd.f32 %v1541_v36, %v1378_v0 }
 0x1cb   : > { %v5892_v2 = vpop.f32.mrf.mxu0 }
 0x1cc   : > { %1611 = vst [vmem:[#allocation2 + $0xa0] sm:$0xff] %v1579_v7  ;;  %v4896_v7 = vld [vmem:[%s5507_s22 + $0x190] sm:$0xff] }
 0x1cd   : > { %3256 = vmatpush.bf16.msra.mxu2 %v4896_v7  ;;  %v4912_v7 = vld [vmem:[%s5507_s22 + $0x210] sm:$0xff] }
 0x1ce   : > { %v1523_v50 = vpop.f32.mrf.mxu2  ;;  %3852 = vmatpush.bf16.msra.mxu0 %v4912_v7 }
 0x1cf   : > { %v1572_v56 = vadd.f32 %v1523_v50, %v1371_v8  ;;  %v1351_v8 = vld [vmem:[#allocation2] sm:$0xff] }
 0x1d0   : > { %v5894_v27 = vpop.f32.mrf.mxu1 }
 0x1d1   : > { %v1543_v3 = vpop.f32.mrf.mxu3  ;;  %1604 = vst [vmem:[#allocation2 + $0x90] sm:$0xff] %v1572_v56 }
 0x1d2   : > { %v1580_v51 = vadd.f32 %v1543_v3, %v1379_v42  ;;  %v2230_v3 = vld [vmem:[#allocation3 + $0xf8] sm:$0xff] }
 0x1d3   : > { %1803 = vmatmul.bf16.gmra.mxu1 %v1686_v48  ;;  %2101 = vmatmul.bf16.gmra.mxu2 %v1984_v57  ;;  %v5897_v49 = vpop.f32.mrf.mxu0  ;;  %v1551_v48 = vadd.f32 %v5857_v4, %v1350_v32  ;;  %v1552_v4 = vadd.f32 %v5862_v58, %v1351_v8  ;;  %v2229_v57 = vld [vmem:[#allocation3 + $0xf0] sm:$0xff]  ;;  %v4904_v58 = vld [vmem:[%s5507_s22 + $0x1d0] sm:$0xff] }
 0x1d4   : > { %1612 = vst [vmem:[#allocation2 + $0xf8] sm:$0xff] %v1580_v51  ;;  %3554 = vmatpush.bf16.msra.mxu3 %v4904_v58 }
 0x1d6   : > { %2399 = vmatmul.bf16.gmra.mxu3 %v2282_v53  ;;  %v1526_v62 = vpop.f32.mrf.mxu2  ;;  %2697 = vmatmul.bf16.gmra.mxu0 %v1687_v21 }
 0x1d7   : > { %v1573_v63 = vadd.f32 %v1526_v62, %v1372_v22  ;;  %v2284_v22 = vpack.c.bf16 %v2230_v3, %v2229_v57  ;;  %v1636_v62 = vld [vmem:[#allocation3 + $0xf9] sm:$0xff]  ;;  %v1355_v3 = vld [vmem:[#allocation2 + $0x68] sm:$0xff] }
 0x1d8   : > { %v5899_v6 = vpop.f32.mrf.mxu1  ;;  %v4895_v57 = vld [vmem:[%s5507_s22 + $0x188] sm:$0xff] }
 0x1d9   : > { %v1546_v5 = vpop.f32.mrf.mxu3  ;;  %1605 = vst [vmem:[#allocation2 + $0x70] sm:$0xff] %v1573_v63  ;;  %3257 = vmatpush.bf16.msra.mxu2 %v4895_v57  ;;  %v4886_v57 = vld [vmem:[%s5507_s22 + $0x140] sm:$0xff] }
 0x1da   : > { %v1581_v9 = vadd.f32 %v1546_v5, %v1380_v61  ;;  %v1635_v61 = vld [vmem:[#allocation3 + $0xf1] sm:$0xff]  ;;  %v1553_v5 = vadd.f32 %v5872_v12, %v1352_v13 }
 0x1db   : > { %v5901_v14 = vpop.f32.mrf.mxu0  ;;  %v1933_v12 = vld [vmem:[#allocation3 + $0xf2] sm:$0xff] }
 0x1dc   : > { %1613 = vst [vmem:[#allocation2 + $0x20] sm:$0xff] %v1581_v9  ;;  %v1936_v13 = vld [vmem:[#allocation3 + $0x112] sm:$0xff] }
 0x1de   : > { %v1528_v19 = vpop.f32.mrf.mxu2 }
 0x1df   : > { %v1574_v52 = vadd.f32 %v1528_v19, %v1373_v35  ;;  %v1689_v35 = vpack.c.bf16 %v1636_v62, %v1635_v61  ;;  %v1353_v19 = vld [vmem:[#allocation2 + $0x18] sm:$0xff]  ;;  %v2233_v61 = vld [vmem:[#allocation3 + $0x120] sm:$0xff]  ;;  %v2234_v62 = vld [vmem:[#allocation3 + $0x128] sm:$0xff] }
 0x1e0   : > { %v1769_v20 = vpop.f32.mrf.mxu1 }
 0x1e1   : > { %v1548_v1 = vpop.f32.mrf.mxu3  ;;  %1606 = vst [vmem:[#allocation2 + $0xc0] sm:$0xff] %v1574_v52  ;;  %v1849_v31 = vadd.f32 %v1769_v20, %v1551_v48  ;;  %v1934_v20 = vld [vmem:[#allocation3 + $0xfa] sm:$0xff] }
 0x1e2   : > { %v1582_v24 = vadd.f32 %v1548_v1, %v1381_v15  ;;  %v1554_v1 = vadd.f32 %v5876_v10, %v1353_v19 }
 0x1e3   : > { %1808 = vmatmul.bf16.gmra.mxu1 %v1687_v21  ;;  %2106 = vmatmul.bf16.gmra.mxu2 %v1985_v59  ;;  %v2663_v0 = vpop.f32.mrf.mxu0 }
 0x1e4   : > { %1614 = vst [vmem:[#allocation2 + $0x98] sm:$0xff] %v1582_v24 }
 0x1e6   : > { %2404 = vmatmul.bf16.gmra.mxu3 %v2283_v23  ;;  %v2067_v33 = vpop.f32.mrf.mxu2  ;;  %2702 = vmatmul.bf16.gmra.mxu0 %v1688_v28 }
 0x1e7   : > { %v2147_v36 = vadd.f32 %v2067_v33, %v1849_v31  ;;  %v2285_v33 = vpack.c.bf16 %v2232_v38, %v2231_v29 }
 0x1e8   : > { %v1771_v25 = vpop.f32.mrf.mxu1 }
 0x1e9   : > { %v2365_v37 = vpop.f32.mrf.mxu3  ;;  %v1850_v56 = vadd.f32 %v1771_v25, %v1552_v4  ;;  %v4887_v4 = vld [vmem:[%s5507_s22 + $0x148] sm:$0xff] }
 0x1ea   : > { %v2445_v26 = vadd.f32 %v2365_v37, %v2147_v36  ;;  %v1637_v36 = vld [vmem:[#allocation3 + $0x109] sm:$0xff]  ;;  %v1638_v37 = vld [vmem:[#allocation3 + $0x111] sm:$0xff]  ;;  %2958 = vmatpush.bf16.msra.mxu1 %v4887_v4  ;;  %v1641_v4 = vld [vmem:[#allocation3 + $0x139] sm:$0xff] }
 0x1eb   : > { %v2665_v50 = vpop.f32.mrf.mxu0 }
 0x1ec   : > { %v2743_v42 = vadd.f32 %v2663_v0, %v2445_v26  ;;  %v1354_v0 = vld [vmem:[#allocation2 + $0x50] sm:$0xff]  ;;  %v1690_v26 = vpack.c.bf16 %v1638_v37, %v1637_v36 }
 0x1ed   : > { %v1555_v8 = vadd.f32 %v5887_v45, %v1354_v0 }
 0x1ee   : > { %2775 = vst [vmem:[#allocation2 + $0xb0] sm:$0xff] %v2743_v42  ;;  %v2069_v51 = vpop.f32.mrf.mxu2  ;;  %2959 = vmatpush.bf16.msra.mxu1 %v4886_v57 }
 0x1ef   : > { %v2148_v53 = vadd.f32 %v2069_v51, %v1850_v56 }
 0x1f0   : > { %v1774_v21 = vpop.f32.mrf.mxu1 }
 0x1f1   : > { %v2367_v11 = vpop.f32.mrf.mxu3  ;;  %v1851_v41 = vadd.f32 %v1774_v21, %v1553_v5 }
 0x1f2   : > { %v2446_v63 = vadd.f32 %v2367_v11, %v2148_v53  ;;  %v1556_v53 = vadd.f32 %v5892_v2, %v1355_v3  ;;  %v1935_v11 = vld [vmem:[#allocation3 + $0x10a] sm:$0xff]  ;;  %v4903_v2 = vld [vmem:[%s5507_s22 + $0x1c8] sm:$0xff] }
 0x1f3   : > { %1813 = vmatmul.bf16.gmra.mxu1 %v1688_v28  ;;  %2111 = vmatmul.bf16.gmra.mxu2 %v1986_v54  ;;  %v2668_v39 = vpop.f32.mrf.mxu0  ;;  %v1987_v28 = vpack.c.bf16 %v1934_v20, %v1933_v12  ;;  %v1988_v5 = vpack.c.bf16 %v1936_v13, %v1935_v11 }
 0x1f4   : > { %v2744_v9 = vadd.f32 %v2665_v50, %v2446_v63  ;;  %3555 = vmatpush.bf16.msra.mxu3 %v4903_v2  ;;  %v1940_v2 = vld [vmem:[#allocation3 + $0x142] sm:$0xff] }
 0x1f6   : > { %2409 = vmatmul.bf16.gmra.mxu3 %v2284_v22  ;;  %2776 = vst [vmem:[#allocation2] sm:$0xff] %v2744_v9  ;;  %v2072_v15 = vpop.f32.mrf.mxu2  ;;  %2707 = vmatmul.bf16.gmra.mxu0 %v1689_v35 }
 0x1f7   : > { %v2149_v16 = vadd.f32 %v2072_v15, %v1851_v41  ;;  %v2286_v41 = vpack.c.bf16 %v2234_v62, %v2233_v61  ;;  %v1639_v15 = vld [vmem:[#allocation3 + $0x121] sm:$0xff]  ;;  %v4894_v61 = vld [vmem:[%s5507_s22 + $0x180] sm:$0xff]  ;;  %v5037_v62 = vld [vmem:[%s5503_s27] ss:$0 sm:$0xff] }
 0x1f8   : > { %v1776_v52 = vpop.f32.mrf.mxu1  ;;  %3258 = vmatpush.bf16.msra.mxu2 %v4894_v61 }
 0x1f9   : > { %v2370_v17 = vpop.f32.mrf.mxu3  ;;  %v1852_v23 = vadd.f32 %v1776_v52, %v1554_v1 }
 0x1fa   : > { %v2447_v59 = vadd.f32 %v2370_v17, %v2149_v16  ;;  %v1640_v16 = vld [vmem:[#allocation3 + $0x129] sm:$0xff] }
 0x1fb   : > { %v2670_v24 = vpop.f32.mrf.mxu0 }
 0x1fc   : > { %v2745_v32 = vadd.f32 %v2668_v39, %v2447_v59  ;;  %v1691_v59 = vpack.c.bf16 %v1640_v16, %v1639_v15 }
 0x1fe   : > { %2777 = vst [vmem:[#allocation2 + $0xd8] sm:$0xff] %v2745_v32  ;;  %v2074_v46 = vpop.f32.mrf.mxu2 }
 0x1ff   : > { %v2150_v48 = vadd.f32 %v2074_v46, %v1852_v23  ;;  %v1357_v23 = vld [vmem:[#allocation2 + $0x48] sm:$0xff] }
 0x200   : > { %v1779_v31 = vpop.f32.mrf.mxu1  ;;  %v1558_v46 = vadd.f32 %v5901_v14, %v1357_v23  ;;  %v1642_v14 = vld [vmem:[#allocation3 + $0x141] sm:$0xff] }
 0x201   : > { %v2372_v60 = vpop.f32.mrf.mxu3  ;;  %v1853_v43 = vadd.f32 %v1779_v31, %v1555_v8  ;;  %v2235_v31 = vld [vmem:[#allocation3 + $0x138] sm:$0xff]  ;;  %v1358_v8 = vld [vmem:[#allocation2 + $0x80] sm:$0xff] }
 0x202   : > { %v2448_v10 = vadd.f32 %v2372_v60, %v2150_v48 }
 0x203   : > { %1818 = vmatmul.bf16.gmra.mxu1 %v1689_v35  ;;  %2116 = vmatmul.bf16.gmra.mxu2 %v1987_v28  ;;  %v2673_v42 = vpop.f32.mrf.mxu0  ;;  %v1356_v35 = vld [vmem:[#allocation2 + $0x30] sm:$0xff] }
 0x204   : > { %v2746_v25 = vadd.f32 %v2670_v24, %v2448_v10  ;;  %v1557_v19 = vadd.f32 %v5897_v49, %v1356_v35  ;;  %v1937_v49 = vld [vmem:[#allocation3 + $0x122] sm:$0xff]  ;;  %v1938_v28 = vld [vmem:[#allocation3 + $0x12a] sm:$0xff] }
 0x205   : > { %v1989_v10 = vpack.c.bf16 %v1938_v28, %v1937_v49  ;;  %v4902_v49 = vld [vmem:[%s5507_s22 + $0x1c0] sm:$0xff] }
 0x206   : > { %2414 = vmatmul.bf16.gmra.mxu3 %v2285_v33  ;;  %2778 = vst [vmem:[#allocation2 + $0x18] sm:$0xff] %v2746_v25  ;;  %v2077_v44 = vpop.f32.mrf.mxu2  ;;  %2712 = vmatmul.bf16.gmra.mxu0 %v1690_v26  ;;  %v2236_v33 = vld [vmem:[#allocation3 + $0x140] sm:$0xff] }
 0x207   : > { %v2151_v50 = vadd.f32 %v2077_v44, %v1853_v43  ;;  %v4911_v43 = vld [vmem:[%s5507_s22 + $0x208] sm:$0xff]  ;;  %v1559_v44 = vadd.f32 %v5848_v47, %v1358_v8  ;;  %3556 = vmatpush.bf16.msra.mxu3 %v4902_v49 }
 0x208   : > { %v1781_v51 = vpop.f32.mrf.mxu1  ;;  %3853 = vmatpush.bf16.msra.mxu0 %v4911_v43 }
 0x209   : > { %v2375_v56 = vpop.f32.mrf.mxu3  ;;  %v1854_v22 = vadd.f32 %v1781_v51, %v1556_v53  ;;  %v1179_v51 = vld [vmem:[%s5505_s26 + $0xf0] sm:$0xff]  ;;  %v1180_v53 = vld [vmem:[%s5505_s26 + $0xf8] sm:$0xff] }
 0x20a   : > { %v2449_v45 = vadd.f32 %v2375_v56, %v2151_v50  ;;  %v1692_v56 = vpack.c.bf16 %v1642_v14, %v1641_v4  ;;  %v1942_v14 = vld [vmem:[#allocation3 + $0x15a] sm:$0xff] }
 0x20b   : > { %v2675_v21 = vpop.f32.mrf.mxu0 }
 0x20c   : > { %v2747_v54 = vadd.f32 %v2673_v42, %v2449_v45 }
 0x20e   : > { %2779 = vst [vmem:[#allocation2 + $0x50] sm:$0xff] %v2747_v54  ;;  %v2079_v63 = vpop.f32.mrf.mxu2  ;;  %v5036_v54 = vld [vmem:[%s5498_s6] ss:$0 sm:$0xff] }
 0x20f   : > { %v2152_v58 = vadd.f32 %v2079_v63, %v1854_v22  ;;  %v1215_v11 = vmul.f32 %v5036_v54, %v1179_v51 }
 0x210   : > { %v1784_v39 = vpop.f32.mrf.mxu1 }
 0x211   : > { %v2377_v9 = vpop.f32.mrf.mxu3  ;;  %v1855_v32 = vadd.f32 %v1784_v39, %v1557_v19  ;;  %v5927_v63 = vadd.f32 %v5037_v62, %v1215_v11  ;;  %v1645_v11 = vld [vmem:[#allocation3 + $0x169] sm:$0xff] }
 0x212   : > { %v2450_v17 = vadd.f32 %v2377_v9, %v2152_v58  ;;  %v1359_v58 = vld [vmem:[#allocation2 + $0x88] sm:$0xff] }
 0x213   : > { %1823 = vmatmul.bf16.gmra.mxu1 %v1690_v26  ;;  %2121 = vmatmul.bf16.gmra.mxu2 %v1988_v5  ;;  %v2678_v1 = vpop.f32.mrf.mxu0  ;;  %v2287_v26 = vpack.c.bf16 %v2236_v33, %v2235_v31  ;;  %v1283_v39 = vmax.f32 %v5927_v63, 0.0  ;;  %v1560_v15 = vadd.f32 %v5859_v55, %v1359_v58  ;;  %v1360_v55 = vld [vmem:[#allocation2 + $0xe8] sm:$0xff]  ;;  %v3106_v63 = vld [vmem:[#allocation3 + $0x30] sm:$0xff] }
 0x214   : > { %v2748_v52 = vadd.f32 %v2675_v21, %v2450_v17  ;;  %v1216_v21 = vmul.f32 %v5036_v54, %v1180_v53  ;;  %v1939_v17 = vld [vmem:[#allocation3 + $0x13a] sm:$0xff]  ;;  %v1561_v28 = vadd.f32 %v5864_v34, %v1360_v55  ;;  %v1941_v34 = vld [vmem:[#allocation3 + $0x152] sm:$0xff] }
 0x215   : > { %1316 = vst [vmem:[#allocation3 + $0x181] sm:$0xff] %v1283_v39 }
 0x216   : > { %2419 = vmatmul.bf16.gmra.mxu3 %v2286_v41  ;;  %2780 = vst [vmem:[#allocation2 + $0x68] sm:$0xff] %v2748_v52  ;;  %v2082_v12 = vpop.f32.mrf.mxu2  ;;  %2717 = vmatmul.bf16.gmra.mxu0 %v1691_v59  ;;  %v5929_v9 = vadd.f32 %v5037_v62, %v1216_v21 }
 0x217   : > { %v2153_v20 = vadd.f32 %v2082_v12, %v1855_v32 }
 0x218   : > { %v1786_v29 = vpop.f32.mrf.mxu1  ;;  %v1284_v41 = vmax.f32 %v5929_v9, 0.0 }
 0x219   : > { %v2380_v24 = vpop.f32.mrf.mxu3  ;;  %v1856_v0 = vadd.f32 %v1786_v29, %v1558_v46  ;;  %v1644_v46 = vld [vmem:[#allocation3 + $0x159] sm:$0xff] }
 0x21a   : > { %v2451_v38 = vadd.f32 %v2380_v24, %v2153_v20  ;;  %1317 = vst [vmem:[#allocation3 + $0x189] sm:$0xff] %v1284_v41  ;;  %v1990_v20 = vpack.c.bf16 %v1940_v2, %v1939_v17 }
 0x21b   : > { %v2680_v60 = vpop.f32.mrf.mxu0 }
 0x21c   : > { %v2749_v48 = vadd.f32 %v2678_v1, %v2451_v38  ;;  %v2238_v1 = vld [vmem:[#allocation3 + $0x158] sm:$0xff] }
 0x21d   : > { %v1643_v38 = vld [vmem:[#allocation3 + $0x151] sm:$0xff] }
 0x21e   : > { %2781 = vst [vmem:[#allocation2 + $0x30] sm:$0xff] %v2749_v48  ;;  %v2084_v36 = vpop.f32.mrf.mxu2 }
 0x21f   : > { %v2154_v37 = vadd.f32 %v2084_v36, %v1856_v0  ;;  %v1693_v0 = vpack.c.bf16 %v1644_v46, %v1643_v38  ;;  %v1364_v38 = vld [vmem:[#allocation2 + $0x8] sm:$0xff] }
 0x220   : > { %v1789_v25 = vpop.f32.mrf.mxu1 }
 0x221   : > { %v2382_v7 = vpop.f32.mrf.mxu3  ;;  %v1857_v45 = vadd.f32 %v1789_v25, %v1559_v44  ;;  %v2239_v44 = vld [vmem:[#allocation3 + $0x168] sm:$0xff] }
 0x222   : > { %v2452_v42 = vadd.f32 %v2382_v7, %v2154_v37  ;;  %v1361_v7 = vld [vmem:[#allocation2 + $0xb8] sm:$0xff] }
 0x223   : > { %1828 = vmatmul.bf16.gmra.mxu1 %v1691_v59  ;;  %2126 = vmatmul.bf16.gmra.mxu2 %v1989_v10  ;;  %v2683_v3 = vpop.f32.mrf.mxu0  ;;  %v2237_v59 = vld [vmem:[#allocation3 + $0x150] sm:$0xff] }
 0x224   : > { %v2750_v50 = vadd.f32 %v2680_v60, %v2452_v42  ;;  %v2288_v29 = vpack.c.bf16 %v2238_v1, %v2237_v59  ;;  %v1944_v59 = vld [vmem:[#allocation3 + $0x172] sm:$0xff] }
 0x226   : > { %2424 = vmatmul.bf16.gmra.mxu3 %v2287_v26  ;;  %2782 = vst [vmem:[#allocation2 + $0x48] sm:$0xff] %v2750_v50  ;;  %v2087_v13 = vpop.f32.mrf.mxu2  ;;  %2722 = vmatmul.bf16.gmra.mxu0 %v1692_v56  ;;  %v1562_v26 = vadd.f32 %v5874_v18, %v1361_v7  ;;  %v2240_v50 = vld [vmem:[#allocation3 + $0x170] sm:$0xff] }
 0x227   : > { %v2155_v47 = vadd.f32 %v2087_v13, %v1857_v45  ;;  %v1362_v45 = vld [vmem:[#allocation2 + $0x60] sm:$0xff]  ;;  %v2289_v54 = vpack.c.bf16 %v2240_v50, %v2239_v44  ;;  %v1646_v13 = vld [vmem:[#allocation3 + $0x171] sm:$0xff] }
 0x228   : > { %v1791_v5 = vpop.f32.mrf.mxu1  ;;  %v4910_v18 = vld [vmem:[%s5507_s22 + $0x200] sm:$0xff]  ;;  %v1694_v61 = vpack.c.bf16 %v1646_v13, %v1645_v11  ;;  %v1663_v11 = vld [vmem:[#allocation2 + $0x38] sm:$0xff] }
 0x229   : > { %v2385_v22 = vpop.f32.mrf.mxu3  ;;  %v1858_v52 = vadd.f32 %v1791_v5, %v1560_v15  ;;  %3854 = vmatpush.bf16.msra.mxu0 %v4910_v18 }
 0x22a   : > { %v2453_v35 = vadd.f32 %v2385_v22, %v2155_v47  ;;  %v1563_v47 = vadd.f32 %v5878_v30, %v1362_v45  ;;  %v1943_v30 = vld [vmem:[#allocation3 + $0x16a] sm:$0xff]  ;;  %v2810_v45 = vld [vmem:[#allocation3 + $0x3a] sm:$0xff] }
 0x22b   : > { %v2685_v19 = vpop.f32.mrf.mxu0 }
 0x22c   : > { %v2751_v16 = vadd.f32 %v2683_v3, %v2453_v35  ;;  %v1991_v3 = vpack.c.bf16 %v1942_v14, %v1941_v34  ;;  %v3107_v34 = vld [vmem:[#allocation3 + $0x38] sm:$0xff] }
 0x22d   : > { %v3405_v14 = vld [vmem:[#allocation3 + $0x39] sm:$0xff]  ;;  %v3170_v50 = vpack.c.bf16 %v3107_v34, %v3106_v63 }
 0x22e   : > { %2783 = vst [vmem:[#allocation2 + $0x80] sm:$0xff] %v2751_v16  ;;  %v2089_v32 = vpop.f32.mrf.mxu2  ;;  %v1363_v16 = vld [vmem:[#allocation2 + $0xf0] sm:$0xff] }
 0x22f   : > { %v2156_v12 = vadd.f32 %v2089_v32, %v1858_v52 }
 0x230   : > { %v1794_v23 = vpop.f32.mrf.mxu1 }
 0x231   : > { %v2387_v24 = vpop.f32.mrf.mxu3  ;;  %v1859_v33 = vadd.f32 %v1794_v23, %v1561_v28  ;;  %v1992_v23 = vpack.c.bf16 %v1944_v59, %v1943_v30  ;;  %v1565_v28 = vadd.f32 %v5894_v27, %v1364_v38  ;;  %v1665_v38 = vld [vmem:[#allocation2 + $0x40] sm:$0xff] }
 0x232   : > { %v2454_v48 = vadd.f32 %v2387_v24, %v2156_v12  ;;  %v2241_v12 = vld [vmem:[#allocation3 + $0x180] sm:$0xff] }
 0x233   : > { %1833 = vmatmul.bf16.gmra.mxu1 %v1692_v56  ;;  %2131 = vmatmul.bf16.gmra.mxu2 %v1990_v20  ;;  %v2688_v31 = vpop.f32.mrf.mxu0  ;;  %v2242_v20 = vld [vmem:[#allocation3 + $0x188] sm:$0xff] }
 0x234   : > { %v2752_v60 = vadd.f32 %v2685_v19, %v2454_v48  ;;  %v1564_v19 = vadd.f32 %v5890_v40, %v1363_v16  ;;  %v2290_v48 = vpack.c.bf16 %v2242_v20, %v2241_v12  ;;  %v2811_v20 = vld [vmem:[#allocation3 + $0x4a] sm:$0xff] }
 0x236   : > { %2429 = vmatmul.bf16.gmra.mxu3 %v2288_v29  ;;  %2784 = vst [vmem:[#allocation2 + $0x88] sm:$0xff] %v2752_v60  ;;  %v2092_v36 = vpop.f32.mrf.mxu2  ;;  %2727 = vmatmul.bf16.gmra.mxu0 %v1693_v0  ;;  %v2588_v60 = vpack.c.bf16 %v1284_v41, %v1283_v39  ;;  %v3404_v41 = vld [vmem:[#allocation3 + $0x31] sm:$0xff] }
 0x237   : > { %v2157_v37 = vadd.f32 %v2092_v36, %v1859_v33 }
 0x238   : > { %v1796_v8 = vpop.f32.mrf.mxu1 }
 0x239   : > { %v2390_v10 = vpop.f32.mrf.mxu3  ;;  %v1860_v43 = vadd.f32 %v1796_v8, %v1562_v26 }
 0x23a   : > { %v2455_v25 = vadd.f32 %v2390_v10, %v2157_v37  ;;  %v1365_v10 = vld [vmem:[#allocation2 + $0x78] sm:$0xff] }
 0x23b   : > { %v2690_v42 = vpop.f32.mrf.mxu0  ;;  %v1566_v27 = vadd.f32 %v5899_v6, %v1365_v10 }
 0x23c   : > { %v2753_v4 = vadd.f32 %v2688_v31, %v2455_v25  ;;  %v2807_v25 = vld [vmem:[#allocation3 + $0x1a] sm:$0xff] }
 0x23e   : > { %2785 = vst [vmem:[#allocation2 + $0xe8] sm:$0xff] %v2753_v4  ;;  %v2094_v56 = vpop.f32.mrf.mxu2  ;;  %v2808_v4 = vld [vmem:[#allocation3 + $0x22] sm:$0xff] }
 0x23f   : > { %v2158_v57 = vadd.f32 %v2094_v56, %v1860_v43  ;;  %v2871_v44 = vpack.c.bf16 %v2808_v4, %v2807_v25 }
 0x240   : > { %v1799_v53 = vpop.f32.mrf.mxu1 }
 0x241   : > { %v2392_v51 = vpop.f32.mrf.mxu3  ;;  %v1861_v58 = vadd.f32 %v1799_v53, %v1563_v47 }
 0x242   : > { %v2456_v21 = vadd.f32 %v2392_v51, %v2158_v57  ;;  %v2809_v51 = vld [vmem:[#allocation3 + $0x32] sm:$0xff] }
 0x243   : > { %1838 = vmatmul.bf16.gmra.mxu1 %v1693_v0  ;;  %2136 = vmatmul.bf16.gmra.mxu2 %v1991_v3  ;;  %v2693_v62 = vpop.f32.mrf.mxu0  ;;  %v3468_v3 = vpack.c.bf16 %v3405_v14, %v3404_v41  ;;  %v2814_v41 = vld [vmem:[#allocation3 + $0x6a] sm:$0xff] }
 0x244   : > { %v2754_v22 = vadd.f32 %v2690_v42, %v2456_v21 }
 0x246   : > { %2434 = vmatmul.bf16.gmra.mxu3 %v2289_v54  ;;  %2786 = vst [vmem:[#allocation2 + $0xb8] sm:$0xff] %v2754_v22  ;;  %v2097_v5 = vpop.f32.mrf.mxu2  ;;  %2732 = vmatmul.bf16.gmra.mxu0 %v1694_v61  ;;  %v2872_v54 = vpack.c.bf16 %v2810_v45, %v2809_v51 }
 0x247   : > { %v2159_v35 = vadd.f32 %v2097_v5, %v1861_v58  ;;  %v1664_v5 = vld [vmem:[#allocation2 + $0x58] sm:$0xff] }
 0x248   : > { %v1801_v17 = vpop.f32.mrf.mxu1 }
 0x249   : > { %v2395_v15 = vpop.f32.mrf.mxu3  ;;  %v1862_v32 = vadd.f32 %v1801_v17, %v1564_v19  ;;  %v3407_v19 = vld [vmem:[#allocation3 + $0x51] sm:$0xff] }
 0x24a   : > { %v2457_v2 = vadd.f32 %v2395_v15, %v2159_v35  ;;  %v3108_v35 = vld [vmem:[#allocation3 + $0x48] sm:$0xff]  ;;  %v3109_v15 = vld [vmem:[#allocation3 + $0x50] sm:$0xff] }
 0x24b   : > { %v2695_v1 = vpop.f32.mrf.mxu0  ;;  %v3171_v59 = vpack.c.bf16 %v3109_v15, %v3108_v35 }
 0x24c   : > { %v2755_v52 = vadd.f32 %v2693_v62, %v2457_v2  ;;  %v3406_v2 = vld [vmem:[#allocation3 + $0x49] sm:$0xff] }
 0x24d   : > { %v3469_v12 = vpack.c.bf16 %v3407_v19, %v3406_v2 }
 0x24e   : > { %2787 = vst [vmem:[#allocation2 + $0x60] sm:$0xff] %v2755_v52  ;;  %v2099_v24 = vpop.f32.mrf.mxu2 }
 0x24f   : > { %v2160_v55 = vadd.f32 %v2099_v24, %v1862_v32  ;;  %v2812_v24 = vld [vmem:[#allocation3 + $0x52] sm:$0xff] }
 0x250   : > { %v1804_v46 = vpop.f32.mrf.mxu1 }
 0x251   : > { %v2397_v29 = vpop.f32.mrf.mxu3  ;;  %v1863_v31 = vadd.f32 %v1804_v46, %v1565_v28 }
 0x252   : > { %v2458_v49 = vadd.f32 %v2397_v29, %v2160_v55  ;;  %v2873_v29 = vpack.c.bf16 %v2812_v24, %v2811_v20 }
 0x253   : > { %1843 = vmatmul.bf16.gmra.mxu1 %v1694_v61  ;;  %2141 = vmatmul.bf16.gmra.mxu2 %v1992_v23  ;;  %v2698_v0 = vpop.f32.mrf.mxu0 }
 0x254   : > { %v2756_v40 = vadd.f32 %v2695_v1, %v2458_v49 }
 0x256   : > { %2439 = vmatmul.bf16.gmra.mxu3 %v2290_v48  ;;  %2788 = vst [vmem:[#allocation2 + $0xf0] sm:$0xff] %v2756_v40  ;;  %v2102_v33 = vpop.f32.mrf.mxu2  ;;  %2737 = vmatmul.bf16.gmra.mxu0 %v2588_v60 }
 0x257   : > { %v2161_v36 = vadd.f32 %v2102_v33, %v1863_v31  ;;  %v1666_v33 = vld [vmem:[#allocation2 + $0xc8] sm:$0xff] }
 0x258   : > { %v1806_v7 = vpop.f32.mrf.mxu1 }
 0x259   : > { %v2400_v37 = vpop.f32.mrf.mxu3  ;;  %v1864_v39 = vadd.f32 %v1806_v7, %v1566_v27  ;;  %v3409_v27 = vld [vmem:[#allocation3 + $0x69] sm:$0xff] }
 0x25a   : > { %v2459_v8 = vadd.f32 %v2400_v37, %v2161_v36  ;;  %v3110_v36 = vld [vmem:[#allocation3 + $0x60] sm:$0xff]  ;;  %v3111_v37 = vld [vmem:[#allocation3 + $0x68] sm:$0xff] }
 0x25b   : > { %v2700_v9 = vpop.f32.mrf.mxu0  ;;  %v3172_v4 = vpack.c.bf16 %v3111_v37, %v3110_v36 }
 0x25c   : > { %v2757_v26 = vadd.f32 %v2698_v0, %v2459_v8  ;;  %v3408_v8 = vld [vmem:[#allocation3 + $0x61] sm:$0xff] }
 0x25e   : > { %2789 = vst [vmem:[#allocation2 + $0x8] sm:$0xff] %v2757_v26  ;;  %v2104_v42 = vpop.f32.mrf.mxu2 }
 0x25f   : > { %v2162_v43 = vadd.f32 %v2104_v42, %v1864_v39  ;;  %v2813_v39 = vld [vmem:[#allocation3 + $0x62] sm:$0xff] }
 0x260   : > { %v1809_v57 = vpop.f32.mrf.mxu1 }
 0x261   : > { %v2402_v56 = vpop.f32.mrf.mxu3  ;;  %v1865_v21 = vadd.f32 %v1809_v57, %v1663_v11  ;;  %v3112_v11 = vld [vmem:[#allocation3 + $0x78] sm:$0xff] }
 0x262   : > { %v2460_v6 = vadd.f32 %v2402_v56, %v2162_v43  ;;  %v2874_v43 = vpack.c.bf16 %v2814_v41, %v2813_v39 }
 0x263   : > { %2960 = vmatmul.bf16.vlgmr.msra.gmra.mxu1 %v2871_v44  ;;  %3259 = vmatmul.bf16.vlgmr.msra.gmra.mxu2 %v3170_v50  ;;  %v2703_v13 = vpop.f32.mrf.mxu0  ;;  %v1667_v44 = vld [vmem:[#allocation2 + $0xe0] sm:$0xff] }
 0x264   : > { %v2758_v53 = vadd.f32 %v2700_v9, %v2460_v6  ;;  %v3470_v9 = vpack.c.bf16 %v3409_v27, %v3408_v8 }
 0x266   : > { %3557 = vmatmul.bf16.vlgmr.msra.gmra.mxu3 %v3468_v3  ;;  %2790 = vst [vmem:[#allocation2 + $0x78] sm:$0xff] %v2758_v53  ;;  %v2107_v18 = vpop.f32.mrf.mxu2  ;;  %3855 = vmatmul.bf16.vlgmr.msra.gmra.mxu0 %v2872_v54 }
 0x267   : > { %v2163_v47 = vadd.f32 %v2107_v18, %v1865_v21 }
 0x268   : > { %v1811_v61 = vpop.f32.mrf.mxu1 }
 0x269   : > { %v2405_v22 = vpop.f32.mrf.mxu3  ;;  %v1866_v17 = vadd.f32 %v1811_v61, %v1664_v5 }
 0x26a   : > { %v2461_v62 = vadd.f32 %v2405_v22, %v2163_v47  ;;  %v3410_v47 = vld [vmem:[#allocation3 + $0x79] sm:$0xff]  ;;  %v3411_v22 = vld [vmem:[#allocation3 + $0x81] sm:$0xff] }
 0x26b   : > { %v2705_v16 = vpop.f32.mrf.mxu0  ;;  %v3471_v15 = vpack.c.bf16 %v3411_v22, %v3410_v47 }
 0x26c   : > { %v2759_v58 = vadd.f32 %v2703_v13, %v2461_v62  ;;  %v3113_v13 = vld [vmem:[#allocation3 + $0x80] sm:$0xff] }
 0x26e   : > { %2791 = vst [vmem:[#allocation2 + $0x38] sm:$0xff] %v2759_v58  ;;  %v2109_v52 = vpop.f32.mrf.mxu2  ;;  %v3173_v58 = vpack.c.bf16 %v3113_v13, %v3112_v11 }
 0x26f   : > { %v2164_v30 = vadd.f32 %v2109_v52, %v1866_v17  ;;  %v2816_v17 = vld [vmem:[#allocation3 + $0x82] sm:$0xff] }
 0x270   : > { %v1814_v32 = vpop.f32.mrf.mxu1 }
 0x271   : > { %v2407_v1 = vpop.f32.mrf.mxu3  ;;  %v1867_v48 = vadd.f32 %v1814_v32, %v1665_v38  ;;  %v3114_v38 = vld [vmem:[#allocation3 + $0x90] sm:$0xff] }
 0x272   : > { %v2462_v55 = vadd.f32 %v2407_v1, %v2164_v30  ;;  %v1669_v30 = vld [vmem:[#allocation2 + $0x70] sm:$0xff] }
 0x273   : > { %2965 = vmatmul.bf16.gmra.mxu1 %v2872_v54  ;;  %3264 = vmatmul.bf16.gmra.mxu2 %v3171_v59  ;;  %v2708_v46 = vpop.f32.mrf.mxu0  ;;  %v1668_v54 = vld [vmem:[#allocation2 + $0x90] sm:$0xff] }
 0x274   : > { %v2760_v23 = vadd.f32 %v2705_v16, %v2462_v55  ;;  %v2815_v16 = vld [vmem:[#allocation3 + $0x7a] sm:$0xff] }
 0x275   : > { %v2875_v52 = vpack.c.bf16 %v2816_v17, %v2815_v16 }
 0x276   : > { %3562 = vmatmul.bf16.gmra.mxu3 %v3469_v12  ;;  %2792 = vst [vmem:[#allocation2 + $0x58] sm:$0xff] %v2760_v23  ;;  %v2112_v49 = vpop.f32.mrf.mxu2  ;;  %3860 = vmatmul.bf16.gmra.mxu0 %v2873_v29 }
 0x277   : > { %v2165_v28 = vadd.f32 %v2112_v49, %v1867_v48 }
 0x278   : > { %v1816_v60 = vpop.f32.mrf.mxu1 }
 0x279   : > { %v2410_v40 = vpop.f32.mrf.mxu3  ;;  %v1868_v7 = vadd.f32 %v1816_v60, %v1666_v33 }
 0x27a   : > { %v2463_v0 = vadd.f32 %v2410_v40, %v2165_v28  ;;  %v3412_v28 = vld [vmem:[#allocation3 + $0x91] sm:$0xff]  ;;  %v3413_v40 = vld [vmem:[#allocation3 + $0x99] sm:$0xff] }
 0x27b   : > { %v2710_v10 = vpop.f32.mrf.mxu0  ;;  %v3472_v37 = vpack.c.bf16 %v3413_v40, %v3412_v28 }
 0x27c   : > { %v2761_v31 = vadd.f32 %v2708_v46, %v2463_v0  ;;  %v3115_v46 = vld [vmem:[#allocation3 + $0x98] sm:$0xff] }
 0x27e   : > { %2793 = vst [vmem:[#allocation2 + $0x40] sm:$0xff] %v2761_v31  ;;  %v2114_v25 = vpop.f32.mrf.mxu2  ;;  %v3174_v31 = vpack.c.bf16 %v3115_v46, %v3114_v38 }
 0x27f   : > { %v2166_v26 = vadd.f32 %v2114_v25, %v1868_v7  ;;  %v2818_v7 = vld [vmem:[#allocation3 + $0x9a] sm:$0xff] }
 0x280   : > { %v1819_v34 = vpop.f32.mrf.mxu1 }
 0x281   : > { %v2412_v63 = vpop.f32.mrf.mxu3  ;;  %v1869_v56 = vadd.f32 %v1819_v34, %v1667_v44  ;;  %v3116_v44 = vld [vmem:[#allocation3 + $0xa8] sm:$0xff] }
 0x282   : > { %v2464_v14 = vadd.f32 %v2412_v63, %v2166_v26  ;;  %v1671_v26 = vld [vmem:[#allocation2 + $0xa8] sm:$0xff] }
 0x283   : > { %2970 = vmatmul.bf16.gmra.mxu1 %v2873_v29  ;;  %3269 = vmatmul.bf16.gmra.mxu2 %v3172_v4  ;;  %v2713_v50 = vpop.f32.mrf.mxu0  ;;  %v1670_v29 = vld [vmem:[#allocation2 + $0xc0] sm:$0xff] }
 0x284   : > { %v2762_v42 = vadd.f32 %v2710_v10, %v2464_v14  ;;  %v2817_v10 = vld [vmem:[#allocation3 + $0x92] sm:$0xff] }
 0x285   : > { %v2876_v25 = vpack.c.bf16 %v2818_v7, %v2817_v10 }
 0x286   : > { %3567 = vmatmul.bf16.gmra.mxu3 %v3470_v9  ;;  %2794 = vst [vmem:[#allocation2 + $0xc8] sm:$0xff] %v2762_v42  ;;  %v2117_v57 = vpop.f32.mrf.mxu2  ;;  %3865 = vmatmul.bf16.gmra.mxu0 %v2874_v43 }
 0x287   : > { %v2167_v3 = vadd.f32 %v2117_v57, %v1869_v56 }
 0x288   : > { %v1821_v45 = vpop.f32.mrf.mxu1 }
 0x289   : > { %v2415_v51 = vpop.f32.mrf.mxu3  ;;  %v1870_v18 = vadd.f32 %v1821_v45, %v1668_v54 }
 0x28a   : > { %v2465_v6 = vadd.f32 %v2415_v51, %v2167_v3  ;;  %v3414_v3 = vld [vmem:[#allocation3 + $0xa9] sm:$0xff]  ;;  %v3415_v51 = vld [vmem:[#allocation3 + $0xb1] sm:$0xff] }
 0x28b   : > { %v2715_v21 = vpop.f32.mrf.mxu0  ;;  %v3473_v13 = vpack.c.bf16 %v3415_v51, %v3414_v3 }
 0x28c   : > { %v2763_v53 = vadd.f32 %v2713_v50, %v2465_v6  ;;  %v3117_v50 = vld [vmem:[#allocation3 + $0xb0] sm:$0xff] }
 0x28e   : > { %2795 = vst [vmem:[#allocation2 + $0xe0] sm:$0xff] %v2763_v53  ;;  %v2119_v61 = vpop.f32.mrf.mxu2  ;;  %v3175_v53 = vpack.c.bf16 %v3117_v50, %v3116_v44 }
 0x28f   : > { %v2168_v62 = vadd.f32 %v2119_v61, %v1870_v18  ;;  %v2820_v18 = vld [vmem:[#allocation3 + $0xb2] sm:$0xff] }
 0x290   : > { %v1824_v35 = vpop.f32.mrf.mxu1 }
 0x291   : > { %v2417_v5 = vpop.f32.mrf.mxu3  ;;  %v1871_v1 = vadd.f32 %v1824_v35, %v1669_v30  ;;  %v3118_v30 = vld [vmem:[#allocation3 + $0xc0] sm:$0xff] }
 0x292   : > { %v2466_v2 = vadd.f32 %v2417_v5, %v2168_v62  ;;  %v1673_v62 = vld [vmem:[#allocation2 + $0x10] sm:$0xff] }
 0x293   : > { %2975 = vmatmul.bf16.gmra.mxu1 %v2874_v43  ;;  %3274 = vmatmul.bf16.gmra.mxu2 %v3173_v58  ;;  %v2718_v59 = vpop.f32.mrf.mxu0  ;;  %v1672_v43 = vld [vmem:[#allocation2 + $0xd0] sm:$0xff] }
 0x294   : > { %v2764_v19 = vadd.f32 %v2715_v21, %v2466_v2  ;;  %v2819_v21 = vld [vmem:[#allocation3 + $0xaa] sm:$0xff] }
 0x295   : > { %v2877_v61 = vpack.c.bf16 %v2820_v18, %v2819_v21 }
 0x296   : > { %3572 = vmatmul.bf16.gmra.mxu3 %v3471_v15  ;;  %2796 = vst [vmem:[#allocation2 + $0x90] sm:$0xff] %v2764_v19  ;;  %v2122_v32 = vpop.f32.mrf.mxu2  ;;  %3870 = vmatmul.bf16.gmra.mxu0 %v2875_v52 }
 0x297   : > { %v2169_v12 = vadd.f32 %v2122_v32, %v1871_v1 }
 0x298   : > { %v1826_v24 = vpop.f32.mrf.mxu1 }
 0x299   : > { %v2420_v20 = vpop.f32.mrf.mxu3  ;;  %v1872_v49 = vadd.f32 %v1826_v24, %v1670_v29 }
 0x29a   : > { %v2467_v55 = vadd.f32 %v2420_v20, %v2169_v12  ;;  %v3416_v12 = vld [vmem:[#allocation3 + $0xc1] sm:$0xff]  ;;  %v3417_v20 = vld [vmem:[#allocation3 + $0xc9] sm:$0xff] }
 0x29b   : > { %v2720_v48 = vpop.f32.mrf.mxu0  ;;  %v3474_v46 = vpack.c.bf16 %v3417_v20, %v3416_v12 }
 0x29c   : > { %v2765_v23 = vadd.f32 %v2718_v59, %v2467_v55  ;;  %v3119_v59 = vld [vmem:[#allocation3 + $0xc8] sm:$0xff] }
 0x29e   : > { %2797 = vst [vmem:[#allocation2 + $0x70] sm:$0xff] %v2765_v23  ;;  %v2124_v60 = vpop.f32.mrf.mxu2  ;;  %v3176_v23 = vpack.c.bf16 %v3119_v59, %v3118_v30 }
 0x29f   : > { %v2170_v0 = vadd.f32 %v2124_v60, %v1872_v49  ;;  %v2822_v49 = vld [vmem:[#allocation3 + $0xca] sm:$0xff] }
 0x2a0   : > { %v1829_v36 = vpop.f32.mrf.mxu1 }
 0x2a1   : > { %v2422_v33 = vpop.f32.mrf.mxu3  ;;  %v1873_v63 = vadd.f32 %v1829_v36, %v1671_v26  ;;  %v3120_v26 = vld [vmem:[#allocation3 + $0xd8] sm:$0xff] }
 0x2a2   : > { %v2468_v8 = vadd.f32 %v2422_v33, %v2170_v0  ;;  %v1675_v0 = vld [vmem:[#allocation2 + $0xa0] sm:$0xff] }
 0x2a3   : > { %2980 = vmatmul.bf16.gmra.mxu1 %v2875_v52  ;;  %3279 = vmatmul.bf16.gmra.mxu2 %v3174_v31  ;;  %v2723_v4 = vpop.f32.mrf.mxu0  ;;  %v1674_v52 = vld [vmem:[#allocation2 + $0x28] sm:$0xff] }
 0x2a4   : > { %v2766_v27 = vadd.f32 %v2720_v48, %v2468_v8  ;;  %v2821_v48 = vld [vmem:[#allocation3 + $0xc2] sm:$0xff] }
 0x2a5   : > { %v2878_v60 = vpack.c.bf16 %v2822_v49, %v2821_v48 }
 0x2a6   : > { %3577 = vmatmul.bf16.gmra.mxu3 %v3472_v37  ;;  %2798 = vst [vmem:[#allocation2 + $0xc0] sm:$0xff] %v2766_v27  ;;  %v2127_v34 = vpop.f32.mrf.mxu2  ;;  %3875 = vmatmul.bf16.gmra.mxu0 %v2876_v25 }
 0x2a7   : > { %v2171_v9 = vadd.f32 %v2127_v34, %v1873_v63 }
 0x2a8   : > { %v1831_v41 = vpop.f32.mrf.mxu1 }
 0x2a9   : > { %v2425_v39 = vpop.f32.mrf.mxu3  ;;  %v1874_v57 = vadd.f32 %v1831_v41, %v1672_v43 }
 0x2aa   : > { %v2469_v14 = vadd.f32 %v2425_v39, %v2171_v9  ;;  %v3418_v9 = vld [vmem:[#allocation3 + $0xd9] sm:$0xff]  ;;  %v3419_v39 = vld [vmem:[#allocation3 + $0xe1] sm:$0xff] }
 0x2ab   : > { %v2725_v56 = vpop.f32.mrf.mxu0  ;;  %v3475_v50 = vpack.c.bf16 %v3419_v39, %v3418_v9 }
 0x2ac   : > { %v2767_v42 = vadd.f32 %v2723_v4, %v2469_v14  ;;  %v3121_v4 = vld [vmem:[#allocation3 + $0xe0] sm:$0xff] }
 0x2ae   : > { %2799 = vst [vmem:[#allocation2 + $0xa8] sm:$0xff] %v2767_v42  ;;  %v2129_v45 = vpop.f32.mrf.mxu2  ;;  %v3177_v42 = vpack.c.bf16 %v3121_v4, %v3120_v26 }
 0x2af   : > { %v2172_v6 = vadd.f32 %v2129_v45, %v1874_v57  ;;  %v2824_v57 = vld [vmem:[#allocation3 + $0xe2] sm:$0xff] }
 0x2b0   : > { %v1834_v11 = vpop.f32.mrf.mxu1 }
 0x2b1   : > { %v2427_v54 = vpop.f32.mrf.mxu3  ;;  %v1875_v5 = vadd.f32 %v1834_v11, %v1673_v62  ;;  %v3122_v62 = vld [vmem:[#allocation3 + $0xf0] sm:$0xff] }
 0x2b2   : > { %v2470_v47 = vadd.f32 %v2427_v54, %v2172_v6  ;;  %v1677_v6 = vld [vmem:[#allocation2 + $0x20] sm:$0xff] }
 0x2b3   : > { %2985 = vmatmul.bf16.gmra.mxu1 %v2876_v25  ;;  %3284 = vmatmul.bf16.gmra.mxu2 %v3175_v53  ;;  %v2728_v58 = vpop.f32.mrf.mxu0  ;;  %v1676_v25 = vld [vmem:[#allocation2 + $0xf8] sm:$0xff] }
 0x2b4   : > { %v2768_v22 = vadd.f32 %v2725_v56, %v2470_v47  ;;  %v2823_v56 = vld [vmem:[#allocation3 + $0xda] sm:$0xff] }
 0x2b5   : > { %v2879_v45 = vpack.c.bf16 %v2824_v57, %v2823_v56 }
 0x2b6   : > { %3582 = vmatmul.bf16.gmra.mxu3 %v3473_v13  ;;  %2800 = vst [vmem:[#allocation2 + $0xd0] sm:$0xff] %v2768_v22  ;;  %v2132_v35 = vpop.f32.mrf.mxu2  ;;  %3880 = vmatmul.bf16.gmra.mxu0 %v2877_v61 }
 0x2b7   : > { %v2173_v15 = vadd.f32 %v2132_v35, %v1875_v5 }
 0x2b8   : > { %v1836_v17 = vpop.f32.mrf.mxu1 }
 0x2b9   : > { %v2430_v16 = vpop.f32.mrf.mxu3  ;;  %v1876_v32 = vadd.f32 %v1836_v17, %v1674_v52 }
 0x2ba   : > { %v2471_v2 = vadd.f32 %v2430_v16, %v2173_v15  ;;  %v3420_v15 = vld [vmem:[#allocation3 + $0xf1] sm:$0xff]  ;;  %v3421_v16 = vld [vmem:[#allocation3 + $0xf9] sm:$0xff] }
 0x2bb   : > { %v2730_v1 = vpop.f32.mrf.mxu0  ;;  %v3476_v59 = vpack.c.bf16 %v3421_v16, %v3420_v15 }
 0x2bc   : > { %v2769_v19 = vadd.f32 %v2728_v58, %v2471_v2  ;;  %v3123_v58 = vld [vmem:[#allocation3 + $0xf8] sm:$0xff] }
 0x2be   : > { %2801 = vst [vmem:[#allocation2 + $0x10] sm:$0xff] %v2769_v19  ;;  %v2134_v24 = vpop.f32.mrf.mxu2  ;;  %v3178_v19 = vpack.c.bf16 %v3123_v58, %v3122_v62 }
 0x2bf   : > { %v2174_v55 = vadd.f32 %v2134_v24, %v1876_v32  ;;  %v2826_v32 = vld [vmem:[#allocation3 + $0xfa] sm:$0xff] }
 0x2c0   : > { %v1839_v38 = vpop.f32.mrf.mxu1 }
 0x2c1   : > { %v2432_v29 = vpop.f32.mrf.mxu3  ;;  %v1877_v33 = vadd.f32 %v1839_v38, %v1675_v0  ;;  %v3124_v0 = vld [vmem:[#allocation3 + $0x108] sm:$0xff] }
 0x2c2   : > { %v2472_v28 = vadd.f32 %v2432_v29, %v2174_v55  ;;  %v2839_v55 = vld [vmem:[#allocation2 + $0xb0] sm:$0xff] }
 0x2c3   : > { %2990 = vmatmul.bf16.gmra.mxu1 %v2877_v61  ;;  %3289 = vmatmul.bf16.gmra.mxu2 %v3176_v23  ;;  %v2733_v31 = vpop.f32.mrf.mxu0  ;;  %v1678_v61 = vld [vmem:[#allocation2 + $0x98] sm:$0xff] }
 0x2c4   : > { %v2770_v40 = vadd.f32 %v2730_v1, %v2472_v28  ;;  %v2825_v1 = vld [vmem:[#allocation3 + $0xf2] sm:$0xff] }
 0x2c5   : > { %v2880_v24 = vpack.c.bf16 %v2826_v32, %v2825_v1 }
 0x2c6   : > { %3587 = vmatmul.bf16.gmra.mxu3 %v3474_v46  ;;  %2802 = vst [vmem:[#allocation2 + $0x28] sm:$0xff] %v2770_v40  ;;  %v2137_v36 = vpop.f32.mrf.mxu2  ;;  %3885 = vmatmul.bf16.gmra.mxu0 %v2878_v60 }
 0x2c7   : > { %v2175_v37 = vadd.f32 %v2137_v36, %v1877_v33 }
 0x2c8   : > { %v1841_v7 = vpop.f32.mrf.mxu1 }
 0x2c9   : > { %v2435_v10 = vpop.f32.mrf.mxu3  ;;  %v1878_v34 = vadd.f32 %v1841_v7, %v1676_v25 }
 0x2ca   : > { %v2473_v8 = vadd.f32 %v2435_v10, %v2175_v37  ;;  %v3422_v37 = vld [vmem:[#allocation3 + $0x109] sm:$0xff]  ;;  %v3423_v10 = vld [vmem:[#allocation3 + $0x111] sm:$0xff] }
 0x2cb   : > { %v2735_v63 = vpop.f32.mrf.mxu0  ;;  %v3477_v4 = vpack.c.bf16 %v3423_v10, %v3422_v37 }
 0x2cc   : > { %v2771_v27 = vadd.f32 %v2733_v31, %v2473_v8  ;;  %v3125_v31 = vld [vmem:[#allocation3 + $0x110] sm:$0xff] }
 0x2ce   : > { %2803 = vst [vmem:[#allocation2 + $0xa0] sm:$0xff] %v2771_v27  ;;  %v2139_v41 = vpop.f32.mrf.mxu2  ;;  %v3179_v27 = vpack.c.bf16 %v3125_v31, %v3124_v0 }
 0x2cf   : > { %v2176_v14 = vadd.f32 %v2139_v41, %v1878_v34  ;;  %v2828_v34 = vld [vmem:[#allocation3 + $0x112] sm:$0xff] }
 0x2d0   : > { %v1844_v44 = vpop.f32.mrf.mxu1 }
 0x2d1   : > { %v2437_v43 = vpop.f32.mrf.mxu3  ;;  %v1879_v54 = vadd.f32 %v1844_v44, %v1677_v6  ;;  %v3126_v6 = vld [vmem:[#allocation3 + $0x120] sm:$0xff] }
 0x2d2   : > { %v2474_v3 = vadd.f32 %v2437_v43, %v2176_v14  ;;  %v2841_v14 = vld [vmem:[#allocation2 + $0xd8] sm:$0xff] }
 0x2d3   : > { %2995 = vmatmul.bf16.gmra.mxu1 %v2878_v60  ;;  %3294 = vmatmul.bf16.gmra.mxu2 %v3177_v42  ;;  %v2738_v53 = vpop.f32.mrf.mxu0  ;;  %v2840_v60 = vld [vmem:[#allocation2] sm:$0xff] }
 0x2d4   : > { %v2772_v51 = vadd.f32 %v2735_v63, %v2474_v3  ;;  %v2827_v63 = vld [vmem:[#allocation3 + $0x10a] sm:$0xff] }
 0x2d5   : > { %v2881_v41 = vpack.c.bf16 %v2828_v34, %v2827_v63 }
 0x2d6   : > { %3592 = vmatmul.bf16.gmra.mxu3 %v3475_v50  ;;  %2804 = vst [vmem:[#allocation2 + $0xf8] sm:$0xff] %v2772_v51  ;;  %v2142_v11 = vpop.f32.mrf.mxu2  ;;  %3890 = vmatmul.bf16.gmra.mxu0 %v2879_v45 }
 0x2d7   : > { %v2177_v13 = vadd.f32 %v2142_v11, %v1879_v54 }
 0x2d8   : > { %v1846_v18 = vpop.f32.mrf.mxu1 }
 0x2d9   : > { %v2440_v21 = vpop.f32.mrf.mxu3  ;;  %v1880_v35 = vadd.f32 %v1846_v18, %v1678_v61 }
 0x2da   : > { %v2475_v47 = vadd.f32 %v2440_v21, %v2177_v13  ;;  %v3424_v13 = vld [vmem:[#allocation3 + $0x121] sm:$0xff]  ;;  %v3425_v21 = vld [vmem:[#allocation3 + $0x129] sm:$0xff] }
 0x2db   : > { %v2740_v5 = vpop.f32.mrf.mxu0  ;;  %v3478_v58 = vpack.c.bf16 %v3425_v21, %v3424_v13 }
 0x2dc   : > { %v2773_v22 = vadd.f32 %v2738_v53, %v2475_v47  ;;  %v3127_v53 = vld [vmem:[#allocation3 + $0x128] sm:$0xff] }
 0x2de   : > { %2805 = vst [vmem:[#allocation2 + $0x20] sm:$0xff] %v2773_v22  ;;  %v2144_v17 = vpop.f32.mrf.mxu2  ;;  %v3180_v22 = vpack.c.bf16 %v3127_v53, %v3126_v6 }
 0x2df   : > { %v2178_v2 = vadd.f32 %v2144_v17, %v1880_v35  ;;  %v2830_v35 = vld [vmem:[#allocation3 + $0x12a] sm:$0xff] }
 0x2e0   : > { %v2961_v30 = vpop.f32.mrf.mxu1 }
 0x2e1   : > { %v2442_v52 = vpop.f32.mrf.mxu3  ;;  %v3041_v29 = vadd.f32 %v2961_v30, %v2839_v55  ;;  %v3128_v55 = vld [vmem:[#allocation3 + $0x138] sm:$0xff] }
 0x2e2   : > { %v2476_v12 = vadd.f32 %v2442_v52, %v2178_v2  ;;  %v2843_v2 = vld [vmem:[#allocation2 + $0x50] sm:$0xff] }
 0x2e3   : > { %3000 = vmatmul.bf16.gmra.mxu1 %v2879_v45  ;;  %3299 = vmatmul.bf16.gmra.mxu2 %v3178_v19  ;;  %v3856_v23 = vpop.f32.mrf.mxu0  ;;  %v2842_v45 = vld [vmem:[#allocation2 + $0x18] sm:$0xff] }
 0x2e4   : > { %v2774_v20 = vadd.f32 %v2740_v5, %v2476_v12  ;;  %v2829_v5 = vld [vmem:[#allocation3 + $0x122] sm:$0xff] }
 0x2e5   : > { %v2882_v17 = vpack.c.bf16 %v2830_v35, %v2829_v5 }
 0x2e6   : > { %3597 = vmatmul.bf16.gmra.mxu3 %v3476_v59  ;;  %2806 = vst [vmem:[#allocation2 + $0x98] sm:$0xff] %v2774_v20  ;;  %v3260_v38 = vpop.f32.mrf.mxu2  ;;  %3895 = vmatmul.bf16.gmra.mxu0 %v2880_v24 }
 0x2e7   : > { %v3340_v46 = vadd.f32 %v3260_v38, %v3041_v29 }
 0x2e8   : > { %v2963_v49 = vpop.f32.mrf.mxu1 }
 0x2e9   : > { %v3558_v48 = vpop.f32.mrf.mxu3  ;;  %v3042_v36 = vadd.f32 %v2963_v49, %v2840_v60 }
 0x2ea   : > { %v3638_v28 = vadd.f32 %v3558_v48, %v3340_v46  ;;  %v3426_v46 = vld [vmem:[#allocation3 + $0x139] sm:$0xff]  ;;  %v3427_v48 = vld [vmem:[#allocation3 + $0x141] sm:$0xff] }
 0x2eb   : > { %v3858_v33 = vpop.f32.mrf.mxu0  ;;  %v3479_v31 = vpack.c.bf16 %v3427_v48, %v3426_v46 }
 0x2ec   : > { %v3936_v40 = vadd.f32 %v3856_v23, %v3638_v28  ;;  %v3129_v23 = vld [vmem:[#allocation3 + $0x140] sm:$0xff] }
 0x2ee   : > { %3968 = vst [vmem:[#allocation2 + $0xb0] sm:$0xff] %v3936_v40  ;;  %v3262_v7 = vpop.f32.mrf.mxu2  ;;  %v3181_v40 = vpack.c.bf16 %v3129_v23, %v3128_v55 }
 0x2ef   : > { %v3341_v8 = vadd.f32 %v3262_v7, %v3042_v36  ;;  %v2832_v36 = vld [vmem:[#allocation3 + $0x142] sm:$0xff] }
 0x2f0   : > { %v2966_v26 = vpop.f32.mrf.mxu1 }
 0x2f1   : > { %v3560_v25 = vpop.f32.mrf.mxu3  ;;  %v3043_v43 = vadd.f32 %v2966_v26, %v2841_v14  ;;  %v3130_v14 = vld [vmem:[#allocation3 + $0x150] sm:$0xff] }
 0x2f2   : > { %v3639_v9 = vadd.f32 %v3560_v25, %v3341_v8  ;;  %v2845_v8 = vld [vmem:[#allocation2 + $0x30] sm:$0xff] }
 0x2f3   : > { %3005 = vmatmul.bf16.gmra.mxu1 %v2880_v24  ;;  %3304 = vmatmul.bf16.gmra.mxu2 %v3179_v27  ;;  %v3861_v42 = vpop.f32.mrf.mxu0  ;;  %v2844_v24 = vld [vmem:[#allocation2 + $0x68] sm:$0xff] }
 0x2f4   : > { %v3937_v39 = vadd.f32 %v3858_v33, %v3639_v9  ;;  %v2831_v33 = vld [vmem:[#allocation3 + $0x13a] sm:$0xff] }
 0x2f5   : > { %v2883_v7 = vpack.c.bf16 %v2832_v36, %v2831_v33 }
 0x2f6   : > { %3602 = vmatmul.bf16.gmra.mxu3 %v3477_v4  ;;  %3969 = vst [vmem:[#allocation2] sm:$0xff] %v3937_v39  ;;  %v3265_v44 = vpop.f32.mrf.mxu2  ;;  %3900 = vmatmul.bf16.gmra.mxu0 %v2881_v41 }
 0x2f7   : > { %v3342_v50 = vadd.f32 %v3265_v44, %v3043_v43 }
 0x2f8   : > { %v2968_v57 = vpop.f32.mrf.mxu1 }
 0x2f9   : > { %v3563_v56 = vpop.f32.mrf.mxu3  ;;  %v3044_v11 = vadd.f32 %v2968_v57, %v2842_v45 }
 0x2fa   : > { %v3640_v3 = vadd.f32 %v3563_v56, %v3342_v50  ;;  %v3428_v50 = vld [vmem:[#allocation3 + $0x151] sm:$0xff]  ;;  %v3429_v56 = vld [vmem:[#allocation3 + $0x159] sm:$0xff] }
 0x2fb   : > { %v3863_v54 = vpop.f32.mrf.mxu0  ;;  %v3480_v53 = vpack.c.bf16 %v3429_v56, %v3428_v50 }
 0x2fc   : > { %v3938_v51 = vadd.f32 %v3861_v42, %v3640_v3  ;;  %v3131_v42 = vld [vmem:[#allocation3 + $0x158] sm:$0xff] }
 0x2fe   : > { %3970 = vst [vmem:[#allocation2 + $0xd8] sm:$0xff] %v3938_v51  ;;  %v3267_v18 = vpop.f32.mrf.mxu2  ;;  %v3182_v51 = vpack.c.bf16 %v3131_v42, %v3130_v14 }
 0x2ff   : > { %v3343_v47 = vadd.f32 %v3267_v18, %v3044_v11  ;;  %v2834_v11 = vld [vmem:[#allocation3 + $0x15a] sm:$0xff] }
 0x300   : > { %v2971_v62 = vpop.f32.mrf.mxu1 }
 0x301   : > { %v3565_v61 = vpop.f32.mrf.mxu3  ;;  %v3045_v52 = vadd.f32 %v2971_v62, %v2843_v2  ;;  %v3132_v2 = vld [vmem:[#allocation3 + $0x168] sm:$0xff] }
 0x302   : > { %v3641_v15 = vadd.f32 %v3565_v61, %v3343_v47  ;;  %v2847_v47 = vld [vmem:[#allocation2 + $0x80] sm:$0xff] }
 0x303   : > { %3010 = vmatmul.bf16.gmra.mxu1 %v2881_v41  ;;  %3309 = vmatmul.bf16.gmra.mxu2 %v3180_v22  ;;  %v3866_v19 = vpop.f32.mrf.mxu0  ;;  %v2846_v41 = vld [vmem:[#allocation2 + $0x48] sm:$0xff] }
 0x304   : > { %v3939_v16 = vadd.f32 %v3863_v54, %v3641_v15  ;;  %v2833_v54 = vld [vmem:[#allocation3 + $0x152] sm:$0xff] }
 0x305   : > { %v2884_v18 = vpack.c.bf16 %v2834_v11, %v2833_v54 }
 0x306   : > { %3607 = vmatmul.bf16.gmra.mxu3 %v3478_v58  ;;  %3971 = vst [vmem:[#allocation2 + $0x18] sm:$0xff] %v3939_v16  ;;  %v3270_v30 = vpop.f32.mrf.mxu2  ;;  %3905 = vmatmul.bf16.gmra.mxu0 %v2882_v17 }
 0x307   : > { %v3344_v59 = vadd.f32 %v3270_v30, %v3045_v52 }
 0x308   : > { %v2973_v32 = vpop.f32.mrf.mxu1 }
 0x309   : > { %v3568_v1 = vpop.f32.mrf.mxu3  ;;  %v3046_v38 = vadd.f32 %v2973_v32, %v2844_v24 }
 0x30a   : > { %v3642_v12 = vadd.f32 %v3568_v1, %v3344_v59  ;;  %v3430_v59 = vld [vmem:[#allocation3 + $0x169] sm:$0xff]  ;;  %v3431_v1 = vld [vmem:[#allocation3 + $0x171] sm:$0xff] }
 0x30b   : > { %v3868_v29 = vpop.f32.mrf.mxu0  ;;  %v3481_v23 = vpack.c.bf16 %v3431_v1, %v3430_v59 }
 0x30c   : > { %v3940_v20 = vadd.f32 %v3866_v19, %v3642_v12  ;;  %v3133_v19 = vld [vmem:[#allocation3 + $0x170] sm:$0xff] }
 0x30e   : > { %3972 = vst [vmem:[#allocation2 + $0x50] sm:$0xff] %v3940_v20  ;;  %v3272_v49 = vpop.f32.mrf.mxu2  ;;  %v3183_v20 = vpack.c.bf16 %v3133_v19, %v3132_v2 }
 0x30f   : > { %v3345_v28 = vadd.f32 %v3272_v49, %v3046_v38  ;;  %v2836_v38 = vld [vmem:[#allocation3 + $0x172] sm:$0xff] }
 0x310   : > { %v2976_v0 = vpop.f32.mrf.mxu1 }
 0x311   : > { %v3570_v60 = vpop.f32.mrf.mxu3  ;;  %v3047_v25 = vadd.f32 %v2976_v0, %v2845_v8  ;;  %v3134_v8 = vld [vmem:[#allocation3 + $0x180] sm:$0xff] }
 0x312   : > { %v3643_v37 = vadd.f32 %v3570_v60, %v3345_v28  ;;  %v2849_v28 = vld [vmem:[#allocation2 + $0xe8] sm:$0xff] }
 0x313   : > { %3015 = vmatmul.bf16.gmra.mxu1 %v2882_v17  ;;  %3314 = vmatmul.bf16.gmra.mxu2 %v3181_v40  ;;  %v3871_v27 = vpop.f32.mrf.mxu0  ;;  %v2848_v17 = vld [vmem:[#allocation2 + $0x88] sm:$0xff] }
 0x314   : > { %v3941_v10 = vadd.f32 %v3868_v29, %v3643_v37  ;;  %v2835_v29 = vld [vmem:[#allocation3 + $0x16a] sm:$0xff] }
 0x315   : > { %v2885_v49 = vpack.c.bf16 %v2836_v38, %v2835_v29 }
 0x316   : > { %3612 = vmatmul.bf16.gmra.mxu3 %v3479_v31  ;;  %3973 = vst [vmem:[#allocation2 + $0x68] sm:$0xff] %v3941_v10  ;;  %v3275_v26 = vpop.f32.mrf.mxu2  ;;  %3910 = vmatmul.bf16.gmra.mxu0 %v2883_v7 }
 0x317   : > { %v3346_v4 = vadd.f32 %v3275_v26, %v3047_v25 }
 0x318   : > { %v2978_v34 = vpop.f32.mrf.mxu1 }
 0x319   : > { %v3573_v63 = vpop.f32.mrf.mxu3  ;;  %v3048_v44 = vadd.f32 %v2978_v34, %v2846_v41 }
 0x31a   : > { %v3644_v9 = vadd.f32 %v3573_v63, %v3346_v4  ;;  %v3432_v4 = vld [vmem:[#allocation3 + $0x181] sm:$0xff]  ;;  %v3433_v63 = vld [vmem:[#allocation3 + $0x189] sm:$0xff] }
 0x31b   : > { %v3873_v43 = vpop.f32.mrf.mxu0  ;;  %v3482_v42 = vpack.c.bf16 %v3433_v63, %v3432_v4 }
 0x31c   : > { %v3942_v39 = vadd.f32 %v3871_v27, %v3644_v9  ;;  %v3135_v27 = vld [vmem:[#allocation3 + $0x188] sm:$0xff] }
 0x31e   : > { %3974 = vst [vmem:[#allocation2 + $0x30] sm:$0xff] %v3942_v39  ;;  %v3277_v57 = vpop.f32.mrf.mxu2  ;;  %v3184_v39 = vpack.c.bf16 %v3135_v27, %v3134_v8 }
 0x31f   : > { %v3347_v3 = vadd.f32 %v3277_v57, %v3048_v44  ;;  %v2838_v44 = vld [vmem:[#allocation3 + $0x18a] sm:$0xff] }
 0x320   : > { %v2981_v6 = vpop.f32.mrf.mxu1 }
 0x321   : > { %v3575_v45 = vpop.f32.mrf.mxu3  ;;  %v3049_v61 = vadd.f32 %v2981_v6, %v2847_v47  ;;  %v3136_v47 = vld [vmem:[#allocation3 + $0x198] sm:$0xff] }
 0x322   : > { %v3645_v13 = vadd.f32 %v3575_v45, %v3347_v3  ;;  %v2851_v3 = vld [vmem:[#allocation2 + $0x60] sm:$0xff] }
 0x323   : > { %3020 = vmatmul.bf16.gmra.mxu1 %v2883_v7  ;;  %3319 = vmatmul.bf16.gmra.mxu2 %v3182_v51  ;;  %v3876_v22 = vpop.f32.mrf.mxu0  ;;  %v2850_v7 = vld [vmem:[#allocation2 + $0xb8] sm:$0xff] }
 0x324   : > { %v3943_v21 = vadd.f32 %v3873_v43, %v3645_v13  ;;  %v2837_v43 = vld [vmem:[#allocation3 + $0x182] sm:$0xff] }
 0x325   : > { %v2886_v57 = vpack.c.bf16 %v2838_v44, %v2837_v43 }
 0x326   : > { %3617 = vmatmul.bf16.gmra.mxu3 %v3480_v53  ;;  %3975 = vst [vmem:[#allocation2 + $0x48] sm:$0xff] %v3943_v21  ;;  %v3280_v62 = vpop.f32.mrf.mxu2  ;;  %3915 = vmatmul.bf16.gmra.mxu0 %v2884_v18 }
 0x327   : > { %v3348_v58 = vadd.f32 %v3280_v62, %v3049_v61 }
 0x328   : > { %v2983_v35 = vpop.f32.mrf.mxu1 }
 0x329   : > { %v3578_v5 = vpop.f32.mrf.mxu3  ;;  %v3050_v30 = vadd.f32 %v2983_v35, %v2848_v17 }
 0x32a   : > { %v3646_v15 = vadd.f32 %v3578_v5, %v3348_v58  ;;  %v3434_v58 = vld [vmem:[#allocation3 + $0x199] sm:$0xff]  ;;  %v3435_v5 = vld [vmem:[#allocation3 + $0x1a1] sm:$0xff] }
 0x32b   : > { %v3878_v52 = vpop.f32.mrf.mxu0  ;;  %v3483_v19 = vpack.c.bf16 %v3435_v5, %v3434_v58 }
 0x32c   : > { %v3944_v16 = vadd.f32 %v3876_v22, %v3646_v15  ;;  %v3137_v22 = vld [vmem:[#allocation3 + $0x1a0] sm:$0xff] }
 0x32e   : > { %3976 = vst [vmem:[#allocation2 + $0x80] sm:$0xff] %v3944_v16  ;;  %v3282_v32 = vpop.f32.mrf.mxu2  ;;  %v3185_v16 = vpack.c.bf16 %v3137_v22, %v3136_v47 }
 0x32f   : > { %v3349_v12 = vadd.f32 %v3282_v32, %v3050_v30  ;;  %v3733_v30 = vld [vmem:[#allocation3 + $0x1a2] sm:$0xff] }
 0x330   : > { %v2986_v55 = vpop.f32.mrf.mxu1 }
 0x331   : > { %v3580_v24 = vpop.f32.mrf.mxu3  ;;  %v3051_v60 = vadd.f32 %v2986_v55, %v2849_v28 }
 0x332   : > { %v3647_v46 = vadd.f32 %v3580_v24, %v3349_v12  ;;  %v2853_v12 = vld [vmem:[#allocation2 + $0x8] sm:$0xff] }
 0x333   : > { %3025 = vmatmul.bf16.gmra.mxu1 %v2884_v18  ;;  %3324 = vmatmul.bf16.gmra.mxu2 %v3183_v20  ;;  %v3881_v40 = vpop.f32.mrf.mxu0  ;;  %v2852_v18 = vld [vmem:[#allocation2 + $0xf0] sm:$0xff] }
 0x334   : > { %v3945_v48 = vadd.f32 %v3878_v52, %v3647_v46  ;;  %v3732_v52 = vld [vmem:[#allocation3 + $0x19a] sm:$0xff] }
 0x335   : > { %v3781_v32 = vpack.c.bf16 %v3733_v30, %v3732_v52 }
 0x336   : > { %3622 = vmatmul.bf16.gmra.mxu3 %v3481_v23  ;;  %3977 = vst [vmem:[#allocation2 + $0x88] sm:$0xff] %v3945_v48  ;;  %v3285_v0 = vpop.f32.mrf.mxu2  ;;  %3920 = vmatmul.bf16.gmra.mxu0 %v2885_v49 }
 0x337   : > { %v3350_v31 = vadd.f32 %v3285_v0, %v3051_v60 }
 0x338   : > { %v2988_v36 = vpop.f32.mrf.mxu1 }
 0x339   : > { %v3583_v33 = vpop.f32.mrf.mxu3  ;;  %v3052_v26 = vadd.f32 %v2988_v36, %v2850_v7 }
 0x33a   : > { %v3648_v37 = vadd.f32 %v3583_v33, %v3350_v31 }
 0x33b   : > { %v3883_v25 = vpop.f32.mrf.mxu0 }
 0x33c   : > { %v3946_v10 = vadd.f32 %v3881_v40, %v3648_v37 }
 0x33e   : > { %3978 = vst [vmem:[#allocation2 + $0xe8] sm:$0xff] %v3946_v10  ;;  %v3287_v34 = vpop.f32.mrf.mxu2  ;;  %v2855_v10 = vld [vmem:[#allocation2 + $0x38] sm:$0xff] }
 0x33f   : > { %v3351_v9 = vadd.f32 %v3287_v34, %v3052_v26 }
 0x340   : > { %v2991_v14 = vpop.f32.mrf.mxu1 }
 0x341   : > { %v3585_v41 = vpop.f32.mrf.mxu3  ;;  %v3053_v45 = vadd.f32 %v2991_v14, %v2851_v3 }
 0x342   : > { %v3649_v50 = vadd.f32 %v3585_v41, %v3351_v9  ;;  %v2856_v9 = vld [vmem:[#allocation2 + $0x58] sm:$0xff] }
 0x343   : > { %3030 = vmatmul.bf16.gmra.mxu1 %v2885_v49  ;;  %3329 = vmatmul.bf16.gmra.mxu2 %v3184_v39  ;;  %v3886_v51 = vpop.f32.mrf.mxu0  ;;  %v2854_v49 = vld [vmem:[#allocation2 + $0x78] sm:$0xff] }
 0x344   : > { %v3947_v56 = vadd.f32 %v3883_v25, %v3649_v50 }
 0x346   : > { %3627 = vmatmul.bf16.gmra.mxu3 %v3482_v42  ;;  %3979 = vst [vmem:[#allocation2 + $0xb8] sm:$0xff] %v3947_v56  ;;  %v3290_v6 = vpop.f32.mrf.mxu2  ;;  %3925 = vmatmul.bf16.gmra.mxu0 %v2886_v57 }
 0x347   : > { %v3352_v53 = vadd.f32 %v3290_v6, %v3053_v45 }
 0x348   : > { %v2993_v11 = vpop.f32.mrf.mxu1 }
 0x349   : > { %v3588_v54 = vpop.f32.mrf.mxu3  ;;  %v3054_v62 = vadd.f32 %v2993_v11, %v2852_v18 }
 0x34a   : > { %v3650_v13 = vadd.f32 %v3588_v54, %v3352_v53 }
 0x34b   : > { %v3888_v61 = vpop.f32.mrf.mxu0 }
 0x34c   : > { %v3948_v21 = vadd.f32 %v3886_v51, %v3650_v13 }
 0x34e   : > { %3980 = vst [vmem:[#allocation2 + $0x60] sm:$0xff] %v3948_v21  ;;  %v3292_v35 = vpop.f32.mrf.mxu2  ;;  %v2858_v21 = vld [vmem:[#allocation2 + $0xc8] sm:$0xff] }
 0x34f   : > { %v3353_v15 = vadd.f32 %v3292_v35, %v3054_v62 }
 0x350   : > { %v2996_v2 = vpop.f32.mrf.mxu1 }
 0x351   : > { %v3590_v17 = vpop.f32.mrf.mxu3  ;;  %v3055_v24 = vadd.f32 %v2996_v2, %v2853_v12 }
 0x352   : > { %v3651_v59 = vadd.f32 %v3590_v17, %v3353_v15  ;;  %v2859_v15 = vld [vmem:[#allocation2 + $0xe0] sm:$0xff] }
 0x353   : > { %3035 = vmatmul.bf16.gmra.mxu1 %v2886_v57  ;;  %3334 = vmatmul.bf16.gmra.mxu2 %v3185_v16  ;;  %v3891_v20 = vpop.f32.mrf.mxu0  ;;  %v2857_v57 = vld [vmem:[#allocation2 + $0x40] sm:$0xff] }
 0x354   : > { %v3949_v1 = vadd.f32 %v3888_v61, %v3651_v59 }
 0x356   : > { %3632 = vmatmul.bf16.gmra.mxu3 %v3483_v19  ;;  %3981 = vst [vmem:[#allocation2 + $0xf0] sm:$0xff] %v3949_v1  ;;  %v3295_v55 = vpop.f32.mrf.mxu2  ;;  %3930 = vmatmul.bf16.gmra.mxu0 %v3781_v32  ;;  %v2860_v32 = vld [vmem:[#allocation2 + $0x90] sm:$0xff] }
 0x357   : > { %v3354_v23 = vadd.f32 %v3295_v55, %v3055_v24 }
 0x358   : > { %v2998_v38 = vpop.f32.mrf.mxu1 }
 0x359   : > { %v3593_v29 = vpop.f32.mrf.mxu3  ;;  %v3056_v40 = vadd.f32 %v2998_v38, %v2854_v49 }
 0x35a   : > { %v3652_v46 = vadd.f32 %v3593_v29, %v3354_v23 }
 0x35b   : > { %v3893_v28 = vpop.f32.mrf.mxu0 }
 0x35c   : > { %v3950_v48 = vadd.f32 %v3891_v20, %v3652_v46 }
 0x35e   : > { %3982 = vst [vmem:[#allocation2 + $0x8] sm:$0xff] %v3950_v48  ;;  %v3297_v60 = vpop.f32.mrf.mxu2  ;;  %v2861_v48 = vld [vmem:[#allocation2 + $0x70] sm:$0xff] }
 0x35f   : > { %v3355_v0 = vadd.f32 %v3297_v60, %v3056_v40 }
 0x360   : > { %v3001_v33 = vpop.f32.mrf.mxu1 }
 0x361   : > { %v3595_v31 = vpop.f32.mrf.mxu3  ;;  %v3057_v8 = vadd.f32 %v3001_v33, %v2855_v10 }
 0x362   : > { %v3653_v36 = vadd.f32 %v3595_v31, %v3355_v0 }
 0x363   : > { %v3896_v7 = vpop.f32.mrf.mxu0 }
 0x364   : > { %v3951_v37 = vadd.f32 %v3893_v28, %v3653_v36 }
 0x366   : > { %3983 = vst [vmem:[#allocation2 + $0x78] sm:$0xff] %v3951_v37  ;;  %v3300_v27 = vpop.f32.mrf.mxu2  ;;  %v2862_v37 = vld [vmem:[#allocation2 + $0xc0] sm:$0xff] }
 0x367   : > { %v3356_v25 = vadd.f32 %v3300_v27, %v3057_v8 }
 0x368   : > { %v3003_v4 = vpop.f32.mrf.mxu1 }
 0x369   : > { %v3598_v26 = vpop.f32.mrf.mxu3  ;;  %v3058_v41 = vadd.f32 %v3003_v4, %v2856_v9 }
 0x36a   : > { %v3654_v63 = vadd.f32 %v3598_v26, %v3356_v25 }
 0x36b   : > { %v3898_v39 = vpop.f32.mrf.mxu0 }
 0x36c   : > { %v3952_v34 = vadd.f32 %v3896_v7, %v3654_v63 }
 0x36e   : > { %3984 = vst [vmem:[#allocation2 + $0x38] sm:$0xff] %v3952_v34  ;;  %v3302_v14 = vpop.f32.mrf.mxu2  ;;  %v2863_v34 = vld [vmem:[#allocation2 + $0xa8] sm:$0xff] }
 0x36f   : > { %v3357_v42 = vadd.f32 %v3302_v14, %v3058_v41 }
 0x370   : > { %v3006_v44 = vpop.f32.mrf.mxu1 }
 0x371   : > { %v3600_v43 = vpop.f32.mrf.mxu3  ;;  %v3059_v51 = vadd.f32 %v3006_v44, %v2857_v57 }
 0x372   : > { %v3655_v50 = vadd.f32 %v3600_v43, %v3357_v42 }
 0x373   : > { %v3901_v3 = vpop.f32.mrf.mxu0 }
 0x374   : > { %v3953_v56 = vadd.f32 %v3898_v39, %v3655_v50 }
 0x376   : > { %3985 = vst [vmem:[#allocation2 + $0x58] sm:$0xff] %v3953_v56  ;;  %v3305_v45 = vpop.f32.mrf.mxu2  ;;  %v2864_v56 = vld [vmem:[#allocation2 + $0xd0] sm:$0xff] }
 0x377   : > { %v3358_v6 = vadd.f32 %v3305_v45, %v3059_v51 }
 0x378   : > { %v3008_v54 = vpop.f32.mrf.mxu1 }
 0x379   : > { %v3603_v53 = vpop.f32.mrf.mxu3  ;;  %v3060_v47 = vadd.f32 %v3008_v54, %v2858_v21 }
 0x37a   : > { %v3656_v11 = vadd.f32 %v3603_v53, %v3358_v6 }
 0x37b   : > { %v3903_v18 = vpop.f32.mrf.mxu0 }
 0x37c   : > { %v3954_v13 = vadd.f32 %v3901_v3, %v3656_v11 }
 0x37e   : > { %3986 = vst [vmem:[#allocation2 + $0x40] sm:$0xff] %v3954_v13  ;;  %v3307_v22 = vpop.f32.mrf.mxu2  ;;  %v2865_v13 = vld [vmem:[#allocation2 + $0x10] sm:$0xff] }
 0x37f   : > { %v3359_v61 = vadd.f32 %v3307_v22, %v3060_v47 }
 0x380   : > { %v3011_v58 = vpop.f32.mrf.mxu1 }
 0x381   : > { %v3605_v62 = vpop.f32.mrf.mxu3  ;;  %v3061_v17 = vadd.f32 %v3011_v58, %v2859_v15 }
 0x382   : > { %v3657_v5 = vadd.f32 %v3605_v62, %v3359_v61 }
 0x383   : > { %v3906_v16 = vpop.f32.mrf.mxu0 }
 0x384   : > { %v3955_v35 = vadd.f32 %v3903_v18, %v3657_v5 }
 0x386   : > { %3987 = vst [vmem:[#allocation2 + $0xc8] sm:$0xff] %v3955_v35  ;;  %v3310_v2 = vpop.f32.mrf.mxu2  ;;  %v2866_v35 = vld [vmem:[#allocation2 + $0x28] sm:$0xff] }
 0x387   : > { %v3360_v19 = vadd.f32 %v3310_v2, %v3061_v17 }
 0x388   : > { %v3013_v30 = vpop.f32.mrf.mxu1 }
 0x389   : > { %v3608_v52 = vpop.f32.mrf.mxu3  ;;  %v3062_v20 = vadd.f32 %v3013_v30, %v2860_v32 }
 0x38a   : > { %v3658_v59 = vadd.f32 %v3608_v52, %v3360_v19 }
 0x38b   : > { %v3908_v12 = vpop.f32.mrf.mxu0 }
 0x38c   : > { %v3956_v1 = vadd.f32 %v3906_v16, %v3658_v59 }
 0x38e   : > { %3988 = vst [vmem:[#allocation2 + $0xe0] sm:$0xff] %v3956_v1  ;;  %v3312_v24 = vpop.f32.mrf.mxu2  ;;  %v2867_v1 = vld [vmem:[#allocation2 + $0xa0] sm:$0xff] }
 0x38f   : > { %v3361_v55 = vadd.f32 %v3312_v24, %v3062_v20 }
 0x390   : > { %v3016_v29 = vpop.f32.mrf.mxu1 }
 0x391   : > { %v3610_v23 = vpop.f32.mrf.mxu3  ;;  %v3063_v28 = vadd.f32 %v3016_v29, %v2861_v48 }
 0x392   : > { %v3659_v38 = vadd.f32 %v3610_v23, %v3361_v55 }
 0x393   : > { %v3911_v49 = vpop.f32.mrf.mxu0 }
 0x394   : > { %v3957_v46 = vadd.f32 %v3908_v12, %v3659_v38 }
 0x396   : > { %3989 = vst [vmem:[#allocation2 + $0x90] sm:$0xff] %v3957_v46  ;;  %v3315_v40 = vpop.f32.mrf.mxu2  ;;  %v2868_v46 = vld [vmem:[#allocation2 + $0xf8] sm:$0xff] }
 0x397   : > { %v3362_v60 = vadd.f32 %v3315_v40, %v3063_v28 }
 0x398   : > { %v3018_v31 = vpop.f32.mrf.mxu1 }
 0x399   : > { %v3613_v0 = vpop.f32.mrf.mxu3  ;;  %v3064_v7 = vadd.f32 %v3018_v31, %v2862_v37 }
 0x39a   : > { %v3660_v33 = vadd.f32 %v3613_v0, %v3362_v60 }
 0x39b   : > { %v3913_v10 = vpop.f32.mrf.mxu0 }
 0x39c   : > { %v3958_v36 = vadd.f32 %v3911_v49, %v3660_v33 }
 0x39e   : > { %3990 = vst [vmem:[#allocation2 + $0x70] sm:$0xff] %v3958_v36  ;;  %v3317_v8 = vpop.f32.mrf.mxu2  ;;  %v2869_v36 = vld [vmem:[#allocation2 + $0x20] sm:$0xff] }
 0x39f   : > { %v3363_v27 = vadd.f32 %v3317_v8, %v3064_v7 }
 0x3a0   : > { %v3021_v26 = vpop.f32.mrf.mxu1 }
 0x3a1   : > { %v3615_v25 = vpop.f32.mrf.mxu3  ;;  %v3065_v39 = vadd.f32 %v3021_v26, %v2863_v34 }
 0x3a2   : > { %v3661_v4 = vadd.f32 %v3615_v25, %v3363_v27 }
 0x3a3   : > { %v3916_v9 = vpop.f32.mrf.mxu0 }
 0x3a4   : > { %v3959_v63 = vadd.f32 %v3913_v10, %v3661_v4 }
 0x3a6   : > { %3991 = vst [vmem:[#allocation2 + $0xc0] sm:$0xff] %v3959_v63  ;;  %v3320_v41 = vpop.f32.mrf.mxu2  ;;  %v2870_v63 = vld [vmem:[#allocation2 + $0x98] sm:$0xff] }
 0x3a7   : > { %v3364_v14 = vadd.f32 %v3320_v41, %v3065_v39 }
 0x3a8   : > { %v3023_v43 = vpop.f32.mrf.mxu1 }
 0x3a9   : > { %v3618_v42 = vpop.f32.mrf.mxu3  ;;  %v3066_v3 = vadd.f32 %v3023_v43, %v2864_v56 }
 0x3aa   : > { %v3662_v44 = vadd.f32 %v3618_v42, %v3364_v14 }
 0x3ab   : > { %v3918_v57 = vpop.f32.mrf.mxu0 }
 0x3ac   : > { %v3960_v50 = vadd.f32 %v3916_v9, %v3662_v44 }
 0x3ae   : > { %3992 = vst [vmem:[#allocation2 + $0xa8] sm:$0xff] %v3960_v50  ;;  %v3322_v51 = vpop.f32.mrf.mxu2 }
 0x3af   : > { %v3365_v45 = vadd.f32 %v3322_v51, %v3066_v3 }
 0x3b0   : > { %v3026_v53 = vpop.f32.mrf.mxu1 }
 0x3b1   : > { %v3620_v6 = vpop.f32.mrf.mxu3  ;;  %v3067_v18 = vadd.f32 %v3026_v53, %v2865_v13 }
 0x3b2   : > { %v3663_v54 = vadd.f32 %v3620_v6, %v3365_v45 }
 0x3b3   : > { %v3921_v21 = vpop.f32.mrf.mxu0 }
 0x3b4   : > { %v3961_v11 = vadd.f32 %v3918_v57, %v3663_v54 }
 0x3b6   : > { %3993 = vst [vmem:[#allocation2 + $0xd0] sm:$0xff] %v3961_v11  ;;  %v3325_v47 = vpop.f32.mrf.mxu2 }
 0x3b7   : > { %v3366_v22 = vadd.f32 %v3325_v47, %v3067_v18 }
 0x3b8   : > { %v3028_v62 = vpop.f32.mrf.mxu1 }
 0x3b9   : > { %v3623_v61 = vpop.f32.mrf.mxu3  ;;  %v3068_v16 = vadd.f32 %v3028_v62, %v2866_v35 }
 0x3ba   : > { %v3664_v58 = vadd.f32 %v3623_v61, %v3366_v22 }
 0x3bb   : > { %v3923_v15 = vpop.f32.mrf.mxu0 }
 0x3bc   : > { %v3962_v5 = vadd.f32 %v3921_v21, %v3664_v58 }
 0x3be   : > { %3994 = vst [vmem:[#allocation2 + $0x10] sm:$0xff] %v3962_v5  ;;  %v3327_v17 = vpop.f32.mrf.mxu2 }
 0x3bf   : > { %v3367_v2 = vadd.f32 %v3327_v17, %v3068_v16 }
 0x3c0   : > { %v3031_v52 = vpop.f32.mrf.mxu1 }
 0x3c1   : > { %v3625_v19 = vpop.f32.mrf.mxu3  ;;  %v3069_v12 = vadd.f32 %v3031_v52, %v2867_v1 }
 0x3c2   : > { %v3665_v30 = vadd.f32 %v3625_v19, %v3367_v2 }
 0x3c3   : > { %v3926_v32 = vpop.f32.mrf.mxu0 }
 0x3c4   : > { %v3963_v59 = vadd.f32 %v3923_v15, %v3665_v30 }
 0x3c6   : > { %3995 = vst [vmem:[#allocation2 + $0x28] sm:$0xff] %v3963_v59  ;;  %v3330_v20 = vpop.f32.mrf.mxu2 }
 0x3c7   : > { %v3368_v24 = vadd.f32 %v3330_v20, %v3069_v12 }
 0x3c8   : > { %v3033_v23 = vpop.f32.mrf.mxu1 }
 0x3c9   : > { %v3628_v55 = vpop.f32.mrf.mxu3  ;;  %v3070_v48 = vadd.f32 %v3033_v23, %v2868_v46 }
 0x3ca   : > { %v3666_v29 = vadd.f32 %v3628_v55, %v3368_v24 }
 0x3cb   : > { %v3928_v28 = vpop.f32.mrf.mxu0 }
 0x3cc   : > { %v3964_v38 = vadd.f32 %v3926_v32, %v3666_v29 }
 0x3ce   : > { %3996 = vst [vmem:[#allocation2 + $0xa0] sm:$0xff] %v3964_v38  ;;  %v3332_v49 = vpop.f32.mrf.mxu2 }
 0x3cf   : > { %v3369_v40 = vadd.f32 %v3332_v49, %v3070_v48 }
 0x3d0   : > { %v3036_v0 = vpop.f32.mrf.mxu1 }
 0x3d1   : > { %v3630_v60 = vpop.f32.mrf.mxu3  ;;  %v3071_v37 = vadd.f32 %v3036_v0, %v2869_v36 }
 0x3d2   : > { %v3667_v31 = vadd.f32 %v3630_v60, %v3369_v40 }
 0x3d3   : > { %v3931_v27 = vpop.f32.mrf.mxu0 }
 0x3d4   : > { %v3965_v33 = vadd.f32 %v3928_v28, %v3667_v31 }
 0x3d6   : > { %3997 = vst [vmem:[#allocation2 + $0xf8] sm:$0xff] %v3965_v33  ;;  %v3335_v10 = vpop.f32.mrf.mxu2 }
 0x3d7   : > { %v3370_v7 = vadd.f32 %v3335_v10, %v3071_v37 }
 0x3d8   : > { %v3038_v26 = vpop.f32.mrf.mxu1 }
 0x3d9   : > { %v3633_v8 = vpop.f32.mrf.mxu3  ;;  %v3072_v34 = vadd.f32 %v3038_v26, %v2870_v63 }
 0x3da   : > { %v3668_v25 = vadd.f32 %v3633_v8, %v3370_v7 }
 0x3db   : > { %v3933_v42 = vpop.f32.mrf.mxu0 }
 0x3dc   : > { %v3966_v4 = vadd.f32 %v3931_v27, %v3668_v25 }
 0x3de   : > { %3998 = vst [vmem:[#allocation2 + $0x20] sm:$0xff] %v3966_v4  ;;  %v3337_v9 = vpop.f32.mrf.mxu2 }
 0x3df   : > { %v3371_v39 = vadd.f32 %v3337_v9, %v3072_v34 }
 0x3e1   : > { %v3635_v41 = vpop.f32.mrf.mxu3 }
 0x3e2   : > { %v3669_v14 = vadd.f32 %v3635_v41, %v3371_v39  ;;  %4003 = sbr.rel (%p4808_p5) target bundleno = 1034 (0x40a), region = 127 }
 0x3e4   : > { %v3967_v43 = vadd.f32 %v3933_v42, %v3669_v14 }
 0x3e6   : > { %3999 = vst [vmem:[#allocation2 + $0x98] sm:$0xff] %v3967_v43 }
 0x3e7   : > { %v4004_v44 = vld [vmem:[#allocation2 + $0xb0] sm:$0xff]  ;;  %v5954_v50 = vld [vmem:[%s6129_s4] ss:$0 sm:$0xff]  ;;  %v4006_v57 = vld [vmem:[#allocation2 + $0xd8] sm:$0xff] }
 0x3e8   : > { %v4005_v56 = vld [vmem:[#allocation2] sm:$0xff]  ;;  %v4007_v3 = vld [vmem:[#allocation2 + $0x18] sm:$0xff]  ;;  %v4040_v51 = vadd.f32 %v5954_v50, %v4004_v44  ;;  %v4042_v6 = vadd.f32 %v5954_v50, %v4006_v57  ;;  %v4008_v53 = vld [vmem:[#allocation2 + $0x50] sm:$0xff] }
 0x3e9   : > { %v4041_v45 = vadd.f32 %v5954_v50, %v4005_v56  ;;  %v4009_v54 = vld [vmem:[#allocation2 + $0x68] sm:$0xff]  ;;  %v4043_v11 = vadd.f32 %v5954_v50, %v4007_v3  ;;  %v4010_v13 = vld [vmem:[#allocation2 + $0x30] sm:$0xff]  ;;  %v4044_v21 = vadd.f32 %v5954_v50, %v4008_v53  ;;  %v4012_v22 = vld [vmem:[#allocation2 + $0x80] sm:$0xff] }
 0x3ea   : > { %4072 = vst [vmem:[%s5509_s20] sm:$0xff] %v4040_v51  ;;  %v4011_v18 = vld [vmem:[#allocation2 + $0x48] sm:$0xff]  ;;  %v4045_v47 = vadd.f32 %v5954_v50, %v4009_v54  ;;  %v4046_v61 = vadd.f32 %v5954_v50, %v4010_v13  ;;  %v4048_v35 = vadd.f32 %v5954_v50, %v4012_v22  ;;  %v4015_v15 = vld [vmem:[#allocation2 + $0xb8] sm:$0xff]  ;;  %v4016_v17 = vld [vmem:[#allocation2 + $0x60] sm:$0xff] }
 0x3eb   : > { %4073 = vst [vmem:[%s5509_s20 + $0x8] sm:$0xff] %v4041_v45  ;;  %v4013_v62 = vld [vmem:[#allocation2 + $0x88] sm:$0xff]  ;;  %v4047_v58 = vadd.f32 %v5954_v50, %v4011_v18  ;;  %v4017_v19 = vld [vmem:[#allocation2 + $0xf0] sm:$0xff]  ;;  %v4051_v52 = vadd.f32 %v5954_v50, %v4015_v15  ;;  %v4052_v59 = vadd.f32 %v5954_v50, %v4016_v17  ;;  %v4019_v1 = vld [vmem:[#allocation2 + $0x78] sm:$0xff] }
 0x3ec   : > { %4074 = vst [vmem:[%s5509_s20 + $0x10] sm:$0xff] %v4042_v6  ;;  %v4014_v5 = vld [vmem:[#allocation2 + $0xe8] sm:$0xff]  ;;  %v4049_v16 = vadd.f32 %v5954_v50, %v4013_v62  ;;  %v4053_v32 = vadd.f32 %v5954_v50, %v4017_v19  ;;  %v4020_v12 = vld [vmem:[#allocation2 + $0x38] sm:$0xff]  ;;  %v4055_v55 = vadd.f32 %v5954_v50, %v4019_v1  ;;  %v4022_v23 = vld [vmem:[#allocation2 + $0x40] sm:$0xff] }
 0x3ed   : > { %4075 = vst [vmem:[%s5509_s20 + $0x18] sm:$0xff] %v4043_v11  ;;  %v4050_v2 = vadd.f32 %v5954_v50, %v4014_v5  ;;  %v4018_v30 = vld [vmem:[#allocation2 + $0x8] sm:$0xff]  ;;  %v4021_v24 = vld [vmem:[#allocation2 + $0x58] sm:$0xff]  ;;  %v4056_v29 = vadd.f32 %v5954_v50, %v4020_v12  ;;  %v4024_v48 = vld [vmem:[#allocation2 + $0xe0] sm:$0xff]  ;;  %v4058_v49 = vadd.f32 %v5954_v50, %v4022_v23 }
 0x3ee   : > { %4076 = vst [vmem:[%s5509_s20 + $0x20] sm:$0xff] %v4044_v21  ;;  %v4054_v20 = vadd.f32 %v5954_v50, %v4018_v30  ;;  %v4023_v38 = vld [vmem:[#allocation2 + $0xc8] sm:$0xff]  ;;  %v4057_v46 = vadd.f32 %v5954_v50, %v4021_v24  ;;  %v4025_v28 = vld [vmem:[#allocation2 + $0x90] sm:$0xff]  ;;  %v4060_v0 = vadd.f32 %v5954_v50, %v4024_v48  ;;  %v4027_v31 = vld [vmem:[#allocation2 + $0xc0] sm:$0xff] }
 0x3ef   : > { %4077 = vst [vmem:[%s5509_s20 + $0x28] sm:$0xff] %v4045_v47  ;;  %v4059_v40 = vadd.f32 %v5954_v50, %v4023_v38  ;;  %v4026_v60 = vld [vmem:[#allocation2 + $0x70] sm:$0xff]  ;;  %v4061_v33 = vadd.f32 %v5954_v50, %v4025_v28  ;;  %v4028_v36 = vld [vmem:[#allocation2 + $0xa8] sm:$0xff]  ;;  %v4063_v7 = vadd.f32 %v5954_v50, %v4027_v31  ;;  %v4032_v4 = vld [vmem:[#allocation2 + $0xa0] sm:$0xff] }
 0x3f0   : > { %4078 = vst [vmem:[%s5509_s20 + $0x30] sm:$0xff] %v4046_v61  ;;  %v4062_v37 = vadd.f32 %v5954_v50, %v4026_v60  ;;  %v4029_v10 = vld [vmem:[#allocation2 + $0xd0] sm:$0xff]  ;;  %v4064_v27 = vadd.f32 %v5954_v50, %v4028_v36  ;;  %v4031_v25 = vld [vmem:[#allocation2 + $0x28] sm:$0xff]  ;;  %v4033_v34 = vld [vmem:[#allocation2 + $0xf8] sm:$0xff]  ;;  %v4068_v41 = vadd.f32 %v5954_v50, %v4032_v4 }
 0x3f1   : > { %4079 = vst [vmem:[%s5509_s20 + $0x38] sm:$0xff] %v4047_v58  ;;  %v4030_v8 = vld [vmem:[#allocation2 + $0x10] sm:$0xff]  ;;  %v4065_v26 = vadd.f32 %v5954_v50, %v4029_v10  ;;  %v4067_v9 = vadd.f32 %v5954_v50, %v4031_v25  ;;  %v4034_v39 = vld [vmem:[#allocation2 + $0x20] sm:$0xff]  ;;  %v4035_v14 = vld [vmem:[#allocation2 + $0x98] sm:$0xff]  ;;  %v4069_v42 = vadd.f32 %v5954_v50, %v4033_v34 }
 0x3f2   : > { %4080 = vst [vmem:[%s5509_s20 + $0x40] sm:$0xff] %v4048_v35  ;;  %v4066_v63 = vadd.f32 %v5954_v50, %v4030_v8  ;;  %v4070_v43 = vadd.f32 %v5954_v50, %v4034_v39  ;;  %v4071_v44 = vadd.f32 %v5954_v50, %v4035_v14 }
 0x3f3   : > { %4081 = vst [vmem:[%s5509_s20 + $0x48] sm:$0xff] %v4049_v16 }
 0x3f4   : > { %4082 = vst [vmem:[%s5509_s20 + $0x50] sm:$0xff] %v4050_v2 }
 0x3f5   : > { %4083 = vst [vmem:[%s5509_s20 + $0x58] sm:$0xff] %v4051_v52 }
 0x3f6   : > { %4084 = vst [vmem:[%s5509_s20 + $0x60] sm:$0xff] %v4052_v59 }
 0x3f7   : > { %4085 = vst [vmem:[%s5509_s20 + $0x68] sm:$0xff] %v4053_v32 }
 0x3f8   : > { %4086 = vst [vmem:[%s5509_s20 + $0x70] sm:$0xff] %v4054_v20 }
 0x3f9   : > { %4087 = vst [vmem:[%s5509_s20 + $0x78] sm:$0xff] %v4055_v55 }
 0x3fa   : > { %4088 = vst [vmem:[%s5509_s20 + $0x80] sm:$0xff] %v4056_v29 }
 0x3fb   : > { %4089 = vst [vmem:[%s5509_s20 + $0x88] sm:$0xff] %v4057_v46 }
 0x3fc   : > { %4090 = vst [vmem:[%s5509_s20 + $0x90] sm:$0xff] %v4058_v49 }
 0x3fd   : > { %4091 = vst [vmem:[%s5509_s20 + $0x98] sm:$0xff] %v4059_v40 }
 0x3fe   : > { %4092 = vst [vmem:[%s5509_s20 + $0xa0] sm:$0xff] %v4060_v0 }
 0x3ff   : > { %4093 = vst [vmem:[%s5509_s20 + $0xa8] sm:$0xff] %v4061_v33 }
 0x400   : > { %4094 = vst [vmem:[%s5509_s20 + $0xb0] sm:$0xff] %v4062_v37 }
 0x401   : > { %4095 = vst [vmem:[%s5509_s20 + $0xb8] sm:$0xff] %v4063_v7 }
 0x402   : > { %4096 = vst [vmem:[%s5509_s20 + $0xc0] sm:$0xff] %v4064_v27 }
 0x403   : > { %4097 = vst [vmem:[%s5509_s20 + $0xc8] sm:$0xff] %v4065_v26 }
 0x404   : > { %4098 = vst [vmem:[%s5509_s20 + $0xd0] sm:$0xff] %v4066_v63 }
 0x405   : > { %4099 = vst [vmem:[%s5509_s20 + $0xd8] sm:$0xff] %v4067_v9 }
 0x406   : > { %4100 = vst [vmem:[%s5509_s20 + $0xe0] sm:$0xff] %v4068_v41 }
 0x407   : > { %4101 = vst [vmem:[%s5509_s20 + $0xe8] sm:$0xff] %v4069_v42 }
 0x408   : > { %4102 = vst [vmem:[%s5509_s20 + $0xf0] sm:$0xff] %v4070_v43 }
 0x409   : > { %4103 = vst [vmem:[%s5509_s20 + $0xf8] sm:$0xff] %v4071_v44 }
 0x40a PF: > { %4110 = sbr.rel (!%p5252_p12) target bundleno = 1070 (0x42e), region = 131  ;;  %v4205_v50 = vld [vmem:[%s5509_s20] sm:$0xff] (%p5252_p12)  ;;  %v4207_v56 = vld [vmem:[%s5509_s20 + $0x8] sm:$0xff] (%p5252_p12)  ;;  %v4209_v57 = vld [vmem:[%s5509_s20 + $0x10] sm:$0xff] (%p5252_p12) }
 0x40b   : > { %s4810_s18 = smul.u32 (%p5252_p12), 768, %s5113_s25  ;;  %v4211_v3 = vld [vmem:[%s5509_s20 + $0x18] sm:$0xff] (%p5252_p12)  ;;  %v4213_v51 = vld [vmem:[%s5509_s20 + $0x20] sm:$0xff] (%p5252_p12)  ;;  %v4215_v45 = vld [vmem:[%s5509_s20 + $0x28] sm:$0xff] (%p5252_p12) }
 0x40c   : > { %v4217_v6 = vld [vmem:[%s5509_s20 + $0x30] sm:$0xff] (%p5252_p12)  ;;  %v4219_v53 = vld [vmem:[%s5509_s20 + $0x38] sm:$0xff] (%p5252_p12)  ;;  %v4221_v54 = vld [vmem:[%s5509_s20 + $0x40] sm:$0xff] (%p5252_p12) }
 0x40d   : > { %s6028_s27 = scalar_lea.vmem (%p5252_p12), %s6130_s5, %s4810_s18  ;;  %v4223_v11 = vld [vmem:[%s5509_s20 + $0x48] sm:$0xff] (%p5252_p12)  ;;  %v4225_v13 = vld [vmem:[%s5509_s20 + $0x50] sm:$0xff] (%p5252_p12)  ;;  %v4227_v21 = vld [vmem:[%s5509_s20 + $0x58] sm:$0xff] (%p5252_p12) }
 0x40e   : > { %4811 = vst [vmem:[%s6028_s27 + $0x10] sm:$0xff] (%p5252_p12), %v4205_v50  ;;  %v4229_v18 = vld [vmem:[%s5509_s20 + $0x60] sm:$0xff] (%p5252_p12)  ;;  %v4231_v47 = vld [vmem:[%s5509_s20 + $0x68] sm:$0xff] (%p5252_p12)  ;;  %v4233_v22 = vld [vmem:[%s5509_s20 + $0x70] sm:$0xff] (%p5252_p12) }
 0x40f   : > { %4812 = vst [vmem:[%s6028_s27 + $0x28] sm:$0xff] %v4207_v56  ;;  %v4235_v61 = vld [vmem:[%s5509_s20 + $0x78] sm:$0xff]  ;;  %v4237_v62 = vld [vmem:[%s5509_s20 + $0x80] sm:$0xff]  ;;  %v4239_v58 = vld [vmem:[%s5509_s20 + $0x88] sm:$0xff] }
 0x410   : > { %4813 = vst [vmem:[%s6028_s27 + $0x40] sm:$0xff] %v4209_v57  ;;  %v4241_v5 = vld [vmem:[%s5509_s20 + $0x90] sm:$0xff]  ;;  %v4243_v35 = vld [vmem:[%s5509_s20 + $0x98] sm:$0xff]  ;;  %v4245_v15 = vld [vmem:[%s5509_s20 + $0xa0] sm:$0xff] }
 0x411   : > { %4814 = vst [vmem:[%s6028_s27 + $0x58] sm:$0xff] %v4211_v3  ;;  %v4247_v16 = vld [vmem:[%s5509_s20 + $0xa8] sm:$0xff]  ;;  %v4249_v17 = vld [vmem:[%s5509_s20 + $0xb0] sm:$0xff]  ;;  %v4251_v2 = vld [vmem:[%s5509_s20 + $0xb8] sm:$0xff] }
 0x412   : > { %4815 = vst [vmem:[%s6028_s27 + $0x70] sm:$0xff] %v4213_v51  ;;  %v4253_v19 = vld [vmem:[%s5509_s20 + $0xc0] sm:$0xff]  ;;  %v4255_v52 = vld [vmem:[%s5509_s20 + $0xc8] sm:$0xff]  ;;  %v4257_v30 = vld [vmem:[%s5509_s20 + $0xd0] sm:$0xff] }
 0x413   : > { %4816 = vst [vmem:[%s6028_s27 + $0x88] sm:$0xff] %v4215_v45  ;;  %v4259_v59 = vld [vmem:[%s5509_s20 + $0xd8] sm:$0xff]  ;;  %v4261_v1 = vld [vmem:[%s5509_s20 + $0xe0] sm:$0xff]  ;;  %v4263_v32 = vld [vmem:[%s5509_s20 + $0xe8] sm:$0xff] }
 0x414   : > { %4817 = vst [vmem:[%s6028_s27 + $0xa0] sm:$0xff] %v4217_v6  ;;  %v4265_v12 = vld [vmem:[%s5509_s20 + $0xf0] sm:$0xff]  ;;  %v4267_v20 = vld [vmem:[%s5509_s20 + $0xf8] sm:$0xff] }
 0x415   : > { %4818 = vst [vmem:[%s6028_s27 + $0xb8] sm:$0xff] %v4219_v53 }
 0x416   : > { %4819 = vst [vmem:[%s6028_s27 + $0xd0] sm:$0xff] %v4221_v54 }
 0x417   : > { %4820 = vst [vmem:[%s6028_s27 + $0xe8] sm:$0xff] %v4223_v11 }
 0x418   : > { %4821 = vst [vmem:[%s6028_s27 + $0x100] sm:$0xff] %v4225_v13 }
 0x419   : > { %4822 = vst [vmem:[%s6028_s27 + $0x118] sm:$0xff] %v4227_v21 }
 0x41a   : > { %4823 = vst [vmem:[%s6028_s27 + $0x130] sm:$0xff] %v4229_v18 }
 0x41b   : > { %4824 = vst [vmem:[%s6028_s27 + $0x148] sm:$0xff] %v4231_v47 }
 0x41c   : > { %4825 = vst [vmem:[%s6028_s27 + $0x160] sm:$0xff] %v4233_v22 }
 0x41d   : > { %4826 = vst [vmem:[%s6028_s27 + $0x178] sm:$0xff] %v4235_v61 }
 0x41e   : > { %4827 = vst [vmem:[%s6028_s27 + $0x190] sm:$0xff] %v4237_v62 }
 0x41f   : > { %4828 = vst [vmem:[%s6028_s27 + $0x1a8] sm:$0xff] %v4239_v58 }
 0x420   : > { %4829 = vst [vmem:[%s6028_s27 + $0x1c0] sm:$0xff] %v4241_v5 }
 0x421   : > { %4830 = vst [vmem:[%s6028_s27 + $0x1d8] sm:$0xff] %v4243_v35 }
 0x422   : > { %4831 = vst [vmem:[%s6028_s27 + $0x1f0] sm:$0xff] %v4245_v15 }
 0x423   : > { %4832 = vst [vmem:[%s6028_s27 + $0x208] sm:$0xff] %v4247_v16 }
 0x424   : > { %4833 = vst [vmem:[%s6028_s27 + $0x220] sm:$0xff] %v4249_v17 }
 0x425   : > { %4834 = vst [vmem:[%s6028_s27 + $0x238] sm:$0xff] %v4251_v2 }
 0x426   : > { %4835 = vst [vmem:[%s6028_s27 + $0x250] sm:$0xff] %v4253_v19 }
 0x427   : > { %4836 = vst [vmem:[%s6028_s27 + $0x268] sm:$0xff] %v4255_v52 }
 0x428   : > { %4837 = vst [vmem:[%s6028_s27 + $0x280] sm:$0xff] %v4257_v30 }
 0x429   : > { %4838 = vst [vmem:[%s6028_s27 + $0x298] sm:$0xff] %v4259_v59 }
 0x42a   : > { %4839 = vst [vmem:[%s6028_s27 + $0x2b0] sm:$0xff] %v4261_v1 }
 0x42b   : > { %4840 = vst [vmem:[%s6028_s27 + $0x2c8] sm:$0xff] %v4263_v32 }
 0x42c   : > { %4841 = vst [vmem:[%s6028_s27 + $0x2e0] sm:$0xff] %v4265_v12 }
 0x42d   : > { %4842 = vst [vmem:[%s6028_s27 + $0x2f8] sm:$0xff] %v4267_v20 }
 0x42e PF: > { %s15_s28 = sadd.s32 1, %s5125_s28   ;;  %s6146_s24 = sld [smem:[#allocation7_spill]] }
 0x42f   : > { %p12_p6 = scmp.ge.s32.totalorder %s15_s28, 6   ;;  %s6147_s25 = sld [smem:[#allocation8_spill]] }
 0x430   : > { %s6148_s26 = sld [smem:[#allocation9_spill]]  ;;  %s6150_s18 = smov %s5089_s19 }
 0x431   : > { %s6149_s27 = sld [smem:[#allocation10_spill]]  ;;  %s6151_s19 = smov %s5250_s17 }
 0x432   : > { %s6152_s20 = smov %s5097_s21  ;;  %s6153_s21 = smov %s5233_s11 }
 0x433   : > { %s6154_s22 = smov %s5105_s23  ;;  %s6155_s23 = smov %s5247_s16 }
 0x434   :  { %14 = sbr.rel (!%p12_p6) target bundleno = 9 (0x9), region = 224 }

</bundles_post_ra>
